<compile_context>
chip_gen: v7x
topology: tpu7x:2x2x1
jax: 0.10.0
libtpu: 0.0.40
codegen_flags: <defaults>
</compile_context>

<pallas_src>
import functools

import jax
import jax.numpy as jnp
from jax import lax
from jax.experimental import pallas as pl
from jax.experimental.pallas import tpu as pltpu

EPS = 1e-5


# ------------------------------ helpers --------------------------------------

@functools.lru_cache(maxsize=1)
def _vmem_limit_bytes():
    """~75% of physical VMEM: ~48 MiB on v7x, ~96 MiB on v5e/v6e."""
    try:
        cap = int(pltpu.get_tpu_info().vmem_capacity_bytes)
        return max(32 * 1024 * 1024, min(3 * cap // 4, 96 * 1024 * 1024))
    except Exception:
        return 32 * 1024 * 1024


def _pick_batch_block(n, ohw, max_rows=512):
    """Images per grid step: fill the MXU M dimension while keeping >=2 grid
    steps (v7x has 2 TensorCores + double-buffered pipelining) and bounding the
    per-step VMEM block."""
    best = 1
    for cand in range(1, n + 1):
        if n % cand != 0:
            continue
        if n // cand < 2:          # keep at least 2 grid steps when possible
            continue
        if cand * ohw > max_rows:  # bound accumulator / block size
            continue
        best = cand
    return best


def _compiler_params():
    return pltpu.CompilerParams(dimension_semantics=("parallel",),
                                vmem_limit_bytes=_vmem_limit_bytes())


# ----------------------------- Pallas kernels --------------------------------

def _fused_enc_dec_kernel(x_ref, we_ref, be_ref, wd_ref, bd_ref,
                          y_ref, s_ref, mid_ref):
    """LeakyReLU(0.2) -> Conv2d(4x4,s2,p1)+b -> ReLU -> ConvT2d(4x4,s2,p1)+b
    for one block of images.  Also emits BatchNorm [sum; sumsq] partials.

    x_ref  : (4, b, oh+1, ow+1, cin)  2x2 input phases of the zero-padded image(s), f32
    we_ref : (4, 4, cin, cout)        encode taps indexed [kh, kw], MXU dtype
    be_ref : (1, cout)                encode bias, f32
    wd_ref : (4, 4, cout, cin)        decode taps indexed [2*rp+rq, 2*u+v], MXU dtype
    bd_ref : (1, cin)                 decode bias, f32
    y_ref  : (4, b, oh, ow, cin)      decode output phases (store dtype)
    s_ref  : (1, 2, cin)              per-step [sum; sumsq] partials, f32
    mid_ref: (b, oh+2, ow+2, cout)    VMEM scratch: zero-bordered `mid`
    """
    b = x_ref.shape[1]
    ph, pw = x_ref.shape[2], x_ref.shape[3]
    oh, ow = ph - 1, pw - 1
    cin = x_ref.shape[4]
    cout = we_ref.shape[3]
    rows = b * oh * ow
    mxu_dtype = we_ref.dtype

    # ---------------- encode: 16 per-tap matmuls, f32 accumulation -----------
    acc = jnp.zeros((rows, cout), jnp.float32)
    for p in range(4):                                   # input spatial phase (r, s)
        r, s = p // 2, p % 2
        xphase = x_ref[p]                                # (b, ph, pw, cin), f32
        xphase = jnp.where(xphase >= 0, xphase, 0.2 * xphase)   # LeakyReLU(0.2)
        xphase = xphase.astype(mxu_dtype)                # cast only at MXU boundary
        for u in range(2):
            for v in range(2):
                kh, kw = 2 * u + r, 2 * v + s            # the 4x4 tap fed by this phase
                tap = xphase[:, u:u + oh, v:v + ow, :].reshape(rows, cin)
                acc = acc + jnp.dot(tap, we_ref[kh, kw],
                                    preferred_element_type=jnp.float32)
    mid = jnp.maximum(acc + be_ref[...], 0.0).astype(mxu_dtype)   # bias + ReLU

    # `mid` never leaves VMEM: zero-bordered scratch feeds the transposed conv.
    mid_ref[...] = jnp.zeros_like(mid_ref)
    mid_ref[:, 1:1 + oh, 1:1 + ow, :] = mid.reshape(b, oh, ow, cout)

    # -------------- decode: 4 output phases x 4 non-zero taps ----------------
    s_loc = jnp.zeros((1, cin), jnp.float32)
    ssq_loc = jnp.zeros((1, cin), jnp.float32)
    for rp in range(2):                                  # output-row parity
        for rq in range(2):                              # output-col parity
            acc2 = jnp.zeros((rows, cin), jnp.float32)
            for u in range(2):
                for v in range(2):
                    tap = mid_ref[:, rp + u:rp + u + oh, rq + v:rq + v + ow, :]
                    acc2 = acc2 + jnp.dot(tap.reshape(rows, cout),
                                          wd_ref[2 * rp + rq, 2 * u + v],
                                          preferred_element_type=jnp.float32)
            yp = acc2 + bd_ref[...]                      # no activation on y
            s_loc = s_loc + jnp.sum(yp, axis=0, keepdims=True)
            ssq_loc = ssq_loc + jnp.sum(yp * yp, axis=0, keepdims=True)
            y_ref[2 * rp + rq] = yp.reshape(b, oh, ow, cin).astype(y_ref.dtype)

    s_ref[0, 0:1, :] = s_loc
    s_ref[0, 1:2, :] = ssq_loc


def _finalize_kernel(x_ref, y_ref, sc_ref, sh_ref, o_ref):
    """BatchNorm pass-2 + 2x2 phase interleave + NCHW relayout + skip concat.

    x_ref : (1, cin, h*w)        original input image, flat spatial, f32
    y_ref : (4, 1, oh, ow, cin)  decode output phases (store dtype)
    sc_ref: (1, cin)             gamma * rsqrt(var + eps), f32
    sh_ref: (1, cin)             beta - mean * scale, f32
    o_ref : (1, 2*cin, h*w)      final output slab (lane-dense last dim)
    """
    oh, ow, cin = y_ref.shape[2], y_ref.shape[3], y_ref.shape[4]

    # skip connection: out[:, :cin] = x (verbatim copy of the original input)
    o_ref[0, 0:cin, :] = x_ref[0]

    # BatchNorm pass 2: one FMA per element, lane-broadcast over cin.
    y = y_ref[...].reshape(4, oh, ow, cin).astype(jnp.float32)
    yn = y * sc_ref[...] + sh_ref[...]

    # Interleave the 4 phases: t[a, rp, b, rq, c] = yn[2*rp+rq][a, b, c].
    row0 = jnp.concatenate([yn[0][:, :, None, :], yn[1][:, :, None, :]], axis=2)
    row1 = jnp.concatenate([yn[2][:, :, None, :], yn[3][:, :, None, :]], axis=2)
    t = jnp.concatenate([row0[:, None], row1[:, None]], axis=1)   # (oh, 2, ow, 2, cin)
    # Flat spatial index (2a+rp)*w + (2b+rq) is exactly the row-major flatten of
    # (a, rp, b, rq); a single 2D transpose makes it channels-first.
    y_cf = t.reshape(4 * oh * ow, cin).T                           # (cin, h*w)
    o_ref[0, cin:2 * cin, :] = y_cf


# ------------------------------- forward --------------------------------------

def innermost_block_forward(x_nchw, params, *, mxu_dtype=jnp.bfloat16,
                            fuse_finalize=True):
    n, cin, h, w = x_nchw.shape
    assert h % 2 == 0 and w % 2 == 0, "stride-2 block expects even spatial dims"
    cout = params["w_enc"].shape[0]
    oh, ow = h // 2, w // 2
    ph, pw = oh + 1, ow + 1

    b_blk = _pick_batch_block(n, oh * ow)
    nsteps = n // b_blk

    # --- encode input prep: NHWC, zero-pad, split into the 2x2 spatial phases.
    # x is the smallest tensor of the block, so this stays a cheap XLA pass.
    # TODO(synk): pull the phase extraction into the kernel (strided ref reads of
    # the raw NCHW image) to drop this last wrapper-side relayout of x.
    x_nhwc = jnp.transpose(x_nchw, (0, 2, 3, 1))
    xp = jnp.pad(x_nhwc, ((0, 0), (1, 1), (1, 1), (0, 0)))
    xph = jnp.transpose(xp.reshape(n, ph, 2, pw, 2, cin),
                        (2, 4, 0, 1, 3, 5)).reshape(4, n, ph, pw, cin)

    # encode weights as per-tap (cin, cout) matrices
    w_enc = jnp.transpose(params["w_enc"], (2, 3, 1, 0)).astype(mxu_dtype)  # (4,4,cin,cout)
    b_enc = params["b_enc"].reshape(1, cout).astype(jnp.float32)
    # ConvTranspose as a stride-1 conv over the zero-dilated input: flipped,
    # in/out-swapped kernel, regrouped by output phase so that
    #   w_dec_ph[2*rp+rq, 2*u+v] = flip(W)^T[2*u+rp, 2*v+rq]
    w2 = jnp.transpose(params["w_dec"][:, :, ::-1, ::-1], (2, 3, 0, 1))     # (4,4,cout,cin)
    w_dec_ph = jnp.transpose(w2.reshape(2, 2, 2, 2, cout, cin),
                             (1, 3, 0, 2, 4, 5)).reshape(4, 4, cout, cin).astype(mxu_dtype)
    b_dec = params["b_dec"].reshape(1, cin).astype(jnp.float32)

    cparams = _compiler_params()

    # --- fused encode + decode + BatchNorm pass-1 (mid stays in VMEM) --------
    y_ph, stats = pl.pallas_call(
        _fused_enc_dec_kernel,
        out_shape=(jax.ShapeDtypeStruct((4, n, oh, ow, cin), mxu_dtype),
                   jax.ShapeDtypeStruct((nsteps, 2, cin), jnp.float32)),
        grid=(nsteps,),
        in_specs=[
            pl.BlockSpec((4, b_blk, ph, pw, cin), lambda i: (0, i, 0, 0, 0)),
            pl.BlockSpec((4, 4, cin, cout), lambda i: (0, 0, 0, 0)),   # VMEM-resident
            pl.BlockSpec((1, cout), lambda i: (0, 0)),
            pl.BlockSpec((4, 4, cout, cin), lambda i: (0, 0, 0, 0)),
            pl.BlockSpec((1, cin), lambda i: (0, 0)),
        ],
        out_specs=(
            pl.BlockSpec((4, b_blk, oh, ow, cin), lambda i: (0, i, 0, 0, 0)),
            pl.BlockSpec((1, 2, cin), lambda i: (i, 0, 0)),
        ),
        scratch_shapes=[pltpu.VMEM((b_blk, oh + 2, ow + 2, cout), mxu_dtype)],
        compiler_params=cparams,
    )(xph, w_enc, b_enc, w_dec_ph, b_dec)

    # --- BatchNorm (training-mode batch statistics): finalize scale / shift --
    s = jnp.sum(stats, axis=0)                               # (2, cin)
    count = jnp.asarray(n * h * w, jnp.float32)
    mean = s[0] / count
    var = jnp.maximum(s[1] / count - mean * mean, 0.0)       # biased variance
    scale = params["gamma"] * lax.rsqrt(var + EPS)
    shift = params["beta"] - mean * scale

    if fuse_finalize:
        # --- BN pass-2 + phase interleave + NCHW relayout + skip concat, fused.
        x_flat = x_nchw.reshape(n, cin, h * w)               # layout-free reshape
        out_flat = pl.pallas_call(
            _finalize_kernel,
            out_shape=jax.ShapeDtypeStruct((n, 2 * cin, h * w), jnp.float32),
            grid=(n,),
            in_specs=[
                pl.BlockSpec((1, cin, h * w), lambda i: (i, 0, 0)),
                pl.BlockSpec((4, 1, oh, ow, cin), lambda i: (0, i, 0, 0, 0)),
                pl.BlockSpec((1, cin), lambda i: (0, 0)),
                pl.BlockSpec((1, cin), lambda i: (0, 0)),
            ],
            out_specs=pl.BlockSpec((1, 2 * cin, h * w), lambda i: (i, 0, 0)),
            compiler_params=cparams,
        )(x_flat, y_ph, scale.reshape(1, cin), shift.reshape(1, cin))
        return out_flat.reshape(n, 2 * cin, h, w)            # layout-free reshape

    # Portability fallback: same math as the fused finalize, done by XLA.
    yn = y_ph.astype(jnp.float32) * scale + shift            # (4, n, oh, ow, cin)
    y6 = yn.reshape(2, 2, n, oh, ow, cin)
    y_nchw = jnp.transpose(y6, (2, 5, 3, 0, 4, 1)).reshape(n, cin, h, w)
    return jnp.concatenate([x_nchw, y_nchw], axis=1)


# ------------------------- params & pure-JAX reference ------------------------

def init_params(key, cin, cout):
    ks = jax.random.split(key, 4)
    std = 0.02
    return {
        "w_enc": std * jax.random.normal(ks[0], (cout, cin, 4, 4), jnp.float32),
        "b_enc": 0.01 * jax.random.normal(ks[1], (cout,), jnp.float32),
        # ConvTranspose2d weight shape = (in_ch=cout, out_ch=cin, 4, 4)
        "w_dec": 0.05 * jax.random.normal(ks[2], (cout, cin, 4, 4), jnp.float32),
        "b_dec": 0.01 * jax.random.normal(ks[3], (cin,), jnp.float32),
        # decodenorm: weight ~ N(0, 0.02), bias defaults to zeros
        "gamma": std * jax.random.normal(jax.random.PRNGKey(42), (cin,), jnp.float32),
        "beta": jnp.zeros((cin,), jnp.float32),
    }


def reference_forward(x, params):
    lr = jnp.where(x >= 0, x, 0.2 * x)
    mid = lax.conv_general_dilated(lr, params["w_enc"], (2, 2), [(1, 1), (1, 1)],
                                   dimension_numbers=("NCHW", "OIHW", "NCHW"))
    mid = jnp.maximum(mid + params["b_enc"][None, :, None, None], 0.0)
    w_t = jnp.transpose(params["w_dec"], (1, 0, 2, 3))[:, :, ::-1, ::-1]
    y = lax.conv_general_dilated(mid, w_t, (1, 1), [(2, 2), (2, 2)],
                                 lhs_dilation=(2, 2),
                                 dimension_numbers=("NCHW", "OIHW", "NCHW"))
    y = y + params["b_dec"][None, :, None, None]
    mean = jnp.mean(y, axis=(0, 2, 3), keepdims=True)
    var = jnp.mean((y - mean) ** 2, axis=(0, 2, 3), keepdims=True)
    yn = (params["gamma"][None, :, None, None] * (y - mean) * lax.rsqrt(var + EPS)
          + params["beta"][None, :, None, None])
    return jnp.concatenate([x, yn], axis=1)


# ----------------------------------- main --------------------------------------

if __name__ == "__main__":
    key = jax.random.PRNGKey(0)
    k_x, k_p = jax.random.split(key)

    N, Cin, Cout, H, W = 2, 4, 8, 16, 16
    x = jax.random.normal(k_x, (N, Cin, H, W), jnp.float32)
    params = init_params(k_p, Cin, Cout)

    ref = reference_forward(x, params)

    def run(mxu_dtype, fuse):
        fwd = jax.jit(functools.partial(innermost_block_forward,
                                        mxu_dtype=mxu_dtype, fuse_finalize=fuse))
        return jax.block_until_ready(fwd(x, params))

    def run_with_fallback(mxu_dtype):
        try:
            return run(mxu_dtype, True)
        except Exception:
            # TODO(synk): the fused finalize kernel leans on in-kernel
            # concatenate / reshape relayouts; if this Mosaic build rejects the
            # lowering, fall back to the (slower) XLA epilogue.
            return run(mxu_dtype, False)

    # Exact-semantics check: f32 MXU operands / f32 intermediate storage.
    out_f32 = run_with_fallback(jnp.float32)
    assert out_f32.shape == (N, 2 * Cin, H, W), out_f32.shape
    if not jnp.allclose(out_f32, ref, atol=1e-4, rtol=1e-4):
        raise AssertionError("f32 Pallas result does not match reference")

    # Production path: bf16 MXU operands / bf16 intermediate with f32 accumulation.
    out_bf16 = run_with_fallback(jnp.bfloat16)
    assert out_bf16.shape == (N, 2 * Cin, H, W), out_bf16.shape
    if not jnp.allclose(out_bf16, ref, atol=2e-2, rtol=2e-2):
        raise AssertionError("bf16 Pallas result does not match reference")

    print("KERNEL_OK")
</pallas_src>

<mosaic_0001>
module attributes {stable_mosaic.version = 11 : i64} {
  func.func @_finalize_kernel(%arg0: i32, %arg1: memref<1x4x256xf32, #tpu.memory_space<vmem>>, %arg2: memref<4x1x8x8x4xf32, #tpu.memory_space<vmem>>, %arg3: memref<1x4xf32, #tpu.memory_space<vmem>>, %arg4: memref<1x4xf32, #tpu.memory_space<vmem>>, %arg5: memref<1x8x256xf32, #tpu.memory_space<vmem>>) attributes {dimension_semantics = [#tpu.dimension_semantics<parallel>], iteration_bounds = array<i64: 2>, scalar_prefetch = 0 : i64, scratch_operands = 0 : i64, tpu.core_type = #tpu.core_type<tc>, window_params = [{transform_indices = @transform_0, window_bounds = array<i64: 1, 4, 256>}, {transform_indices = @transform_1, window_bounds = array<i64: 4, 1, 8, 8, 4>}, {pipeline_mode = #tpu.pipeline_mode<synchronous>, transform_indices = @transform_2, window_bounds = array<i64: 1, 4>}, {pipeline_mode = #tpu.pipeline_mode<synchronous>, transform_indices = @transform_3, window_bounds = array<i64: 1, 4>}, {transform_indices = @transform_4, window_bounds = array<i64: 1, 8, 256>}]} {
    %c0 = arith.constant 0 : index
    %c0_0 = arith.constant 0 : index
    %c0_1 = arith.constant 0 : index
    %0 = vector.load %arg1[%c0, %c0_0, %c0_1] : memref<1x4x256xf32, #tpu.memory_space<vmem>>, vector<1x4x256xf32>
    %1 = vector.shape_cast %0 : vector<1x4x256xf32> to vector<4x256xf32>
    %c0_2 = arith.constant 0 : index
    %c0_3 = arith.constant 0 : index
    %c0_4 = arith.constant 0 : index
    %2 = vector.load %arg5[%c0_2, %c0_3, %c0_4] : memref<1x8x256xf32, #tpu.memory_space<vmem>>, vector<1x4x256xf32>
    %3 = vector.shape_cast %2 : vector<1x4x256xf32> to vector<4x256xf32>
    %4 = vector.shape_cast %1 : vector<4x256xf32> to vector<1x4x256xf32>
    tpu.vector_store %arg5[%c0_2, %c0_3, %c0_4], %4 {strides = array<i32>} : memref<1x8x256xf32, #tpu.memory_space<vmem>>, vector<1x4x256xf32>,
    %c0_5 = arith.constant 0 : index
    %c0_6 = arith.constant 0 : index
    %c0_7 = arith.constant 0 : index
    %c0_8 = arith.constant 0 : index
    %c0_9 = arith.constant 0 : index
    %5 = vector.load %arg2[%c0_5, %c0_6, %c0_7, %c0_8, %c0_9] : memref<4x1x8x8x4xf32, #tpu.memory_space<vmem>>, vector<4x1x8x8x4xf32>
    %6 = vector.shape_cast %5 : vector<4x1x8x8x4xf32> to vector<4x8x8x4xf32>
    %c0_10 = arith.constant 0 : index
    %c0_11 = arith.constant 0 : index
    %7 = vector.load %arg3[%c0_10, %c0_11] : memref<1x4xf32, #tpu.memory_space<vmem>>, vector<1x4xf32>
    %8 = vector.shape_cast %7 : vector<1x4xf32> to vector<1x1x1x4xf32>
    %9 = vector.broadcast %8 : vector<1x1x1x4xf32> to vector<4x8x8x4xf32>
    %10 = arith.mulf %6, %9 : vector<4x8x8x4xf32>
    %c0_12 = arith.constant 0 : index
    %c0_13 = arith.constant 0 : index
    %11 = vector.load %arg4[%c0_12, %c0_13] : memref<1x4xf32, #tpu.memory_space<vmem>>, vector<1x4xf32>
    %12 = vector.shape_cast %11 : vector<1x4xf32> to vector<1x1x1x4xf32>
    %13 = vector.broadcast %12 : vector<1x1x1x4xf32> to vector<4x8x8x4xf32>
    %14 = arith.addf %10, %13 : vector<4x8x8x4xf32>
    %15 = vector.extract_strided_slice %14 {offsets = [0, 0, 0, 0], sizes = [1, 8, 8, 4], strides = [1, 1, 1, 1]} : vector<4x8x8x4xf32> to vector<1x8x8x4xf32>
    %16 = vector.shape_cast %15 : vector<1x8x8x4xf32> to vector<8x8x4xf32>
    %17 = vector.shape_cast %16 : vector<8x8x4xf32> to vector<8x8x1x4xf32>
    %18 = vector.extract_strided_slice %14 {offsets = [1, 0, 0, 0], sizes = [1, 8, 8, 4], strides = [1, 1, 1, 1]} : vector<4x8x8x4xf32> to vector<1x8x8x4xf32>
    %19 = vector.shape_cast %18 : vector<1x8x8x4xf32> to vector<8x8x4xf32>
    %20 = vector.shape_cast %19 : vector<8x8x4xf32> to vector<8x8x1x4xf32>
    %21 = tpu.concatenate %17, %20 in 2 : vector<8x8x1x4xf32>, vector<8x8x1x4xf32> -> vector<8x8x2x4xf32>
    %22 = vector.extract_strided_slice %14 {offsets = [2, 0, 0, 0], sizes = [1, 8, 8, 4], strides = [1, 1, 1, 1]} : vector<4x8x8x4xf32> to vector<1x8x8x4xf32>
    %23 = vector.shape_cast %22 : vector<1x8x8x4xf32> to vector<8x8x4xf32>
    %24 = vector.shape_cast %23 : vector<8x8x4xf32> to vector<8x8x1x4xf32>
    %25 = vector.extract_strided_slice %14 {offsets = [3, 0, 0, 0], sizes = [1, 8, 8, 4], strides = [1, 1, 1, 1]} : vector<4x8x8x4xf32> to vector<1x8x8x4xf32>
    %26 = vector.shape_cast %25 : vector<1x8x8x4xf32> to vector<8x8x4xf32>
    %27 = vector.shape_cast %26 : vector<8x8x4xf32> to vector<8x8x1x4xf32>
    %28 = tpu.concatenate %24, %27 in 2 : vector<8x8x1x4xf32>, vector<8x8x1x4xf32> -> vector<8x8x2x4xf32>
    %29 = vector.shape_cast %21 : vector<8x8x2x4xf32> to vector<8x1x8x2x4xf32>
    %30 = vector.shape_cast %28 : vector<8x8x2x4xf32> to vector<8x1x8x2x4xf32>
    %31 = tpu.concatenate %29, %30 in 1 : vector<8x1x8x2x4xf32>, vector<8x1x8x2x4xf32> -> vector<8x2x8x2x4xf32>
    %32 = vector.shape_cast %31 : vector<8x2x8x2x4xf32> to vector<256x4xf32>
    %33 = tpu.transpose %32, [1, 0] : vector<256x4xf32> -> vector<4x256xf32>
    %c0_14 = arith.constant 0 : index
    %c4 = arith.constant 4 : index
    %c0_15 = arith.constant 0 : index
    %34 = vector.load %arg5[%c0_14, %c4, %c0_15] : memref<1x8x256xf32, #tpu.memory_space<vmem>>, vector<1x4x256xf32>
    %35 = vector.shape_cast %34 : vector<1x4x256xf32> to vector<4x256xf32>
    %36 = vector.shape_cast %33 : vector<4x256xf32> to vector<1x4x256xf32>
    tpu.vector_store %arg5[%c0_14, %c4, %c0_15], %36 {strides = array<i32>} : memref<1x8x256xf32, #tpu.memory_space<vmem>>, vector<1x4x256xf32>,
    return
  }
  func.func @transform_0(%arg0: i32) -> (i32, i32, i32) {
    %c0_i32 = arith.constant 0 : i32
    %c0_i32_0 = arith.constant 0 : i32
    %c0_i32_1 = arith.constant 0 : i32
    return %arg0, %c0_i32, %c0_i32_0 : i32, i32, i32
  }
  func.func @transform_1(%arg0: i32) -> (i32, i32, i32, i32, i32) {
    %c0_i32 = arith.constant 0 : i32
    %c0_i32_0 = arith.constant 0 : i32
    %c0_i32_1 = arith.constant 0 : i32
    %c0_i32_2 = arith.constant 0 : i32
    %c0_i32_3 = arith.constant 0 : i32
    return %c0_i32, %arg0, %c0_i32_0, %c0_i32_1, %c0_i32_2 : i32, i32, i32, i32, i32
  }
  func.func @transform_2(%arg0: i32) -> (i32, i32) {
    %c0_i32 = arith.constant 0 : i32
    %c0_i32_0 = arith.constant 0 : i32
    %c0_i32_1 = arith.constant 0 : i32
    return %c0_i32, %c0_i32_0 : i32, i32
  }
  func.func @transform_3(%arg0: i32) -> (i32, i32) {
    %c0_i32 = arith.constant 0 : i32
    %c0_i32_0 = arith.constant 0 : i32
    %c0_i32_1 = arith.constant 0 : i32
    return %c0_i32, %c0_i32_0 : i32, i32
  }
  func.func @transform_4(%arg0: i32) -> (i32, i32, i32) {
    %c0_i32 = arith.constant 0 : i32
    %c0_i32_0 = arith.constant 0 : i32
    %c0_i32_1 = arith.constant 0 : i32
    return %arg0, %c0_i32, %c0_i32_0 : i32, i32, i32
  }
}

module attributes {stable_mosaic.version = 11 : i64} {
  func.func @_fused_enc_dec_kernel(%arg0: i32, %arg1: memref<4x1x9x9x4xf32, #tpu.memory_space<vmem>>, %arg2: memref<4x4x4x8xf32, #tpu.memory_space<vmem>>, %arg3: memref<1x8xf32, #tpu.memory_space<vmem>>, %arg4: memref<4x4x8x4xf32, #tpu.memory_space<vmem>>, %arg5: memref<1x4xf32, #tpu.memory_space<vmem>>, %arg6: memref<4x1x8x8x4xf32, #tpu.memory_space<vmem>>, %arg7: memref<1x2x4xf32, #tpu.memory_space<vmem>>, %arg8: memref<1x10x10x8xf32, #tpu.memory_space<vmem>>) attributes {dimension_semantics = [#tpu.dimension_semantics<parallel>], iteration_bounds = array<i64: 2>, scalar_prefetch = 0 : i64, scratch_operands = 1 : i64, tpu.core_type = #tpu.core_type<tc>, window_params = [{transform_indices = @transform_0, window_bounds = array<i64: 4, 1, 9, 9, 4>}, {pipeline_mode = #tpu.pipeline_mode<synchronous>, transform_indices = @transform_1, window_bounds = array<i64: 4, 4, 4, 8>}, {pipeline_mode = #tpu.pipeline_mode<synchronous>, transform_indices = @transform_2, window_bounds = array<i64: 1, 8>}, {pipeline_mode = #tpu.pipeline_mode<synchronous>, transform_indices = @transform_3, window_bounds = array<i64: 4, 4, 8, 4>}, {pipeline_mode = #tpu.pipeline_mode<synchronous>, transform_indices = @transform_4, window_bounds = array<i64: 1, 4>}, {transform_indices = @transform_5, window_bounds = array<i64: 4, 1, 8, 8, 4>}, {transform_indices = @transform_6, window_bounds = array<i64: 1, 2, 4>}]} {
    %cst = arith.constant 0.000000e+00 : f32
    %0 = vector.broadcast %cst : f32 to vector<64x8xf32>
    %c0 = arith.constant 0 : index
    %c0_0 = arith.constant 0 : index
    %c0_1 = arith.constant 0 : index
    %c0_2 = arith.constant 0 : index
    %c0_3 = arith.constant 0 : index
    %1 = vector.load %arg1[%c0, %c0_0, %c0_1, %c0_2, %c0_3] : memref<4x1x9x9x4xf32, #tpu.memory_space<vmem>>, vector<1x1x9x9x4xf32>
    %2 = vector.shape_cast %1 : vector<1x1x9x9x4xf32> to vector<1x9x9x4xf32>
    %cst_4 = arith.constant 0.000000e+00 : f32
    %3 = vector.broadcast %cst_4 : f32 to vector<1x9x9x4xf32>
    %4 = arith.cmpf oge, %2, %3 : vector<1x9x9x4xf32>
    %cst_5 = arith.constant 2.000000e-01 : f32
    %5 = vector.broadcast %cst_5 : f32 to vector<1x9x9x4xf32>
    %6 = arith.mulf %5, %2 : vector<1x9x9x4xf32>
    %7 = arith.select %4, %2, %6 : vector<1x9x9x4xi1>, vector<1x9x9x4xf32>
    %8 = vector.extract_strided_slice %7 {offsets = [0, 0, 0, 0], sizes = [1, 8, 8, 4], strides = [1, 1, 1, 1]} : vector<1x9x9x4xf32> to vector<1x8x8x4xf32>
    %9 = vector.shape_cast %8 : vector<1x8x8x4xf32> to vector<64x4xf32>
    %c0_6 = arith.constant 0 : index
    %c0_7 = arith.constant 0 : index
    %c0_8 = arith.constant 0 : index
    %c0_9 = arith.constant 0 : index
    %10 = vector.load %arg2[%c0_6, %c0_7, %c0_8, %c0_9] : memref<4x4x4x8xf32, #tpu.memory_space<vmem>>, vector<1x1x4x8xf32>
    %11 = vector.shape_cast %10 : vector<1x1x4x8xf32> to vector<4x8xf32>
    %cst_10 = arith.constant dense<0.000000e+00> : vector<64x8xf32>
    %12 = tpu.matmul %9, %11, %cst_10 {dimension_numbers = #tpu.dot_dimension_numbers<[1], [0], [0], [1], [0, 0, 1, 1], [], []>} : vector<64x4xf32>, vector<4x8xf32>, vector<64x8xf32> -> vector<64x8xf32>
    %13 = arith.addf %0, %12 : vector<64x8xf32>
    %14 = vector.extract_strided_slice %7 {offsets = [0, 0, 1, 0], sizes = [1, 8, 8, 4], strides = [1, 1, 1, 1]} : vector<1x9x9x4xf32> to vector<1x8x8x4xf32>
    %15 = vector.shape_cast %14 : vector<1x8x8x4xf32> to vector<64x4xf32>
    %c0_11 = arith.constant 0 : index
    %c2 = arith.constant 2 : index
    %c0_12 = arith.constant 0 : index
    %c0_13 = arith.constant 0 : index
    %16 = vector.load %arg2[%c0_11, %c2, %c0_12, %c0_13] : memref<4x4x4x8xf32, #tpu.memory_space<vmem>>, vector<1x1x4x8xf32>
    %17 = vector.shape_cast %16 : vector<1x1x4x8xf32> to vector<4x8xf32>
    %cst_14 = arith.constant dense<0.000000e+00> : vector<64x8xf32>
    %18 = tpu.matmul %15, %17, %cst_14 {dimension_numbers = #tpu.dot_dimension_numbers<[1], [0], [0], [1], [0, 0, 1, 1], [], []>} : vector<64x4xf32>, vector<4x8xf32>, vector<64x8xf32> -> vector<64x8xf32>
    %19 = arith.addf %13, %18 : vector<64x8xf32>
    %20 = vector.extract_strided_slice %7 {offsets = [0, 1, 0, 0], sizes = [1, 8, 8, 4], strides = [1, 1, 1, 1]} : vector<1x9x9x4xf32> to vector<1x8x8x4xf32>
    %21 = vector.shape_cast %20 : vector<1x8x8x4xf32> to vector<64x4xf32>
    %c2_15 = arith.constant 2 : index
    %c0_16 = arith.constant 0 : index
    %c0_17 = arith.constant 0 : index
    %c0_18 = arith.constant 0 : index
    %22 = vector.load %arg2[%c2_15, %c0_16, %c0_17, %c0_18] : memref<4x4x4x8xf32, #tpu.memory_space<vmem>>, vector<1x1x4x8xf32>
    %23 = vector.shape_cast %22 : vector<1x1x4x8xf32> to vector<4x8xf32>
    %cst_19 = arith.constant dense<0.000000e+00> : vector<64x8xf32>
    %24 = tpu.matmul %21, %23, %cst_19 {dimension_numbers = #tpu.dot_dimension_numbers<[1], [0], [0], [1], [0, 0, 1, 1], [], []>} : vector<64x4xf32>, vector<4x8xf32>, vector<64x8xf32> -> vector<64x8xf32>
    %25 = arith.addf %19, %24 : vector<64x8xf32>
    %26 = vector.extract_strided_slice %7 {offsets = [0, 1, 1, 0], sizes = [1, 8, 8, 4], strides = [1, 1, 1, 1]} : vector<1x9x9x4xf32> to vector<1x8x8x4xf32>
    %27 = vector.shape_cast %26 : vector<1x8x8x4xf32> to vector<64x4xf32>
    %c2_20 = arith.constant 2 : index
    %c2_21 = arith.constant 2 : index
    %c0_22 = arith.constant 0 : index
    %c0_23 = arith.constant 0 : index
    %28 = vector.load %arg2[%c2_20, %c2_21, %c0_22, %c0_23] : memref<4x4x4x8xf32, #tpu.memory_space<vmem>>, vector<1x1x4x8xf32>
    %29 = vector.shape_cast %28 : vector<1x1x4x8xf32> to vector<4x8xf32>
    %cst_24 = arith.constant dense<0.000000e+00> : vector<64x8xf32>
    %30 = tpu.matmul %27, %29, %cst_24 {dimension_numbers = #tpu.dot_dimension_numbers<[1], [0], [0], [1], [0, 0, 1, 1], [], []>} : vector<64x4xf32>, vector<4x8xf32>, vector<64x8xf32> -> vector<64x8xf32>
    %31 = arith.addf %25, %30 : vector<64x8xf32>
    %c1 = arith.constant 1 : index
    %c0_25 = arith.constant 0 : index
    %c0_26 = arith.constant 0 : index
    %c0_27 = arith.constant 0 : index
    %c0_28 = arith.constant 0 : index
    %32 = vector.load %arg1[%c1, %c0_25, %c0_26, %c0_27, %c0_28] : memref<4x1x9x9x4xf32, #tpu.memory_space<vmem>>, vector<1x1x9x9x4xf32>
    %33 = vector.shape_cast %32 : vector<1x1x9x9x4xf32> to vector<1x9x9x4xf32>
    %cst_29 = arith.constant 0.000000e+00 : f32
    %34 = vector.broadcast %cst_29 : f32 to vector<1x9x9x4xf32>
    %35 = arith.cmpf oge, %33, %34 : vector<1x9x9x4xf32>
    %cst_30 = arith.constant 2.000000e-01 : f32
    %36 = vector.broadcast %cst_30 : f32 to vector<1x9x9x4xf32>
    %37 = arith.mulf %36, %33 : vector<1x9x9x4xf32>
    %38 = arith.select %35, %33, %37 : vector<1x9x9x4xi1>, vector<1x9x9x4xf32>
    %39 = vector.extract_strided_slice %38 {offsets = [0, 0, 0, 0], sizes = [1, 8, 8, 4], strides = [1, 1, 1, 1]} : vector<1x9x9x4xf32> to vector<1x8x8x4xf32>
    %40 = vector.shape_cast %39 : vector<1x8x8x4xf32> to vector<64x4xf32>
    %c0_31 = arith.constant 0 : index
    %c1_32 = arith.constant 1 : index
    %c0_33 = arith.constant 0 : index
    %c0_34 = arith.constant 0 : index
    %41 = vector.load %arg2[%c0_31, %c1_32, %c0_33, %c0_34] : memref<4x4x4x8xf32, #tpu.memory_space<vmem>>, vector<1x1x4x8xf32>
    %42 = vector.shape_cast %41 : vector<1x1x4x8xf32> to vector<4x8xf32>
    %cst_35 = arith.constant dense<0.000000e+00> : vector<64x8xf32>
    %43 = tpu.matmul %40, %42, %cst_35 {dimension_numbers = #tpu.dot_dimension_numbers<[1], [0], [0], [1], [0, 0, 1, 1], [], []>} : vector<64x4xf32>, vector<4x8xf32>, vector<64x8xf32> -> vector<64x8xf32>
    %44 = arith.addf %31, %43 : vector<64x8xf32>
    %45 = vector.extract_strided_slice %38 {offsets = [0, 0, 1, 0], sizes = [1, 8, 8, 4], strides = [1, 1, 1, 1]} : vector<1x9x9x4xf32> to vector<1x8x8x4xf32>
    %46 = vector.shape_cast %45 : vector<1x8x8x4xf32> to vector<64x4xf32>
    %c0_36 = arith.constant 0 : index
    %c3 = arith.constant 3 : index
    %c0_37 = arith.constant 0 : index
    %c0_38 = arith.constant 0 : index
    %47 = vector.load %arg2[%c0_36, %c3, %c0_37, %c0_38] : memref<4x4x4x8xf32, #tpu.memory_space<vmem>>, vector<1x1x4x8xf32>
    %48 = vector.shape_cast %47 : vector<1x1x4x8xf32> to vector<4x8xf32>
    %cst_39 = arith.constant dense<0.000000e+00> : vector<64x8xf32>
    %49 = tpu.matmul %46, %48, %cst_39 {dimension_numbers = #tpu.dot_dimension_numbers<[1], [0], [0], [1], [0, 0, 1, 1], [], []>} : vector<64x4xf32>, vector<4x8xf32>, vector<64x8xf32> -> vector<64x8xf32>
    %50 = arith.addf %44, %49 : vector<64x8xf32>
    %51 = vector.extract_strided_slice %38 {offsets = [0, 1, 0, 0], sizes = [1, 8, 8, 4], strides = [1, 1, 1, 1]} : vector<1x9x9x4xf32> to vector<1x8x8x4xf32>
    %52 = vector.shape_cast %51 : vector<1x8x8x4xf32> to vector<64x4xf32>
    %c2_40 = arith.constant 2 : index
    %c1_41 = arith.constant 1 : index
    %c0_42 = arith.constant 0 : index
    %c0_43 = arith.constant 0 : index
    %53 = vector.load %arg2[%c2_40, %c1_41, %c0_42, %c0_43] : memref<4x4x4x8xf32, #tpu.memory_space<vmem>>, vector<1x1x4x8xf32>
    %54 = vector.shape_cast %53 : vector<1x1x4x8xf32> to vector<4x8xf32>
    %cst_44 = arith.constant dense<0.000000e+00> : vector<64x8xf32>
    %55 = tpu.matmul %52, %54, %cst_44 {dimension_numbers = #tpu.dot_dimension_numbers<[1], [0], [0], [1], [0, 0, 1, 1], [], []>} : vector<64x4xf32>, vector<4x8xf32>, vector<64x8xf32> -> vector<64x8xf32>
    %56 = arith.addf %50, %55 : vector<64x8xf32>
    %57 = vector.extract_strided_slice %38 {offsets = [0, 1, 1, 0], sizes = [1, 8, 8, 4], strides = [1, 1, 1, 1]} : vector<1x9x9x4xf32> to vector<1x8x8x4xf32>
    %58 = vector.shape_cast %57 : vector<1x8x8x4xf32> to vector<64x4xf32>
    %c2_45 = arith.constant 2 : index
    %c3_46 = arith.constant 3 : index
    %c0_47 = arith.constant 0 : index
    %c0_48 = arith.constant 0 : index
    %59 = vector.load %arg2[%c2_45, %c3_46, %c0_47, %c0_48] : memref<4x4x4x8xf32, #tpu.memory_space<vmem>>, vector<1x1x4x8xf32>
    %60 = vector.shape_cast %59 : vector<1x1x4x8xf32> to vector<4x8xf32>
    %cst_49 = arith.constant dense<0.000000e+00> : vector<64x8xf32>
    %61 = tpu.matmul %58, %60, %cst_49 {dimension_numbers = #tpu.dot_dimension_numbers<[1], [0], [0], [1], [0, 0, 1, 1], [], []>} : vector<64x4xf32>, vector<4x8xf32>, vector<64x8xf32> -> vector<64x8xf32>
    %62 = arith.addf %56, %61 : vector<64x8xf32>
    %c2_50 = arith.constant 2 : index
    %c0_51 = arith.constant 0 : index
    %c0_52 = arith.constant 0 : index
    %c0_53 = arith.constant 0 : index
    %c0_54 = arith.constant 0 : index
    %63 = vector.load %arg1[%c2_50, %c0_51, %c0_52, %c0_53, %c0_54] : memref<4x1x9x9x4xf32, #tpu.memory_space<vmem>>, vector<1x1x9x9x4xf32>
    %64 = vector.shape_cast %63 : vector<1x1x9x9x4xf32> to vector<1x9x9x4xf32>
    %cst_55 = arith.constant 0.000000e+00 : f32
    %65 = vector.broadcast %cst_55 : f32 to vector<1x9x9x4xf32>
    %66 = arith.cmpf oge, %64, %65 : vector<1x9x9x4xf32>
    %cst_56 = arith.constant 2.000000e-01 : f32
    %67 = vector.broadcast %cst_56 : f32 to vector<1x9x9x4xf32>
    %68 = arith.mulf %67, %64 : vector<1x9x9x4xf32>
    %69 = arith.select %66, %64, %68 : vector<1x9x9x4xi1>, vector<1x9x9x4xf32>
    %70 = vector.extract_strided_slice %69 {offsets = [0, 0, 0, 0], sizes = [1, 8, 8, 4], strides = [1, 1, 1, 1]} : vector<1x9x9x4xf32> to vector<1x8x8x4xf32>
    %71 = vector.shape_cast %70 : vector<1x8x8x4xf32> to vector<64x4xf32>
    %c1_57 = arith.constant 1 : index
    %c0_58 = arith.constant 0 : index
    %c0_59 = arith.constant 0 : index
    %c0_60 = arith.constant 0 : index
    %72 = vector.load %arg2[%c1_57, %c0_58, %c0_59, %c0_60] : memref<4x4x4x8xf32, #tpu.memory_space<vmem>>, vector<1x1x4x8xf32>
    %73 = vector.shape_cast %72 : vector<1x1x4x8xf32> to vector<4x8xf32>
    %cst_61 = arith.constant dense<0.000000e+00> : vector<64x8xf32>
    %74 = tpu.matmul %71, %73, %cst_61 {dimension_numbers = #tpu.dot_dimension_numbers<[1], [0], [0], [1], [0, 0, 1, 1], [], []>} : vector<64x4xf32>, vector<4x8xf32>, vector<64x8xf32> -> vector<64x8xf32>
    %75 = arith.addf %62, %74 : vector<64x8xf32>
    %76 = vector.extract_strided_slice %69 {offsets = [0, 0, 1, 0], sizes = [1, 8, 8, 4], strides = [1, 1, 1, 1]} : vector<1x9x9x4xf32> to vector<1x8x8x4xf32>
    %77 = vector.shape_cast %76 : vector<1x8x8x4xf32> to vector<64x4xf32>
    %c1_62 = arith.constant 1 : index
    %c2_63 = arith.constant 2 : index
    %c0_64 = arith.constant 0 : index
    %c0_65 = arith.constant 0 : index
    %78 = vector.load %arg2[%c1_62, %c2_63, %c0_64, %c0_65] : memref<4x4x4x8xf32, #tpu.memory_space<vmem>>, vector<1x1x4x8xf32>
    %79 = vector.shape_cast %78 : vector<1x1x4x8xf32> to vector<4x8xf32>
    %cst_66 = arith.constant dense<0.000000e+00> : vector<64x8xf32>
    %80 = tpu.matmul %77, %79, %cst_66 {dimension_numbers = #tpu.dot_dimension_numbers<[1], [0], [0], [1], [0, 0, 1, 1], [], []>} : vector<64x4xf32>, vector<4x8xf32>, vector<64x8xf32> -> vector<64x8xf32>
    %81 = arith.addf %75, %80 : vector<64x8xf32>
    %82 = vector.extract_strided_slice %69 {offsets = [0, 1, 0, 0], sizes = [1, 8, 8, 4], strides = [1, 1, 1, 1]} : vector<1x9x9x4xf32> to vector<1x8x8x4xf32>
    %83 = vector.shape_cast %82 : vector<1x8x8x4xf32> to vector<64x4xf32>
    %c3_67 = arith.constant 3 : index
    %c0_68 = arith.constant 0 : index
    %c0_69 = arith.constant 0 : index
    %c0_70 = arith.constant 0 : index
    %84 = vector.load %arg2[%c3_67, %c0_68, %c0_69, %c0_70] : memref<4x4x4x8xf32, #tpu.memory_space<vmem>>, vector<1x1x4x8xf32>
    %85 = vector.shape_cast %84 : vector<1x1x4x8xf32> to vector<4x8xf32>
    %cst_71 = arith.constant dense<0.000000e+00> : vector<64x8xf32>
    %86 = tpu.matmul %83, %85, %cst_71 {dimension_numbers = #tpu.dot_dimension_numbers<[1], [0], [0], [1], [0, 0, 1, 1], [], []>} : vector<64x4xf32>, vector<4x8xf32>, vector<64x8xf32> -> vector<64x8xf32>
    %87 = arith.addf %81, %86 : vector<64x8xf32>
    %88 = vector.extract_strided_slice %69 {offsets = [0, 1, 1, 0], sizes = [1, 8, 8, 4], strides = [1, 1, 1, 1]} : vector<1x9x9x4xf32> to vector<1x8x8x4xf32>
    %89 = vector.shape_cast %88 : vector<1x8x8x4xf32> to vector<64x4xf32>
    %c3_72 = arith.constant 3 : index
    %c2_73 = arith.constant 2 : index
    %c0_74 = arith.constant 0 : index
    %c0_75 = arith.constant 0 : index
    %90 = vector.load %arg2[%c3_72, %c2_73, %c0_74, %c0_75] : memref<4x4x4x8xf32, #tpu.memory_space<vmem>>, vector<1x1x4x8xf32>
    %91 = vector.shape_cast %90 : vector<1x1x4x8xf32> to vector<4x8xf32>
    %cst_76 = arith.constant dense<0.000000e+00> : vector<64x8xf32>
    %92 = tpu.matmul %89, %91, %cst_76 {dimension_numbers = #tpu.dot_dimension_numbers<[1], [0], [0], [1], [0, 0, 1, 1], [], []>} : vector<64x4xf32>, vector<4x8xf32>, vector<64x8xf32> -> vector<64x8xf32>
    %93 = arith.addf %87, %92 : vector<64x8xf32>
    %c3_77 = arith.constant 3 : index
    %c0_78 = arith.constant 0 : index
    %c0_79 = arith.constant 0 : index
    %c0_80 = arith.constant 0 : index
    %c0_81 = arith.constant 0 : index
    %94 = vector.load %arg1[%c3_77, %c0_78, %c0_79, %c0_80, %c0_81] : memref<4x1x9x9x4xf32, #tpu.memory_space<vmem>>, vector<1x1x9x9x4xf32>
    %95 = vector.shape_cast %94 : vector<1x1x9x9x4xf32> to vector<1x9x9x4xf32>
    %cst_82 = arith.constant 0.000000e+00 : f32
    %96 = vector.broadcast %cst_82 : f32 to vector<1x9x9x4xf32>
    %97 = arith.cmpf oge, %95, %96 : vector<1x9x9x4xf32>
    %cst_83 = arith.constant 2.000000e-01 : f32
    %98 = vector.broadcast %cst_83 : f32 to vector<1x9x9x4xf32>
    %99 = arith.mulf %98, %95 : vector<1x9x9x4xf32>
    %100 = arith.select %97, %95, %99 : vector<1x9x9x4xi1>, vector<1x9x9x4xf32>
    %101 = vector.extract_strided_slice %100 {offsets = [0, 0, 0, 0], sizes = [1, 8, 8, 4], strides = [1, 1, 1, 1]} : vector<1x9x9x4xf32> to vector<1x8x8x4xf32>
    %102 = vector.shape_cast %101 : vector<1x8x8x4xf32> to vector<64x4xf32>
    %c1_84 = arith.constant 1 : index
    %c1_85 = arith.constant 1 : index
    %c0_86 = arith.constant 0 : index
    %c0_87 = arith.constant 0 : index
    %103 = vector.load %arg2[%c1_84, %c1_85, %c0_86, %c0_87] : memref<4x4x4x8xf32, #tpu.memory_space<vmem>>, vector<1x1x4x8xf32>
    %104 = vector.shape_cast %103 : vector<1x1x4x8xf32> to vector<4x8xf32>
    %cst_88 = arith.constant dense<0.000000e+00> : vector<64x8xf32>
    %105 = tpu.matmul %102, %104, %cst_88 {dimension_numbers = #tpu.dot_dimension_numbers<[1], [0], [0], [1], [0, 0, 1, 1], [], []>} : vector<64x4xf32>, vector<4x8xf32>, vector<64x8xf32> -> vector<64x8xf32>
    %106 = arith.addf %93, %105 : vector<64x8xf32>
    %107 = vector.extract_strided_slice %100 {offsets = [0, 0, 1, 0], sizes = [1, 8, 8, 4], strides = [1, 1, 1, 1]} : vector<1x9x9x4xf32> to vector<1x8x8x4xf32>
    %108 = vector.shape_cast %107 : vector<1x8x8x4xf32> to vector<64x4xf32>
    %c1_89 = arith.constant 1 : index
    %c3_90 = arith.constant 3 : index
    %c0_91 = arith.constant 0 : index
    %c0_92 = arith.constant 0 : index
    %109 = vector.load %arg2[%c1_89, %c3_90, %c0_91, %c0_92] : memref<4x4x4x8xf32, #tpu.memory_space<vmem>>, vector<1x1x4x8xf32>
    %110 = vector.shape_cast %109 : vector<1x1x4x8xf32> to vector<4x8xf32>
    %cst_93 = arith.constant dense<0.000000e+00> : vector<64x8xf32>
    %111 = tpu.matmul %108, %110, %cst_93 {dimension_numbers = #tpu.dot_dimension_numbers<[1], [0], [0], [1], [0, 0, 1, 1], [], []>} : vector<64x4xf32>, vector<4x8xf32>, vector<64x8xf32> -> vector<64x8xf32>
    %112 = arith.addf %106, %111 : vector<64x8xf32>
    %113 = vector.extract_strided_slice %100 {offsets = [0, 1, 0, 0], sizes = [1, 8, 8, 4], strides = [1, 1, 1, 1]} : vector<1x9x9x4xf32> to vector<1x8x8x4xf32>
    %114 = vector.shape_cast %113 : vector<1x8x8x4xf32> to vector<64x4xf32>
    %c3_94 = arith.constant 3 : index
    %c1_95 = arith.constant 1 : index
    %c0_96 = arith.constant 0 : index
    %c0_97 = arith.constant 0 : index
    %115 = vector.load %arg2[%c3_94, %c1_95, %c0_96, %c0_97] : memref<4x4x4x8xf32, #tpu.memory_space<vmem>>, vector<1x1x4x8xf32>
    %116 = vector.shape_cast %115 : vector<1x1x4x8xf32> to vector<4x8xf32>
    %cst_98 = arith.constant dense<0.000000e+00> : vector<64x8xf32>
    %117 = tpu.matmul %114, %116, %cst_98 {dimension_numbers = #tpu.dot_dimension_numbers<[1], [0], [0], [1], [0, 0, 1, 1], [], []>} : vector<64x4xf32>, vector<4x8xf32>, vector<64x8xf32> -> vector<64x8xf32>
    %118 = arith.addf %112, %117 : vector<64x8xf32>
    %119 = vector.extract_strided_slice %100 {offsets = [0, 1, 1, 0], sizes = [1, 8, 8, 4], strides = [1, 1, 1, 1]} : vector<1x9x9x4xf32> to vector<1x8x8x4xf32>
    %120 = vector.shape_cast %119 : vector<1x8x8x4xf32> to vector<64x4xf32>
    %c3_99 = arith.constant 3 : index
    %c3_100 = arith.constant 3 : index
    %c0_101 = arith.constant 0 : index
    %c0_102 = arith.constant 0 : index
    %121 = vector.load %arg2[%c3_99, %c3_100, %c0_101, %c0_102] : memref<4x4x4x8xf32, #tpu.memory_space<vmem>>, vector<1x1x4x8xf32>
    %122 = vector.shape_cast %121 : vector<1x1x4x8xf32> to vector<4x8xf32>
    %cst_103 = arith.constant dense<0.000000e+00> : vector<64x8xf32>
    %123 = tpu.matmul %120, %122, %cst_103 {dimension_numbers = #tpu.dot_dimension_numbers<[1], [0], [0], [1], [0, 0, 1, 1], [], []>} : vector<64x4xf32>, vector<4x8xf32>, vector<64x8xf32> -> vector<64x8xf32>
    %124 = arith.addf %118, %123 : vector<64x8xf32>
    %c0_104 = arith.constant 0 : index
    %c0_105 = arith.constant 0 : index
    %125 = vector.load %arg3[%c0_104, %c0_105] : memref<1x8xf32, #tpu.memory_space<vmem>>, vector<1x8xf32>
    %126 = vector.broadcast %125 : vector<1x8xf32> to vector<64x8xf32>
    %127 = arith.addf %124, %126 : vector<64x8xf32>
    %cst_106 = arith.constant 0.000000e+00 : f32
    %128 = vector.broadcast %cst_106 : f32 to vector<64x8xf32>
    %129 = arith.maximumf %127, %128 : vector<64x8xf32>
    %cst_107 = arith.constant 0.000000e+00 : f32
    %130 = vector.broadcast %cst_107 : f32 to vector<1x10x10x8xf32>
    %c0_108 = arith.constant 0 : index
    %c0_109 = arith.constant 0 : index
    %c0_110 = arith.constant 0 : index
    %c0_111 = arith.constant 0 : index
    %131 = vector.load %arg8[%c0_108, %c0_109, %c0_110, %c0_111] : memref<1x10x10x8xf32, #tpu.memory_space<vmem>>, vector<1x10x10x8xf32>
    tpu.vector_store %arg8[%c0_108, %c0_109, %c0_110, %c0_111], %130 {strides = array<i32>} : memref<1x10x10x8xf32, #tpu.memory_space<vmem>>, vector<1x10x10x8xf32>,
    %132 = vector.shape_cast %129 : vector<64x8xf32> to vector<1x8x8x8xf32>
    %c0_112 = arith.constant 0 : index
    %c1_113 = arith.constant 1 : index
    %c1_114 = arith.constant 1 : index
    %c0_115 = arith.constant 0 : index
    %133 = vector.load %arg8[%c0_112, %c1_113, %c1_114, %c0_115] : memref<1x10x10x8xf32, #tpu.memory_space<vmem>>, vector<1x8x8x8xf32>
    tpu.vector_store %arg8[%c0_112, %c1_113, %c1_114, %c0_115], %132 {strides = array<i32>} : memref<1x10x10x8xf32, #tpu.memory_space<vmem>>, vector<1x8x8x8xf32>,
    %cst_116 = arith.constant 0.000000e+00 : f32
    %134 = vector.broadcast %cst_116 : f32 to vector<1x4xf32>
    %cst_117 = arith.constant 0.000000e+00 : f32
    %135 = vector.broadcast %cst_117 : f32 to vector<1x4xf32>
    %cst_118 = arith.constant 0.000000e+00 : f32
    %136 = vector.broadcast %cst_118 : f32 to vector<64x4xf32>
    %c0_119 = arith.constant 0 : index
    %c0_120 = arith.constant 0 : index
    %c0_121 = arith.constant 0 : index
    %c0_122 = arith.constant 0 : index
    %137 = vector.load %arg8[%c0_119, %c0_120, %c0_121, %c0_122] : memref<1x10x10x8xf32, #tpu.memory_space<vmem>>, vector<1x8x8x8xf32>
    %138 = vector.shape_cast %137 : vector<1x8x8x8xf32> to vector<64x8xf32>
    %c0_123 = arith.constant 0 : index
    %c0_124 = arith.constant 0 : index
    %c0_125 = arith.constant 0 : index
    %c0_126 = arith.constant 0 : index
    %139 = vector.load %arg4[%c0_123, %c0_124, %c0_125, %c0_126] : memref<4x4x8x4xf32, #tpu.memory_space<vmem>>, vector<1x1x8x4xf32>
    %140 = vector.shape_cast %139 : vector<1x1x8x4xf32> to vector<8x4xf32>
    %cst_127 = arith.constant dense<0.000000e+00> : vector<64x4xf32>
    %141 = tpu.matmul %138, %140, %cst_127 {dimension_numbers = #tpu.dot_dimension_numbers<[1], [0], [0], [1], [0, 0, 1, 1], [], []>} : vector<64x8xf32>, vector<8x4xf32>, vector<64x4xf32> -> vector<64x4xf32>
    %142 = arith.addf %136, %141 : vector<64x4xf32>
    %c0_128 = arith.constant 0 : index
    %c0_129 = arith.constant 0 : index
    %c1_130 = arith.constant 1 : index
    %c0_131 = arith.constant 0 : index
    %143 = vector.load %arg8[%c0_128, %c0_129, %c1_130, %c0_131] : memref<1x10x10x8xf32, #tpu.memory_space<vmem>>, vector<1x8x8x8xf32>
    %144 = vector.shape_cast %143 : vector<1x8x8x8xf32> to vector<64x8xf32>
    %c0_132 = arith.constant 0 : index
    %c1_133 = arith.constant 1 : index
    %c0_134 = arith.constant 0 : index
    %c0_135 = arith.constant 0 : index
    %145 = vector.load %arg4[%c0_132, %c1_133, %c0_134, %c0_135] : memref<4x4x8x4xf32, #tpu.memory_space<vmem>>, vector<1x1x8x4xf32>
    %146 = vector.shape_cast %145 : vector<1x1x8x4xf32> to vector<8x4xf32>
    %cst_136 = arith.constant dense<0.000000e+00> : vector<64x4xf32>
    %147 = tpu.matmul %144, %146, %cst_136 {dimension_numbers = #tpu.dot_dimension_numbers<[1], [0], [0], [1], [0, 0, 1, 1], [], []>} : vector<64x8xf32>, vector<8x4xf32>, vector<64x4xf32> -> vector<64x4xf32>
    %148 = arith.addf %142, %147 : vector<64x4xf32>
    %c0_137 = arith.constant 0 : index
    %c1_138 = arith.constant 1 : index
    %c0_139 = arith.constant 0 : index
    %c0_140 = arith.constant 0 : index
    %149 = vector.load %arg8[%c0_137, %c1_138, %c0_139, %c0_140] : memref<1x10x10x8xf32, #tpu.memory_space<vmem>>, vector<1x8x8x8xf32>
    %150 = vector.shape_cast %149 : vector<1x8x8x8xf32> to vector<64x8xf32>
    %c0_141 = arith.constant 0 : index
    %c2_142 = arith.constant 2 : index
    %c0_143 = arith.constant 0 : index
    %c0_144 = arith.constant 0 : index
    %151 = vector.load %arg4[%c0_141, %c2_142, %c0_143, %c0_144] : memref<4x4x8x4xf32, #tpu.memory_space<vmem>>, vector<1x1x8x4xf32>
    %152 = vector.shape_cast %151 : vector<1x1x8x4xf32> to vector<8x4xf32>
    %cst_145 = arith.constant dense<0.000000e+00> : vector<64x4xf32>
    %153 = tpu.matmul %150, %152, %cst_145 {dimension_numbers = #tpu.dot_dimension_numbers<[1], [0], [0], [1], [0, 0, 1, 1], [], []>} : vector<64x8xf32>, vector<8x4xf32>, vector<64x4xf32> -> vector<64x4xf32>
    %154 = arith.addf %148, %153 : vector<64x4xf32>
    %c0_146 = arith.constant 0 : index
    %c1_147 = arith.constant 1 : index
    %c1_148 = arith.constant 1 : index
    %c0_149 = arith.constant 0 : index
    %155 = vector.load %arg8[%c0_146, %c1_147, %c1_148, %c0_149] : memref<1x10x10x8xf32, #tpu.memory_space<vmem>>, vector<1x8x8x8xf32>
    %156 = vector.shape_cast %155 : vector<1x8x8x8xf32> to vector<64x8xf32>
    %c0_150 = arith.constant 0 : index
    %c3_151 = arith.constant 3 : index
    %c0_152 = arith.constant 0 : index
    %c0_153 = arith.constant 0 : index
    %157 = vector.load %arg4[%c0_150, %c3_151, %c0_152, %c0_153] : memref<4x4x8x4xf32, #tpu.memory_space<vmem>>, vector<1x1x8x4xf32>
    %158 = vector.shape_cast %157 : vector<1x1x8x4xf32> to vector<8x4xf32>
    %cst_154 = arith.constant dense<0.000000e+00> : vector<64x4xf32>
    %159 = tpu.matmul %156, %158, %cst_154 {dimension_numbers = #tpu.dot_dimension_numbers<[1], [0], [0], [1], [0, 0, 1, 1], [], []>} : vector<64x8xf32>, vector<8x4xf32>, vector<64x4xf32> -> vector<64x4xf32>
    %160 = arith.addf %154, %159 : vector<64x4xf32>
    %c0_155 = arith.constant 0 : index
    %c0_156 = arith.constant 0 : index
    %161 = vector.load %arg5[%c0_155, %c0_156] : memref<1x4xf32, #tpu.memory_space<vmem>>, vector<1x4xf32>
    %162 = vector.broadcast %161 : vector<1x4xf32> to vector<64x4xf32>
    %163 = arith.addf %160, %162 : vector<64x4xf32>
    %cst_157 = arith.constant dense<0.000000e+00> : vector<4xf32>
    %164 = vector.multi_reduction <add>, %163, %cst_157 [0] : vector<64x4xf32> to vector<4xf32>
    %165 = vector.shape_cast %164 : vector<4xf32> to vector<1x4xf32>
    %166 = arith.addf %134, %165 : vector<1x4xf32>
    %167 = arith.mulf %163, %163 : vector<64x4xf32>
    %cst_158 = arith.constant dense<0.000000e+00> : vector<4xf32>
    %168 = vector.multi_reduction <add>, %167, %cst_158 [0] : vector<64x4xf32> to vector<4xf32>
    %169 = vector.shape_cast %168 : vector<4xf32> to vector<1x4xf32>
    %170 = arith.addf %135, %169 : vector<1x4xf32>
    %171 = vector.shape_cast %163 : vector<64x4xf32> to vector<1x8x8x4xf32>
    %c0_159 = arith.constant 0 : index
    %c0_160 = arith.constant 0 : index
    %c0_161 = arith.constant 0 : index
    %c0_162 = arith.constant 0 : index
    %c0_163 = arith.constant 0 : index
    %172 = vector.load %arg6[%c0_159, %c0_160, %c0_161, %c0_162, %c0_163] : memref<4x1x8x8x4xf32, #tpu.memory_space<vmem>>, vector<1x1x8x8x4xf32>
    %173 = vector.shape_cast %172 : vector<1x1x8x8x4xf32> to vector<1x8x8x4xf32>
    %174 = vector.shape_cast %171 : vector<1x8x8x4xf32> to vector<1x1x8x8x4xf32>
    tpu.vector_store %arg6[%c0_159, %c0_160, %c0_161, %c0_162, %c0_163], %174 {strides = array<i32>} : memref<4x1x8x8x4xf32, #tpu.memory_space<vmem>>, vector<1x1x8x8x4xf32>,
    %cst_164 = arith.constant 0.000000e+00 : f32
    %175 = vector.broadcast %cst_164 : f32 to vector<64x4xf32>
    %c0_165 = arith.constant 0 : index
    %c0_166 = arith.constant 0 : index
    %c1_167 = arith.constant 1 : index
    %c0_168 = arith.constant 0 : index
    %176 = vector.load %arg8[%c0_165, %c0_166, %c1_167, %c0_168] : memref<1x10x10x8xf32, #tpu.memory_space<vmem>>, vector<1x8x8x8xf32>
    %177 = vector.shape_cast %176 : vector<1x8x8x8xf32> to vector<64x8xf32>
    %c1_169 = arith.constant 1 : index
    %c0_170 = arith.constant 0 : index
    %c0_171 = arith.constant 0 : index
    %c0_172 = arith.constant 0 : index
    %178 = vector.load %arg4[%c1_169, %c0_170, %c0_171, %c0_172] : memref<4x4x8x4xf32, #tpu.memory_space<vmem>>, vector<1x1x8x4xf32>
    %179 = vector.shape_cast %178 : vector<1x1x8x4xf32> to vector<8x4xf32>
    %cst_173 = arith.constant dense<0.000000e+00> : vector<64x4xf32>
    %180 = tpu.matmul %177, %179, %cst_173 {dimension_numbers = #tpu.dot_dimension_numbers<[1], [0], [0], [1], [0, 0, 1, 1], [], []>} : vector<64x8xf32>, vector<8x4xf32>, vector<64x4xf32> -> vector<64x4xf32>
    %181 = arith.addf %175, %180 : vector<64x4xf32>
    %c0_174 = arith.constant 0 : index
    %c0_175 = arith.constant 0 : index
    %c2_176 = arith.constant 2 : index
    %c0_177 = arith.constant 0 : index
    %182 = vector.load %arg8[%c0_174, %c0_175, %c2_176, %c0_177] : memref<1x10x10x8xf32, #tpu.memory_space<vmem>>, vector<1x8x8x8xf32>
    %183 = vector.shape_cast %182 : vector<1x8x8x8xf32> to vector<64x8xf32>
    %c1_178 = arith.constant 1 : index
    %c1_179 = arith.constant 1 : index
    %c0_180 = arith.constant 0 : index
    %c0_181 = arith.constant 0 : index
    %184 = vector.load %arg4[%c1_178, %c1_179, %c0_180, %c0_181] : memref<4x4x8x4xf32, #tpu.memory_space<vmem>>, vector<1x1x8x4xf32>
    %185 = vector.shape_cast %184 : vector<1x1x8x4xf32> to vector<8x4xf32>
    %cst_182 = arith.constant dense<0.000000e+00> : vector<64x4xf32>
    %186 = tpu.matmul %183, %185, %cst_182 {dimension_numbers = #tpu.dot_dimension_numbers<[1], [0], [0], [1], [0, 0, 1, 1], [], []>} : vector<64x8xf32>, vector<8x4xf32>, vector<64x4xf32> -> vector<64x4xf32>
    %187 = arith.addf %181, %186 : vector<64x4xf32>
    %c0_183 = arith.constant 0 : index
    %c1_184 = arith.constant 1 : index
    %c1_185 = arith.constant 1 : index
    %c0_186 = arith.constant 0 : index
    %188 = vector.load %arg8[%c0_183, %c1_184, %c1_185, %c0_186] : memref<1x10x10x8xf32, #tpu.memory_space<vmem>>, vector<1x8x8x8xf32>
    %189 = vector.shape_cast %188 : vector<1x8x8x8xf32> to vector<64x8xf32>
    %c1_187 = arith.constant 1 : index
    %c2_188 = arith.constant 2 : index
    %c0_189 = arith.constant 0 : index
    %c0_190 = arith.constant 0 : index
    %190 = vector.load %arg4[%c1_187, %c2_188, %c0_189, %c0_190] : memref<4x4x8x4xf32, #tpu.memory_space<vmem>>, vector<1x1x8x4xf32>
    %191 = vector.shape_cast %190 : vector<1x1x8x4xf32> to vector<8x4xf32>
    %cst_191 = arith.constant dense<0.000000e+00> : vector<64x4xf32>
    %192 = tpu.matmul %189, %191, %cst_191 {dimension_numbers = #tpu.dot_dimension_numbers<[1], [0], [0], [1], [0, 0, 1, 1], [], []>} : vector<64x8xf32>, vector<8x4xf32>, vector<64x4xf32> -> vector<64x4xf32>
    %193 = arith.addf %187, %192 : vector<64x4xf32>
    %c0_192 = arith.constant 0 : index
    %c1_193 = arith.constant 1 : index
    %c2_194 = arith.constant 2 : index
    %c0_195 = arith.constant 0 : index
    %194 = vector.load %arg8[%c0_192, %c1_193, %c2_194, %c0_195] : memref<1x10x10x8xf32, #tpu.memory_space<vmem>>, vector<1x8x8x8xf32>
    %195 = vector.shape_cast %194 : vector<1x8x8x8xf32> to vector<64x8xf32>
    %c1_196 = arith.constant 1 : index
    %c3_197 = arith.constant 3 : index
    %c0_198 = arith.constant 0 : index
    %c0_199 = arith.constant 0 : index
    %196 = vector.load %arg4[%c1_196, %c3_197, %c0_198, %c0_199] : memref<4x4x8x4xf32, #tpu.memory_space<vmem>>, vector<1x1x8x4xf32>
    %197 = vector.shape_cast %196 : vector<1x1x8x4xf32> to vector<8x4xf32>
    %cst_200 = arith.constant dense<0.000000e+00> : vector<64x4xf32>
    %198 = tpu.matmul %195, %197, %cst_200 {dimension_numbers = #tpu.dot_dimension_numbers<[1], [0], [0], [1], [0, 0, 1, 1], [], []>} : vector<64x8xf32>, vector<8x4xf32>, vector<64x4xf32> -> vector<64x4xf32>
    %199 = arith.addf %193, %198 : vector<64x4xf32>
    %c0_201 = arith.constant 0 : index
    %c0_202 = arith.constant 0 : index
    %200 = vector.load %arg5[%c0_201, %c0_202] : memref<1x4xf32, #tpu.memory_space<vmem>>, vector<1x4xf32>
    %201 = vector.broadcast %200 : vector<1x4xf32> to vector<64x4xf32>
    %202 = arith.addf %199, %201 : vector<64x4xf32>
    %cst_203 = arith.constant dense<0.000000e+00> : vector<4xf32>
    %203 = vector.multi_reduction <add>, %202, %cst_203 [0] : vector<64x4xf32> to vector<4xf32>
    %204 = vector.shape_cast %203 : vector<4xf32> to vector<1x4xf32>
    %205 = arith.addf %166, %204 : vector<1x4xf32>
    %206 = arith.mulf %202, %202 : vector<64x4xf32>
    %cst_204 = arith.constant dense<0.000000e+00> : vector<4xf32>
    %207 = vector.multi_reduction <add>, %206, %cst_204 [0] : vector<64x4xf32> to vector<4xf32>
    %208 = vector.shape_cast %207 : vector<4xf32> to vector<1x4xf32>
    %209 = arith.addf %170, %208 : vector<1x4xf32>
    %210 = vector.shape_cast %202 : vector<64x4xf32> to vector<1x8x8x4xf32>
    %c1_205 = arith.constant 1 : index
    %c0_206 = arith.constant 0 : index
    %c0_207 = arith.constant 0 : index
    %c0_208 = arith.constant 0 : index
    %c0_209 = arith.constant 0 : index
    %211 = vector.load %arg6[%c1_205, %c0_206, %c0_207, %c0_208, %c0_209] : memref<4x1x8x8x4xf32, #tpu.memory_space<vmem>>, vector<1x1x8x8x4xf32>
    %212 = vector.shape_cast %211 : vector<1x1x8x8x4xf32> to vector<1x8x8x4xf32>
    %213 = vector.shape_cast %210 : vector<1x8x8x4xf32> to vector<1x1x8x8x4xf32>
    tpu.vector_store %arg6[%c1_205, %c0_206, %c0_207, %c0_208, %c0_209], %213 {strides = array<i32>} : memref<4x1x8x8x4xf32, #tpu.memory_space<vmem>>, vector<1x1x8x8x4xf32>,
    %cst_210 = arith.constant 0.000000e+00 : f32
    %214 = vector.broadcast %cst_210 : f32 to vector<64x4xf32>
    %c0_211 = arith.constant 0 : index
    %c1_212 = arith.constant 1 : index
    %c0_213 = arith.constant 0 : index
    %c0_214 = arith.constant 0 : index
    %215 = vector.load %arg8[%c0_211, %c1_212, %c0_213, %c0_214] : memref<1x10x10x8xf32, #tpu.memory_space<vmem>>, vector<1x8x8x8xf32>
    %216 = vector.shape_cast %215 : vector<1x8x8x8xf32> to vector<64x8xf32>
    %c2_215 = arith.constant 2 : index
    %c0_216 = arith.constant 0 : index
    %c0_217 = arith.constant 0 : index
    %c0_218 = arith.constant 0 : index
    %217 = vector.load %arg4[%c2_215, %c0_216, %c0_217, %c0_218] : memref<4x4x8x4xf32, #tpu.memory_space<vmem>>, vector<1x1x8x4xf32>
    %218 = vector.shape_cast %217 : vector<1x1x8x4xf32> to vector<8x4xf32>
    %cst_219 = arith.constant dense<0.000000e+00> : vector<64x4xf32>
    %219 = tpu.matmul %216, %218, %cst_219 {dimension_numbers = #tpu.dot_dimension_numbers<[1], [0], [0], [1], [0, 0, 1, 1], [], []>} : vector<64x8xf32>, vector<8x4xf32>, vector<64x4xf32> -> vector<64x4xf32>
    %220 = arith.addf %214, %219 : vector<64x4xf32>
    %c0_220 = arith.constant 0 : index
    %c1_221 = arith.constant 1 : index
    %c1_222 = arith.constant 1 : index
    %c0_223 = arith.constant 0 : index
    %221 = vector.load %arg8[%c0_220, %c1_221, %c1_222, %c0_223] : memref<1x10x10x8xf32, #tpu.memory_space<vmem>>, vector<1x8x8x8xf32>
    %222 = vector.shape_cast %221 : vector<1x8x8x8xf32> to vector<64x8xf32>
    %c2_224 = arith.constant 2 : index
    %c1_225 = arith.constant 1 : index
    %c0_226 = arith.constant 0 : index
    %c0_227 = arith.constant 0 : index
    %223 = vector.load %arg4[%c2_224, %c1_225, %c0_226, %c0_227] : memref<4x4x8x4xf32, #tpu.memory_space<vmem>>, vector<1x1x8x4xf32>
    %224 = vector.shape_cast %223 : vector<1x1x8x4xf32> to vector<8x4xf32>
    %cst_228 = arith.constant dense<0.000000e+00> : vector<64x4xf32>
    %225 = tpu.matmul %222, %224, %cst_228 {dimension_numbers = #tpu.dot_dimension_numbers<[1], [0], [0], [1], [0, 0, 1, 1], [], []>} : vector<64x8xf32>, vector<8x4xf32>, vector<64x4xf32> -> vector<64x4xf32>
    %226 = arith.addf %220, %225 : vector<64x4xf32>
    %c0_229 = arith.constant 0 : index
    %c2_230 = arith.constant 2 : index
    %c0_231 = arith.constant 0 : index
    %c0_232 = arith.constant 0 : index
    %227 = vector.load %arg8[%c0_229, %c2_230, %c0_231, %c0_232] : memref<1x10x10x8xf32, #tpu.memory_space<vmem>>, vector<1x8x8x8xf32>
    %228 = vector.shape_cast %227 : vector<1x8x8x8xf32> to vector<64x8xf32>
    %c2_233 = arith.constant 2 : index
    %c2_234 = arith.constant 2 : index
    %c0_235 = arith.constant 0 : index
    %c0_236 = arith.constant 0 : index
    %229 = vector.load %arg4[%c2_233, %c2_234, %c0_235, %c0_236] : memref<4x4x8x4xf32, #tpu.memory_space<vmem>>, vector<1x1x8x4xf32>
    %230 = vector.shape_cast %229 : vector<1x1x8x4xf32> to vector<8x4xf32>
    %cst_237 = arith.constant dense<0.000000e+00> : vector<64x4xf32>
    %231 = tpu.matmul %228, %230, %cst_237 {dimension_numbers = #tpu.dot_dimension_numbers<[1], [0], [0], [1], [0, 0, 1, 1], [], []>} : vector<64x8xf32>, vector<8x4xf32>, vector<64x4xf32> -> vector<64x4xf32>
    %232 = arith.addf %226, %231 : vector<64x4xf32>
    %c0_238 = arith.constant 0 : index
    %c2_239 = arith.constant 2 : index
    %c1_240 = arith.constant 1 : index
    %c0_241 = arith.constant 0 : index
    %233 = vector.load %arg8[%c0_238, %c2_239, %c1_240, %c0_241] : memref<1x10x10x8xf32, #tpu.memory_space<vmem>>, vector<1x8x8x8xf32>
    %234 = vector.shape_cast %233 : vector<1x8x8x8xf32> to vector<64x8xf32>
    %c2_242 = arith.constant 2 : index
    %c3_243 = arith.constant 3 : index
    %c0_244 = arith.constant 0 : index
    %c0_245 = arith.constant 0 : index
    %235 = vector.load %arg4[%c2_242, %c3_243, %c0_244, %c0_245] : memref<4x4x8x4xf32, #tpu.memory_space<vmem>>, vector<1x1x8x4xf32>
    %236 = vector.shape_cast %235 : vector<1x1x8x4xf32> to vector<8x4xf32>
    %cst_246 = arith.constant dense<0.000000e+00> : vector<64x4xf32>
    %237 = tpu.matmul %234, %236, %cst_246 {dimension_numbers = #tpu.dot_dimension_numbers<[1], [0], [0], [1], [0, 0, 1, 1], [], []>} : vector<64x8xf32>, vector<8x4xf32>, vector<64x4xf32> -> vector<64x4xf32>
    %238 = arith.addf %232, %237 : vector<64x4xf32>
    %c0_247 = arith.constant 0 : index
    %c0_248 = arith.constant 0 : index
    %239 = vector.load %arg5[%c0_247, %c0_248] : memref<1x4xf32, #tpu.memory_space<vmem>>, vector<1x4xf32>
    %240 = vector.broadcast %239 : vector<1x4xf32> to vector<64x4xf32>
    %241 = arith.addf %238, %240 : vector<64x4xf32>
    %cst_249 = arith.constant dense<0.000000e+00> : vector<4xf32>
    %242 = vector.multi_reduction <add>, %241, %cst_249 [0] : vector<64x4xf32> to vector<4xf32>
    %243 = vector.shape_cast %242 : vector<4xf32> to vector<1x4xf32>
    %244 = arith.addf %205, %243 : vector<1x4xf32>
    %245 = arith.mulf %241, %241 : vector<64x4xf32>
    %cst_250 = arith.constant dense<0.000000e+00> : vector<4xf32>
    %246 = vector.multi_reduction <add>, %245, %cst_250 [0] : vector<64x4xf32> to vector<4xf32>
    %247 = vector.shape_cast %246 : vector<4xf32> to vector<1x4xf32>
    %248 = arith.addf %209, %247 : vector<1x4xf32>
    %249 = vector.shape_cast %241 : vector<64x4xf32> to vector<1x8x8x4xf32>
    %c2_251 = arith.constant 2 : index
    %c0_252 = arith.constant 0 : index
    %c0_253 = arith.constant 0 : index
    %c0_254 = arith.constant 0 : index
    %c0_255 = arith.constant 0 : index
    %250 = vector.load %arg6[%c2_251, %c0_252, %c0_253, %c0_254, %c0_255] : memref<4x1x8x8x4xf32, #tpu.memory_space<vmem>>, vector<1x1x8x8x4xf32>
    %251 = vector.shape_cast %250 : vector<1x1x8x8x4xf32> to vector<1x8x8x4xf32>
    %252 = vector.shape_cast %249 : vector<1x8x8x4xf32> to vector<1x1x8x8x4xf32>
    tpu.vector_store %arg6[%c2_251, %c0_252, %c0_253, %c0_254, %c0_255], %252 {strides = array<i32>} : memref<4x1x8x8x4xf32, #tpu.memory_space<vmem>>, vector<1x1x8x8x4xf32>,
    %cst_256 = arith.constant 0.000000e+00 : f32
    %253 = vector.broadcast %cst_256 : f32 to vector<64x4xf32>
    %c0_257 = arith.constant 0 : index
    %c1_258 = arith.constant 1 : index
    %c1_259 = arith.constant 1 : index
    %c0_260 = arith.constant 0 : index
    %254 = vector.load %arg8[%c0_257, %c1_258, %c1_259, %c0_260] : memref<1x10x10x8xf32, #tpu.memory_space<vmem>>, vector<1x8x8x8xf32>
    %255 = vector.shape_cast %254 : vector<1x8x8x8xf32> to vector<64x8xf32>
    %c3_261 = arith.constant 3 : index
    %c0_262 = arith.constant 0 : index
    %c0_263 = arith.constant 0 : index
    %c0_264 = arith.constant 0 : index
    %256 = vector.load %arg4[%c3_261, %c0_262, %c0_263, %c0_264] : memref<4x4x8x4xf32, #tpu.memory_space<vmem>>, vector<1x1x8x4xf32>
    %257 = vector.shape_cast %256 : vector<1x1x8x4xf32> to vector<8x4xf32>
    %cst_265 = arith.constant dense<0.000000e+00> : vector<64x4xf32>
    %258 = tpu.matmul %255, %257, %cst_265 {dimension_numbers = #tpu.dot_dimension_numbers<[1], [0], [0], [1], [0, 0, 1, 1], [], []>} : vector<64x8xf32>, vector<8x4xf32>, vector<64x4xf32> -> vector<64x4xf32>
    %259 = arith.addf %253, %258 : vector<64x4xf32>
    %c0_266 = arith.constant 0 : index
    %c1_267 = arith.constant 1 : index
    %c2_268 = arith.constant 2 : index
    %c0_269 = arith.constant 0 : index
    %260 = vector.load %arg8[%c0_266, %c1_267, %c2_268, %c0_269] : memref<1x10x10x8xf32, #tpu.memory_space<vmem>>, vector<1x8x8x8xf32>
    %261 = vector.shape_cast %260 : vector<1x8x8x8xf32> to vector<64x8xf32>
    %c3_270 = arith.constant 3 : index
    %c1_271 = arith.constant 1 : index
    %c0_272 = arith.constant 0 : index
    %c0_273 = arith.constant 0 : index
    %262 = vector.load %arg4[%c3_270, %c1_271, %c0_272, %c0_273] : memref<4x4x8x4xf32, #tpu.memory_space<vmem>>, vector<1x1x8x4xf32>
    %263 = vector.shape_cast %262 : vector<1x1x8x4xf32> to vector<8x4xf32>
    %cst_274 = arith.constant dense<0.000000e+00> : vector<64x4xf32>
    %264 = tpu.matmul %261, %263, %cst_274 {dimension_numbers = #tpu.dot_dimension_numbers<[1], [0], [0], [1], [0, 0, 1, 1], [], []>} : vector<64x8xf32>, vector<8x4xf32>, vector<64x4xf32> -> vector<64x4xf32>
    %265 = arith.addf %259, %264 : vector<64x4xf32>
    %c0_275 = arith.constant 0 : index
    %c2_276 = arith.constant 2 : index
    %c1_277 = arith.constant 1 : index
    %c0_278 = arith.constant 0 : index
    %266 = vector.load %arg8[%c0_275, %c2_276, %c1_277, %c0_278] : memref<1x10x10x8xf32, #tpu.memory_space<vmem>>, vector<1x8x8x8xf32>
    %267 = vector.shape_cast %266 : vector<1x8x8x8xf32> to vector<64x8xf32>
    %c3_279 = arith.constant 3 : index
    %c2_280 = arith.constant 2 : index
    %c0_281 = arith.constant 0 : index
    %c0_282 = arith.constant 0 : index
    %268 = vector.load %arg4[%c3_279, %c2_280, %c0_281, %c0_282] : memref<4x4x8x4xf32, #tpu.memory_space<vmem>>, vector<1x1x8x4xf32>
    %269 = vector.shape_cast %268 : vector<1x1x8x4xf32> to vector<8x4xf32>
    %cst_283 = arith.constant dense<0.000000e+00> : vector<64x4xf32>
    %270 = tpu.matmul %267, %269, %cst_283 {dimension_numbers = #tpu.dot_dimension_numbers<[1], [0], [0], [1], [0, 0, 1, 1], [], []>} : vector<64x8xf32>, vector<8x4xf32>, vector<64x4xf32> -> vector<64x4xf32>
    %271 = arith.addf %265, %270 : vector<64x4xf32>
    %c0_284 = arith.constant 0 : index
    %c2_285 = arith.constant 2 : index
    %c2_286 = arith.constant 2 : index
    %c0_287 = arith.constant 0 : index
    %272 = vector.load %arg8[%c0_284, %c2_285, %c2_286, %c0_287] : memref<1x10x10x8xf32, #tpu.memory_space<vmem>>, vector<1x8x8x8xf32>
    %273 = vector.shape_cast %272 : vector<1x8x8x8xf32> to vector<64x8xf32>
    %c3_288 = arith.constant 3 : index
    %c3_289 = arith.constant 3 : index
    %c0_290 = arith.constant 0 : index
    %c0_291 = arith.constant 0 : index
    %274 = vector.load %arg4[%c3_288, %c3_289, %c0_290, %c0_291] : memref<4x4x8x4xf32, #tpu.memory_space<vmem>>, vector<1x1x8x4xf32>
    %275 = vector.shape_cast %274 : vector<1x1x8x4xf32> to vector<8x4xf32>
    %cst_292 = arith.constant dense<0.000000e+00> : vector<64x4xf32>
    %276 = tpu.matmul %273, %275, %cst_292 {dimension_numbers = #tpu.dot_dimension_numbers<[1], [0], [0], [1], [0, 0, 1, 1], [], []>} : vector<64x8xf32>, vector<8x4xf32>, vector<64x4xf32> -> vector<64x4xf32>
    %277 = arith.addf %271, %276 : vector<64x4xf32>
    %c0_293 = arith.constant 0 : index
    %c0_294 = arith.constant 0 : index
    %278 = vector.load %arg5[%c0_293, %c0_294] : memref<1x4xf32, #tpu.memory_space<vmem>>, vector<1x4xf32>
    %279 = vector.broadcast %278 : vector<1x4xf32> to vector<64x4xf32>
    %280 = arith.addf %277, %279 : vector<64x4xf32>
    %cst_295 = arith.constant dense<0.000000e+00> : vector<4xf32>
    %281 = vector.multi_reduction <add>, %280, %cst_295 [0] : vector<64x4xf32> to vector<4xf32>
    %282 = vector.shape_cast %281 : vector<4xf32> to vector<1x4xf32>
    %283 = arith.addf %244, %282 : vector<1x4xf32>
    %284 = arith.mulf %280, %280 : vector<64x4xf32>
    %cst_296 = arith.constant dense<0.000000e+00> : vector<4xf32>
    %285 = vector.multi_reduction <add>, %284, %cst_296 [0] : vector<64x4xf32> to vector<4xf32>
    %286 = vector.shape_cast %285 : vector<4xf32> to vector<1x4xf32>
    %287 = arith.addf %248, %286 : vector<1x4xf32>
    %288 = vector.shape_cast %280 : vector<64x4xf32> to vector<1x8x8x4xf32>
    %c3_297 = arith.constant 3 : index
    %c0_298 = arith.constant 0 : index
    %c0_299 = arith.constant 0 : index
    %c0_300 = arith.constant 0 : index
    %c0_301 = arith.constant 0 : index
    %289 = vector.load %arg6[%c3_297, %c0_298, %c0_299, %c0_300, %c0_301] : memref<4x1x8x8x4xf32, #tpu.memory_space<vmem>>, vector<1x1x8x8x4xf32>
    %290 = vector.shape_cast %289 : vector<1x1x8x8x4xf32> to vector<1x8x8x4xf32>
    %291 = vector.shape_cast %288 : vector<1x8x8x4xf32> to vector<1x1x8x8x4xf32>
    tpu.vector_store %arg6[%c3_297, %c0_298, %c0_299, %c0_300, %c0_301], %291 {strides = array<i32>} : memref<4x1x8x8x4xf32, #tpu.memory_space<vmem>>, vector<1x1x8x8x4xf32>,
    %c0_302 = arith.constant 0 : index
    %c0_303 = arith.constant 0 : index
    %c0_304 = arith.constant 0 : index
    %292 = vector.load %arg7[%c0_302, %c0_303, %c0_304] : memref<1x2x4xf32, #tpu.memory_space<vmem>>, vector<1x1x4xf32>
    %293 = vector.shape_cast %292 : vector<1x1x4xf32> to vector<1x4xf32>
    %294 = vector.shape_cast %283 : vector<1x4xf32> to vector<1x1x4xf32>
    tpu.vector_store %arg7[%c0_302, %c0_303, %c0_304], %294 {strides = array<i32>} : memref<1x2x4xf32, #tpu.memory_space<vmem>>, vector<1x1x4xf32>,
    %c0_305 = arith.constant 0 : index
    %c1_306 = arith.constant 1 : index
    %c0_307 = arith.constant 0 : index
    %295 = vector.load %arg7[%c0_305, %c1_306, %c0_307] : memref<1x2x4xf32, #tpu.memory_space<vmem>>, vector<1x1x4xf32>
    %296 = vector.shape_cast %295 : vector<1x1x4xf32> to vector<1x4xf32>
    %297 = vector.shape_cast %287 : vector<1x4xf32> to vector<1x1x4xf32>
    tpu.vector_store %arg7[%c0_305, %c1_306, %c0_307], %297 {strides = array<i32>} : memref<1x2x4xf32, #tpu.memory_space<vmem>>, vector<1x1x4xf32>,
    return
  }
  func.func @transform_0(%arg0: i32) -> (i32, i32, i32, i32, i32) {
    %c0_i32 = arith.constant 0 : i32
    %c0_i32_0 = arith.constant 0 : i32
    %c0_i32_1 = arith.constant 0 : i32
    %c0_i32_2 = arith.constant 0 : i32
    %c0_i32_3 = arith.constant 0 : i32
    return %c0_i32, %arg0, %c0_i32_0, %c0_i32_1, %c0_i32_2 : i32, i32, i32, i32, i32
  }
  func.func @transform_1(%arg0: i32) -> (i32, i32, i32, i32) {
    %c0_i32 = arith.constant 0 : i32
    %c0_i32_0 = arith.constant 0 : i32
    %c0_i32_1 = arith.constant 0 : i32
    %c0_i32_2 = arith.constant 0 : i32
    %c0_i32_3 = arith.constant 0 : i32
    return %c0_i32, %c0_i32_0, %c0_i32_1, %c0_i32_2 : i32, i32, i32, i32
  }
  func.func @transform_2(%arg0: i32) -> (i32, i32) {
    %c0_i32 = arith.constant 0 : i32
    %c0_i32_0 = arith.constant 0 : i32
    %c0_i32_1 = arith.constant 0 : i32
    return %c0_i32, %c0_i32_0 : i32, i32
  }
  func.func @transform_3(%arg0: i32) -> (i32, i32, i32, i32) {
    %c0_i32 = arith.constant 0 : i32
    %c0_i32_0 = arith.constant 0 : i32
    %c0_i32_1 = arith.constant 0 : i32
    %c0_i32_2 = arith.constant 0 : i32
    %c0_i32_3 = arith.constant 0 : i32
    return %c0_i32, %c0_i32_0, %c0_i32_1, %c0_i32_2 : i32, i32, i32, i32
  }
  func.func @transform_4(%arg0: i32) -> (i32, i32) {
    %c0_i32 = arith.constant 0 : i32
    %c0_i32_0 = arith.constant 0 : i32
    %c0_i32_1 = arith.constant 0 : i32
    return %c0_i32, %c0_i32_0 : i32, i32
  }
  func.func @transform_5(%arg0: i32) -> (i32, i32, i32, i32, i32) {
    %c0_i32 = arith.constant 0 : i32
    %c0_i32_0 = arith.constant 0 : i32
    %c0_i32_1 = arith.constant 0 : i32
    %c0_i32_2 = arith.constant 0 : i32
    %c0_i32_3 = arith.constant 0 : i32
    return %c0_i32, %arg0, %c0_i32_0, %c0_i32_1, %c0_i32_2 : i32, i32, i32, i32, i32
  }
  func.func @transform_6(%arg0: i32) -> (i32, i32, i32) {
    %c0_i32 = arith.constant 0 : i32
    %c0_i32_0 = arith.constant 0 : i32
    %c0_i32_1 = arith.constant 0 : i32
    return %arg0, %c0_i32, %c0_i32_0 : i32, i32, i32
  }
}

module attributes {stable_mosaic.version = 11 : i64} {
  func.func @_fused_enc_dec_kernel(%arg0: i32, %arg1: memref<4x1x9x9x4xf32, #tpu.memory_space<vmem>>, %arg2: memref<4x4x4x8xf32, #tpu.memory_space<vmem>>, %arg3: memref<1x8xf32, #tpu.memory_space<vmem>>, %arg4: memref<4x4x8x4xf32, #tpu.memory_space<vmem>>, %arg5: memref<1x4xf32, #tpu.memory_space<vmem>>, %arg6: memref<4x1x8x8x4xf32, #tpu.memory_space<vmem>>, %arg7: memref<1x2x4xf32, #tpu.memory_space<vmem>>, %arg8: memref<1x10x10x8xf32, #tpu.memory_space<vmem>>) attributes {dimension_semantics = [#tpu.dimension_semantics<parallel>], iteration_bounds = array<i64: 2>, scalar_prefetch = 0 : i64, scratch_operands = 1 : i64, tpu.core_type = #tpu.core_type<tc>, window_params = [{transform_indices = @transform_0, window_bounds = array<i64: 4, 1, 9, 9, 4>}, {pipeline_mode = #tpu.pipeline_mode<synchronous>, transform_indices = @transform_1, window_bounds = array<i64: 4, 4, 4, 8>}, {pipeline_mode = #tpu.pipeline_mode<synchronous>, transform_indices = @transform_2, window_bounds = array<i64: 1, 8>}, {pipeline_mode = #tpu.pipeline_mode<synchronous>, transform_indices = @transform_3, window_bounds = array<i64: 4, 4, 8, 4>}, {pipeline_mode = #tpu.pipeline_mode<synchronous>, transform_indices = @transform_4, window_bounds = array<i64: 1, 4>}, {transform_indices = @transform_5, window_bounds = array<i64: 4, 1, 8, 8, 4>}, {transform_indices = @transform_6, window_bounds = array<i64: 1, 2, 4>}]} {
    %cst = arith.constant 0.000000e+00 : f32
    %0 = vector.broadcast %cst : f32 to vector<64x8xf32>
    %c0 = arith.constant 0 : index
    %c0_0 = arith.constant 0 : index
    %c0_1 = arith.constant 0 : index
    %c0_2 = arith.constant 0 : index
    %c0_3 = arith.constant 0 : index
    %1 = vector.load %arg1[%c0, %c0_0, %c0_1, %c0_2, %c0_3] : memref<4x1x9x9x4xf32, #tpu.memory_space<vmem>>, vector<1x1x9x9x4xf32>
    %2 = vector.shape_cast %1 : vector<1x1x9x9x4xf32> to vector<1x9x9x4xf32>
    %cst_4 = arith.constant 0.000000e+00 : f32
    %3 = vector.broadcast %cst_4 : f32 to vector<1x9x9x4xf32>
    %4 = arith.cmpf oge, %2, %3 : vector<1x9x9x4xf32>
    %cst_5 = arith.constant 2.000000e-01 : f32
    %5 = vector.broadcast %cst_5 : f32 to vector<1x9x9x4xf32>
    %6 = arith.mulf %5, %2 : vector<1x9x9x4xf32>
    %7 = arith.select %4, %2, %6 : vector<1x9x9x4xi1>, vector<1x9x9x4xf32>
    %8 = vector.extract_strided_slice %7 {offsets = [0, 0, 0, 0], sizes = [1, 8, 8, 4], strides = [1, 1, 1, 1]} : vector<1x9x9x4xf32> to vector<1x8x8x4xf32>
    %9 = vector.shape_cast %8 : vector<1x8x8x4xf32> to vector<64x4xf32>
    %c0_6 = arith.constant 0 : index
    %c0_7 = arith.constant 0 : index
    %c0_8 = arith.constant 0 : index
    %c0_9 = arith.constant 0 : index
    %10 = vector.load %arg2[%c0_6, %c0_7, %c0_8, %c0_9] : memref<4x4x4x8xf32, #tpu.memory_space<vmem>>, vector<1x1x4x8xf32>
    %11 = vector.shape_cast %10 : vector<1x1x4x8xf32> to vector<4x8xf32>
    %cst_10 = arith.constant dense<0.000000e+00> : vector<64x8xf32>
    %12 = tpu.matmul %9, %11, %cst_10 {dimension_numbers = #tpu.dot_dimension_numbers<[1], [0], [0], [1], [0, 0, 1, 1], [], []>} : vector<64x4xf32>, vector<4x8xf32>, vector<64x8xf32> -> vector<64x8xf32>
    %13 = arith.addf %0, %12 : vector<64x8xf32>
    %14 = vector.extract_strided_slice %7 {offsets = [0, 0, 1, 0], sizes = [1, 8, 8, 4], strides = [1, 1, 1, 1]} : vector<1x9x9x4xf32> to vector<1x8x8x4xf32>
    %15 = vector.shape_cast %14 : vector<1x8x8x4xf32> to vector<64x4xf32>
    %c0_11 = arith.constant 0 : index
    %c2 = arith.constant 2 : index
    %c0_12 = arith.constant 0 : index
    %c0_13 = arith.constant 0 : index
    %16 = vector.load %arg2[%c0_11, %c2, %c0_12, %c0_13] : memref<4x4x4x8xf32, #tpu.memory_space<vmem>>, vector<1x1x4x8xf32>
    %17 = vector.shape_cast %16 : vector<1x1x4x8xf32> to vector<4x8xf32>
    %cst_14 = arith.constant dense<0.000000e+00> : vector<64x8xf32>
    %18 = tpu.matmul %15, %17, %cst_14 {dimension_numbers = #tpu.dot_dimension_numbers<[1], [0], [0], [1], [0, 0, 1, 1], [], []>} : vector<64x4xf32>, vector<4x8xf32>, vector<64x8xf32> -> vector<64x8xf32>
    %19 = arith.addf %13, %18 : vector<64x8xf32>
    %20 = vector.extract_strided_slice %7 {offsets = [0, 1, 0, 0], sizes = [1, 8, 8, 4], strides = [1, 1, 1, 1]} : vector<1x9x9x4xf32> to vector<1x8x8x4xf32>
    %21 = vector.shape_cast %20 : vector<1x8x8x4xf32> to vector<64x4xf32>
    %c2_15 = arith.constant 2 : index
    %c0_16 = arith.constant 0 : index
    %c0_17 = arith.constant 0 : index
    %c0_18 = arith.constant 0 : index
    %22 = vector.load %arg2[%c2_15, %c0_16, %c0_17, %c0_18] : memref<4x4x4x8xf32, #tpu.memory_space<vmem>>, vector<1x1x4x8xf32>
    %23 = vector.shape_cast %22 : vector<1x1x4x8xf32> to vector<4x8xf32>
    %cst_19 = arith.constant dense<0.000000e+00> : vector<64x8xf32>
    %24 = tpu.matmul %21, %23, %cst_19 {dimension_numbers = #tpu.dot_dimension_numbers<[1], [0], [0], [1], [0, 0, 1, 1], [], []>} : vector<64x4xf32>, vector<4x8xf32>, vector<64x8xf32> -> vector<64x8xf32>
    %25 = arith.addf %19, %24 : vector<64x8xf32>
    %26 = vector.extract_strided_slice %7 {offsets = [0, 1, 1, 0], sizes = [1, 8, 8, 4], strides = [1, 1, 1, 1]} : vector<1x9x9x4xf32> to vector<1x8x8x4xf32>
    %27 = vector.shape_cast %26 : vector<1x8x8x4xf32> to vector<64x4xf32>
    %c2_20 = arith.constant 2 : index
    %c2_21 = arith.constant 2 : index
    %c0_22 = arith.constant 0 : index
    %c0_23 = arith.constant 0 : index
    %28 = vector.load %arg2[%c2_20, %c2_21, %c0_22, %c0_23] : memref<4x4x4x8xf32, #tpu.memory_space<vmem>>, vector<1x1x4x8xf32>
    %29 = vector.shape_cast %28 : vector<1x1x4x8xf32> to vector<4x8xf32>
    %cst_24 = arith.constant dense<0.000000e+00> : vector<64x8xf32>
    %30 = tpu.matmul %27, %29, %cst_24 {dimension_numbers = #tpu.dot_dimension_numbers<[1], [0], [0], [1], [0, 0, 1, 1], [], []>} : vector<64x4xf32>, vector<4x8xf32>, vector<64x8xf32> -> vector<64x8xf32>
    %31 = arith.addf %25, %30 : vector<64x8xf32>
    %c1 = arith.constant 1 : index
    %c0_25 = arith.constant 0 : index
    %c0_26 = arith.constant 0 : index
    %c0_27 = arith.constant 0 : index
    %c0_28 = arith.constant 0 : index
    %32 = vector.load %arg1[%c1, %c0_25, %c0_26, %c0_27, %c0_28] : memref<4x1x9x9x4xf32, #tpu.memory_space<vmem>>, vector<1x1x9x9x4xf32>
    %33 = vector.shape_cast %32 : vector<1x1x9x9x4xf32> to vector<1x9x9x4xf32>
    %cst_29 = arith.constant 0.000000e+00 : f32
    %34 = vector.broadcast %cst_29 : f32 to vector<1x9x9x4xf32>
    %35 = arith.cmpf oge, %33, %34 : vector<1x9x9x4xf32>
    %cst_30 = arith.constant 2.000000e-01 : f32
    %36 = vector.broadcast %cst_30 : f32 to vector<1x9x9x4xf32>
    %37 = arith.mulf %36, %33 : vector<1x9x9x4xf32>
    %38 = arith.select %35, %33, %37 : vector<1x9x9x4xi1>, vector<1x9x9x4xf32>
    %39 = vector.extract_strided_slice %38 {offsets = [0, 0, 0, 0], sizes = [1, 8, 8, 4], strides = [1, 1, 1, 1]} : vector<1x9x9x4xf32> to vector<1x8x8x4xf32>
    %40 = vector.shape_cast %39 : vector<1x8x8x4xf32> to vector<64x4xf32>
    %c0_31 = arith.constant 0 : index
    %c1_32 = arith.constant 1 : index
    %c0_33 = arith.constant 0 : index
    %c0_34 = arith.constant 0 : index
    %41 = vector.load %arg2[%c0_31, %c1_32, %c0_33, %c0_34] : memref<4x4x4x8xf32, #tpu.memory_space<vmem>>, vector<1x1x4x8xf32>
    %42 = vector.shape_cast %41 : vector<1x1x4x8xf32> to vector<4x8xf32>
    %cst_35 = arith.constant dense<0.000000e+00> : vector<64x8xf32>
    %43 = tpu.matmul %40, %42, %cst_35 {dimension_numbers = #tpu.dot_dimension_numbers<[1], [0], [0], [1], [0, 0, 1, 1], [], []>} : vector<64x4xf32>, vector<4x8xf32>, vector<64x8xf32> -> vector<64x8xf32>
    %44 = arith.addf %31, %43 : vector<64x8xf32>
    %45 = vector.extract_strided_slice %38 {offsets = [0, 0, 1, 0], sizes = [1, 8, 8, 4], strides = [1, 1, 1, 1]} : vector<1x9x9x4xf32> to vector<1x8x8x4xf32>
    %46 = vector.shape_cast %45 : vector<1x8x8x4xf32> to vector<64x4xf32>
    %c0_36 = arith.constant 0 : index
    %c3 = arith.constant 3 : index
    %c0_37 = arith.constant 0 : index
    %c0_38 = arith.constant 0 : index
    %47 = vector.load %arg2[%c0_36, %c3, %c0_37, %c0_38] : memref<4x4x4x8xf32, #tpu.memory_space<vmem>>, vector<1x1x4x8xf32>
    %48 = vector.shape_cast %47 : vector<1x1x4x8xf32> to vector<4x8xf32>
    %cst_39 = arith.constant dense<0.000000e+00> : vector<64x8xf32>
    %49 = tpu.matmul %46, %48, %cst_39 {dimension_numbers = #tpu.dot_dimension_numbers<[1], [0], [0], [1], [0, 0, 1, 1], [], []>} : vector<64x4xf32>, vector<4x8xf32>, vector<64x8xf32> -> vector<64x8xf32>
    %50 = arith.addf %44, %49 : vector<64x8xf32>
    %51 = vector.extract_strided_slice %38 {offsets = [0, 1, 0, 0], sizes = [1, 8, 8, 4], strides = [1, 1, 1, 1]} : vector<1x9x9x4xf32> to vector<1x8x8x4xf32>
    %52 = vector.shape_cast %51 : vector<1x8x8x4xf32> to vector<64x4xf32>
    %c2_40 = arith.constant 2 : index
    %c1_41 = arith.constant 1 : index
    %c0_42 = arith.constant 0 : index
    %c0_43 = arith.constant 0 : index
    %53 = vector.load %arg2[%c2_40, %c1_41, %c0_42, %c0_43] : memref<4x4x4x8xf32, #tpu.memory_space<vmem>>, vector<1x1x4x8xf32>
    %54 = vector.shape_cast %53 : vector<1x1x4x8xf32> to vector<4x8xf32>
    %cst_44 = arith.constant dense<0.000000e+00> : vector<64x8xf32>
    %55 = tpu.matmul %52, %54, %cst_44 {dimension_numbers = #tpu.dot_dimension_numbers<[1], [0], [0], [1], [0, 0, 1, 1], [], []>} : vector<64x4xf32>, vector<4x8xf32>, vector<64x8xf32> -> vector<64x8xf32>
    %56 = arith.addf %50, %55 : vector<64x8xf32>
    %57 = vector.extract_strided_slice %38 {offsets = [0, 1, 1, 0], sizes = [1, 8, 8, 4], strides = [1, 1, 1, 1]} : vector<1x9x9x4xf32> to vector<1x8x8x4xf32>
    %58 = vector.shape_cast %57 : vector<1x8x8x4xf32> to vector<64x4xf32>
    %c2_45 = arith.constant 2 : index
    %c3_46 = arith.constant 3 : index
    %c0_47 = arith.constant 0 : index
    %c0_48 = arith.constant 0 : index
    %59 = vector.load %arg2[%c2_45, %c3_46, %c0_47, %c0_48] : memref<4x4x4x8xf32, #tpu.memory_space<vmem>>, vector<1x1x4x8xf32>
    %60 = vector.shape_cast %59 : vector<1x1x4x8xf32> to vector<4x8xf32>
    %cst_49 = arith.constant dense<0.000000e+00> : vector<64x8xf32>
    %61 = tpu.matmul %58, %60, %cst_49 {dimension_numbers = #tpu.dot_dimension_numbers<[1], [0], [0], [1], [0, 0, 1, 1], [], []>} : vector<64x4xf32>, vector<4x8xf32>, vector<64x8xf32> -> vector<64x8xf32>
    %62 = arith.addf %56, %61 : vector<64x8xf32>
    %c2_50 = arith.constant 2 : index
    %c0_51 = arith.constant 0 : index
    %c0_52 = arith.constant 0 : index
    %c0_53 = arith.constant 0 : index
    %c0_54 = arith.constant 0 : index
    %63 = vector.load %arg1[%c2_50, %c0_51, %c0_52, %c0_53, %c0_54] : memref<4x1x9x9x4xf32, #tpu.memory_space<vmem>>, vector<1x1x9x9x4xf32>
    %64 = vector.shape_cast %63 : vector<1x1x9x9x4xf32> to vector<1x9x9x4xf32>
    %cst_55 = arith.constant 0.000000e+00 : f32
    %65 = vector.broadcast %cst_55 : f32 to vector<1x9x9x4xf32>
    %66 = arith.cmpf oge, %64, %65 : vector<1x9x9x4xf32>
    %cst_56 = arith.constant 2.000000e-01 : f32
    %67 = vector.broadcast %cst_56 : f32 to vector<1x9x9x4xf32>
    %68 = arith.mulf %67, %64 : vector<1x9x9x4xf32>
    %69 = arith.select %66, %64, %68 : vector<1x9x9x4xi1>, vector<1x9x9x4xf32>
    %70 = vector.extract_strided_slice %69 {offsets = [0, 0, 0, 0], sizes = [1, 8, 8, 4], strides = [1, 1, 1, 1]} : vector<1x9x9x4xf32> to vector<1x8x8x4xf32>
    %71 = vector.shape_cast %70 : vector<1x8x8x4xf32> to vector<64x4xf32>
    %c1_57 = arith.constant 1 : index
    %c0_58 = arith.constant 0 : index
    %c0_59 = arith.constant 0 : index
    %c0_60 = arith.constant 0 : index
    %72 = vector.load %arg2[%c1_57, %c0_58, %c0_59, %c0_60] : memref<4x4x4x8xf32, #tpu.memory_space<vmem>>, vector<1x1x4x8xf32>
    %73 = vector.shape_cast %72 : vector<1x1x4x8xf32> to vector<4x8xf32>
    %cst_61 = arith.constant dense<0.000000e+00> : vector<64x8xf32>
    %74 = tpu.matmul %71, %73, %cst_61 {dimension_numbers = #tpu.dot_dimension_numbers<[1], [0], [0], [1], [0, 0, 1, 1], [], []>} : vector<64x4xf32>, vector<4x8xf32>, vector<64x8xf32> -> vector<64x8xf32>
    %75 = arith.addf %62, %74 : vector<64x8xf32>
    %76 = vector.extract_strided_slice %69 {offsets = [0, 0, 1, 0], sizes = [1, 8, 8, 4], strides = [1, 1, 1, 1]} : vector<1x9x9x4xf32> to vector<1x8x8x4xf32>
    %77 = vector.shape_cast %76 : vector<1x8x8x4xf32> to vector<64x4xf32>
    %c1_62 = arith.constant 1 : index
    %c2_63 = arith.constant 2 : index
    %c0_64 = arith.constant 0 : index
    %c0_65 = arith.constant 0 : index
    %78 = vector.load %arg2[%c1_62, %c2_63, %c0_64, %c0_65] : memref<4x4x4x8xf32, #tpu.memory_space<vmem>>, vector<1x1x4x8xf32>
    %79 = vector.shape_cast %78 : vector<1x1x4x8xf32> to vector<4x8xf32>
    %cst_66 = arith.constant dense<0.000000e+00> : vector<64x8xf32>
    %80 = tpu.matmul %77, %79, %cst_66 {dimension_numbers = #tpu.dot_dimension_numbers<[1], [0], [0], [1], [0, 0, 1, 1], [], []>} : vector<64x4xf32>, vector<4x8xf32>, vector<64x8xf32> -> vector<64x8xf32>
    %81 = arith.addf %75, %80 : vector<64x8xf32>
    %82 = vector.extract_strided_slice %69 {offsets = [0, 1, 0, 0], sizes = [1, 8, 8, 4], strides = [1, 1, 1, 1]} : vector<1x9x9x4xf32> to vector<1x8x8x4xf32>
    %83 = vector.shape_cast %82 : vector<1x8x8x4xf32> to vector<64x4xf32>
    %c3_67 = arith.constant 3 : index
    %c0_68 = arith.constant 0 : index
    %c0_69 = arith.constant 0 : index
    %c0_70 = arith.constant 0 : index
    %84 = vector.load %arg2[%c3_67, %c0_68, %c0_69, %c0_70] : memref<4x4x4x8xf32, #tpu.memory_space<vmem>>, vector<1x1x4x8xf32>
    %85 = vector.shape_cast %84 : vector<1x1x4x8xf32> to vector<4x8xf32>
    %cst_71 = arith.constant dense<0.000000e+00> : vector<64x8xf32>
    %86 = tpu.matmul %83, %85, %cst_71 {dimension_numbers = #tpu.dot_dimension_numbers<[1], [0], [0], [1], [0, 0, 1, 1], [], []>} : vector<64x4xf32>, vector<4x8xf32>, vector<64x8xf32> -> vector<64x8xf32>
    %87 = arith.addf %81, %86 : vector<64x8xf32>
    %88 = vector.extract_strided_slice %69 {offsets = [0, 1, 1, 0], sizes = [1, 8, 8, 4], strides = [1, 1, 1, 1]} : vector<1x9x9x4xf32> to vector<1x8x8x4xf32>
    %89 = vector.shape_cast %88 : vector<1x8x8x4xf32> to vector<64x4xf32>
    %c3_72 = arith.constant 3 : index
    %c2_73 = arith.constant 2 : index
    %c0_74 = arith.constant 0 : index
    %c0_75 = arith.constant 0 : index
    %90 = vector.load %arg2[%c3_72, %c2_73, %c0_74, %c0_75] : memref<4x4x4x8xf32, #tpu.memory_space<vmem>>, vector<1x1x4x8xf32>
    %91 = vector.shape_cast %90 : vector<1x1x4x8xf32> to vector<4x8xf32>
    %cst_76 = arith.constant dense<0.000000e+00> : vector<64x8xf32>
    %92 = tpu.matmul %89, %91, %cst_76 {dimension_numbers = #tpu.dot_dimension_numbers<[1], [0], [0], [1], [0, 0, 1, 1], [], []>} : vector<64x4xf32>, vector<4x8xf32>, vector<64x8xf32> -> vector<64x8xf32>
    %93 = arith.addf %87, %92 : vector<64x8xf32>
    %c3_77 = arith.constant 3 : index
    %c0_78 = arith.constant 0 : index
    %c0_79 = arith.constant 0 : index
    %c0_80 = arith.constant 0 : index
    %c0_81 = arith.constant 0 : index
    %94 = vector.load %arg1[%c3_77, %c0_78, %c0_79, %c0_80, %c0_81] : memref<4x1x9x9x4xf32, #tpu.memory_space<vmem>>, vector<1x1x9x9x4xf32>
    %95 = vector.shape_cast %94 : vector<1x1x9x9x4xf32> to vector<1x9x9x4xf32>
    %cst_82 = arith.constant 0.000000e+00 : f32
    %96 = vector.broadcast %cst_82 : f32 to vector<1x9x9x4xf32>
    %97 = arith.cmpf oge, %95, %96 : vector<1x9x9x4xf32>
    %cst_83 = arith.constant 2.000000e-01 : f32
    %98 = vector.broadcast %cst_83 : f32 to vector<1x9x9x4xf32>
    %99 = arith.mulf %98, %95 : vector<1x9x9x4xf32>
    %100 = arith.select %97, %95, %99 : vector<1x9x9x4xi1>, vector<1x9x9x4xf32>
    %101 = vector.extract_strided_slice %100 {offsets = [0, 0, 0, 0], sizes = [1, 8, 8, 4], strides = [1, 1, 1, 1]} : vector<1x9x9x4xf32> to vector<1x8x8x4xf32>
    %102 = vector.shape_cast %101 : vector<1x8x8x4xf32> to vector<64x4xf32>
    %c1_84 = arith.constant 1 : index
    %c1_85 = arith.constant 1 : index
    %c0_86 = arith.constant 0 : index
    %c0_87 = arith.constant 0 : index
    %103 = vector.load %arg2[%c1_84, %c1_85, %c0_86, %c0_87] : memref<4x4x4x8xf32, #tpu.memory_space<vmem>>, vector<1x1x4x8xf32>
    %104 = vector.shape_cast %103 : vector<1x1x4x8xf32> to vector<4x8xf32>
    %cst_88 = arith.constant dense<0.000000e+00> : vector<64x8xf32>
    %105 = tpu.matmul %102, %104, %cst_88 {dimension_numbers = #tpu.dot_dimension_numbers<[1], [0], [0], [1], [0, 0, 1, 1], [], []>} : vector<64x4xf32>, vector<4x8xf32>, vector<64x8xf32> -> vector<64x8xf32>
    %106 = arith.addf %93, %105 : vector<64x8xf32>
    %107 = vector.extract_strided_slice %100 {offsets = [0, 0, 1, 0], sizes = [1, 8, 8, 4], strides = [1, 1, 1, 1]} : vector<1x9x9x4xf32> to vector<1x8x8x4xf32>
    %108 = vector.shape_cast %107 : vector<1x8x8x4xf32> to vector<64x4xf32>
    %c1_89 = arith.constant 1 : index
    %c3_90 = arith.constant 3 : index
    %c0_91 = arith.constant 0 : index
    %c0_92 = arith.constant 0 : index
    %109 = vector.load %arg2[%c1_89, %c3_90, %c0_91, %c0_92] : memref<4x4x4x8xf32, #tpu.memory_space<vmem>>, vector<1x1x4x8xf32>
    %110 = vector.shape_cast %109 : vector<1x1x4x8xf32> to vector<4x8xf32>
    %cst_93 = arith.constant dense<0.000000e+00> : vector<64x8xf32>
    %111 = tpu.matmul %108, %110, %cst_93 {dimension_numbers = #tpu.dot_dimension_numbers<[1], [0], [0], [1], [0, 0, 1, 1], [], []>} : vector<64x4xf32>, vector<4x8xf32>, vector<64x8xf32> -> vector<64x8xf32>
    %112 = arith.addf %106, %111 : vector<64x8xf32>
    %113 = vector.extract_strided_slice %100 {offsets = [0, 1, 0, 0], sizes = [1, 8, 8, 4], strides = [1, 1, 1, 1]} : vector<1x9x9x4xf32> to vector<1x8x8x4xf32>
    %114 = vector.shape_cast %113 : vector<1x8x8x4xf32> to vector<64x4xf32>
    %c3_94 = arith.constant 3 : index
    %c1_95 = arith.constant 1 : index
    %c0_96 = arith.constant 0 : index
    %c0_97 = arith.constant 0 : index
    %115 = vector.load %arg2[%c3_94, %c1_95, %c0_96, %c0_97] : memref<4x4x4x8xf32, #tpu.memory_space<vmem>>, vector<1x1x4x8xf32>
    %116 = vector.shape_cast %115 : vector<1x1x4x8xf32> to vector<4x8xf32>
    %cst_98 = arith.constant dense<0.000000e+00> : vector<64x8xf32>
    %117 = tpu.matmul %114, %116, %cst_98 {dimension_numbers = #tpu.dot_dimension_numbers<[1], [0], [0], [1], [0, 0, 1, 1], [], []>} : vector<64x4xf32>, vector<4x8xf32>, vector<64x8xf32> -> vector<64x8xf32>
    %118 = arith.addf %112, %117 : vector<64x8xf32>
    %119 = vector.extract_strided_slice %100 {offsets = [0, 1, 1, 0], sizes = [1, 8, 8, 4], strides = [1, 1, 1, 1]} : vector<1x9x9x4xf32> to vector<1x8x8x4xf32>
    %120 = vector.shape_cast %119 : vector<1x8x8x4xf32> to vector<64x4xf32>
    %c3_99 = arith.constant 3 : index
    %c3_100 = arith.constant 3 : index
    %c0_101 = arith.constant 0 : index
    %c0_102 = arith.constant 0 : index
    %121 = vector.load %arg2[%c3_99, %c3_100, %c0_101, %c0_102] : memref<4x4x4x8xf32, #tpu.memory_space<vmem>>, vector<1x1x4x8xf32>
    %122 = vector.shape_cast %121 : vector<1x1x4x8xf32> to vector<4x8xf32>
    %cst_103 = arith.constant dense<0.000000e+00> : vector<64x8xf32>
    %123 = tpu.matmul %120, %122, %cst_103 {dimension_numbers = #tpu.dot_dimension_numbers<[1], [0], [0], [1], [0, 0, 1, 1], [], []>} : vector<64x4xf32>, vector<4x8xf32>, vector<64x8xf32> -> vector<64x8xf32>
    %124 = arith.addf %118, %123 : vector<64x8xf32>
    %c0_104 = arith.constant 0 : index
    %c0_105 = arith.constant 0 : index
    %125 = vector.load %arg3[%c0_104, %c0_105] : memref<1x8xf32, #tpu.memory_space<vmem>>, vector<1x8xf32>
    %126 = vector.broadcast %125 : vector<1x8xf32> to vector<64x8xf32>
    %127 = arith.addf %124, %126 : vector<64x8xf32>
    %cst_106 = arith.constant 0.000000e+00 : f32
    %128 = vector.broadcast %cst_106 : f32 to vector<64x8xf32>
    %129 = arith.maximumf %127, %128 : vector<64x8xf32>
    %cst_107 = arith.constant 0.000000e+00 : f32
    %130 = vector.broadcast %cst_107 : f32 to vector<1x10x10x8xf32>
    %c0_108 = arith.constant 0 : index
    %c0_109 = arith.constant 0 : index
    %c0_110 = arith.constant 0 : index
    %c0_111 = arith.constant 0 : index
    %131 = vector.load %arg8[%c0_108, %c0_109, %c0_110, %c0_111] : memref<1x10x10x8xf32, #tpu.memory_space<vmem>>, vector<1x10x10x8xf32>
    tpu.vector_store %arg8[%c0_108, %c0_109, %c0_110, %c0_111], %130 {strides = array<i32>} : memref<1x10x10x8xf32, #tpu.memory_space<vmem>>, vector<1x10x10x8xf32>,
    %132 = vector.shape_cast %129 : vector<64x8xf32> to vector<1x8x8x8xf32>
    %c0_112 = arith.constant 0 : index
    %c1_113 = arith.constant 1 : index
    %c1_114 = arith.constant 1 : index
    %c0_115 = arith.constant 0 : index
    %133 = vector.load %arg8[%c0_112, %c1_113, %c1_114, %c0_115] : memref<1x10x10x8xf32, #tpu.memory_space<vmem>>, vector<1x8x8x8xf32>
    tpu.vector_store %arg8[%c0_112, %c1_113, %c1_114, %c0_115], %132 {strides = array<i32>} : memref<1x10x10x8xf32, #tpu.memory_space<vmem>>, vector<1x8x8x8xf32>,
    %cst_116 = arith.constant 0.000000e+00 : f32
    %134 = vector.broadcast %cst_116 : f32 to vector<1x4xf32>
    %cst_117 = arith.constant 0.000000e+00 : f32
    %135 = vector.broadcast %cst_117 : f32 to vector<1x4xf32>
    %cst_118 = arith.constant 0.000000e+00 : f32
    %136 = vector.broadcast %cst_118 : f32 to vector<64x4xf32>
    %c0_119 = arith.constant 0 : index
    %c0_120 = arith.constant 0 : index
    %c0_121 = arith.constant 0 : index
    %c0_122 = arith.constant 0 : index
    %137 = vector.load %arg8[%c0_119, %c0_120, %c0_121, %c0_122] : memref<1x10x10x8xf32, #tpu.memory_space<vmem>>, vector<1x8x8x8xf32>
    %138 = vector.shape_cast %137 : vector<1x8x8x8xf32> to vector<64x8xf32>
    %c0_123 = arith.constant 0 : index
    %c0_124 = arith.constant 0 : index
    %c0_125 = arith.constant 0 : index
    %c0_126 = arith.constant 0 : index
    %139 = vector.load %arg4[%c0_123, %c0_124, %c0_125, %c0_126] : memref<4x4x8x4xf32, #tpu.memory_space<vmem>>, vector<1x1x8x4xf32>
    %140 = vector.shape_cast %139 : vector<1x1x8x4xf32> to vector<8x4xf32>
    %cst_127 = arith.constant dense<0.000000e+00> : vector<64x4xf32>
    %141 = tpu.matmul %138, %140, %cst_127 {dimension_numbers = #tpu.dot_dimension_numbers<[1], [0], [0], [1], [0, 0, 1, 1], [], []>} : vector<64x8xf32>, vector<8x4xf32>, vector<64x4xf32> -> vector<64x4xf32>
    %142 = arith.addf %136, %141 : vector<64x4xf32>
    %c0_128 = arith.constant 0 : index
    %c0_129 = arith.constant 0 : index
    %c1_130 = arith.constant 1 : index
    %c0_131 = arith.constant 0 : index
    %143 = vector.load %arg8[%c0_128, %c0_129, %c1_130, %c0_131] : memref<1x10x10x8xf32, #tpu.memory_space<vmem>>, vector<1x8x8x8xf32>
    %144 = vector.shape_cast %143 : vector<1x8x8x8xf32> to vector<64x8xf32>
    %c0_132 = arith.constant 0 : index
    %c1_133 = arith.constant 1 : index
    %c0_134 = arith.constant 0 : index
    %c0_135 = arith.constant 0 : index
    %145 = vector.load %arg4[%c0_132, %c1_133, %c0_134, %c0_135] : memref<4x4x8x4xf32, #tpu.memory_space<vmem>>, vector<1x1x8x4xf32>
    %146 = vector.shape_cast %145 : vector<1x1x8x4xf32> to vector<8x4xf32>
    %cst_136 = arith.constant dense<0.000000e+00> : vector<64x4xf32>
    %147 = tpu.matmul %144, %146, %cst_136 {dimension_numbers = #tpu.dot_dimension_numbers<[1], [0], [0], [1], [0, 0, 1, 1], [], []>} : vector<64x8xf32>, vector<8x4xf32>, vector<64x4xf32> -> vector<64x4xf32>
    %148 = arith.addf %142, %147 : vector<64x4xf32>
    %c0_137 = arith.constant 0 : index
    %c1_138 = arith.constant 1 : index
    %c0_139 = arith.constant 0 : index
    %c0_140 = arith.constant 0 : index
    %149 = vector.load %arg8[%c0_137, %c1_138, %c0_139, %c0_140] : memref<1x10x10x8xf32, #tpu.memory_space<vmem>>, vector<1x8x8x8xf32>
    %150 = vector.shape_cast %149 : vector<1x8x8x8xf32> to vector<64x8xf32>
    %c0_141 = arith.constant 0 : index
    %c2_142 = arith.constant 2 : index
    %c0_143 = arith.constant 0 : index
    %c0_144 = arith.constant 0 : index
    %151 = vector.load %arg4[%c0_141, %c2_142, %c0_143, %c0_144] : memref<4x4x8x4xf32, #tpu.memory_space<vmem>>, vector<1x1x8x4xf32>
    %152 = vector.shape_cast %151 : vector<1x1x8x4xf32> to vector<8x4xf32>
    %cst_145 = arith.constant dense<0.000000e+00> : vector<64x4xf32>
    %153 = tpu.matmul %150, %152, %cst_145 {dimension_numbers = #tpu.dot_dimension_numbers<[1], [0], [0], [1], [0, 0, 1, 1], [], []>} : vector<64x8xf32>, vector<8x4xf32>, vector<64x4xf32> -> vector<64x4xf32>
    %154 = arith.addf %148, %153 : vector<64x4xf32>
    %c0_146 = arith.constant 0 : index
    %c1_147 = arith.constant 1 : index
    %c1_148 = arith.constant 1 : index
    %c0_149 = arith.constant 0 : index
    %155 = vector.load %arg8[%c0_146, %c1_147, %c1_148, %c0_149] : memref<1x10x10x8xf32, #tpu.memory_space<vmem>>, vector<1x8x8x8xf32>
    %156 = vector.shape_cast %155 : vector<1x8x8x8xf32> to vector<64x8xf32>
    %c0_150 = arith.constant 0 : index
    %c3_151 = arith.constant 3 : index
    %c0_152 = arith.constant 0 : index
    %c0_153 = arith.constant 0 : index
    %157 = vector.load %arg4[%c0_150, %c3_151, %c0_152, %c0_153] : memref<4x4x8x4xf32, #tpu.memory_space<vmem>>, vector<1x1x8x4xf32>
    %158 = vector.shape_cast %157 : vector<1x1x8x4xf32> to vector<8x4xf32>
    %cst_154 = arith.constant dense<0.000000e+00> : vector<64x4xf32>
    %159 = tpu.matmul %156, %158, %cst_154 {dimension_numbers = #tpu.dot_dimension_numbers<[1], [0], [0], [1], [0, 0, 1, 1], [], []>} : vector<64x8xf32>, vector<8x4xf32>, vector<64x4xf32> -> vector<64x4xf32>
    %160 = arith.addf %154, %159 : vector<64x4xf32>
    %c0_155 = arith.constant 0 : index
    %c0_156 = arith.constant 0 : index
    %161 = vector.load %arg5[%c0_155, %c0_156] : memref<1x4xf32, #tpu.memory_space<vmem>>, vector<1x4xf32>
    %162 = vector.broadcast %161 : vector<1x4xf32> to vector<64x4xf32>
    %163 = arith.addf %160, %162 : vector<64x4xf32>
    %cst_157 = arith.constant dense<0.000000e+00> : vector<4xf32>
    %164 = vector.multi_reduction <add>, %163, %cst_157 [0] : vector<64x4xf32> to vector<4xf32>
    %165 = vector.shape_cast %164 : vector<4xf32> to vector<1x4xf32>
    %166 = arith.addf %134, %165 : vector<1x4xf32>
    %167 = arith.mulf %163, %163 : vector<64x4xf32>
    %cst_158 = arith.constant dense<0.000000e+00> : vector<4xf32>
    %168 = vector.multi_reduction <add>, %167, %cst_158 [0] : vector<64x4xf32> to vector<4xf32>
    %169 = vector.shape_cast %168 : vector<4xf32> to vector<1x4xf32>
    %170 = arith.addf %135, %169 : vector<1x4xf32>
    %171 = vector.shape_cast %163 : vector<64x4xf32> to vector<1x8x8x4xf32>
    %c0_159 = arith.constant 0 : index
    %c0_160 = arith.constant 0 : index
    %c0_161 = arith.constant 0 : index
    %c0_162 = arith.constant 0 : index
    %c0_163 = arith.constant 0 : index
    %172 = vector.load %arg6[%c0_159, %c0_160, %c0_161, %c0_162, %c0_163] : memref<4x1x8x8x4xf32, #tpu.memory_space<vmem>>, vector<1x1x8x8x4xf32>
    %173 = vector.shape_cast %172 : vector<1x1x8x8x4xf32> to vector<1x8x8x4xf32>
    %174 = vector.shape_cast %171 : vector<1x8x8x4xf32> to vector<1x1x8x8x4xf32>
    tpu.vector_store %arg6[%c0_159, %c0_160, %c0_161, %c0_162, %c0_163], %174 {strides = array<i32>} : memref<4x1x8x8x4xf32, #tpu.memory_space<vmem>>, vector<1x1x8x8x4xf32>,
    %cst_164 = arith.constant 0.000000e+00 : f32
    %175 = vector.broadcast %cst_164 : f32 to vector<64x4xf32>
    %c0_165 = arith.constant 0 : index
    %c0_166 = arith.constant 0 : index
    %c1_167 = arith.constant 1 : index
    %c0_168 = arith.constant 0 : index
    %176 = vector.load %arg8[%c0_165, %c0_166, %c1_167, %c0_168] : memref<1x10x10x8xf32, #tpu.memory_space<vmem>>, vector<1x8x8x8xf32>
    %177 = vector.shape_cast %176 : vector<1x8x8x8xf32> to vector<64x8xf32>
    %c1_169 = arith.constant 1 : index
    %c0_170 = arith.constant 0 : index
    %c0_171 = arith.constant 0 : index
    %c0_172 = arith.constant 0 : index
    %178 = vector.load %arg4[%c1_169, %c0_170, %c0_171, %c0_172] : memref<4x4x8x4xf32, #tpu.memory_space<vmem>>, vector<1x1x8x4xf32>
    %179 = vector.shape_cast %178 : vector<1x1x8x4xf32> to vector<8x4xf32>
    %cst_173 = arith.constant dense<0.000000e+00> : vector<64x4xf32>
    %180 = tpu.matmul %177, %179, %cst_173 {dimension_numbers = #tpu.dot_dimension_numbers<[1], [0], [0], [1], [0, 0, 1, 1], [], []>} : vector<64x8xf32>, vector<8x4xf32>, vector<64x4xf32> -> vector<64x4xf32>
    %181 = arith.addf %175, %180 : vector<64x4xf32>
    %c0_174 = arith.constant 0 : index
    %c0_175 = arith.constant 0 : index
    %c2_176 = arith.constant 2 : index
    %c0_177 = arith.constant 0 : index
    %182 = vector.load %arg8[%c0_174, %c0_175, %c2_176, %c0_177] : memref<1x10x10x8xf32, #tpu.memory_space<vmem>>, vector<1x8x8x8xf32>
    %183 = vector.shape_cast %182 : vector<1x8x8x8xf32> to vector<64x8xf32>
    %c1_178 = arith.constant 1 : index
    %c1_179 = arith.constant 1 : index
    %c0_180 = arith.constant 0 : index
    %c0_181 = arith.constant 0 : index
    %184 = vector.load %arg4[%c1_178, %c1_179, %c0_180, %c0_181] : memref<4x4x8x4xf32, #tpu.memory_space<vmem>>, vector<1x1x8x4xf32>
    %185 = vector.shape_cast %184 : vector<1x1x8x4xf32> to vector<8x4xf32>
    %cst_182 = arith.constant dense<0.000000e+00> : vector<64x4xf32>
    %186 = tpu.matmul %183, %185, %cst_182 {dimension_numbers = #tpu.dot_dimension_numbers<[1], [0], [0], [1], [0, 0, 1, 1], [], []>} : vector<64x8xf32>, vector<8x4xf32>, vector<64x4xf32> -> vector<64x4xf32>
    %187 = arith.addf %181, %186 : vector<64x4xf32>
    %c0_183 = arith.constant 0 : index
    %c1_184 = arith.constant 1 : index
    %c1_185 = arith.constant 1 : index
    %c0_186 = arith.constant 0 : index
    %188 = vector.load %arg8[%c0_183, %c1_184, %c1_185, %c0_186] : memref<1x10x10x8xf32, #tpu.memory_space<vmem>>, vector<1x8x8x8xf32>
    %189 = vector.shape_cast %188 : vector<1x8x8x8xf32> to vector<64x8xf32>
    %c1_187 = arith.constant 1 : index
    %c2_188 = arith.constant 2 : index
    %c0_189 = arith.constant 0 : index
    %c0_190 = arith.constant 0 : index
    %190 = vector.load %arg4[%c1_187, %c2_188, %c0_189, %c0_190] : memref<4x4x8x4xf32, #tpu.memory_space<vmem>>, vector<1x1x8x4xf32>
    %191 = vector.shape_cast %190 : vector<1x1x8x4xf32> to vector<8x4xf32>
    %cst_191 = arith.constant dense<0.000000e+00> : vector<64x4xf32>
    %192 = tpu.matmul %189, %191, %cst_191 {dimension_numbers = #tpu.dot_dimension_numbers<[1], [0], [0], [1], [0, 0, 1, 1], [], []>} : vector<64x8xf32>, vector<8x4xf32>, vector<64x4xf32> -> vector<64x4xf32>
    %193 = arith.addf %187, %192 : vector<64x4xf32>
    %c0_192 = arith.constant 0 : index
    %c1_193 = arith.constant 1 : index
    %c2_194 = arith.constant 2 : index
    %c0_195 = arith.constant 0 : index
    %194 = vector.load %arg8[%c0_192, %c1_193, %c2_194, %c0_195] : memref<1x10x10x8xf32, #tpu.memory_space<vmem>>, vector<1x8x8x8xf32>
    %195 = vector.shape_cast %194 : vector<1x8x8x8xf32> to vector<64x8xf32>
    %c1_196 = arith.constant 1 : index
    %c3_197 = arith.constant 3 : index
    %c0_198 = arith.constant 0 : index
    %c0_199 = arith.constant 0 : index
    %196 = vector.load %arg4[%c1_196, %c3_197, %c0_198, %c0_199] : memref<4x4x8x4xf32, #tpu.memory_space<vmem>>, vector<1x1x8x4xf32>
    %197 = vector.shape_cast %196 : vector<1x1x8x4xf32> to vector<8x4xf32>
    %cst_200 = arith.constant dense<0.000000e+00> : vector<64x4xf32>
    %198 = tpu.matmul %195, %197, %cst_200 {dimension_numbers = #tpu.dot_dimension_numbers<[1], [0], [0], [1], [0, 0, 1, 1], [], []>} : vector<64x8xf32>, vector<8x4xf32>, vector<64x4xf32> -> vector<64x4xf32>
    %199 = arith.addf %193, %198 : vector<64x4xf32>
    %c0_201 = arith.constant 0 : index
    %c0_202 = arith.constant 0 : index
    %200 = vector.load %arg5[%c0_201, %c0_202] : memref<1x4xf32, #tpu.memory_space<vmem>>, vector<1x4xf32>
    %201 = vector.broadcast %200 : vector<1x4xf32> to vector<64x4xf32>
    %202 = arith.addf %199, %201 : vector<64x4xf32>
    %cst_203 = arith.constant dense<0.000000e+00> : vector<4xf32>
    %203 = vector.multi_reduction <add>, %202, %cst_203 [0] : vector<64x4xf32> to vector<4xf32>
    %204 = vector.shape_cast %203 : vector<4xf32> to vector<1x4xf32>
    %205 = arith.addf %166, %204 : vector<1x4xf32>
    %206 = arith.mulf %202, %202 : vector<64x4xf32>
    %cst_204 = arith.constant dense<0.000000e+00> : vector<4xf32>
    %207 = vector.multi_reduction <add>, %206, %cst_204 [0] : vector<64x4xf32> to vector<4xf32>
    %208 = vector.shape_cast %207 : vector<4xf32> to vector<1x4xf32>
    %209 = arith.addf %170, %208 : vector<1x4xf32>
    %210 = vector.shape_cast %202 : vector<64x4xf32> to vector<1x8x8x4xf32>
    %c1_205 = arith.constant 1 : index
    %c0_206 = arith.constant 0 : index
    %c0_207 = arith.constant 0 : index
    %c0_208 = arith.constant 0 : index
    %c0_209 = arith.constant 0 : index
    %211 = vector.load %arg6[%c1_205, %c0_206, %c0_207, %c0_208, %c0_209] : memref<4x1x8x8x4xf32, #tpu.memory_space<vmem>>, vector<1x1x8x8x4xf32>
    %212 = vector.shape_cast %211 : vector<1x1x8x8x4xf32> to vector<1x8x8x4xf32>
    %213 = vector.shape_cast %210 : vector<1x8x8x4xf32> to vector<1x1x8x8x4xf32>
    tpu.vector_store %arg6[%c1_205, %c0_206, %c0_207, %c0_208, %c0_209], %213 {strides = array<i32>} : memref<4x1x8x8x4xf32, #tpu.memory_space<vmem>>, vector<1x1x8x8x4xf32>,
    %cst_210 = arith.constant 0.000000e+00 : f32
    %214 = vector.broadcast %cst_210 : f32 to vector<64x4xf32>
    %c0_211 = arith.constant 0 : index
    %c1_212 = arith.constant 1 : index
    %c0_213 = arith.constant 0 : index
    %c0_214 = arith.constant 0 : index
    %215 = vector.load %arg8[%c0_211, %c1_212, %c0_213, %c0_214] : memref<1x10x10x8xf32, #tpu.memory_space<vmem>>, vector<1x8x8x8xf32>
    %216 = vector.shape_cast %215 : vector<1x8x8x8xf32> to vector<64x8xf32>
    %c2_215 = arith.constant 2 : index
    %c0_216 = arith.constant 0 : index
    %c0_217 = arith.constant 0 : index
    %c0_218 = arith.constant 0 : index
    %217 = vector.load %arg4[%c2_215, %c0_216, %c0_217, %c0_218] : memref<4x4x8x4xf32, #tpu.memory_space<vmem>>, vector<1x1x8x4xf32>
    %218 = vector.shape_cast %217 : vector<1x1x8x4xf32> to vector<8x4xf32>
    %cst_219 = arith.constant dense<0.000000e+00> : vector<64x4xf32>
    %219 = tpu.matmul %216, %218, %cst_219 {dimension_numbers = #tpu.dot_dimension_numbers<[1], [0], [0], [1], [0, 0, 1, 1], [], []>} : vector<64x8xf32>, vector<8x4xf32>, vector<64x4xf32> -> vector<64x4xf32>
    %220 = arith.addf %214, %219 : vector<64x4xf32>
    %c0_220 = arith.constant 0 : index
    %c1_221 = arith.constant 1 : index
    %c1_222 = arith.constant 1 : index
    %c0_223 = arith.constant 0 : index
    %221 = vector.load %arg8[%c0_220, %c1_221, %c1_222, %c0_223] : memref<1x10x10x8xf32, #tpu.memory_space<vmem>>, vector<1x8x8x8xf32>
    %222 = vector.shape_cast %221 : vector<1x8x8x8xf32> to vector<64x8xf32>
    %c2_224 = arith.constant 2 : index
    %c1_225 = arith.constant 1 : index
    %c0_226 = arith.constant 0 : index
    %c0_227 = arith.constant 0 : index
    %223 = vector.load %arg4[%c2_224, %c1_225, %c0_226, %c0_227] : memref<4x4x8x4xf32, #tpu.memory_space<vmem>>, vector<1x1x8x4xf32>
    %224 = vector.shape_cast %223 : vector<1x1x8x4xf32> to vector<8x4xf32>
    %cst_228 = arith.constant dense<0.000000e+00> : vector<64x4xf32>
    %225 = tpu.matmul %222, %224, %cst_228 {dimension_numbers = #tpu.dot_dimension_numbers<[1], [0], [0], [1], [0, 0, 1, 1], [], []>} : vector<64x8xf32>, vector<8x4xf32>, vector<64x4xf32> -> vector<64x4xf32>
    %226 = arith.addf %220, %225 : vector<64x4xf32>
    %c0_229 = arith.constant 0 : index
    %c2_230 = arith.constant 2 : index
    %c0_231 = arith.constant 0 : index
    %c0_232 = arith.constant 0 : index
    %227 = vector.load %arg8[%c0_229, %c2_230, %c0_231, %c0_232] : memref<1x10x10x8xf32, #tpu.memory_space<vmem>>, vector<1x8x8x8xf32>
    %228 = vector.shape_cast %227 : vector<1x8x8x8xf32> to vector<64x8xf32>
    %c2_233 = arith.constant 2 : index
    %c2_234 = arith.constant 2 : index
    %c0_235 = arith.constant 0 : index
    %c0_236 = arith.constant 0 : index
    %229 = vector.load %arg4[%c2_233, %c2_234, %c0_235, %c0_236] : memref<4x4x8x4xf32, #tpu.memory_space<vmem>>, vector<1x1x8x4xf32>
    %230 = vector.shape_cast %229 : vector<1x1x8x4xf32> to vector<8x4xf32>
    %cst_237 = arith.constant dense<0.000000e+00> : vector<64x4xf32>
    %231 = tpu.matmul %228, %230, %cst_237 {dimension_numbers = #tpu.dot_dimension_numbers<[1], [0], [0], [1], [0, 0, 1, 1], [], []>} : vector<64x8xf32>, vector<8x4xf32>, vector<64x4xf32> -> vector<64x4xf32>
    %232 = arith.addf %226, %231 : vector<64x4xf32>
    %c0_238 = arith.constant 0 : index
    %c2_239 = arith.constant 2 : index
    %c1_240 = arith.constant 1 : index
    %c0_241 = arith.constant 0 : index
    %233 = vector.load %arg8[%c0_238, %c2_239, %c1_240, %c0_241] : memref<1x10x10x8xf32, #tpu.memory_space<vmem>>, vector<1x8x8x8xf32>
    %234 = vector.shape_cast %233 : vector<1x8x8x8xf32> to vector<64x8xf32>
    %c2_242 = arith.constant 2 : index
    %c3_243 = arith.constant 3 : index
    %c0_244 = arith.constant 0 : index
    %c0_245 = arith.constant 0 : index
    %235 = vector.load %arg4[%c2_242, %c3_243, %c0_244, %c0_245] : memref<4x4x8x4xf32, #tpu.memory_space<vmem>>, vector<1x1x8x4xf32>
    %236 = vector.shape_cast %235 : vector<1x1x8x4xf32> to vector<8x4xf32>
    %cst_246 = arith.constant dense<0.000000e+00> : vector<64x4xf32>
    %237 = tpu.matmul %234, %236, %cst_246 {dimension_numbers = #tpu.dot_dimension_numbers<[1], [0], [0], [1], [0, 0, 1, 1], [], []>} : vector<64x8xf32>, vector<8x4xf32>, vector<64x4xf32> -> vector<64x4xf32>
    %238 = arith.addf %232, %237 : vector<64x4xf32>
    %c0_247 = arith.constant 0 : index
    %c0_248 = arith.constant 0 : index
    %239 = vector.load %arg5[%c0_247, %c0_248] : memref<1x4xf32, #tpu.memory_space<vmem>>, vector<1x4xf32>
    %240 = vector.broadcast %239 : vector<1x4xf32> to vector<64x4xf32>
    %241 = arith.addf %238, %240 : vector<64x4xf32>
    %cst_249 = arith.constant dense<0.000000e+00> : vector<4xf32>
    %242 = vector.multi_reduction <add>, %241, %cst_249 [0] : vector<64x4xf32> to vector<4xf32>
    %243 = vector.shape_cast %242 : vector<4xf32> to vector<1x4xf32>
    %244 = arith.addf %205, %243 : vector<1x4xf32>
    %245 = arith.mulf %241, %241 : vector<64x4xf32>
    %cst_250 = arith.constant dense<0.000000e+00> : vector<4xf32>
    %246 = vector.multi_reduction <add>, %245, %cst_250 [0] : vector<64x4xf32> to vector<4xf32>
    %247 = vector.shape_cast %246 : vector<4xf32> to vector<1x4xf32>
    %248 = arith.addf %209, %247 : vector<1x4xf32>
    %249 = vector.shape_cast %241 : vector<64x4xf32> to vector<1x8x8x4xf32>
    %c2_251 = arith.constant 2 : index
    %c0_252 = arith.constant 0 : index
    %c0_253 = arith.constant 0 : index
    %c0_254 = arith.constant 0 : index
    %c0_255 = arith.constant 0 : index
    %250 = vector.load %arg6[%c2_251, %c0_252, %c0_253, %c0_254, %c0_255] : memref<4x1x8x8x4xf32, #tpu.memory_space<vmem>>, vector<1x1x8x8x4xf32>
    %251 = vector.shape_cast %250 : vector<1x1x8x8x4xf32> to vector<1x8x8x4xf32>
    %252 = vector.shape_cast %249 : vector<1x8x8x4xf32> to vector<1x1x8x8x4xf32>
    tpu.vector_store %arg6[%c2_251, %c0_252, %c0_253, %c0_254, %c0_255], %252 {strides = array<i32>} : memref<4x1x8x8x4xf32, #tpu.memory_space<vmem>>, vector<1x1x8x8x4xf32>,
    %cst_256 = arith.constant 0.000000e+00 : f32
    %253 = vector.broadcast %cst_256 : f32 to vector<64x4xf32>
    %c0_257 = arith.constant 0 : index
    %c1_258 = arith.constant 1 : index
    %c1_259 = arith.constant 1 : index
    %c0_260 = arith.constant 0 : index
    %254 = vector.load %arg8[%c0_257, %c1_258, %c1_259, %c0_260] : memref<1x10x10x8xf32, #tpu.memory_space<vmem>>, vector<1x8x8x8xf32>
    %255 = vector.shape_cast %254 : vector<1x8x8x8xf32> to vector<64x8xf32>
    %c3_261 = arith.constant 3 : index
    %c0_262 = arith.constant 0 : index
    %c0_263 = arith.constant 0 : index
    %c0_264 = arith.constant 0 : index
    %256 = vector.load %arg4[%c3_261, %c0_262, %c0_263, %c0_264] : memref<4x4x8x4xf32, #tpu.memory_space<vmem>>, vector<1x1x8x4xf32>
    %257 = vector.shape_cast %256 : vector<1x1x8x4xf32> to vector<8x4xf32>
    %cst_265 = arith.constant dense<0.000000e+00> : vector<64x4xf32>
    %258 = tpu.matmul %255, %257, %cst_265 {dimension_numbers = #tpu.dot_dimension_numbers<[1], [0], [0], [1], [0, 0, 1, 1], [], []>} : vector<64x8xf32>, vector<8x4xf32>, vector<64x4xf32> -> vector<64x4xf32>
    %259 = arith.addf %253, %258 : vector<64x4xf32>
    %c0_266 = arith.constant 0 : index
    %c1_267 = arith.constant 1 : index
    %c2_268 = arith.constant 2 : index
    %c0_269 = arith.constant 0 : index
    %260 = vector.load %arg8[%c0_266, %c1_267, %c2_268, %c0_269] : memref<1x10x10x8xf32, #tpu.memory_space<vmem>>, vector<1x8x8x8xf32>
    %261 = vector.shape_cast %260 : vector<1x8x8x8xf32> to vector<64x8xf32>
    %c3_270 = arith.constant 3 : index
    %c1_271 = arith.constant 1 : index
    %c0_272 = arith.constant 0 : index
    %c0_273 = arith.constant 0 : index
    %262 = vector.load %arg4[%c3_270, %c1_271, %c0_272, %c0_273] : memref<4x4x8x4xf32, #tpu.memory_space<vmem>>, vector<1x1x8x4xf32>
    %263 = vector.shape_cast %262 : vector<1x1x8x4xf32> to vector<8x4xf32>
    %cst_274 = arith.constant dense<0.000000e+00> : vector<64x4xf32>
    %264 = tpu.matmul %261, %263, %cst_274 {dimension_numbers = #tpu.dot_dimension_numbers<[1], [0], [0], [1], [0, 0, 1, 1], [], []>} : vector<64x8xf32>, vector<8x4xf32>, vector<64x4xf32> -> vector<64x4xf32>
    %265 = arith.addf %259, %264 : vector<64x4xf32>
    %c0_275 = arith.constant 0 : index
    %c2_276 = arith.constant 2 : index
    %c1_277 = arith.constant 1 : index
    %c0_278 = arith.constant 0 : index
    %266 = vector.load %arg8[%c0_275, %c2_276, %c1_277, %c0_278] : memref<1x10x10x8xf32, #tpu.memory_space<vmem>>, vector<1x8x8x8xf32>
    %267 = vector.shape_cast %266 : vector<1x8x8x8xf32> to vector<64x8xf32>
    %c3_279 = arith.constant 3 : index
    %c2_280 = arith.constant 2 : index
    %c0_281 = arith.constant 0 : index
    %c0_282 = arith.constant 0 : index
    %268 = vector.load %arg4[%c3_279, %c2_280, %c0_281, %c0_282] : memref<4x4x8x4xf32, #tpu.memory_space<vmem>>, vector<1x1x8x4xf32>
    %269 = vector.shape_cast %268 : vector<1x1x8x4xf32> to vector<8x4xf32>
    %cst_283 = arith.constant dense<0.000000e+00> : vector<64x4xf32>
    %270 = tpu.matmul %267, %269, %cst_283 {dimension_numbers = #tpu.dot_dimension_numbers<[1], [0], [0], [1], [0, 0, 1, 1], [], []>} : vector<64x8xf32>, vector<8x4xf32>, vector<64x4xf32> -> vector<64x4xf32>
    %271 = arith.addf %265, %270 : vector<64x4xf32>
    %c0_284 = arith.constant 0 : index
    %c2_285 = arith.constant 2 : index
    %c2_286 = arith.constant 2 : index
    %c0_287 = arith.constant 0 : index
    %272 = vector.load %arg8[%c0_284, %c2_285, %c2_286, %c0_287] : memref<1x10x10x8xf32, #tpu.memory_space<vmem>>, vector<1x8x8x8xf32>
    %273 = vector.shape_cast %272 : vector<1x8x8x8xf32> to vector<64x8xf32>
    %c3_288 = arith.constant 3 : index
    %c3_289 = arith.constant 3 : index
    %c0_290 = arith.constant 0 : index
    %c0_291 = arith.constant 0 : index
    %274 = vector.load %arg4[%c3_288, %c3_289, %c0_290, %c0_291] : memref<4x4x8x4xf32, #tpu.memory_space<vmem>>, vector<1x1x8x4xf32>
    %275 = vector.shape_cast %274 : vector<1x1x8x4xf32> to vector<8x4xf32>
    %cst_292 = arith.constant dense<0.000000e+00> : vector<64x4xf32>
    %276 = tpu.matmul %273, %275, %cst_292 {dimension_numbers = #tpu.dot_dimension_numbers<[1], [0], [0], [1], [0, 0, 1, 1], [], []>} : vector<64x8xf32>, vector<8x4xf32>, vector<64x4xf32> -> vector<64x4xf32>
    %277 = arith.addf %271, %276 : vector<64x4xf32>
    %c0_293 = arith.constant 0 : index
    %c0_294 = arith.constant 0 : index
    %278 = vector.load %arg5[%c0_293, %c0_294] : memref<1x4xf32, #tpu.memory_space<vmem>>, vector<1x4xf32>
    %279 = vector.broadcast %278 : vector<1x4xf32> to vector<64x4xf32>
    %280 = arith.addf %277, %279 : vector<64x4xf32>
    %cst_295 = arith.constant dense<0.000000e+00> : vector<4xf32>
    %281 = vector.multi_reduction <add>, %280, %cst_295 [0] : vector<64x4xf32> to vector<4xf32>
    %282 = vector.shape_cast %281 : vector<4xf32> to vector<1x4xf32>
    %283 = arith.addf %244, %282 : vector<1x4xf32>
    %284 = arith.mulf %280, %280 : vector<64x4xf32>
    %cst_296 = arith.constant dense<0.000000e+00> : vector<4xf32>
    %285 = vector.multi_reduction <add>, %284, %cst_296 [0] : vector<64x4xf32> to vector<4xf32>
    %286 = vector.shape_cast %285 : vector<4xf32> to vector<1x4xf32>
    %287 = arith.addf %248, %286 : vector<1x4xf32>
    %288 = vector.shape_cast %280 : vector<64x4xf32> to vector<1x8x8x4xf32>
    %c3_297 = arith.constant 3 : index
    %c0_298 = arith.constant 0 : index
    %c0_299 = arith.constant 0 : index
    %c0_300 = arith.constant 0 : index
    %c0_301 = arith.constant 0 : index
    %289 = vector.load %arg6[%c3_297, %c0_298, %c0_299, %c0_300, %c0_301] : memref<4x1x8x8x4xf32, #tpu.memory_space<vmem>>, vector<1x1x8x8x4xf32>
    %290 = vector.shape_cast %289 : vector<1x1x8x8x4xf32> to vector<1x8x8x4xf32>
    %291 = vector.shape_cast %288 : vector<1x8x8x4xf32> to vector<1x1x8x8x4xf32>
    tpu.vector_store %arg6[%c3_297, %c0_298, %c0_299, %c0_300, %c0_301], %291 {strides = array<i32>} : memref<4x1x8x8x4xf32, #tpu.memory_space<vmem>>, vector<1x1x8x8x4xf32>,
    %c0_302 = arith.constant 0 : index
    %c0_303 = arith.constant 0 : index
    %c0_304 = arith.constant 0 : index
    %292 = vector.load %arg7[%c0_302, %c0_303, %c0_304] : memref<1x2x4xf32, #tpu.memory_space<vmem>>, vector<1x1x4xf32>
    %293 = vector.shape_cast %292 : vector<1x1x4xf32> to vector<1x4xf32>
    %294 = vector.shape_cast %283 : vector<1x4xf32> to vector<1x1x4xf32>
    tpu.vector_store %arg7[%c0_302, %c0_303, %c0_304], %294 {strides = array<i32>} : memref<1x2x4xf32, #tpu.memory_space<vmem>>, vector<1x1x4xf32>,
    %c0_305 = arith.constant 0 : index
    %c1_306 = arith.constant 1 : index
    %c0_307 = arith.constant 0 : index
    %295 = vector.load %arg7[%c0_305, %c1_306, %c0_307] : memref<1x2x4xf32, #tpu.memory_space<vmem>>, vector<1x1x4xf32>
    %296 = vector.shape_cast %295 : vector<1x1x4xf32> to vector<1x4xf32>
    %297 = vector.shape_cast %287 : vector<1x4xf32> to vector<1x1x4xf32>
    tpu.vector_store %arg7[%c0_305, %c1_306, %c0_307], %297 {strides = array<i32>} : memref<1x2x4xf32, #tpu.memory_space<vmem>>, vector<1x1x4xf32>,
    return
  }
  func.func @transform_0(%arg0: i32) -> (i32, i32, i32, i32, i32) {
    %c0_i32 = arith.constant 0 : i32
    %c0_i32_0 = arith.constant 0 : i32
    %c0_i32_1 = arith.constant 0 : i32
    %c0_i32_2 = arith.constant 0 : i32
    %c0_i32_3 = arith.constant 0 : i32
    return %c0_i32, %arg0, %c0_i32_0, %c0_i32_1, %c0_i32_2 : i32, i32, i32, i32, i32
  }
  func.func @transform_1(%arg0: i32) -> (i32, i32, i32, i32) {
    %c0_i32 = arith.constant 0 : i32
    %c0_i32_0 = arith.constant 0 : i32
    %c0_i32_1 = arith.constant 0 : i32
    %c0_i32_2 = arith.constant 0 : i32
    %c0_i32_3 = arith.constant 0 : i32
    return %c0_i32, %c0_i32_0, %c0_i32_1, %c0_i32_2 : i32, i32, i32, i32
  }
  func.func @transform_2(%arg0: i32) -> (i32, i32) {
    %c0_i32 = arith.constant 0 : i32
    %c0_i32_0 = arith.constant 0 : i32
    %c0_i32_1 = arith.constant 0 : i32
    return %c0_i32, %c0_i32_0 : i32, i32
  }
  func.func @transform_3(%arg0: i32) -> (i32, i32, i32, i32) {
    %c0_i32 = arith.constant 0 : i32
    %c0_i32_0 = arith.constant 0 : i32
    %c0_i32_1 = arith.constant 0 : i32
    %c0_i32_2 = arith.constant 0 : i32
    %c0_i32_3 = arith.constant 0 : i32
    return %c0_i32, %c0_i32_0, %c0_i32_1, %c0_i32_2 : i32, i32, i32, i32
  }
  func.func @transform_4(%arg0: i32) -> (i32, i32) {
    %c0_i32 = arith.constant 0 : i32
    %c0_i32_0 = arith.constant 0 : i32
    %c0_i32_1 = arith.constant 0 : i32
    return %c0_i32, %c0_i32_0 : i32, i32
  }
  func.func @transform_5(%arg0: i32) -> (i32, i32, i32, i32, i32) {
    %c0_i32 = arith.constant 0 : i32
    %c0_i32_0 = arith.constant 0 : i32
    %c0_i32_1 = arith.constant 0 : i32
    %c0_i32_2 = arith.constant 0 : i32
    %c0_i32_3 = arith.constant 0 : i32
    return %c0_i32, %arg0, %c0_i32_0, %c0_i32_1, %c0_i32_2 : i32, i32, i32, i32, i32
  }
  func.func @transform_6(%arg0: i32) -> (i32, i32, i32) {
    %c0_i32 = arith.constant 0 : i32
    %c0_i32_0 = arith.constant 0 : i32
    %c0_i32_1 = arith.constant 0 : i32
    return %arg0, %c0_i32, %c0_i32_0 : i32, i32, i32
  }
}

</mosaic_0001>

<bundles_post_ra>
// kernel: innermost_block_forward.3
= control target key start
LH: loop header
LB: loop body
LE: loop exit
PB: predicated region body
PF: predicated region fallthrough
CT: control target
= control target key end

     0   :  { %s3939_s15 = smov 0   ;;  %s3941_s16 = smov 0   ;;  %s4832_s0 = inlined_call_operand.vmem [shape: f32[2,4,256], index: 0, kind: input, shape index: {}]   ;;  %s4833_s1 = inlined_call_operand.vmem [shape: f32[4,2,8,8,4], index: 1, kind: input, shape index: {}]   ;;  %s4834_s2 = inlined_call_operand.vmem [shape: f32[1,4], index: 2, kind: input, shape index: {}]   ;;  %s4835_s3 = inlined_call_operand.vmem [shape: f32[1,4], index: 3, kind: input, shape index: {}]   ;;  %s4836_s4 = inlined_call_operand.vmem [shape: f32[2,8,256], index: 4, kind: output, shape index: {}]  }
   0x1   :  { %s3943_s17 = smov 0  }
   0x2 LB: > { %s3839_s18 = sadd.s32 4294967295, %s3910_s17   ;;  %s3956_s19 = sadd.s32 1, %s3910_s17   ;;  %s3910_s17 = sphi %s3943_s17, %s4839_s17   ;;  %s3906_s16 = sphi %s3941_s16, %s4838_s16   ;;  %s3902_s15 = sphi %s3939_s15, %s4837_s15  }
   0x3   : > { %s44_s20 = ssub.s32 %s3910_s17, %s3956_s19  ;;  %s47_s21 = sadd.s32 1, %s3906_s16 }
   0x4   : > { %p45_p0 = scmp.eq.s32.totalorder %s44_s20, 0  ;;  %p54_p1 = scmp.ne.s32.totalorder %s3906_s16, %s3902_s15 }
   0x5   : > { %p55_p2 = scmp.eq.s32.totalorder %s3910_s17, 0  ;;  %p3842_p4 = scmp.ge.s32.totalorder %s3910_s17, 2 }
   0x6   : > { %s3965_s22 = scalar_select %p45_p0, %s3906_s16, %s47_s21  }
   0x7   : > { %p56_p3 = por %p55_p2, %p54_p1  ;;  %154 = sbr.rel (%p3842_p4) target bundleno = 34 (0x22), region = 24 }
   0xe   : > { %165 = sbr.rel (!%p56_p3) target bundleno = 34 (0x22), region = 32  ;;  %s167_s23 = sand.u32 (%p56_p3), 1, %s3906_s16  }
   0xf   : > { %s3856_s24 = sshll.u32 (%p56_p3), %s3910_s17, 6  ;;  %s3843_s25 = sshll.u32 (%p56_p3), %s167_s23, 8 }
  0x10   : > { %s3973_s28 = scalar_lea.vmem (%p56_p3), %s4833_s1, %s3856_s24  ;;  %s3978_s29 = scalar_lea.vmem (%p56_p3), [#allocation2], %s3843_s25 }
  0x11   : > { %v262_v0 = vld [vmem:[%s3973_s28] sm:$0xff] (%p56_p3)  ;;  %v264_v1 = vld [vmem:[%s3973_s28 + $0x8] sm:$0xff] (%p56_p3)  ;;  %v266_v2 = vld [vmem:[%s3973_s28 + $0x10] sm:$0xff] (%p56_p3) }
  0x12   : > { %263 = vst [vmem:[%s3978_s29] sm:$0xff] (%p56_p3), %v262_v0  ;;  %265 = vst [vmem:[%s3978_s29 + $0x8] sm:$0xff] (%p56_p3), %v264_v1  ;;  %v268_v3 = vld [vmem:[%s3973_s28 + $0x18] sm:$0xff] (%p56_p3)  ;;  %v270_v4 = vld [vmem:[%s3973_s28 + $0x20] sm:$0xff] (%p56_p3) }
  0x13   : > { %267 = vst [vmem:[%s3978_s29 + $0x10] sm:$0xff] (%p56_p3), %v266_v2  ;;  %v272_v5 = vld [vmem:[%s3973_s28 + $0x28] sm:$0xff] (%p56_p3)  ;;  %269 = vst [vmem:[%s3978_s29 + $0x18] sm:$0xff] (%p56_p3), %v268_v3  ;;  %v274_v6 = vld [vmem:[%s3973_s28 + $0x30] sm:$0xff] (%p56_p3) }
  0x14   : > { %271 = vst [vmem:[%s3978_s29 + $0x20] sm:$0xff] (%p56_p3), %v270_v4  ;;  %273 = vst [vmem:[%s3978_s29 + $0x28] sm:$0xff] (%p56_p3), %v272_v5  ;;  %v276_v7 = vld [vmem:[%s3973_s28 + $0x38] sm:$0xff] (%p56_p3)  ;;  %v278_v8 = vld [vmem:[%s3973_s28 + $0x80] sm:$0xff] (%p56_p3) }
  0x15   : > { %275 = vst [vmem:[%s3978_s29 + $0x30] sm:$0xff] %v274_v6  ;;  %277 = vst [vmem:[%s3978_s29 + $0x38] sm:$0xff] %v276_v7  ;;  %v280_v9 = vld [vmem:[%s3973_s28 + $0x88] sm:$0xff]  ;;  %v282_v10 = vld [vmem:[%s3973_s28 + $0x90] sm:$0xff] }
  0x16   : > { %279 = vst [vmem:[%s3978_s29 + $0x40] sm:$0xff] %v278_v8  ;;  %v284_v11 = vld [vmem:[%s3973_s28 + $0x98] sm:$0xff]  ;;  %281 = vst [vmem:[%s3978_s29 + $0x48] sm:$0xff] %v280_v9  ;;  %v286_v12 = vld [vmem:[%s3973_s28 + $0xa0] sm:$0xff] }
  0x17   : > { %283 = vst [vmem:[%s3978_s29 + $0x50] sm:$0xff] %v282_v10  ;;  %285 = vst [vmem:[%s3978_s29 + $0x58] sm:$0xff] %v284_v11  ;;  %v288_v13 = vld [vmem:[%s3973_s28 + $0xa8] sm:$0xff]  ;;  %v290_v14 = vld [vmem:[%s3973_s28 + $0xb0] sm:$0xff] }
  0x18   : > { %287 = vst [vmem:[%s3978_s29 + $0x60] sm:$0xff] %v286_v12  ;;  %289 = vst [vmem:[%s3978_s29 + $0x68] sm:$0xff] %v288_v13  ;;  %v292_v15 = vld [vmem:[%s3973_s28 + $0xb8] sm:$0xff]  ;;  %v294_v16 = vld [vmem:[%s3973_s28 + $0x100] sm:$0xff] }
  0x19   : > { %291 = vst [vmem:[%s3978_s29 + $0x70] sm:$0xff] %v290_v14  ;;  %v296_v17 = vld [vmem:[%s3973_s28 + $0x108] sm:$0xff]  ;;  %293 = vst [vmem:[%s3978_s29 + $0x78] sm:$0xff] %v292_v15  ;;  %v298_v18 = vld [vmem:[%s3973_s28 + $0x110] sm:$0xff] }
  0x1a   : > { %295 = vst [vmem:[%s3978_s29 + $0x80] sm:$0xff] %v294_v16  ;;  %297 = vst [vmem:[%s3978_s29 + $0x88] sm:$0xff] %v296_v17  ;;  %v300_v19 = vld [vmem:[%s3973_s28 + $0x118] sm:$0xff]  ;;  %v302_v20 = vld [vmem:[%s3973_s28 + $0x120] sm:$0xff] }
  0x1b   : > { %299 = vst [vmem:[%s3978_s29 + $0x90] sm:$0xff] %v298_v18  ;;  %301 = vst [vmem:[%s3978_s29 + $0x98] sm:$0xff] %v300_v19  ;;  %v304_v21 = vld [vmem:[%s3973_s28 + $0x128] sm:$0xff]  ;;  %v306_v22 = vld [vmem:[%s3973_s28 + $0x130] sm:$0xff] }
  0x1c   : > { %303 = vst [vmem:[%s3978_s29 + $0xa0] sm:$0xff] %v302_v20  ;;  %v308_v23 = vld [vmem:[%s3973_s28 + $0x138] sm:$0xff]  ;;  %305 = vst [vmem:[%s3978_s29 + $0xa8] sm:$0xff] %v304_v21  ;;  %v310_v24 = vld [vmem:[%s3973_s28 + $0x180] sm:$0xff] }
  0x1d   : > { %307 = vst [vmem:[%s3978_s29 + $0xb0] sm:$0xff] %v306_v22  ;;  %309 = vst [vmem:[%s3978_s29 + $0xb8] sm:$0xff] %v308_v23  ;;  %v312_v25 = vld [vmem:[%s3973_s28 + $0x188] sm:$0xff]  ;;  %v314_v26 = vld [vmem:[%s3973_s28 + $0x190] sm:$0xff] }
  0x1e   : > { %311 = vst [vmem:[%s3978_s29 + $0xc0] sm:$0xff] %v310_v24  ;;  %313 = vst [vmem:[%s3978_s29 + $0xc8] sm:$0xff] %v312_v25  ;;  %v316_v27 = vld [vmem:[%s3973_s28 + $0x198] sm:$0xff]  ;;  %v318_v28 = vld [vmem:[%s3973_s28 + $0x1a0] sm:$0xff] }
  0x1f   : > { %315 = vst [vmem:[%s3978_s29 + $0xd0] sm:$0xff] %v314_v26  ;;  %v320_v29 = vld [vmem:[%s3973_s28 + $0x1a8] sm:$0xff]  ;;  %317 = vst [vmem:[%s3978_s29 + $0xd8] sm:$0xff] %v316_v27  ;;  %v322_v30 = vld [vmem:[%s3973_s28 + $0x1b0] sm:$0xff] }
  0x20   : > { %319 = vst [vmem:[%s3978_s29 + $0xe0] sm:$0xff] %v318_v28  ;;  %321 = vst [vmem:[%s3978_s29 + $0xe8] sm:$0xff] %v320_v29  ;;  %v324_v31 = vld [vmem:[%s3973_s28 + $0x1b8] sm:$0xff] }
  0x21   : > { %323 = vst [vmem:[%s3978_s29 + $0xf0] sm:$0xff] %v322_v30  ;;  %325 = vst [vmem:[%s3978_s29 + $0xf8] sm:$0xff] %v324_v31 }
  0x22 PF: > { %p3846_p5 = scmp.ge.s32.totalorder %s3910_s17, 1  ;;  %p330_p6 = scmp.lt.s32.totalorder %s3910_s17, 3 }
  0x24   : > { %p331_p7 = pnand %p3846_p5, %p330_p6 }
  0x25   : > { %s337_s30 = sand.u32 (!%p331_p7), 1, %s3902_s15   ;;  %v4047_v32 = vld [vmem:[%s4834_s2] ss:$0 sm:$0xff] (!%p331_p7)  ;;  %v505_v33 = vlaneseq (!%p331_p7)  ;;  %v3912_v35 = vmov (!%p331_p7), 1966171168   ;;  %vm1677_vm0 = vcmask (!%p331_p7), 1040384  }
  0x26   : > { %334 = sbr.rel (%p331_p7) target bundleno = 348 (0x15c), region = 70  ;;  %s3847_s7 = sshll.u32 (!%p331_p7), %s337_s30, 8  ;;  %v4052_v34 = vld [vmem:[%s4835_s3] ss:$0 sm:$0xff] (!%p331_p7)  ;;  %v503_v36 = vunpack.c.l.s4 (!%p331_p7), %v3912_v35  ;;  %v3913_v38 = vmov (!%p331_p7), 1983009808  }
  0x27   : > { %v506_v37 = vshrl.u32 (!%p331_p7), %v505_v33, 7  ;;  %v3121_v39 = vunpack.c.l.s4 (!%p331_p7), %v3913_v38  ;;  %s4054_s10 = scalar_lea.vmem (!%p331_p7), [#allocation2], %s3847_s7  ;;  %p367_p8 = scmp.lt.s32.totalorder (!%p331_p7), %s3839_s18, 1 }
  0x28   : > { %v387_v40 = vld [vmem:[%s4054_s10 + $0x20] sm:$0xff] (!%p331_p7)  ;;  %v504_v45 = vunpack.c.0.s8 (!%p331_p7), %v503_v36 }
  0x29   : > { %v395_v41 = vld [vmem:[%s4054_s10 + $0x60] sm:$0xff] (!%p331_p7)  ;;  %v426_v43 = vmul.f32 (!%p331_p7), %v4047_v32, %v387_v40  ;;  %v4061_v46 = vsub.s32 (!%p331_p7), 0, %v506_v37  ;;  %v3122_v50 = vunpack.c.0.s8 (!%p331_p7), %v3121_v39 }
  0x2a   : > { %v383_v42 = vld [vmem:[%s4054_s10] sm:$0xff] (!%p331_p7)  ;;  %v434_v44 = vmul.f32 (!%p331_p7), %v4047_v32, %v395_v41  ;;  %v4071_v56 = vsub.s32 (!%p331_p7), %v504_v45, %v506_v37 }
  0x2b   : > { %v391_v47 = vld [vmem:[%s4054_s10 + $0x40] sm:$0xff] (!%p331_p7)  ;;  %v422_v51 = vmul.f32 (!%p331_p7), %v4047_v32, %v383_v42  ;;  %v465_v54 = vadd.f32 (!%p331_p7), %v4052_v34, %v426_v43  ;;  %v4076_v58 = vsub.s32 (!%p331_p7), %v3122_v50, %v506_v37 }
  0x2c   : > { %v403_v48 = vld [vmem:[%s4054_s10 + $0xa0] sm:$0xff] (!%p331_p7)  ;;  %v430_v52 = vmul.f32 (!%p331_p7), %v4047_v32, %v391_v47  ;;  %v473_v55 = vadd.f32 (!%p331_p7), %v4052_v34, %v434_v44 }
  0x2d   : > { %v411_v49 = vld [vmem:[%s4054_s10 + $0xe0] sm:$0xff]  ;;  %v442_v53 = vmul.f32 %v4047_v32, %v403_v48  ;;  %v4079_v59 = vadd.f32 %v4052_v34, %v422_v51  ;;  %v704_v62 = vrot.slane %v465_v54, %v4071_v56  ;;  %v697_v0 = vcombine.high %v465_v54, %v465_v54  ;;  %s4841_s18 = smov (!%p367_p8, %s3839_s18), 1 }
  0x2e   : > { %v4074_v57 = vmul.f32 %v4047_v32, %v411_v49  ;;  %v4082_v60 = vadd.f32 %v4052_v34, %v430_v52  ;;  %v1168_v63 = vrot.slane %v473_v55, %v4071_v56  ;;  %v1161_v1 = vcombine.high %v473_v55, %v473_v55  ;;  %s3857_s11 = sshll.u32 %s4841_s18, 3  ;;  %s3858_s12 = sshll.u32 %s4841_s18, 4 }
  0x2f   : > { %v4085_v61 = vadd.f32 %v4052_v34, %v442_v53  ;;  %v508_v2 = vrot.slane %v4079_v59, %v4071_v56  ;;  %v501_v4 = vcombine.high %v4079_v59, %v4079_v59  ;;  %v712_v6 = vcombine.high %v704_v62, %v704_v62  ;;  %s371_s15 = scalar_lea.vmem %s4832_s0, %s3857_s11  ;;  %s4444_s21 = scalar_lea.vmem %s4836_s4, %s3858_s12 }
  0x30   : > { %v972_v3 = vrot.slane %v4082_v60, %v4071_v56  ;;  %v965_v5 = vcombine.high %v4082_v60, %v4082_v60  ;;  %v720_v7 = vrot.slane %v704_v62, %v4071_v56  ;;  %v1176_v8 = vcombine.high %v1168_v63, %v1168_v63 }
  0x31   : > { %v1184_v9 = vrot.slane %v1168_v63, %v4071_v56  ;;  %v516_v10 = vcombine.high %v508_v2, %v508_v2  ;;  %v524_v11 = vrot.slane %v508_v2, %v4071_v56  ;;  %v734_v14 = vrot.slane %v712_v6, %v4071_v56 }
  0x32   : > { %v980_v12 = vcombine.high %v972_v3, %v972_v3  ;;  %v988_v13 = vrot.slane %v972_v3, %v4071_v56  ;;  %v742_v15 = vcombine.high %v720_v7, %v720_v7  ;;  %v1198_v16 = vrot.slane %v1176_v8, %v4071_v56 }
  0x33   : > { %v1206_v17 = vcombine.high %v1184_v9, %v1184_v9  ;;  %v1488_v18 = vrot.slane %v1184_v9, %v4061_v46  ;;  %v538_v19 = vrot.slane %v516_v10, %v4071_v56  ;;  %v546_v20 = vcombine.high %v524_v11, %v524_v11 }
  0x34   : > { %v1002_v21 = vrot.slane %v980_v12, %v4071_v56  ;;  %v744_v22 = vcombine.high %v734_v14, %v734_v14  ;;  %v1208_v23 = vcombine.high %v1198_v16, %v1198_v16  ;;  %v1492_v24 = vrot.slane %v1198_v16, %v4061_v46 }
  0x35   : > { %v1496_v25 = vrot.slane %v1206_v17, %v4061_v46  ;;  %v1710_v26 = vsel %vm1677_vm0, %v720_v7, %v1488_v18  ;;  %v548_v27 = vcombine.high %v538_v19, %v538_v19  ;;  %v1010_v28 = vcombine.high %v988_v13, %v988_v13 }
  0x36   : > { %v1012_v29 = vcombine.high %v1002_v21, %v1002_v21  ;;  %v1500_v30 = vrot.slane %v1208_v23, %v4061_v46  ;;  %v1711_v31 = vsel %vm1677_vm0, %v734_v14, %v1492_v24  ;;  %v1360_v35 = vrot.slane %v988_v13, %v4061_v46 }
  0x37   : > { %v1712_v33 = vsel %vm1677_vm0, %v742_v15, %v1496_v25  ;;  %v3390_v36 = vcombine.low %v1710_v26, %v1711_v31  ;;  %v1364_v37 = vrot.slane %v1002_v21, %v4061_v46  ;;  %v1368_v38 = vrot.slane %v1010_v28, %v4061_v46 }
  0x38   : > { %v1372_v39 = vrot.slane %v1012_v29, %v4061_v46  ;;  %v1713_v40 = vsel %vm1677_vm0, %v744_v22, %v1500_v30  ;;  %v1678_v41 = vsel %vm1677_vm0, %v524_v11, %v1360_v35  ;;  %v711_v42 = vrot.slane %v697_v0, %v4071_v56 }
  0x39   : > { %v1175_v43 = vrot.slane %v1161_v1, %v4071_v56  ;;  %v3391_v44 = vcombine.low %v1712_v33, %v1713_v40  ;;  %v3398_v45 = vrot.slane %v3390_v36, %v4076_v58  ;;  %v1679_v47 = vsel %vm1677_vm0, %v538_v19, %v1364_v37  ;;  %v399_v19 = vld [vmem:[%s4054_s10 + $0x80] sm:$0xff] }
  0x3a   : > { %v1680_v48 = vsel %vm1677_vm0, %v546_v20, %v1368_v38  ;;  %v1681_v49 = vsel %vm1677_vm0, %v548_v27, %v1372_v39  ;;  %v3118_v50 = vcombine.low %v1678_v41, %v1679_v47  ;;  %v713_v51 = vcombine.high %v711_v42, %v711_v42 }
  0x3b   : > { %v727_v52 = vrot.slane %v711_v42, %v4071_v56  ;;  %v3405_v53 = vrot.slane %v3391_v44, %v4076_v58  ;;  %v3119_v54 = vcombine.low %v1680_v48, %v1681_v49  ;;  %v1177_v55 = vcombine.high %v1175_v43, %v1175_v43  ;;  %v407_v48 = vld [vmem:[%s4054_s10 + $0xc0] sm:$0xff] }
  0x3c   : > { %v1191_v59 = vrot.slane %v1175_v43, %v4071_v56  ;;  %v3126_v62 = vrot.slane %v3118_v50, %v4076_v58  ;;  %v741_v63 = vrot.slane %v713_v51, %v4071_v56  ;;  %v515_v1 = vrot.slane %v501_v4, %v4071_v56 }
  0x3d   : > { %v743_v0 = vcombine.high %v727_v52, %v727_v52  ;;  %v3406_v2 = vcombine.low %v3398_v45, %v3405_v53  ;;  %v3133_v3 = vrot.slane %v3119_v54, %v4076_v58  ;;  %v1205_v6 = vrot.slane %v1177_v55, %v4071_v56 }
  0x3e   : > { %v1207_v7 = vcombine.high %v1191_v59, %v1191_v59  ;;  %v745_v8 = vcombine.high %v741_v63, %v741_v63  ;;  %v1504_v9 = vrot.slane %v1191_v59, %v4061_v46  ;;  %v517_v10 = vcombine.high %v515_v1, %v515_v1 }
  0x3f   : > { %v531_v11 = vrot.slane %v515_v1, %v4071_v56  ;;  %3726 = vxpose.xlu1.b32.start [1/16] (narrow) %v3406_v2, 8  ;;  %v3134_v12 = vcombine.low %v3126_v62, %v3133_v3  ;;  %v1209_v13 = vcombine.high %v1205_v6, %v1205_v6  ;;  %v1508_v14 = vrot.slane %v1205_v6, %v4061_v46 }
  0x40   : > { %v1512_v4 = vrot.slane %v1207_v7, %v4061_v46  ;;  %v1714_v15 = vsel %vm1677_vm0, %v727_v52, %v1504_v9  ;;  %v545_v16 = vrot.slane %v517_v10, %v4071_v56  ;;  %v979_v18 = vrot.slane %v965_v5, %v4071_v56 }
  0x41   : > { %v547_v17 = vcombine.high %v531_v11, %v531_v11  ;;  %3694 = vxpose.xlu0.b32.start [1/16] (narrow) %v3134_v12, 8  ;;  %v1516_v20 = vrot.slane %v1209_v13, %v4061_v46  ;;  %v1715_v21 = vsel %vm1677_vm0, %v741_v63, %v1508_v14  ;;  %v4148_v23 = vadd.f32 %v4052_v34, %v4074_v57 }
  0x42   : > { %v1716_v22 = vsel %vm1677_vm0, %v743_v0, %v1512_v4  ;;  %v3407_v24 = vcombine.low %v1714_v15, %v1715_v21  ;;  %v549_v25 = vcombine.high %v545_v16, %v545_v16  ;;  %v981_v26 = vcombine.high %v979_v18, %v979_v18 }
  0x43   : > { %v995_v27 = vrot.slane %v979_v18, %v4071_v56  ;;  %v1717_v60 = vsel %vm1677_vm0, %v745_v8, %v1516_v20  ;;  %v1953_v5 = vrot.slane %v4085_v61, %v4071_v56  ;;  %v2417_v28 = vrot.slane %v4148_v23, %v4071_v56 }
  0x44   : > { %v438_v29 = vmul.f32 %v4047_v32, %v399_v19  ;;  %v3408_v30 = vcombine.low %v1716_v22, %v1717_v60  ;;  %v3415_v57 = vrot.slane %v3407_v24, %v4076_v58  ;;  %v1009_v31 = vrot.slane %v981_v26, %v4071_v56 }
  0x45   : > { %v1011_v33 = vcombine.high %v995_v27, %v995_v27  ;;  %v1376_v35 = vrot.slane %v995_v27, %v4061_v46  ;;  %v1961_v36 = vcombine.high %v1953_v5, %v1953_v5  ;;  %v1969_v37 = vrot.slane %v1953_v5, %v4071_v56 }
  0x46   : > { %v2425_v38 = vcombine.high %v2417_v28, %v2417_v28  ;;  %v3422_v39 = vrot.slane %v3408_v30, %v4076_v58  ;;  %v1013_v40 = vcombine.high %v1009_v31, %v1009_v31  ;;  %v1380_v41 = vrot.slane %v1009_v31, %v4061_v46 }
  0x47   : > { %v1384_v42 = vrot.slane %v1011_v33, %v4061_v46  ;;  %v1682_v43 = vsel %vm1677_vm0, %v531_v11, %v1376_v35  ;;  %v1983_v44 = vrot.slane %v1961_v36, %v4071_v56  ;;  %v1991_v45 = vcombine.high %v1969_v37, %v1969_v37 }
  0x48   : > { %v2433_v47 = vrot.slane %v2417_v28, %v4071_v56  ;;  %v3423_v49 = vcombine.low %v3415_v57, %v3422_v39  ;;  %v1388_v50 = vrot.slane %v1013_v40, %v4061_v46  ;;  %v1683_v51 = vsel %vm1677_vm0, %v545_v16, %v1380_v41 }
  0x49   : > { %v1684_v52 = vsel %vm1677_vm0, %v547_v17, %v1384_v42  ;;  %v3135_v53 = vcombine.low %v1682_v43, %v1683_v51  ;;  %v1993_v54 = vcombine.high %v1983_v44, %v1983_v44  ;;  %v2447_v55 = vrot.slane %v2425_v38, %v4071_v56 }
  0x4a   : > { %v2455_v59 = vcombine.high %v2433_v47, %v2433_v47  ;;  %3727 = vxpose.xlu1.b32.cont [2/16] (narrow) %v3423_v49, 8  ;;  %v1685_v62 = vsel %vm1677_vm0, %v549_v25, %v1388_v50  ;;  %v2737_v63 = vrot.slane %v2433_v47, %v4061_v46  ;;  %v446_v0 = vmul.f32 %v4047_v32, %v407_v48 }
  0x4b   : > { %v477_v1 = vadd.f32 %v4052_v34, %v438_v29  ;;  %v3136_v2 = vcombine.low %v1684_v52, %v1685_v62  ;;  %v3143_v3 = vrot.slane %v3135_v53, %v4076_v58  ;;  %v2457_v6 = vcombine.high %v2447_v55, %v2447_v55 }
  0x4c   : > { %v2741_v7 = vrot.slane %v2447_v55, %v4061_v46  ;;  %v2745_v8 = vrot.slane %v2455_v59, %v4061_v46  ;;  %v2958_v9 = vsel %vm1677_vm0, %v1969_v37, %v2737_v63  ;;  %v4181_v10 = vadd.f32 %v4052_v34, %v446_v0 }
  0x4d   : > { %v1757_v11 = vrot.slane %v477_v1, %v4071_v56  ;;  %v3150_v12 = vrot.slane %v3136_v2, %v4076_v58  ;;  %v2749_v13 = vrot.slane %v2457_v6, %v4061_v46  ;;  %v1946_v4 = vcombine.high %v4085_v61, %v4085_v61 }
  0x4e   : > { %v2959_v14 = vsel %vm1677_vm0, %v1983_v44, %v2741_v7  ;;  %v2960_v15 = vsel %vm1677_vm0, %v1991_v45, %v2745_v8  ;;  %v2221_v21 = vrot.slane %v4181_v10, %v4071_v56  ;;  %v2410_v57 = vcombine.high %v4148_v23, %v4148_v23 }
  0x4f   : > { %v3424_v16 = vcombine.low %v2958_v9, %v2959_v14  ;;  %v1765_v17 = vcombine.high %v1757_v11, %v1757_v11  ;;  %v1773_v18 = vrot.slane %v1757_v11, %v4071_v56  ;;  %v3151_v19 = vcombine.low %v3143_v3, %v3150_v12  ;;  %v388_v3 = vld [vmem:[%s4054_s10 + $0x28] sm:$0xff] }
  0x50   : > { %v2961_v20 = vsel %vm1677_vm0, %v1993_v54, %v2749_v13  ;;  %v1960_v22 = vrot.slane %v1946_v4, %v4071_v56  ;;  %v2229_v27 = vcombine.high %v2221_v21, %v2221_v21  ;;  %v2237_v60 = vrot.slane %v2221_v21, %v4071_v56  ;;  %v396_v4 = vld [vmem:[%s4054_s10 + $0x68] sm:$0xff] }
  0x51   : > { %v3425_v24 = vcombine.low %v2960_v15, %v2961_v20  ;;  %v3432_v25 = vrot.slane %v3424_v16, %v4076_v58  ;;  %v1787_v26 = vrot.slane %v1765_v17, %v4071_v56  ;;  %v1795_v61 = vcombine.high %v1773_v18, %v1773_v18  ;;  %3695 = vxpose.xlu0.b32.cont [2/16] (narrow) %v3151_v19, 8 }
  0x52   : > { %v1962_v5 = vcombine.high %v1960_v22, %v1960_v22  ;;  %v1976_v28 = vrot.slane %v1960_v22, %v4071_v56  ;;  %v1750_v31 = vcombine.high %v477_v1, %v477_v1  ;;  %v2251_v33 = vrot.slane %v2229_v27, %v4071_v56  ;;  %v384_v22 = vld [vmem:[%s4054_s10 + $0x8] sm:$0xff] }
  0x53   : > { %v3439_v29 = vrot.slane %v3425_v24, %v4076_v58  ;;  %v1797_v30 = vcombine.high %v1787_v26, %v1787_v26  ;;  %v2259_v35 = vcombine.high %v2237_v60, %v2237_v60  ;;  %v2609_v36 = vrot.slane %v2237_v60, %v4061_v46 }
  0x54   : > { %v1990_v37 = vrot.slane %v1962_v5, %v4071_v56  ;;  %v1992_v39 = vcombine.high %v1976_v28, %v1976_v28  ;;  %v2424_v40 = vrot.slane %v2410_v57, %v4071_v56  ;;  %v1764_v41 = vrot.slane %v1750_v31, %v4071_v56 }
  0x55   : > { %v3440_v38 = vcombine.low %v3432_v25, %v3439_v29  ;;  %v2261_v42 = vcombine.high %v2251_v33, %v2251_v33  ;;  %v2613_v43 = vrot.slane %v2251_v33, %v4061_v46  ;;  %v2617_v44 = vrot.slane %v2259_v35, %v4061_v46 }
  0x56   : > { %v2926_v23 = vsel %vm1677_vm0, %v1773_v18, %v2609_v36  ;;  %v1994_v45 = vcombine.high %v1990_v37, %v1990_v37  ;;  %v2426_v47 = vcombine.high %v2424_v40, %v2424_v40  ;;  %v2440_v48 = vrot.slane %v2424_v40, %v4071_v56 }
  0x57   : > { %3728 = vxpose.xlu1.b32.cont [3/16] (narrow) %v3440_v38, 8  ;;  %v1766_v49 = vcombine.high %v1764_v41, %v1764_v41  ;;  %v2621_v50 = vrot.slane %v2261_v42, %v4061_v46  ;;  %v2927_v51 = vsel %vm1677_vm0, %v1787_v26, %v2613_v43  ;;  %v2928_v52 = vsel %vm1677_vm0, %v1795_v61, %v2617_v44  ;;  %v392_v42 = vld [vmem:[%s4054_s10 + $0x48] sm:$0xff] }
  0x58   : > { %v1780_v53 = vrot.slane %v1764_v41, %v4071_v56  ;;  %v3152_v54 = vcombine.low %v2926_v23, %v2927_v51  ;;  %v2454_v55 = vrot.slane %v2426_v47, %v4071_v56  ;;  %v2456_v59 = vcombine.high %v2440_v48, %v2440_v48 }
  0x59   : > { %v2753_v62 = vrot.slane %v2440_v48, %v4061_v46  ;;  %v2929_v63 = vsel %vm1677_vm0, %v1797_v30, %v2621_v50  ;;  %v1794_v0 = vrot.slane %v1766_v49, %v4071_v56  ;;  %v2214_v2 = vcombine.high %v4181_v10, %v4181_v10 }
  0x5a   : > { %v1796_v1 = vcombine.high %v1780_v53, %v1780_v53  ;;  %v3153_v6 = vcombine.low %v2928_v52, %v2929_v63  ;;  %v3160_v7 = vrot.slane %v3152_v54, %v4076_v58  ;;  %v2458_v8 = vcombine.high %v2454_v55, %v2454_v55 }
  0x5b   : > { %v2757_v9 = vrot.slane %v2454_v55, %v4061_v46  ;;  %v2761_v11 = vrot.slane %v2456_v59, %v4061_v46  ;;  %v2962_v12 = vsel %vm1677_vm0, %v1976_v28, %v2753_v62  ;;  %v1798_v13 = vcombine.high %v1794_v0, %v1794_v0 }
  0x5c   : > { %v2228_v14 = vrot.slane %v2214_v2, %v4071_v56  ;;  %v3167_v15 = vrot.slane %v3153_v6, %v4076_v58  ;;  %v2765_v10 = vrot.slane %v2458_v8, %v4061_v46  ;;  %v427_v17 = vmul.f32 %v4047_v32, %v388_v3 }
  0x5d   : > { %v2963_v16 = vsel %vm1677_vm0, %v1990_v37, %v2757_v9  ;;  %v2964_v18 = vsel %vm1677_vm0, %v1992_v39, %v2761_v11  ;;  %v435_v26 = vmul.f32 %v4047_v32, %v396_v4  ;;  %v423_v31 = vmul.f32 %v4047_v32, %v384_v22 }
  0x5e   : > { %v3441_v19 = vcombine.low %v2962_v12, %v2963_v16  ;;  %v2230_v20 = vcombine.high %v2228_v14, %v2228_v14  ;;  %v2244_v21 = vrot.slane %v2228_v14, %v4071_v56  ;;  %v3168_v24 = vcombine.low %v3160_v7, %v3167_v15 }
  0x5f   : > { %v2965_v25 = vsel %vm1677_vm0, %v1994_v45, %v2765_v10  ;;  %v466_v61 = vadd.f32 %v4052_v34, %v427_v17  ;;  %v4242_v30 = vadd.f32 %v4052_v34, %v435_v26  ;;  %v462_v54 = vadd.f32 %v4052_v34, %v423_v31 }
  0x60   : > { %v3442_v27 = vcombine.low %v2964_v18, %v2965_v25  ;;  %v3449_v60 = vrot.slane %v3441_v19, %v4076_v58  ;;  %v2258_v5 = vrot.slane %v2230_v20, %v4071_v56  ;;  %v2260_v28 = vcombine.high %v2244_v21, %v2244_v21  ;;  %3696 = vxpose.xlu0.b32.cont [3/16] (narrow) %v3168_v24, 8 }
  0x61   : > { %v2625_v29 = vrot.slane %v2244_v21, %v4061_v46  ;;  %v753_v57 = vrot.slane %v466_v61, %v4071_v56  ;;  %v1217_v41 = vrot.slane %v4242_v30, %v4071_v56  ;;  %v557_v3 = vrot.slane %v462_v54, %v4071_v56 }
  0x62   : > { %v3456_v33 = vrot.slane %v3442_v27, %v4076_v58  ;;  %v2262_v35 = vcombine.high %v2258_v5, %v2258_v5  ;;  %v2629_v36 = vrot.slane %v2258_v5, %v4061_v46  ;;  %v2633_v37 = vrot.slane %v2260_v28, %v4061_v46 }
  0x63   : > { %v2930_v38 = vsel %vm1677_vm0, %v1780_v53, %v2625_v29  ;;  %v761_v39 = vcombine.high %v753_v57, %v753_v57  ;;  %v769_v40 = vrot.slane %v753_v57, %v4071_v56  ;;  %v1225_v50 = vcombine.high %v1217_v41, %v1217_v41 }
  0x64   : > { %v3457_v43 = vcombine.low %v3449_v60, %v3456_v33  ;;  %v2637_v44 = vrot.slane %v2262_v35, %v4061_v46  ;;  %v2931_v23 = vsel %vm1677_vm0, %v1794_v0, %v2629_v36  ;;  %v2932_v45 = vsel %vm1677_vm0, %v1796_v1, %v2633_v37 }
  0x65   : > { %v3169_v47 = vcombine.low %v2930_v38, %v2931_v23  ;;  %v783_v48 = vrot.slane %v761_v39, %v4071_v56  ;;  %v791_v49 = vcombine.high %v769_v40, %v769_v40  ;;  %v1233_v52 = vrot.slane %v1217_v41, %v4071_v56 }
  0x66   : > { %3729 = vxpose.xlu1.b32.cont [4/16] (narrow) %v3457_v43, 8  ;;  %v2933_v51 = vsel %vm1677_vm0, %v1798_v13, %v2637_v44  ;;  %v431_v53 = vmul.f32 %v4047_v32, %v392_v42  ;;  %v1247_v63 = vrot.slane %v1225_v50, %v4071_v56  ;;  %v746_v9 = vcombine.high %v466_v61, %v466_v61 }
  0x67   : > { %v3170_v55 = vcombine.low %v2932_v45, %v2933_v51  ;;  %v3177_v59 = vrot.slane %v3169_v47, %v4076_v58  ;;  %v793_v62 = vcombine.high %v783_v48, %v783_v48  ;;  %v1255_v0 = vcombine.high %v1233_v52, %v1233_v52 }
  0x68   : > { %v1520_v1 = vrot.slane %v1233_v52, %v4061_v46  ;;  %v4266_v2 = vadd.f32 %v4052_v34, %v431_v53  ;;  %v1257_v7 = vcombine.high %v1247_v63, %v1247_v63  ;;  %v1524_v8 = vrot.slane %v1247_v63, %v4061_v46 }
  0x69   : > { %v3184_v6 = vrot.slane %v3170_v55, %v4076_v58  ;;  %v1528_v11 = vrot.slane %v1255_v0, %v4061_v46  ;;  %v565_v13 = vcombine.high %v557_v3, %v557_v3  ;;  %v573_v14 = vrot.slane %v557_v3, %v4071_v56 }
  0x6a   : > { %v1718_v12 = vsel %vm1677_vm0, %v769_v40, %v1520_v1  ;;  %v1532_v15 = vrot.slane %v1257_v7, %v4061_v46  ;;  %v1719_v10 = vsel %vm1677_vm0, %v783_v48, %v1524_v8  ;;  %v1021_v16 = vrot.slane %v4266_v2, %v4071_v56 }
  0x6b   : > { %v3185_v4 = vcombine.low %v3177_v59, %v3184_v6  ;;  %v1720_v17 = vsel %vm1677_vm0, %v791_v49, %v1528_v11  ;;  %v3458_v18 = vcombine.low %v1718_v12, %v1719_v10  ;;  %v587_v19 = vrot.slane %v565_v13, %v4071_v56  ;;  %v404_v12 = vld [vmem:[%s4054_s10 + $0xa8] sm:$0xff] }
  0x6c   : > { %v595_v20 = vcombine.high %v573_v14, %v573_v14  ;;  %v1721_v21 = vsel %vm1677_vm0, %v793_v62, %v1532_v15  ;;  %v1029_v22 = vcombine.high %v1021_v16, %v1021_v16  ;;  %v1037_v24 = vrot.slane %v1021_v16, %v4071_v56  ;;  %v412_v10 = vld [vmem:[%s4054_s10 + $0xe8] sm:$0xff] }
  0x6d   : > { %3697 = vxpose.xlu0.b32.cont [4/16] (narrow) %v3185_v4, 8  ;;  %v760_v25 = vrot.slane %v746_v9, %v4071_v56  ;;  %v3459_v26 = vcombine.low %v1720_v17, %v1721_v21  ;;  %v3466_v61 = vrot.slane %v3458_v18, %v4076_v58  ;;  %v597_v27 = vcombine.high %v587_v19, %v587_v19  ;;  %v408_v21 = vld [vmem:[%s4054_s10 + $0xc8] sm:$0xff] }
  0x6e   : > { %v1210_v60 = vcombine.high %v4242_v30, %v4242_v30  ;;  %v1051_v5 = vrot.slane %v1029_v22, %v4071_v56  ;;  %v1059_v28 = vcombine.high %v1037_v24, %v1037_v24  ;;  %v1392_v29 = vrot.slane %v1037_v24, %v4061_v46 }
  0x6f   : > { %v762_v57 = vcombine.high %v760_v25, %v760_v25  ;;  %v3473_v31 = vrot.slane %v3459_v26, %v4076_v58  ;;  %v776_v33 = vrot.slane %v760_v25, %v4071_v56  ;;  %v550_v36 = vcombine.high %v462_v54, %v462_v54 }
  0x70   : > { %v1224_v35 = vrot.slane %v1210_v60, %v4071_v56  ;;  %v1061_v37 = vcombine.high %v1051_v5, %v1051_v5  ;;  %v1396_v38 = vrot.slane %v1051_v5, %v4061_v46  ;;  %v1400_v39 = vrot.slane %v1059_v28, %v4061_v46 }
  0x71   : > { %v1686_v30 = vsel %vm1677_vm0, %v573_v14, %v1392_v29  ;;  %v3474_v40 = vcombine.low %v3466_v61, %v3473_v31  ;;  %v790_v41 = vrot.slane %v762_v57, %v4071_v56  ;;  %v792_v42 = vcombine.high %v776_v33, %v776_v33 }
  0x72   : > { %v1226_v43 = vcombine.high %v1224_v35, %v1224_v35  ;;  %v1404_v44 = vrot.slane %v1061_v37, %v4061_v46  ;;  %v1687_v23 = vsel %vm1677_vm0, %v587_v19, %v1396_v38  ;;  %v1688_v45 = vsel %vm1677_vm0, %v595_v20, %v1400_v39  ;;  %v400_v20 = vld [vmem:[%s4054_s10 + $0x88] sm:$0xff] }
  0x73   : > { %v1240_v47 = vrot.slane %v1224_v35, %v4071_v56  ;;  %3730 = vxpose.xlu1.b32.cont [5/16] (narrow) %v3474_v40, 8  ;;  %v3186_v48 = vcombine.low %v1686_v30, %v1687_v23  ;;  %v794_v49 = vcombine.high %v790_v41, %v790_v41  ;;  %v564_v51 = vrot.slane %v550_v36, %v4071_v56 }
  0x74   : > { %v1254_v50 = vrot.slane %v1226_v43, %v4071_v56  ;;  %v1689_v52 = vsel %vm1677_vm0, %v597_v27, %v1404_v44  ;;  %v1014_v55 = vcombine.high %v4266_v2, %v4266_v2  ;;  %v443_v26 = vmul.f32 %v4047_v32, %v404_v12 }
  0x75   : > { %v1256_v53 = vcombine.high %v1240_v47, %v1240_v47  ;;  %v1536_v54 = vrot.slane %v1240_v47, %v4061_v46  ;;  %v3187_v59 = vcombine.low %v1688_v45, %v1689_v52  ;;  %v3194_v62 = vrot.slane %v3186_v48, %v4076_v58 }
  0x76   : > { %v1258_v63 = vcombine.high %v1254_v50, %v1254_v50  ;;  %v1540_v0 = vrot.slane %v1254_v50, %v4061_v46  ;;  %v566_v6 = vcombine.high %v564_v51, %v564_v51  ;;  %v580_v7 = vrot.slane %v564_v51, %v4071_v56 }
  0x77   : > { %v1544_v1 = vrot.slane %v1256_v53, %v4061_v46  ;;  %v1722_v3 = vsel %vm1677_vm0, %v776_v33, %v1536_v54  ;;  %v3201_v8 = vrot.slane %v3187_v59, %v4076_v58  ;;  %v1028_v11 = vrot.slane %v1014_v55, %v4071_v56 }
  0x78   : > { %v1548_v2 = vrot.slane %v1258_v63, %v4061_v46  ;;  %v1723_v9 = vsel %vm1677_vm0, %v790_v41, %v1540_v0  ;;  %v594_v4 = vrot.slane %v566_v6, %v4071_v56  ;;  %v596_v15 = vcombine.high %v580_v7, %v580_v7 }
  0x79   : > { %v1724_v13 = vsel %vm1677_vm0, %v792_v42, %v1544_v1  ;;  %v3475_v14 = vcombine.low %v1722_v3, %v1723_v9  ;;  %v3202_v16 = vcombine.low %v3194_v62, %v3201_v8  ;;  %v1030_v18 = vcombine.high %v1028_v11, %v1028_v11 }
  0x7a   : > { %v1725_v17 = vsel %vm1677_vm0, %v794_v49, %v1548_v2  ;;  %v1044_v19 = vrot.slane %v1028_v11, %v4071_v56  ;;  %v598_v25 = vcombine.high %v594_v4, %v594_v4  ;;  %v451_v5 = vmul.f32 %v4047_v32, %v412_v10 }
  0x7b   : > { %v3476_v22 = vcombine.low %v1724_v13, %v1725_v17  ;;  %v3483_v24 = vrot.slane %v3475_v14, %v4076_v58  ;;  %3698 = vxpose.xlu0.b32.cont [5/16] (narrow) %v3202_v16, 8  ;;  %v1058_v61 = vrot.slane %v1030_v18, %v4071_v56  ;;  %v4329_v29 = vadd.f32 %v4052_v34, %v443_v26 }
  0x7c   : > { %v1060_v27 = vcombine.high %v1044_v19, %v1044_v19  ;;  %v1408_v60 = vrot.slane %v1044_v19, %v4061_v46  ;;  %v439_v57 = vmul.f32 %v4047_v32, %v400_v20  ;;  %v447_v31 = vmul.f32 %v4047_v32, %v408_v21 }
  0x7d   : > { %v3490_v28 = vrot.slane %v3476_v22, %v4076_v58  ;;  %v1062_v33 = vcombine.high %v1058_v61, %v1058_v61  ;;  %v1412_v35 = vrot.slane %v1058_v61, %v4061_v46  ;;  %v4337_v39 = vadd.f32 %v4052_v34, %v451_v5 }
  0x7e   : > { %v1416_v36 = vrot.slane %v1060_v27, %v4061_v46  ;;  %v1690_v37 = vsel %vm1677_vm0, %v580_v7, %v1408_v60  ;;  %v2002_v30 = vrot.slane %v4329_v29, %v4071_v56  ;;  %v4342_v40 = vadd.f32 %v4052_v34, %v439_v57 }
  0x7f   : > { %v3491_v38 = vcombine.low %v3483_v24, %v3490_v28  ;;  %v1420_v41 = vrot.slane %v1062_v33, %v4061_v46  ;;  %v1691_v42 = vsel %vm1677_vm0, %v594_v4, %v1412_v35  ;;  %v4348_v44 = vadd.f32 %v4052_v34, %v447_v31 }
  0x80   : > { %v1692_v43 = vsel %vm1677_vm0, %v596_v15, %v1416_v36  ;;  %v3203_v23 = vcombine.low %v1690_v37, %v1691_v42  ;;  %v2010_v45 = vcombine.high %v2002_v30, %v2002_v30  ;;  %v2018_v47 = vrot.slane %v2002_v30, %v4071_v56  ;;  %v389_v30 = vld [vmem:[%s4054_s10 + $0x30] sm:$0xff] }
  0x81   : > { %3731 = vxpose.xlu1.b32.cont [6/16] (narrow) %v3491_v38, 8  ;;  %v2466_v48 = vrot.slane %v4337_v39, %v4071_v56  ;;  %v1693_v49 = vsel %vm1677_vm0, %v598_v25, %v1420_v41  ;;  %v1806_v50 = vrot.slane %v4342_v40, %v4071_v56  ;;  %v2270_v51 = vrot.slane %v4348_v44, %v4071_v56 }
  0x82   : > { %v1995_v52 = vcombine.high %v4329_v29, %v4329_v29  ;;  %v3204_v53 = vcombine.low %v1692_v43, %v1693_v49  ;;  %v3211_v54 = vrot.slane %v3203_v23, %v4076_v58  ;;  %v2032_v55 = vrot.slane %v2010_v45, %v4071_v56 }
  0x83   : > { %v2040_v59 = vcombine.high %v2018_v47, %v2018_v47  ;;  %v2474_v62 = vcombine.high %v2466_v48, %v2466_v48  ;;  %v2482_v63 = vrot.slane %v2466_v48, %v4071_v56  ;;  %v1814_v0 = vcombine.high %v1806_v50, %v1806_v50 }
  0x84   : > { %v1822_v1 = vrot.slane %v1806_v50, %v4071_v56  ;;  %v3218_v3 = vrot.slane %v3204_v53, %v4076_v58  ;;  %v2042_v6 = vcombine.high %v2032_v55, %v2032_v55  ;;  %v2278_v7 = vcombine.high %v2270_v51, %v2270_v51  ;;  %v397_v50 = vld [vmem:[%s4054_s10 + $0x70] sm:$0xff] }
  0x85   : > { %v2286_v8 = vrot.slane %v2270_v51, %v4071_v56  ;;  %v2496_v2 = vrot.slane %v2474_v62, %v4071_v56  ;;  %v2504_v9 = vcombine.high %v2482_v63, %v2482_v63  ;;  %v2769_v11 = vrot.slane %v2482_v63, %v4061_v46 }
  0x86   : > { %v1836_v12 = vrot.slane %v1814_v0, %v4071_v56  ;;  %v3219_v13 = vcombine.low %v3211_v54, %v3218_v3  ;;  %v1844_v14 = vcombine.high %v1822_v1, %v1822_v1  ;;  %v2300_v4 = vrot.slane %v2278_v7, %v4071_v56 }
  0x87   : > { %v2308_v15 = vcombine.high %v2286_v8, %v2286_v8  ;;  %v2506_v10 = vcombine.high %v2496_v2, %v2496_v2  ;;  %v2773_v16 = vrot.slane %v2496_v2, %v4061_v46  ;;  %v2777_v17 = vrot.slane %v2504_v9, %v4061_v46 }
  0x88   : > { %v2966_v18 = vsel %vm1677_vm0, %v2018_v47, %v2769_v11  ;;  %3699 = vxpose.xlu0.b32.cont [6/16] (narrow) %v3219_v13, 8  ;;  %v1846_v19 = vcombine.high %v1836_v12, %v1836_v12  ;;  %v2310_v20 = vcombine.high %v2300_v4, %v2300_v4  ;;  %v2641_v21 = vrot.slane %v2286_v8, %v4061_v46 }
  0x89   : > { %v2645_v22 = vrot.slane %v2300_v4, %v4061_v46  ;;  %v2781_v24 = vrot.slane %v2506_v10, %v4061_v46  ;;  %v2967_v25 = vsel %vm1677_vm0, %v2032_v55, %v2773_v16  ;;  %v2968_v26 = vsel %vm1677_vm0, %v2040_v59, %v2777_v17 }
  0x8a   : > { %v2649_v61 = vrot.slane %v2308_v15, %v4061_v46  ;;  %v3492_v27 = vcombine.low %v2966_v18, %v2967_v25  ;;  %v2653_v60 = vrot.slane %v2310_v20, %v4061_v46  ;;  %v2934_v5 = vsel %vm1677_vm0, %v1822_v1, %v2641_v21 }
  0x8b   : > { %v2935_v28 = vsel %vm1677_vm0, %v1836_v12, %v2645_v22  ;;  %v2969_v29 = vsel %vm1677_vm0, %v2042_v6, %v2781_v24  ;;  %v2009_v33 = vrot.slane %v1995_v52, %v4071_v56  ;;  %v2459_v38 = vcombine.high %v4337_v39, %v4337_v39 }
  0x8c   : > { %v2936_v57 = vsel %vm1677_vm0, %v1844_v14, %v2649_v61  ;;  %v3220_v31 = vcombine.low %v2934_v5, %v2935_v28  ;;  %v3493_v35 = vcombine.low %v2968_v26, %v2969_v29  ;;  %v3500_v36 = vrot.slane %v3492_v27, %v4076_v58  ;;  %v385_v28 = vld [vmem:[%s4054_s10 + $0x10] sm:$0xff] }
  0x8d   : > { %v2937_v37 = vsel %vm1677_vm0, %v1846_v19, %v2653_v60  ;;  %v2011_v43 = vcombine.high %v2009_v33, %v2009_v33  ;;  %v2025_v23 = vrot.slane %v2009_v33, %v4071_v56  ;;  %v2473_v47 = vrot.slane %v2459_v38, %v4071_v56  ;;  %v393_v29 = vld [vmem:[%s4054_s10 + $0x50] sm:$0xff] }
  0x8e   : > { %v3221_v41 = vcombine.low %v2936_v57, %v2937_v37  ;;  %v3228_v42 = vrot.slane %v3220_v31, %v4076_v58  ;;  %v3507_v45 = vrot.slane %v3493_v35, %v4076_v58  ;;  %v1799_v48 = vcombine.high %v4342_v40, %v4342_v40 }
  0x8f   : > { %v2263_v49 = vcombine.high %v4348_v44, %v4348_v44  ;;  %v2039_v51 = vrot.slane %v2011_v43, %v4071_v56  ;;  %v2041_v52 = vcombine.high %v2025_v23, %v2025_v23  ;;  %v428_v53 = vmul.f32 %v4047_v32, %v389_v30 }
  0x90   : > { %v3235_v39 = vrot.slane %v3221_v41, %v4076_v58  ;;  %v3508_v54 = vcombine.low %v3500_v36, %v3507_v45  ;;  %v2475_v55 = vcombine.high %v2473_v47, %v2473_v47  ;;  %v2489_v59 = vrot.slane %v2473_v47, %v4071_v56  ;;  %v4451_v41 = vld [vmem:[%s371_s15] sm:$0xff] }
  0x91   : > { %v1813_v62 = vrot.slane %v1799_v48, %v4071_v56  ;;  %v2043_v0 = vcombine.high %v2039_v51, %v2039_v51  ;;  %v2277_v40 = vrot.slane %v2263_v49, %v4071_v56  ;;  %v436_v44 = vmul.f32 %v4047_v32, %v397_v50  ;;  %381 = vst [vmem:[%s4444_s21] sm:$0xf] %v4451_v41 }
  0x92   : > { %v3236_v63 = vcombine.low %v3228_v42, %v3235_v39  ;;  %3732 = vxpose.xlu1.b32.cont [7/16] (narrow) %v3508_v54, 8  ;;  %v2503_v1 = vrot.slane %v2475_v55, %v4071_v56  ;;  %v2505_v3 = vcombine.high %v2489_v59, %v2489_v59  ;;  %v2785_v6 = vrot.slane %v2489_v59, %v4061_v46 }
  0x93   : > { %v1815_v7 = vcombine.high %v1813_v62, %v1813_v62  ;;  %v1829_v8 = vrot.slane %v1813_v62, %v4071_v56  ;;  %v2279_v2 = vcombine.high %v2277_v40, %v2277_v40  ;;  %v2293_v9 = vrot.slane %v2277_v40, %v4071_v56 }
  0x94   : > { %3700 = vxpose.xlu0.b32.cont [7/16] (narrow) %v3236_v63, 8  ;;  %v4411_v11 = vadd.f32 %v4052_v34, %v428_v53  ;;  %v2507_v12 = vcombine.high %v2503_v1, %v2503_v1  ;;  %v2789_v13 = vrot.slane %v2503_v1, %v4061_v46  ;;  %v2793_v14 = vrot.slane %v2505_v3, %v4061_v46 }
  0x95   : > { %v2970_v4 = vsel %vm1677_vm0, %v2025_v23, %v2785_v6  ;;  %v1843_v15 = vrot.slane %v1815_v7, %v4071_v56  ;;  %v1845_v10 = vcombine.high %v1829_v8, %v1829_v8  ;;  %v2307_v16 = vrot.slane %v2279_v2, %v4071_v56 }
  0x96   : > { %v2309_v17 = vcombine.high %v2293_v9, %v2293_v9  ;;  %v2797_v18 = vrot.slane %v2507_v12, %v4061_v46  ;;  %v2971_v19 = vsel %vm1677_vm0, %v2039_v51, %v2789_v13  ;;  %v2972_v20 = vsel %vm1677_vm0, %v2041_v52, %v2793_v14 }
  0x97   : > { %v2657_v21 = vrot.slane %v2293_v9, %v4061_v46  ;;  %v3509_v22 = vcombine.low %v2970_v4, %v2971_v19  ;;  %v1847_v24 = vcombine.high %v1843_v15, %v1843_v15  ;;  %v2311_v25 = vcombine.high %v2307_v16, %v2307_v16 }
  0x98   : > { %v2661_v26 = vrot.slane %v2307_v16, %v4061_v46  ;;  %v2973_v61 = vsel %vm1677_vm0, %v2043_v0, %v2797_v18  ;;  %v2665_v27 = vrot.slane %v2309_v17, %v4061_v46  ;;  %v4431_v5 = vadd.f32 %v4052_v34, %v436_v44 }
  0x99   : > { %v2938_v60 = vsel %vm1677_vm0, %v1829_v8, %v2657_v21  ;;  %v3510_v57 = vcombine.low %v2972_v20, %v2973_v61  ;;  %v3517_v31 = vrot.slane %v3509_v22, %v4076_v58  ;;  %v2669_v33 = vrot.slane %v2311_v25, %v4061_v46 }
  0x9a   : > { %v2939_v35 = vsel %vm1677_vm0, %v1843_v15, %v2661_v26  ;;  %v2940_v36 = vsel %vm1677_vm0, %v1845_v10, %v2665_v27  ;;  %v802_v38 = vrot.slane %v4411_v11, %v4071_v56  ;;  %v1266_v30 = vrot.slane %v4431_v5, %v4071_v56 }
  0x9b   : > { %v3237_v37 = vcombine.low %v2938_v60, %v2939_v35  ;;  %v3524_v42 = vrot.slane %v3510_v57, %v4076_v58  ;;  %v2941_v43 = vsel %vm1677_vm0, %v1847_v24, %v2669_v33  ;;  %v424_v23 = vmul.f32 %v4047_v32, %v385_v28 }
  0x9c   : > { %v432_v45 = vmul.f32 %v4047_v32, %v393_v29  ;;  %v3238_v47 = vcombine.low %v2940_v36, %v2941_v43  ;;  %v810_v49 = vcombine.high %v802_v38, %v802_v38  ;;  %v818_v50 = vrot.slane %v802_v38, %v4071_v56  ;;  %v4468_v32 = vld [vmem:[%s4835_s3] ss:$0 sm:$0xff] }
  0x9d   : > { %v3245_v48 = vrot.slane %v3237_v37, %v4076_v58  ;;  %v3525_v39 = vcombine.low %v3517_v31, %v3524_v42  ;;  %v1274_v51 = vcombine.high %v1266_v30, %v1266_v30  ;;  %v1282_v52 = vrot.slane %v1266_v30, %v4071_v56 }
  0x9e   : > { %v463_v53 = vadd.f32 %v4052_v34, %v424_v23  ;;  %v3252_v54 = vrot.slane %v3238_v47, %v4076_v58  ;;  %v832_v55 = vrot.slane %v810_v49, %v4071_v56  ;;  %v840_v59 = vcombine.high %v818_v50, %v818_v50  ;;  %v405_v23 = vld [vmem:[%s4054_s10 + $0xb0] sm:$0xff] }
  0x9f   : > { %v4471_v62 = vadd.f32 %v4468_v32, %v432_v45  ;;  %3733 = vxpose.xlu1.b32.cont [8/16] (narrow) %v3525_v39, 8  ;;  %v1296_v63 = vrot.slane %v1274_v51, %v4071_v56  ;;  %v1304_v0 = vcombine.high %v1282_v52, %v1282_v52  ;;  %v1552_v40 = vrot.slane %v1282_v52, %v4061_v46  ;;  %v413_v45 = vld [vmem:[%s4054_s10 + $0xf0] sm:$0xff] }
  0xa0   : > { %v606_v34 = vrot.slane %v463_v53, %v4071_v56  ;;  %v3253_v44 = vcombine.low %v3245_v48, %v3252_v54  ;;  %v842_v1 = vcombine.high %v832_v55, %v832_v55  ;;  %v795_v6 = vcombine.high %v4411_v11, %v4411_v11  ;;  %v401_v47 = vld [vmem:[%s4054_s10 + $0x90] sm:$0xff] }
  0xa1   : > { %v1070_v3 = vrot.slane %v4471_v62, %v4071_v56  ;;  %v1306_v7 = vcombine.high %v1296_v63, %v1296_v63  ;;  %v1556_v8 = vrot.slane %v1296_v63, %v4061_v46  ;;  %v1560_v2 = vrot.slane %v1304_v0, %v4061_v46 }
  0xa2   : > { %v1726_v9 = vsel %vm1677_vm0, %v818_v50, %v1552_v40  ;;  %3701 = vxpose.xlu0.b32.cont [8/16] (narrow) %v3253_v44, 8  ;;  %v614_v12 = vcombine.high %v606_v34, %v606_v34  ;;  %v622_v13 = vrot.slane %v606_v34, %v4071_v56  ;;  %v809_v16 = vrot.slane %v795_v6, %v4071_v56 }
  0xa3   : > { %v1078_v14 = vcombine.high %v1070_v3, %v1070_v3  ;;  %v1086_v4 = vrot.slane %v1070_v3, %v4071_v56  ;;  %v1564_v15 = vrot.slane %v1306_v7, %v4061_v46  ;;  %v1727_v10 = vsel %vm1677_vm0, %v832_v55, %v1556_v8 }
  0xa4   : > { %v1728_v11 = vsel %vm1677_vm0, %v840_v59, %v1560_v2  ;;  %v3526_v17 = vcombine.low %v1726_v9, %v1727_v10  ;;  %v636_v18 = vrot.slane %v614_v12, %v4071_v56  ;;  %v644_v19 = vcombine.high %v622_v13, %v622_v13 }
  0xa5   : > { %v1100_v20 = vrot.slane %v1078_v14, %v4071_v56  ;;  %v1729_v21 = vsel %vm1677_vm0, %v842_v1, %v1564_v15  ;;  %v1108_v22 = vcombine.high %v1086_v4, %v1086_v4  ;;  %v1424_v24 = vrot.slane %v1086_v4, %v4061_v46 }
  0xa6   : > { %v811_v25 = vcombine.high %v809_v16, %v809_v16  ;;  %v3527_v26 = vcombine.low %v1728_v11, %v1729_v21  ;;  %v3534_v61 = vrot.slane %v3526_v17, %v4076_v58  ;;  %v646_v27 = vcombine.high %v636_v18, %v636_v18 }
  0xa7   : > { %v1110_v60 = vcombine.high %v1100_v20, %v1100_v20  ;;  %v1428_v28 = vrot.slane %v1100_v20, %v4061_v46  ;;  %v1432_v29 = vrot.slane %v1108_v22, %v4061_v46  ;;  %v1694_v57 = vsel %vm1677_vm0, %v622_v13, %v1424_v24 }
  0xa8   : > { %v825_v31 = vrot.slane %v809_v16, %v4071_v56  ;;  %v3541_v33 = vrot.slane %v3527_v26, %v4076_v58  ;;  %v839_v36 = vrot.slane %v811_v25, %v4071_v56  ;;  %v1259_v37 = vcombine.high %v4431_v5, %v4431_v5 }
  0xa9   : > { %v1436_v35 = vrot.slane %v1110_v60, %v4061_v46  ;;  %v1695_v38 = vsel %vm1677_vm0, %v636_v18, %v1428_v28  ;;  %v1696_v30 = vsel %vm1677_vm0, %v644_v19, %v1432_v29  ;;  %v599_v43 = vcombine.high %v463_v53, %v463_v53  ;;  %v4517_v53 = vld [vmem:[%s4834_s2] ss:$0 sm:$0xff] }
  0xaa   : > { %v841_v42 = vcombine.high %v825_v31, %v825_v31  ;;  %v3542_v48 = vcombine.low %v3534_v61, %v3541_v33  ;;  %v3254_v50 = vcombine.low %v1694_v57, %v1695_v38  ;;  %v843_v39 = vcombine.high %v839_v36, %v839_v36 }
  0xab   : > { %v1697_v49 = vsel %vm1677_vm0, %v646_v27, %v1436_v35  ;;  %v1273_v52 = vrot.slane %v1259_v37, %v4071_v56  ;;  %v613_v54 = vrot.slane %v599_v43, %v4071_v56  ;;  %v1063_v5 = vcombine.high %v4471_v62, %v4471_v62  ;;  %v409_v35 = vld [vmem:[%s4054_s10 + $0xd0] sm:$0xff] }
  0xac   : > { %v3255_v51 = vcombine.low %v1696_v30, %v1697_v49  ;;  %3734 = vxpose.xlu1.b32.cont [9/16] (narrow) %v3542_v48, 8  ;;  %v3262_v55 = vrot.slane %v3254_v50, %v4076_v58  ;;  %v444_v59 = vmul.f32 %v4517_v53, %v405_v23  ;;  %v452_v63 = vmul.f32 %v4517_v53, %v413_v45 }
  0xad   : > { %v440_v0 = vmul.f32 %v4517_v53, %v401_v47  ;;  %v1275_v34 = vcombine.high %v1273_v52, %v1273_v52  ;;  %v1289_v44 = vrot.slane %v1273_v52, %v4071_v56  ;;  %v615_v62 = vcombine.high %v613_v54, %v613_v54 }
  0xae   : > { %v3269_v40 = vrot.slane %v3255_v51, %v4076_v58  ;;  %v629_v1 = vrot.slane %v613_v54, %v4071_v56  ;;  %v1077_v3 = vrot.slane %v1063_v5, %v4071_v56  ;;  %v4527_v6 = vadd.f32 %v4468_v32, %v444_v59 }
  0xaf   : > { %v4530_v7 = vadd.f32 %v4468_v32, %v452_v63  ;;  %v1303_v2 = vrot.slane %v1275_v34, %v4071_v56  ;;  %v1305_v9 = vcombine.high %v1289_v44, %v1289_v44  ;;  %v1568_v12 = vrot.slane %v1289_v44, %v4061_v46 }
  0xb0   : > { %v3270_v8 = vcombine.low %v3262_v55, %v3269_v40  ;;  %v643_v13 = vrot.slane %v615_v62, %v4071_v56  ;;  %v645_v14 = vcombine.high %v629_v1, %v629_v1  ;;  %v1079_v4 = vcombine.high %v1077_v3, %v1077_v3 }
  0xb1   : > { %v1093_v15 = vrot.slane %v1077_v3, %v4071_v56  ;;  %v1307_v10 = vcombine.high %v1303_v2, %v1303_v2  ;;  %v1572_v11 = vrot.slane %v1303_v2, %v4061_v46  ;;  %v1576_v16 = vrot.slane %v1305_v9, %v4061_v46 }
  0xb2   : > { %3702 = vxpose.xlu0.b32.cont [9/16] (narrow) %v3270_v8, 8  ;;  %v1730_v17 = vsel %vm1677_vm0, %v825_v31, %v1568_v12  ;;  %v647_v18 = vcombine.high %v643_v13, %v643_v13  ;;  %v1107_v19 = vrot.slane %v1079_v4, %v4071_v56  ;;  %v2051_v26 = vrot.slane %v4527_v6, %v4071_v56 }
  0xb3   : > { %v1109_v20 = vcombine.high %v1093_v15, %v1093_v15  ;;  %v1440_v21 = vrot.slane %v1093_v15, %v4061_v46  ;;  %v1580_v22 = vrot.slane %v1307_v10, %v4061_v46  ;;  %v1731_v24 = vsel %vm1677_vm0, %v839_v36, %v1572_v11 }
  0xb4   : > { %v1732_v25 = vsel %vm1677_vm0, %v841_v42, %v1576_v16  ;;  %v3543_v61 = vcombine.low %v1730_v17, %v1731_v24  ;;  %v1111_v27 = vcombine.high %v1107_v19, %v1107_v19  ;;  %v1444_v60 = vrot.slane %v1107_v19, %v4061_v46 }
  0xb5   : > { %v1448_v28 = vrot.slane %v1109_v20, %v4061_v46  ;;  %v1733_v29 = vsel %vm1677_vm0, %v843_v39, %v1580_v22  ;;  %v1698_v57 = vsel %vm1677_vm0, %v629_v1, %v1440_v21  ;;  %v2059_v31 = vcombine.high %v2051_v26, %v2051_v26 }
  0xb6   : > { %v2067_v33 = vrot.slane %v2051_v26, %v4071_v56  ;;  %v3544_v36 = vcombine.low %v1732_v25, %v1733_v29  ;;  %v3551_v37 = vrot.slane %v3543_v61, %v4076_v58  ;;  %v1452_v38 = vrot.slane %v1111_v27, %v4061_v46 }
  0xb7   : > { %v1699_v30 = vsel %vm1677_vm0, %v643_v13, %v1444_v60  ;;  %v1700_v42 = vsel %vm1677_vm0, %v645_v14, %v1448_v28  ;;  %v2081_v23 = vrot.slane %v2059_v31, %v4071_v56  ;;  %v2515_v49 = vrot.slane %v4530_v7, %v4071_v56 }
  0xb8   : > { %v3271_v43 = vcombine.low %v1698_v57, %v1699_v30  ;;  %v2089_v45 = vcombine.high %v2067_v33, %v2067_v33  ;;  %v3558_v47 = vrot.slane %v3544_v36, %v4076_v58  ;;  %v1701_v48 = vsel %vm1677_vm0, %v647_v18, %v1452_v38 }
  0xb9   : > { %v448_v50 = vmul.f32 %v4517_v53, %v409_v35  ;;  %v3272_v39 = vcombine.low %v1700_v42, %v1701_v48  ;;  %v2091_v52 = vcombine.high %v2081_v23, %v2081_v23  ;;  %v4564_v54 = vadd.f32 %v4468_v32, %v440_v0 }
  0xba   : > { %v3279_v51 = vrot.slane %v3271_v43, %v4076_v58  ;;  %v3559_v5 = vcombine.low %v3551_v37, %v3558_v47  ;;  %v2523_v55 = vcombine.high %v2515_v49, %v2515_v49  ;;  %v2531_v59 = vrot.slane %v2515_v49, %v4071_v56  ;;  %v390_v49 = vld [vmem:[%s4054_s10 + $0x38] sm:$0xff] }
  0xbb   : > { %v487_v63 = vadd.f32 %v4468_v32, %v448_v50  ;;  %v3286_v40 = vrot.slane %v3272_v39, %v4076_v58  ;;  %v1855_v34 = vrot.slane %v4564_v54, %v4071_v56  ;;  %v2044_v44 = vcombine.high %v4527_v6, %v4527_v6 }
  0xbc   : > { %v2508_v62 = vcombine.high %v4530_v7, %v4530_v7  ;;  %3735 = vxpose.xlu1.b32.cont [10/16] (narrow) %v3559_v5, 8  ;;  %v2545_v0 = vrot.slane %v2523_v55, %v4071_v56  ;;  %v2553_v1 = vcombine.high %v2531_v59, %v2531_v59  ;;  %v2801_v3 = vrot.slane %v2531_v59, %v4061_v46 }
  0xbd   : > { %v2319_v8 = vrot.slane %v487_v63, %v4071_v56  ;;  %v3287_v2 = vcombine.low %v3279_v51, %v3286_v40  ;;  %v1863_v9 = vcombine.high %v1855_v34, %v1855_v34  ;;  %v1871_v12 = vrot.slane %v1855_v34, %v4071_v56 }
  0xbe   : > { %v2058_v13 = vrot.slane %v2044_v44, %v4071_v56  ;;  %v2555_v14 = vcombine.high %v2545_v0, %v2545_v0  ;;  %v2805_v6 = vrot.slane %v2545_v0, %v4061_v46  ;;  %v2809_v4 = vrot.slane %v2553_v1, %v4061_v46 }
  0xbf   : > { %v2974_v7 = vsel %vm1677_vm0, %v2067_v33, %v2801_v3  ;;  %3703 = vxpose.xlu0.b32.cont [10/16] (narrow) %v3287_v2, 8  ;;  %v1885_v15 = vrot.slane %v1863_v9, %v4071_v56  ;;  %v1893_v10 = vcombine.high %v1871_v12, %v1871_v12  ;;  %v2327_v11 = vcombine.high %v2319_v8, %v2319_v8 }
  0xc0   : > { %v2335_v16 = vrot.slane %v2319_v8, %v4071_v56  ;;  %v2813_v17 = vrot.slane %v2555_v14, %v4061_v46  ;;  %v2975_v18 = vsel %vm1677_vm0, %v2081_v23, %v2805_v6  ;;  %v2976_v19 = vsel %vm1677_vm0, %v2089_v45, %v2809_v4 }
  0xc1   : > { %v2060_v20 = vcombine.high %v2058_v13, %v2058_v13  ;;  %v3560_v21 = vcombine.low %v2974_v7, %v2975_v18  ;;  %v1895_v22 = vcombine.high %v1885_v15, %v1885_v15  ;;  %v2349_v24 = vrot.slane %v2327_v11, %v4071_v56  ;;  %v398_v7 = vld [vmem:[%s4054_s10 + $0x78] sm:$0xff] }
  0xc2   : > { %v2357_v25 = vcombine.high %v2335_v16, %v2335_v16  ;;  %v2977_v26 = vsel %vm1677_vm0, %v2091_v52, %v2813_v17  ;;  %v2673_v61 = vrot.slane %v2335_v16, %v4061_v46  ;;  %v2074_v27 = vrot.slane %v2058_v13, %v4071_v56 }
  0xc3   : > { %v2088_v60 = vrot.slane %v2060_v20, %v4071_v56  ;;  %v3561_v28 = vcombine.low %v2976_v19, %v2977_v26  ;;  %v3568_v29 = vrot.slane %v3560_v21, %v4076_v58  ;;  %v2359_v57 = vcombine.high %v2349_v24, %v2349_v24  ;;  %v386_v26 = vld [vmem:[%s4054_s10 + $0x18] sm:$0xff] }
  0xc4   : > { %v2677_v31 = vrot.slane %v2349_v24, %v4061_v46  ;;  %v2681_v33 = vrot.slane %v2357_v25, %v4061_v46  ;;  %v2942_v35 = vsel %vm1677_vm0, %v1871_v12, %v2673_v61  ;;  %v2090_v36 = vcombine.high %v2074_v27, %v2074_v27 }
  0xc5   : > { %v2092_v37 = vcombine.high %v2088_v60, %v2088_v60  ;;  %v3575_v38 = vrot.slane %v3561_v28, %v4076_v58  ;;  %v2685_v30 = vrot.slane %v2359_v57, %v4061_v46  ;;  %v2522_v43 = vrot.slane %v2508_v62, %v4071_v56 }
  0xc6   : > { %v2943_v42 = vsel %vm1677_vm0, %v1885_v15, %v2677_v31  ;;  %v2944_v23 = vsel %vm1677_vm0, %v1893_v10, %v2681_v33  ;;  %v1848_v47 = vcombine.high %v4564_v54, %v4564_v54  ;;  %v2312_v48 = vcombine.high %v487_v63, %v487_v63 }
  0xc7   : > { %v3288_v45 = vcombine.low %v2942_v35, %v2943_v42  ;;  %v3576_v50 = vcombine.low %v3568_v29, %v3575_v38  ;;  %v2945_v39 = vsel %vm1677_vm0, %v1895_v22, %v2685_v30  ;;  %v2524_v51 = vcombine.high %v2522_v43, %v2522_v43  ;;  %v394_v29 = vld [vmem:[%s4054_s10 + $0x58] sm:$0xff] }
  0xc8   : > { %v2538_v52 = vrot.slane %v2522_v43, %v4071_v56  ;;  %v3289_v5 = vcombine.low %v2944_v23, %v2945_v39  ;;  %v1862_v59 = vrot.slane %v1848_v47, %v4071_v56  ;;  %v2326_v40 = vrot.slane %v2312_v48, %v4071_v56 }
  0xc9   : > { %v3296_v55 = vrot.slane %v3288_v45, %v4076_v58  ;;  %3736 = vxpose.xlu1.b32.cont [11/16] (narrow) %v3576_v50, 8  ;;  %v2552_v34 = vrot.slane %v2524_v51, %v4071_v56  ;;  %v429_v44 = vmul.f32 %v4517_v53, %v390_v49  ;;  %v437_v25 = vmul.f32 %v4517_v53, %v398_v7 }
  0xca   : > { %v2554_v54 = vcombine.high %v2538_v52, %v2538_v52  ;;  %v2817_v63 = vrot.slane %v2538_v52, %v4061_v46  ;;  %v3303_v62 = vrot.slane %v3289_v5, %v4076_v58  ;;  %v1864_v0 = vcombine.high %v1862_v59, %v1862_v59 }
  0xcb   : > { %v1878_v1 = vrot.slane %v1862_v59, %v4071_v56  ;;  %v2328_v3 = vcombine.high %v2326_v40, %v2326_v40  ;;  %v2556_v8 = vcombine.high %v2552_v34, %v2552_v34  ;;  %v2821_v2 = vrot.slane %v2552_v34, %v4061_v46 }
  0xcc   : > { %v2825_v9 = vrot.slane %v2554_v54, %v4061_v46  ;;  %v2978_v12 = vsel %vm1677_vm0, %v2074_v27, %v2817_v63  ;;  %v3304_v13 = vcombine.low %v3296_v55, %v3303_v62  ;;  %v1892_v14 = vrot.slane %v1864_v0, %v4071_v56 }
  0xcd   : > { %v1894_v6 = vcombine.high %v1878_v1, %v1878_v1  ;;  %v2342_v4 = vrot.slane %v2326_v40, %v4071_v56  ;;  %v2829_v15 = vrot.slane %v2556_v8, %v4061_v46  ;;  %v2979_v10 = vsel %vm1677_vm0, %v2088_v60, %v2821_v2 }
  0xce   : > { %v2980_v11 = vsel %vm1677_vm0, %v2090_v36, %v2825_v9  ;;  %v2356_v16 = vrot.slane %v2328_v3, %v4071_v56  ;;  %3704 = vxpose.xlu0.b32.cont [11/16] (narrow) %v3304_v13, 8  ;;  %v3577_v17 = vcombine.low %v2978_v12, %v2979_v10  ;;  %v1896_v18 = vcombine.high %v1892_v14, %v1892_v14 }
  0xcf   : > { %v2358_v19 = vcombine.high %v2342_v4, %v2342_v4  ;;  %v2689_v20 = vrot.slane %v2342_v4, %v4061_v46  ;;  %v2981_v21 = vsel %vm1677_vm0, %v2092_v37, %v2829_v15  ;;  %v468_v33 = vadd.f32 %v4468_v32, %v429_v44 }
  0xd0   : > { %v2360_v22 = vcombine.high %v2356_v16, %v2356_v16  ;;  %v2693_v24 = vrot.slane %v2356_v16, %v4061_v46  ;;  %v3578_v61 = vcombine.low %v2980_v11, %v2981_v21  ;;  %v3585_v27 = vrot.slane %v3577_v17, %v4076_v58 }
  0xd1   : > { %v2697_v60 = vrot.slane %v2358_v19, %v4061_v46  ;;  %v2946_v28 = vsel %vm1677_vm0, %v1878_v1, %v2689_v20  ;;  %v476_v35 = vadd.f32 %v4468_v32, %v437_v25  ;;  %v425_v30 = vmul.f32 %v4517_v53, %v386_v26 }
  0xd2   : > { %v2701_v57 = vrot.slane %v2360_v22, %v4061_v46  ;;  %v2947_v31 = vsel %vm1677_vm0, %v1892_v14, %v2693_v24  ;;  %v3592_v36 = vrot.slane %v3578_v61, %v4076_v58  ;;  %v851_v43 = vrot.slane %v468_v33, %v4071_v56 }
  0xd3   : > { %v2948_v37 = vsel %vm1677_vm0, %v1894_v6, %v2697_v60  ;;  %v3305_v38 = vcombine.low %v2946_v28, %v2947_v31  ;;  %v1315_v23 = vrot.slane %v476_v35, %v4071_v56  ;;  %v433_v45 = vmul.f32 %v4517_v53, %v394_v29 }
  0xd4   : > { %v2949_v42 = vsel %vm1677_vm0, %v1896_v18, %v2701_v57  ;;  %v3593_v47 = vcombine.low %v3585_v27, %v3592_v36  ;;  %v4647_v50 = vadd.f32 %v4468_v32, %v425_v30  ;;  %v859_v39 = vcombine.high %v851_v43, %v851_v43 }
  0xd5   : > { %v3306_v48 = vcombine.low %v2948_v37, %v2949_v42  ;;  %v3313_v49 = vrot.slane %v3305_v38, %v4076_v58  ;;  %v867_v51 = vrot.slane %v851_v43, %v4071_v56  ;;  %v1323_v52 = vcombine.high %v1315_v23, %v1315_v23 }
  0xd6   : > { %v1331_v5 = vrot.slane %v1315_v23, %v4071_v56  ;;  %3737 = vxpose.xlu1.b32.cont [12/16] (narrow) %v3593_v47, 8  ;;  %v4653_v59 = vadd.f32 %v4468_v32, %v433_v45  ;;  %v655_v40 = vrot.slane %v4647_v50, %v4071_v56  ;;  %v844_v34 = vcombine.high %v468_v33, %v468_v33  ;;  %v406_v23 = vld [vmem:[%s4054_s10 + $0xb8] sm:$0xff] }
  0xd7   : > { %v3320_v55 = vrot.slane %v3306_v48, %v4076_v58  ;;  %v881_v54 = vrot.slane %v859_v39, %v4071_v56  ;;  %v889_v63 = vcombine.high %v867_v51, %v867_v51  ;;  %v1345_v44 = vrot.slane %v1323_v52, %v4071_v56 }
  0xd8   : > { %v1353_v62 = vcombine.high %v1331_v5, %v1331_v5  ;;  %v1584_v1 = vrot.slane %v1331_v5, %v4061_v46  ;;  %v663_v3 = vcombine.high %v655_v40, %v655_v40  ;;  %v671_v8 = vrot.slane %v655_v40, %v4071_v56 }
  0xd9   : > { %v3321_v0 = vcombine.low %v3313_v49, %v3320_v55  ;;  %v891_v2 = vcombine.high %v881_v54, %v881_v54  ;;  %v1355_v9 = vcombine.high %v1345_v44, %v1345_v44  ;;  %v1588_v12 = vrot.slane %v1345_v44, %v4061_v46 }
  0xda   : > { %v1592_v13 = vrot.slane %v1353_v62, %v4061_v46  ;;  %v1734_v14 = vsel %vm1677_vm0, %v867_v51, %v1584_v1  ;;  %v685_v6 = vrot.slane %v663_v3, %v4071_v56  ;;  %v693_v4 = vcombine.high %v671_v8, %v671_v8 }
  0xdb   : > { %3705 = vxpose.xlu0.b32.cont [12/16] (narrow) %v3321_v0, 8  ;;  %v1119_v7 = vrot.slane %v4653_v59, %v4071_v56  ;;  %v1596_v15 = vrot.slane %v1355_v9, %v4061_v46  ;;  %v1735_v10 = vsel %vm1677_vm0, %v881_v54, %v1588_v12  ;;  %v858_v16 = vrot.slane %v844_v34, %v4071_v56  ;;  %v414_v54 = vld [vmem:[%s4054_s10 + $0xf8] sm:$0xff] }
  0xdc   : > { %v1736_v11 = vsel %vm1677_vm0, %v889_v63, %v1592_v13  ;;  %v3594_v17 = vcombine.low %v1734_v14, %v1735_v10  ;;  %v695_v18 = vcombine.high %v685_v6, %v685_v6  ;;  %v1308_v25 = vcombine.high %v476_v35, %v476_v35 }
  0xdd   : > { %v1127_v19 = vcombine.high %v1119_v7, %v1119_v7  ;;  %v1135_v20 = vrot.slane %v1119_v7, %v4071_v56  ;;  %v1737_v21 = vsel %vm1677_vm0, %v891_v2, %v1596_v15  ;;  %v860_v22 = vcombine.high %v858_v16, %v858_v16 }
  0xde   : > { %v874_v24 = vrot.slane %v858_v16, %v4071_v56  ;;  %v3595_v26 = vcombine.low %v1736_v11, %v1737_v21  ;;  %v3602_v61 = vrot.slane %v3594_v17, %v4076_v58  ;;  %v1322_v31 = vrot.slane %v1308_v25, %v4071_v56  ;;  %v402_v17 = vld [vmem:[%s4054_s10 + $0x98] sm:$0xff] }
  0xdf   : > { %v1149_v27 = vrot.slane %v1127_v19, %v4071_v56  ;;  %v1157_v60 = vcombine.high %v1135_v20, %v1135_v20  ;;  %v1456_v28 = vrot.slane %v1135_v20, %v4061_v46  ;;  %v888_v29 = vrot.slane %v860_v22, %v4071_v56 }
  0xe0   : > { %v890_v57 = vcombine.high %v874_v24, %v874_v24  ;;  %v3609_v33 = vrot.slane %v3595_v26, %v4076_v58  ;;  %v1324_v42 = vcombine.high %v1322_v31, %v1322_v31  ;;  %v1338_v43 = vrot.slane %v1322_v31, %v4071_v56 }
  0xe1   : > { %v1159_v36 = vcombine.high %v1149_v27, %v1149_v27  ;;  %v1460_v37 = vrot.slane %v1149_v27, %v4061_v46  ;;  %v1464_v35 = vrot.slane %v1157_v60, %v4061_v46  ;;  %v1702_v38 = vsel %vm1677_vm0, %v671_v8, %v1456_v28 }
  0xe2   : > { %v892_v30 = vcombine.high %v888_v29, %v888_v29  ;;  %v3610_v45 = vcombine.low %v3602_v61, %v3609_v33  ;;  %v1352_v51 = vrot.slane %v1324_v42, %v4071_v56  ;;  %v1354_v52 = vcombine.high %v1338_v43, %v1338_v43  ;;  %v410_v61 = vld [vmem:[%s4054_s10 + $0xd8] sm:$0xff] }
  0xe3   : > { %v1468_v47 = vrot.slane %v1159_v36, %v4061_v46  ;;  %v1703_v48 = vsel %vm1677_vm0, %v685_v6, %v1460_v37  ;;  %v1704_v49 = vsel %vm1677_vm0, %v693_v4, %v1464_v35  ;;  %v1600_v5 = vrot.slane %v1338_v43, %v4061_v46 }
  0xe4   : > { %v3322_v39 = vcombine.low %v1702_v38, %v1703_v48  ;;  %3738 = vxpose.xlu1.b32.cont [13/16] (narrow) %v3610_v45, 8  ;;  %v648_v40 = vcombine.high %v4647_v50, %v4647_v50  ;;  %v1112_v34 = vcombine.high %v4653_v59, %v4653_v59  ;;  %v445_v63 = vmul.f32 %v4517_v53, %v406_v23 }
  0xe5   : > { %v1705_v55 = vsel %vm1677_vm0, %v695_v18, %v1468_v47  ;;  %v1356_v0 = vcombine.high %v1352_v51, %v1352_v51  ;;  %v1604_v1 = vrot.slane %v1352_v51, %v4061_v46  ;;  %v1608_v3 = vrot.slane %v1354_v52, %v4061_v46 }
  0xe6   : > { %v3323_v44 = vcombine.low %v1704_v49, %v1705_v55  ;;  %v3330_v62 = vrot.slane %v3322_v39, %v4076_v58  ;;  %v1738_v8 = vsel %vm1677_vm0, %v874_v24, %v1600_v5  ;;  %v662_v2 = vrot.slane %v648_v40, %v4071_v56 }
  0xe7   : > { %v1126_v50 = vrot.slane %v1112_v34, %v4071_v56  ;;  %v1612_v9 = vrot.slane %v1356_v0, %v4061_v46  ;;  %v1739_v12 = vsel %vm1677_vm0, %v888_v29, %v1604_v1  ;;  %v453_v13 = vmul.f32 %v4517_v53, %v414_v54 }
  0xe8   : > { %v3337_v59 = vrot.slane %v3323_v44, %v4076_v58  ;;  %v1740_v14 = vsel %vm1677_vm0, %v890_v57, %v1608_v3  ;;  %v3611_v6 = vcombine.low %v1738_v8, %v1739_v12  ;;  %v664_v4 = vcombine.high %v662_v2, %v662_v2 }
  0xe9   : > { %v678_v7 = vrot.slane %v662_v2, %v4071_v56  ;;  %v1741_v10 = vsel %vm1677_vm0, %v892_v30, %v1612_v9  ;;  %v1128_v11 = vcombine.high %v1126_v50, %v1126_v50  ;;  %v1142_v16 = vrot.slane %v1126_v50, %v4071_v56 }
  0xea   : > { %v3338_v15 = vcombine.low %v3330_v62, %v3337_v59  ;;  %v3612_v18 = vcombine.low %v1740_v14, %v1741_v10  ;;  %v3619_v19 = vrot.slane %v3611_v6, %v4076_v58  ;;  %v692_v20 = vrot.slane %v664_v4, %v4071_v56 }
  0xeb   : > { %v694_v21 = vcombine.high %v678_v7, %v678_v7  ;;  %v1156_v22 = vrot.slane %v1128_v11, %v4071_v56  ;;  %v1158_v24 = vcombine.high %v1142_v16, %v1142_v16  ;;  %v1472_v25 = vrot.slane %v1142_v16, %v4061_v46 }
  0xec   : > { %3706 = vxpose.xlu0.b32.cont [13/16] (narrow) %v3338_v15, 8  ;;  %v4717_v26 = vadd.f32 %v4468_v32, %v445_v63  ;;  %v3626_v27 = vrot.slane %v3612_v18, %v4076_v58  ;;  %v696_v60 = vcombine.high %v692_v20, %v692_v20  ;;  %v4722_v28 = vadd.f32 %v4468_v32, %v453_v13 }
  0xed   : > { %v441_v29 = vmul.f32 %v4517_v53, %v402_v17  ;;  %v1160_v57 = vcombine.high %v1156_v22, %v1156_v22  ;;  %v1476_v31 = vrot.slane %v1156_v22, %v4061_v46  ;;  %v1480_v33 = vrot.slane %v1158_v24, %v4061_v46 }
  0xee   : > { %v1706_v36 = vsel %vm1677_vm0, %v678_v7, %v1472_v25  ;;  %v3627_v37 = vcombine.low %v3619_v19, %v3626_v27  ;;  %v2100_v35 = vrot.slane %v4717_v26, %v4071_v56  ;;  %v2564_v38 = vrot.slane %v4722_v28, %v4071_v56 }
  0xef   : > { %v449_v30 = vmul.f32 %v4517_v53, %v410_v61  ;;  %v1484_v42 = vrot.slane %v1160_v57, %v4061_v46  ;;  %v1707_v43 = vsel %vm1677_vm0, %v692_v20, %v1476_v31  ;;  %v1708_v23 = vsel %vm1677_vm0, %v694_v21, %v1480_v33 }
  0xf0   : > { %v4737_v45 = vadd.f32 %v4468_v32, %v441_v29  ;;  %3739 = vxpose.xlu1.b32.cont [14/16] (narrow) %v3627_v37, 8  ;;  %v3339_v47 = vcombine.low %v1706_v36, %v1707_v43  ;;  %v2108_v48 = vcombine.high %v2100_v35, %v2100_v35  ;;  %v2116_v49 = vrot.slane %v2100_v35, %v4071_v56 }
  0xf1   : > { %v2572_v39 = vcombine.high %v2564_v38, %v2564_v38  ;;  %v1709_v51 = vsel %vm1677_vm0, %v696_v60, %v1484_v42  ;;  %v2580_v52 = vrot.slane %v2564_v38, %v4071_v56  ;;  %v4743_v53 = vadd.f32 %v4468_v32, %v449_v30 }
  0xf2   : > { %v1904_v5 = vrot.slane %v4737_v45, %v4071_v56  ;;  %v3340_v55 = vcombine.low %v1708_v23, %v1709_v51  ;;  %v3347_v40 = vrot.slane %v3339_v47, %v4076_v58  ;;  %v2130_v34 = vrot.slane %v2108_v48, %v4071_v56 }
  0xf3   : > { %v2138_v54 = vcombine.high %v2116_v49, %v2116_v49  ;;  %v2594_v63 = vrot.slane %v2572_v39, %v4071_v56  ;;  %v2602_v44 = vcombine.high %v2580_v52, %v2580_v52  ;;  %v2833_v62 = vrot.slane %v2580_v52, %v4061_v46 }
  0xf4   : > { %v1912_v0 = vcombine.high %v1904_v5, %v1904_v5  ;;  %v3354_v1 = vrot.slane %v3340_v55, %v4076_v58  ;;  %v2140_v3 = vcombine.high %v2130_v34, %v2130_v34  ;;  %v1920_v32 = vrot.slane %v1904_v5, %v4071_v56 }
  0xf5   : > { %v2368_v8 = vrot.slane %v4743_v53, %v4071_v56  ;;  %v2604_v2 = vcombine.high %v2594_v63, %v2594_v63  ;;  %v2837_v50 = vrot.slane %v2594_v63, %v4061_v46  ;;  %v2841_v59 = vrot.slane %v2602_v44, %v4061_v46 }
  0xf6   : > { %v2982_v9 = vsel %vm1677_vm0, %v2116_v49, %v2833_v62  ;;  %v3355_v12 = vcombine.low %v3347_v40, %v3354_v1  ;;  %v1934_v13 = vrot.slane %v1912_v0, %v4071_v56  ;;  %v1942_v14 = vcombine.high %v1920_v32, %v1920_v32 }
  0xf7   : > { %v2376_v6 = vcombine.high %v2368_v8, %v2368_v8  ;;  %v2845_v4 = vrot.slane %v2604_v2, %v4061_v46  ;;  %v2983_v7 = vsel %vm1677_vm0, %v2130_v34, %v2837_v50  ;;  %v2984_v15 = vsel %vm1677_vm0, %v2138_v54, %v2841_v59 }
  0xf8   : > { %v2384_v10 = vrot.slane %v2368_v8, %v4071_v56  ;;  %3707 = vxpose.xlu0.b32.cont [14/16] (narrow) %v3355_v12, 8  ;;  %v3628_v11 = vcombine.low %v2982_v9, %v2983_v7  ;;  %v1944_v16 = vcombine.high %v1934_v13, %v1934_v13  ;;  %v2093_v18 = vcombine.high %v4717_v26, %v4717_v26 }
  0xf9   : > { %v2398_v17 = vrot.slane %v2376_v6, %v4071_v56  ;;  %v2985_v19 = vsel %vm1677_vm0, %v2140_v3, %v2845_v4  ;;  %v2557_v22 = vcombine.high %v4722_v28, %v4722_v28  ;;  %v1897_v36 = vcombine.high %v4737_v45, %v4737_v45 }
  0xfa   : > { %v2406_v20 = vcombine.high %v2384_v10, %v2384_v10  ;;  %v2705_v21 = vrot.slane %v2384_v10, %v4061_v46  ;;  %v3629_v24 = vcombine.low %v2984_v15, %v2985_v19  ;;  %v3636_v25 = vrot.slane %v3628_v11, %v4076_v58 }
  0xfb   : > { %v2408_v61 = vcombine.high %v2398_v17, %v2398_v17  ;;  %v2709_v27 = vrot.slane %v2398_v17, %v4061_v46  ;;  %v2107_v26 = vrot.slane %v2093_v18, %v4071_v56  ;;  %v2571_v57 = vrot.slane %v2557_v22, %v4071_v56 }
  0xfc   : > { %v2713_v60 = vrot.slane %v2406_v20, %v4061_v46  ;;  %v2950_v29 = vsel %vm1677_vm0, %v1920_v32, %v2705_v21  ;;  %v3643_v31 = vrot.slane %v3629_v24, %v4076_v58  ;;  %v1911_v55 = vrot.slane %v1897_v36, %v4071_v56 }
  0xfd   : > { %v2717_v33 = vrot.slane %v2408_v61, %v4061_v46  ;;  %v2951_v28 = vsel %vm1677_vm0, %v1934_v13, %v2709_v27  ;;  %v2109_v38 = vcombine.high %v2107_v26, %v2107_v26  ;;  %v2123_v30 = vrot.slane %v2107_v26, %v4071_v56 }
  0xfe   : > { %v2952_v37 = vsel %vm1677_vm0, %v1942_v14, %v2713_v60  ;;  %v3356_v35 = vcombine.low %v2950_v29, %v2951_v28  ;;  %v3644_v42 = vcombine.low %v3636_v25, %v3643_v31  ;;  %v2573_v23 = vcombine.high %v2571_v57, %v2571_v57 }
  0xff   : > { %v2953_v43 = vsel %vm1677_vm0, %v1944_v16, %v2717_v33  ;;  %v2587_v47 = vrot.slane %v2571_v57, %v4071_v56  ;;  %v2137_v39 = vrot.slane %v2109_v38, %v4071_v56  ;;  %v2139_v51 = vcombine.high %v2123_v30, %v2123_v30 }
 0x100   : > { %v3357_v48 = vcombine.low %v2952_v37, %v2953_v43  ;;  %v3364_v49 = vrot.slane %v3356_v35, %v4076_v58  ;;  %3740 = vxpose.xlu1.b32.cont [15/16] (narrow) %v3644_v42, 8  ;;  %v2601_v45 = vrot.slane %v2573_v23, %v4071_v56  ;;  %v2361_v54 = vcombine.high %v4743_v53, %v4743_v53 }
 0x101   : > { %v2603_v52 = vcombine.high %v2587_v47, %v2587_v47  ;;  %v2849_v5 = vrot.slane %v2587_v47, %v4061_v46  ;;  %v2141_v34 = vcombine.high %v2137_v39, %v2137_v39  ;;  %v379_v63 = vcombine.high %v4451_v41, %v4451_v41 }
 0x102   : > { %v3371_v40 = vrot.slane %v3357_v48, %v4076_v58  ;;  %v2605_v44 = vcombine.high %v2601_v45, %v2601_v45  ;;  %v2853_v62 = vrot.slane %v2601_v45, %v4061_v46  ;;  %v1913_v32 = vcombine.high %v1911_v55, %v1911_v55 }
 0x103   : > { %v2857_v0 = vrot.slane %v2603_v52, %v4061_v46  ;;  %v2986_v1 = vsel %vm1677_vm0, %v2123_v30, %v2849_v5  ;;  %v2375_v8 = vrot.slane %v2361_v54, %v4071_v56  ;;  %382 = vst [vmem:[%s4444_s21 + $0x8] sm:$0xf] %v379_v63  ;;  %v1927_v41 = vrot.slane %v1911_v55, %v4071_v56 }
 0x104   : > { %v3372_v3 = vcombine.low %v3364_v49, %v3371_v40  ;;  %v2861_v2 = vrot.slane %v2605_v44, %v4061_v46  ;;  %v2987_v50 = vsel %vm1677_vm0, %v2137_v39, %v2853_v62  ;;  %v1941_v9 = vrot.slane %v1913_v32, %v4071_v56 }
 0x105   : > { %v2988_v53 = vsel %vm1677_vm0, %v2139_v51, %v2857_v0  ;;  %v3645_v59 = vcombine.low %v2986_v1, %v2987_v50  ;;  %v2377_v12 = vcombine.high %v2375_v8, %v2375_v8  ;;  %v2391_v14 = vrot.slane %v2375_v8, %v4071_v56 }
 0x106   : > { %3708 = vxpose.xlu0.b32.cont [15/16] (narrow) %v3372_v3, 8  ;;  %v2989_v13 = vsel %vm1677_vm0, %v2141_v34, %v2861_v2  ;;  %v1943_v15 = vcombine.high %v1927_v41, %v1927_v41  ;;  %v1945_v17 = vcombine.high %v1941_v9, %v1941_v9 }
 0x107   : > { %v3646_v6 = vcombine.low %v2988_v53, %v2989_v13  ;;  %v3653_v4 = vrot.slane %v3645_v59, %v4076_v58  ;;  %v2405_v7 = vrot.slane %v2377_v12, %v4071_v56  ;;  %v2407_v10 = vcombine.high %v2391_v14, %v2391_v14 }
 0x108   : > { %v2721_v11 = vrot.slane %v2391_v14, %v4061_v46 }
 0x109   : > { %v3660_v16 = vrot.slane %v3646_v6, %v4076_v58  ;;  %v2409_v18 = vcombine.high %v2405_v7, %v2405_v7  ;;  %v2725_v19 = vrot.slane %v2405_v7, %v4061_v46  ;;  %v2729_v20 = vrot.slane %v2407_v10, %v4061_v46 }
 0x10a   : > { %v2954_v21 = vsel %vm1677_vm0, %v1927_v41, %v2721_v11 }
 0x10b   : > { %v3661_v22 = vcombine.low %v3653_v4, %v3660_v16  ;;  %v2733_v24 = vrot.slane %v2409_v18, %v4061_v46  ;;  %v2955_v56 = vsel %vm1677_vm0, %v1941_v9, %v2725_v19  ;;  %v2956_v25 = vsel %vm1677_vm0, %v1943_v15, %v2729_v20 }
 0x10c   : > { %v3373_v61 = vcombine.low %v2954_v21, %v2955_v56 }
 0x10d   : > { %3741 = vxpose.xlu1.b32.end [16/16] (narrow) %v3661_v22, 8  ;;  %v2957_v27 = vsel %vm1677_vm0, %v1945_v17, %v2733_v24 }
 0x10e   : > { %v3374_v60 = vcombine.low %v2956_v25, %v2957_v27  ;;  %v3381_v29 = vrot.slane %v3373_v61, %v4076_v58 }
 0x110   : > { %v3388_v26 = vrot.slane %v3374_v60, %v4076_v58 }
 0x112   : > { %v3389_v57 = vcombine.low %v3381_v29, %v3388_v26 }
 0x114   : > { %3709 = vxpose.xlu0.b32.end [16/16] (narrow) %v3389_v57, 8 }
 0x151   : > { %v3742_v31 = vpop.trf.xlu1 }
 0x152   : > { %v3761_v33 = vrot.slane %v3742_v31, 4 }
 0x154   : > { %3765 = vst [vmem:[%s4444_s21 + $0x8] sm:$0xf0] %v3761_v33 }
 0x158   : > { %v3710_v46 = vpop.trf.xlu0 }
 0x159   : > { %v3760_v28 = vrot.slane %v3710_v46, 4 }
 0x15b   : > { %3764 = vst [vmem:[%s4444_s21] sm:$0xf0] %v3760_v28 }
 0x15c PF: > { %p11_p9 = scmp.ge.s32.totalorder %s3956_s19, 4   ;;  %s4837_s15 = smov %s3906_s16 }
 0x15d   : > { %s4838_s16 = smov %s3965_s22  ;;  %s4839_s17 = smov %s3956_s19 }
 0x15e   :  { %13 = sbr.rel (!%p11_p9) target bundleno = 2 (0x2), region = 112 }

// kernel: innermost_block_forward.2
= control target key start
LH: loop header
LB: loop body
LE: loop exit
PB: predicated region body
PF: predicated region fallthrough
CT: control target
= control target key end

     0   :  { %s7405_s21 = smov 0   ;;  %s7407_s22 = smov 0   ;;  %s8720_s0 = inlined_call_operand.vmem [shape: f32[4,2,9,9,4], index: 0, kind: input, shape index: {}]   ;;  %s8721_s1 = inlined_call_operand.vmem [shape: f32[4,4,4,8], index: 1, kind: input, shape index: {}]   ;;  %s8722_s2 = inlined_call_operand.vmem [shape: f32[1,8], index: 2, kind: input, shape index: {}]   ;;  %s8723_s3 = inlined_call_operand.vmem [shape: f32[4,4,8,4], index: 3, kind: input, shape index: {}]   ;;  %s8724_s4 = inlined_call_operand.vmem [shape: f32[1,4], index: 4, kind: input, shape index: {}]   ;;  %s8725_s5 = inlined_call_operand.vmem [shape: f32[4,2,8,8,4], index: 5, kind: output, shape index: {0}]   ;;  %s8726_s6 = inlined_call_operand.vmem [shape: f32[2,2,4], index: 6, kind: output, shape index: {1}]  }
   0x1   :  { %s7409_s23 = smov 0  }
   0x2 LB: > { %s7421_s24 = sadd.s32 4294967295, %s7367_s23   ;;  %s7424_s25 = sadd.s32 1, %s7367_s23   ;;  %s7367_s23 = sphi %s7409_s23, %s8730_s23   ;;  %s7363_s22 = sphi %s7407_s22, %s8729_s22   ;;  %s7359_s21 = sphi %s7405_s21, %s8728_s21  }
   0x3   : > { %s21_s26 = ssub.s32 %s7367_s23, %s7424_s25  ;;  %s24_s27 = sadd.s32 1, %s7363_s22 }
   0x4   : > { %p22_p0 = scmp.eq.s32.totalorder %s21_s26, 0  ;;  %p31_p1 = scmp.ne.s32.totalorder %s7363_s22, %s7359_s21 }
   0x5   : > { %p32_p2 = scmp.eq.s32.totalorder %s7367_s23, 0  ;;  %p145_p3 = scmp.eq.s32.totalorder %s7421_s24, 1 }
   0x6   : > { %s7434_s28 = scalar_select %p22_p0, %s7363_s22, %s24_s27  }
   0x7   : > { %p33_p4 = por %p32_p2, %p31_p1  ;;  %p7436_p5 = por %p145_p3, %p31_p1 }
   0x8   : > { %p5969_p6 = scmp.ge.s32.totalorder %s7367_s23, 2 }
   0xa   : > { %205 = sbr.rel (%p5969_p6) target bundleno = 58 (0x3a), region = 32 }
  0x11   : > { %208 = sbr.rel (!%p33_p4) target bundleno = 58 (0x3a), region = 36  ;;  %s210_s30 = sand.u32 (%p33_p4), 1, %s7363_s22  }
  0x12   : > { %s7318_s7 = smul.u32 (%p33_p4), 144, %s7367_s23 }
  0x13   : > { %s7317_s8 = smul.u32 (%p33_p4), 576, %s210_s30 }
  0x14   : > { %s7446_s11 = scalar_lea.vmem (%p33_p4), %s8720_s0, %s7318_s7 }
  0x15   : > { %v385_v0 = vld [vmem:[%s7446_s11] sm:$0xff] (%p33_p4)  ;;  %v387_v1 = vld [vmem:[%s7446_s11 + $0x8] sm:$0xff] (%p33_p4)  ;;  %v389_v2 = vld [vmem:[%s7446_s11 + $0x10] sm:$0xff] (%p33_p4)  ;;  %s7451_s12 = scalar_lea.vmem (%p33_p4), [#allocation3], %s7317_s8 }
  0x16   : > { %386 = vst [vmem:[%s7451_s12] sm:$0xff] (%p33_p4), %v385_v0  ;;  %388 = vst [vmem:[%s7451_s12 + $0x8] sm:$0xff] (%p33_p4), %v387_v1  ;;  %v391_v3 = vld [vmem:[%s7446_s11 + $0x18] sm:$0xff] (%p33_p4)  ;;  %v393_v4 = vld [vmem:[%s7446_s11 + $0x20] sm:$0xff] (%p33_p4) }
  0x17   : > { %390 = vst [vmem:[%s7451_s12 + $0x10] sm:$0xff] (%p33_p4), %v389_v2  ;;  %v395_v5 = vld [vmem:[%s7446_s11 + $0x28] sm:$0xff] (%p33_p4)  ;;  %392 = vst [vmem:[%s7451_s12 + $0x18] sm:$0xff] (%p33_p4), %v391_v3  ;;  %v397_v6 = vld [vmem:[%s7446_s11 + $0x30] sm:$0xff] (%p33_p4) }
  0x18   : > { %394 = vst [vmem:[%s7451_s12 + $0x20] sm:$0xff] %v393_v4  ;;  %396 = vst [vmem:[%s7451_s12 + $0x28] sm:$0xff] %v395_v5  ;;  %v399_v7 = vld [vmem:[%s7446_s11 + $0x38] sm:$0xff]  ;;  %v401_v8 = vld [vmem:[%s7446_s11 + $0x40] sm:$0xff] }
  0x19   : > { %398 = vst [vmem:[%s7451_s12 + $0x30] sm:$0xff] %v397_v6  ;;  %400 = vst [vmem:[%s7451_s12 + $0x38] sm:$0xff] %v399_v7  ;;  %v403_v9 = vld [vmem:[%s7446_s11 + $0x48] sm:$0xff]  ;;  %v405_v10 = vld [vmem:[%s7446_s11 + $0x50] sm:$0xff] }
  0x1a   : > { %402 = vst [vmem:[%s7451_s12 + $0x40] sm:$0xff] %v401_v8  ;;  %v407_v11 = vld [vmem:[%s7446_s11 + $0x58] sm:$0xff]  ;;  %404 = vst [vmem:[%s7451_s12 + $0x48] sm:$0xff] %v403_v9  ;;  %v409_v12 = vld [vmem:[%s7446_s11 + $0x60] sm:$0xff] }
  0x1b   : > { %406 = vst [vmem:[%s7451_s12 + $0x50] sm:$0xff] %v405_v10  ;;  %408 = vst [vmem:[%s7451_s12 + $0x58] sm:$0xff] %v407_v11  ;;  %v411_v13 = vld [vmem:[%s7446_s11 + $0x68] sm:$0xff]  ;;  %v413_v14 = vld [vmem:[%s7446_s11 + $0x70] sm:$0xff] }
  0x1c   : > { %410 = vst [vmem:[%s7451_s12 + $0x60] sm:$0xff] %v409_v12  ;;  %412 = vst [vmem:[%s7451_s12 + $0x68] sm:$0xff] %v411_v13  ;;  %v415_v15 = vld [vmem:[%s7446_s11 + $0x78] sm:$0xff]  ;;  %v417_v16 = vld [vmem:[%s7446_s11 + $0x80] sm:$0xff] }
  0x1d   : > { %414 = vst [vmem:[%s7451_s12 + $0x70] sm:$0xff] %v413_v14  ;;  %v419_v17 = vld [vmem:[%s7446_s11 + $0x88] sm:$0xff]  ;;  %416 = vst [vmem:[%s7451_s12 + $0x78] sm:$0xff] %v415_v15  ;;  %v421_v18 = vld [vmem:[%s7446_s11 + $0x120] sm:$0xff] }
  0x1e   : > { %418 = vst [vmem:[%s7451_s12 + $0x80] sm:$0xff] %v417_v16  ;;  %420 = vst [vmem:[%s7451_s12 + $0x88] sm:$0xff] %v419_v17  ;;  %v423_v19 = vld [vmem:[%s7446_s11 + $0x128] sm:$0xff]  ;;  %v425_v20 = vld [vmem:[%s7446_s11 + $0x130] sm:$0xff] }
  0x1f   : > { %422 = vst [vmem:[%s7451_s12 + $0x90] sm:$0xff] %v421_v18  ;;  %424 = vst [vmem:[%s7451_s12 + $0x98] sm:$0xff] %v423_v19  ;;  %v427_v21 = vld [vmem:[%s7446_s11 + $0x138] sm:$0xff]  ;;  %v429_v22 = vld [vmem:[%s7446_s11 + $0x140] sm:$0xff] }
  0x20   : > { %426 = vst [vmem:[%s7451_s12 + $0xa0] sm:$0xff] %v425_v20  ;;  %v431_v23 = vld [vmem:[%s7446_s11 + $0x148] sm:$0xff]  ;;  %428 = vst [vmem:[%s7451_s12 + $0xa8] sm:$0xff] %v427_v21  ;;  %v433_v24 = vld [vmem:[%s7446_s11 + $0x150] sm:$0xff] }
  0x21   : > { %430 = vst [vmem:[%s7451_s12 + $0xb0] sm:$0xff] %v429_v22  ;;  %432 = vst [vmem:[%s7451_s12 + $0xb8] sm:$0xff] %v431_v23  ;;  %v435_v25 = vld [vmem:[%s7446_s11 + $0x158] sm:$0xff]  ;;  %v437_v26 = vld [vmem:[%s7446_s11 + $0x160] sm:$0xff] }
  0x22   : > { %434 = vst [vmem:[%s7451_s12 + $0xc0] sm:$0xff] %v433_v24  ;;  %436 = vst [vmem:[%s7451_s12 + $0xc8] sm:$0xff] %v435_v25  ;;  %v439_v27 = vld [vmem:[%s7446_s11 + $0x168] sm:$0xff]  ;;  %v441_v28 = vld [vmem:[%s7446_s11 + $0x170] sm:$0xff] }
  0x23   : > { %438 = vst [vmem:[%s7451_s12 + $0xd0] sm:$0xff] %v437_v26  ;;  %v443_v29 = vld [vmem:[%s7446_s11 + $0x178] sm:$0xff]  ;;  %440 = vst [vmem:[%s7451_s12 + $0xd8] sm:$0xff] %v439_v27  ;;  %v445_v30 = vld [vmem:[%s7446_s11 + $0x180] sm:$0xff] }
  0x24   : > { %442 = vst [vmem:[%s7451_s12 + $0xe0] sm:$0xff] %v441_v28  ;;  %444 = vst [vmem:[%s7451_s12 + $0xe8] sm:$0xff] %v443_v29  ;;  %v447_v31 = vld [vmem:[%s7446_s11 + $0x188] sm:$0xff]  ;;  %v449_v32 = vld [vmem:[%s7446_s11 + $0x190] sm:$0xff] }
  0x25   : > { %446 = vst [vmem:[%s7451_s12 + $0xf0] sm:$0xff] %v445_v30  ;;  %448 = vst [vmem:[%s7451_s12 + $0xf8] sm:$0xff] %v447_v31  ;;  %v451_v33 = vld [vmem:[%s7446_s11 + $0x198] sm:$0xff]  ;;  %v453_v34 = vld [vmem:[%s7446_s11 + $0x1a0] sm:$0xff] }
  0x26   : > { %450 = vst [vmem:[%s7451_s12 + $0x100] sm:$0xff] %v449_v32  ;;  %v455_v35 = vld [vmem:[%s7446_s11 + $0x1a8] sm:$0xff]  ;;  %452 = vst [vmem:[%s7451_s12 + $0x108] sm:$0xff] %v451_v33  ;;  %v457_v36 = vld [vmem:[%s7446_s11 + $0x240] sm:$0xff] }
  0x27   : > { %454 = vst [vmem:[%s7451_s12 + $0x110] sm:$0xff] %v453_v34  ;;  %456 = vst [vmem:[%s7451_s12 + $0x118] sm:$0xff] %v455_v35  ;;  %v459_v37 = vld [vmem:[%s7446_s11 + $0x248] sm:$0xff]  ;;  %v461_v38 = vld [vmem:[%s7446_s11 + $0x250] sm:$0xff] }
  0x28   : > { %458 = vst [vmem:[%s7451_s12 + $0x120] sm:$0xff] %v457_v36  ;;  %460 = vst [vmem:[%s7451_s12 + $0x128] sm:$0xff] %v459_v37  ;;  %v463_v39 = vld [vmem:[%s7446_s11 + $0x258] sm:$0xff]  ;;  %v465_v40 = vld [vmem:[%s7446_s11 + $0x260] sm:$0xff] }
  0x29   : > { %462 = vst [vmem:[%s7451_s12 + $0x130] sm:$0xff] %v461_v38  ;;  %v467_v41 = vld [vmem:[%s7446_s11 + $0x268] sm:$0xff]  ;;  %464 = vst [vmem:[%s7451_s12 + $0x138] sm:$0xff] %v463_v39  ;;  %v469_v42 = vld [vmem:[%s7446_s11 + $0x270] sm:$0xff] }
  0x2a   : > { %466 = vst [vmem:[%s7451_s12 + $0x140] sm:$0xff] %v465_v40  ;;  %468 = vst [vmem:[%s7451_s12 + $0x148] sm:$0xff] %v467_v41  ;;  %v471_v43 = vld [vmem:[%s7446_s11 + $0x278] sm:$0xff]  ;;  %v473_v44 = vld [vmem:[%s7446_s11 + $0x280] sm:$0xff] }
  0x2b   : > { %470 = vst [vmem:[%s7451_s12 + $0x150] sm:$0xff] %v469_v42  ;;  %472 = vst [vmem:[%s7451_s12 + $0x158] sm:$0xff] %v471_v43  ;;  %v475_v45 = vld [vmem:[%s7446_s11 + $0x288] sm:$0xff]  ;;  %v477_v46 = vld [vmem:[%s7446_s11 + $0x290] sm:$0xff] }
  0x2c   : > { %474 = vst [vmem:[%s7451_s12 + $0x160] sm:$0xff] %v473_v44  ;;  %v479_v47 = vld [vmem:[%s7446_s11 + $0x298] sm:$0xff]  ;;  %476 = vst [vmem:[%s7451_s12 + $0x168] sm:$0xff] %v475_v45  ;;  %v481_v48 = vld [vmem:[%s7446_s11 + $0x2a0] sm:$0xff] }
  0x2d   : > { %478 = vst [vmem:[%s7451_s12 + $0x170] sm:$0xff] %v477_v46  ;;  %480 = vst [vmem:[%s7451_s12 + $0x178] sm:$0xff] %v479_v47  ;;  %v483_v49 = vld [vmem:[%s7446_s11 + $0x2a8] sm:$0xff]  ;;  %v485_v50 = vld [vmem:[%s7446_s11 + $0x2b0] sm:$0xff] }
  0x2e   : > { %482 = vst [vmem:[%s7451_s12 + $0x180] sm:$0xff] %v481_v48  ;;  %484 = vst [vmem:[%s7451_s12 + $0x188] sm:$0xff] %v483_v49  ;;  %v487_v51 = vld [vmem:[%s7446_s11 + $0x2b8] sm:$0xff]  ;;  %v489_v52 = vld [vmem:[%s7446_s11 + $0x2c0] sm:$0xff] }
  0x2f   : > { %486 = vst [vmem:[%s7451_s12 + $0x190] sm:$0xff] %v485_v50  ;;  %v491_v53 = vld [vmem:[%s7446_s11 + $0x2c8] sm:$0xff]  ;;  %488 = vst [vmem:[%s7451_s12 + $0x198] sm:$0xff] %v487_v51  ;;  %v493_v54 = vld [vmem:[%s7446_s11 + $0x360] sm:$0xff] }
  0x30   : > { %490 = vst [vmem:[%s7451_s12 + $0x1a0] sm:$0xff] %v489_v52  ;;  %492 = vst [vmem:[%s7451_s12 + $0x1a8] sm:$0xff] %v491_v53  ;;  %v495_v55 = vld [vmem:[%s7446_s11 + $0x368] sm:$0xff]  ;;  %v497_v56 = vld [vmem:[%s7446_s11 + $0x370] sm:$0xff] }
  0x31   : > { %494 = vst [vmem:[%s7451_s12 + $0x1b0] sm:$0xff] %v493_v54  ;;  %496 = vst [vmem:[%s7451_s12 + $0x1b8] sm:$0xff] %v495_v55  ;;  %v499_v57 = vld [vmem:[%s7446_s11 + $0x378] sm:$0xff]  ;;  %v501_v58 = vld [vmem:[%s7446_s11 + $0x380] sm:$0xff] }
  0x32   : > { %498 = vst [vmem:[%s7451_s12 + $0x1c0] sm:$0xff] %v497_v56  ;;  %v503_v59 = vld [vmem:[%s7446_s11 + $0x388] sm:$0xff]  ;;  %500 = vst [vmem:[%s7451_s12 + $0x1c8] sm:$0xff] %v499_v57  ;;  %v505_v60 = vld [vmem:[%s7446_s11 + $0x390] sm:$0xff] }
  0x33   : > { %502 = vst [vmem:[%s7451_s12 + $0x1d0] sm:$0xff] %v501_v58  ;;  %504 = vst [vmem:[%s7451_s12 + $0x1d8] sm:$0xff] %v503_v59  ;;  %v507_v61 = vld [vmem:[%s7446_s11 + $0x398] sm:$0xff]  ;;  %v509_v62 = vld [vmem:[%s7446_s11 + $0x3a0] sm:$0xff] }
  0x34   : > { %506 = vst [vmem:[%s7451_s12 + $0x1e0] sm:$0xff] %v505_v60  ;;  %508 = vst [vmem:[%s7451_s12 + $0x1e8] sm:$0xff] %v507_v61  ;;  %v511_v63 = vld [vmem:[%s7446_s11 + $0x3a8] sm:$0xff]  ;;  %v513_v0 = vld [vmem:[%s7446_s11 + $0x3b0] sm:$0xff] }
  0x35   : > { %510 = vst [vmem:[%s7451_s12 + $0x1f0] sm:$0xff] %v509_v62  ;;  %v515_v1 = vld [vmem:[%s7446_s11 + $0x3b8] sm:$0xff]  ;;  %512 = vst [vmem:[%s7451_s12 + $0x1f8] sm:$0xff] %v511_v63  ;;  %v517_v2 = vld [vmem:[%s7446_s11 + $0x3c0] sm:$0xff] }
  0x36   : > { %514 = vst [vmem:[%s7451_s12 + $0x200] sm:$0xff] %v513_v0  ;;  %516 = vst [vmem:[%s7451_s12 + $0x208] sm:$0xff] %v515_v1  ;;  %v519_v3 = vld [vmem:[%s7446_s11 + $0x3c8] sm:$0xff]  ;;  %v521_v4 = vld [vmem:[%s7446_s11 + $0x3d0] sm:$0xff] }
  0x37   : > { %518 = vst [vmem:[%s7451_s12 + $0x210] sm:$0xff] %v517_v2  ;;  %520 = vst [vmem:[%s7451_s12 + $0x218] sm:$0xff] %v519_v3  ;;  %v523_v5 = vld [vmem:[%s7446_s11 + $0x3d8] sm:$0xff]  ;;  %v525_v6 = vld [vmem:[%s7446_s11 + $0x3e0] sm:$0xff] }
  0x38   : > { %522 = vst [vmem:[%s7451_s12 + $0x220] sm:$0xff] %v521_v4  ;;  %v527_v7 = vld [vmem:[%s7446_s11 + $0x3e8] sm:$0xff]  ;;  %524 = vst [vmem:[%s7451_s12 + $0x228] sm:$0xff] %v523_v5 }
  0x39   : > { %526 = vst [vmem:[%s7451_s12 + $0x230] sm:$0xff] %v525_v6  ;;  %528 = vst [vmem:[%s7451_s12 + $0x238] sm:$0xff] %v527_v7 }
  0x3a PF: > { %p5971_p7 = scmp.ge.s32.totalorder %s7367_s23, 1  ;;  %p533_p8 = scmp.lt.s32.totalorder %s7367_s23, 3 }
  0x3c   : > { %p534_p9 = pnand %p5971_p7, %p533_p8 }
  0x3d   : > { %v5974_v8 = vld [vmem:[%s8721_s1 + $0x8] sm:$0xf] (!%p534_p9)  ;;  %vm709_vm0 = vcmask (!%p534_p9), 1043456   ;;  %s540_s15 = sand.u32 (!%p534_p9), 1, %s7359_s21   ;;  %v648_v9 = vld [vmem:[%s8721_s1] sm:$0xf] (!%p534_p9) }
  0x3e   : > { %537 = sbr.rel (%p534_p9) target bundleno = 1030 (0x406), region = 74  ;;  %6653 = vmatprep.subr.msk.mxu0 (!%p534_p9), %vm709_vm0, %v5974_v8  ;;  %vm665_vm1 = vcmask (!%p534_p9), 1046528   ;;  %vm692_vm2 = vcmask (!%p534_p9), 31744   ;;  %v7630_v35 = vld [vmem:[%s8721_s1 + $0x20] sm:$0xf] (!%p534_p9)  ;;  %p572_p10 = scmp.lt.s32.totalorder (!%p534_p9), %s7421_s24, 1 }
  0x3f   : > { %s7319_s16 = smul.u32 (!%p534_p9), 576, %s540_s15  ;;  %6654 = vmatpush3.msk.msra.mxu0 (!%p534_p9), %vm709_vm0, %v5974_v8 }
  0x40   : > { %6667 = vmatprep.subr.msk.mxu0 (!%p534_p9), %vm709_vm0, %v648_v9 }
  0x41   : > { %s7608_s19 = scalar_lea.vmem (!%p534_p9), [#allocation3], %s7319_s16 }
  0x42   : > { %v576_v10 = vld [vmem:[%s7608_s19] sm:$0xff] (!%p534_p9)  ;;  %v577_v11 = vld [vmem:[%s7608_s19 + $0x8] sm:$0x1] (!%p534_p9)  ;;  %v578_v12 = vld [vmem:[%s7608_s19 + $0x10] sm:$0xff] (!%p534_p9) }
  0x43   : > { %vm594_vm3 = vcmp.ge.f32.partialorder (!%p534_p9), %v576_v10, 0.0  ;;  %vm595_vm4 = vcmp.ge.f32.partialorder (!%p534_p9), %v577_v11, 0.0  ;;  %v612_v13 = vmul.f32 (!%p534_p9), 0.2, %v576_v10  ;;  %v613_v14 = vmul.f32 (!%p534_p9), 0.2, %v577_v11 }
  0x44   : > { %v579_v15 = vld [vmem:[%s7608_s19 + $0x18] sm:$0x1] (!%p534_p9)  ;;  %vm596_vm5 = vcmp.ge.f32.partialorder (!%p534_p9), %v578_v12, 0.0  ;;  %v614_v16 = vmul.f32 (!%p534_p9), 0.2, %v578_v12  ;;  %v580_v17 = vld [vmem:[%s7608_s19 + $0x20] sm:$0xff] (!%p534_p9) }
  0x45   : > { %v7615_v18 = vsel %vm594_vm3, %v576_v10, %v612_v13  ;;  %v631_v19 = vsel %vm595_vm4, %v577_v11, %v613_v14  ;;  %vm597_vm6 = vcmp.ge.f32.partialorder %v579_v15, 0.0  ;;  %v615_v20 = vmul.f32 0.2, %v579_v15  ;;  %v581_v21 = vld [vmem:[%s7608_s19 + $0x28] sm:$0x1]  ;;  %v582_v22 = vld [vmem:[%s7608_s19 + $0x30] sm:$0xff] }
  0x46   : > { %v666_v23 = vrot.slane %v7615_v18, 1  ;;  %v667_v24 = vrot.slane %v631_v19, 1  ;;  %v7620_v25 = vsel %vm596_vm5, %v578_v12, %v614_v16  ;;  %vm598_vm7 = vcmp.ge.f32.partialorder %v580_v17, 0.0  ;;  %v583_v26 = vld [vmem:[%s7608_s19 + $0x38] sm:$0x1]  ;;  %v584_v30 = vld [vmem:[%s7608_s19 + $0x40] sm:$0xff] }
  0x47   : > { %v633_v27 = vsel %vm597_vm6, %v579_v15, %v615_v20  ;;  %v669_v28 = vrot.slane %v7620_v25, 1  ;;  %vm599_vm8 = vcmp.ge.f32.partialorder %v581_v21, 0.0  ;;  %v616_v29 = vmul.f32 0.2, %v580_v17  ;;  %v585_v34 = vld [vmem:[%s7608_s19 + $0x48] sm:$0x1] }
  0x48   : > { %v668_v31 = vsel %vm665_vm1, %v666_v23, %v667_v24  ;;  %v670_v32 = vrot.slane %v633_v27, 1  ;;  %v617_v33 = vmul.f32 0.2, %v581_v21  ;;  %vm600_vm9 = vcmp.ge.f32.partialorder %v582_v22, 0.0  ;;  %v586_v42 = vld [vmem:[%s7608_s19 + $0x50] sm:$0xff]  ;;  %v588_v47 = vld [vmem:[%s7608_s19 + $0x60] sm:$0xff] }
  0x49   : > { %6655 = vmatprep.mubr.msk.f32.mxu0 %vm692_vm2, %v668_v31  ;;  %v7633_v36 = vsel %vm598_vm7, %v580_v17, %v616_v29  ;;  %vm601_vm10 = vcmp.ge.f32.partialorder %v583_v26, 0.0  ;;  %v618_v37 = vmul.f32 0.2, %v582_v22  ;;  %v619_v38 = vmul.f32 0.2, %v583_v26  ;;  %v590_v59 = vld [vmem:[%s7608_s19 + $0x70] sm:$0xff] }
  0x4a   : > { %v7636_v39 = vsel %vm665_vm1, %v669_v28, %v670_v32  ;;  %v635_v40 = vsel %vm599_vm8, %v581_v21, %v617_v33  ;;  %v672_v41 = vrot.slane %v7633_v36, 1  ;;  %vm602_vm11 = vcmp.ge.f32.partialorder %v584_v30, 0.0  ;;  %v587_v43 = vld [vmem:[%s7608_s19 + $0x58] sm:$0x1]  ;;  %v589_v54 = vld [vmem:[%s7608_s19 + $0x68] sm:$0x1] }
  0x4b   : > { %6656 = vmatmul.mubr.msk.f32.vlgmr.msra.gmra.mrb[0].mxu0 %vm692_vm2, %v7636_v39  ;;  %v673_v44 = vrot.slane %v635_v40, 1  ;;  %v7644_v45 = vsel %vm600_vm9, %v582_v22, %v618_v37  ;;  %v637_v46 = vsel %vm601_vm10, %v583_v26, %v619_v38  ;;  %vm603_vm12 = vcmp.ge.f32.partialorder %v585_v34, 0.0  ;;  %v591_v63 = vld [vmem:[%s7608_s19 + $0x78] sm:$0x1]  ;;  %v6003_v20 = vld [vmem:[%s8721_s1 + $0x28] sm:$0xf] }
  0x4c   : > { %6668 = vmatpush3.msk.msra.mxu0 %vm709_vm0, %v648_v9  ;;  %v675_v48 = vrot.slane %v7644_v45, 1  ;;  %v676_v49 = vrot.slane %v637_v46, 1  ;;  %v620_v50 = vmul.f32 0.2, %v584_v30  ;;  %v621_v51 = vmul.f32 0.2, %v585_v34 }
  0x4d   : > { %v7650_v52 = vsel %vm665_vm1, %v672_v41, %v673_v44  ;;  %vm604_vm13 = vcmp.ge.f32.partialorder %v586_v42, 0.0  ;;  %vm605_vm14 = vcmp.ge.f32.partialorder %v587_v43, 0.0  ;;  %v622_v53 = vmul.f32 0.2, %v586_v42  ;;  %6681 = vmatprep.subr.msk.mxu0 %vm709_vm0, %v7630_v35  ;;  %v592_v21 = vld [vmem:[%s7608_s19 + $0x80] sm:$0xff]  ;;  %v6013_v28 = vld [vmem:[%s7608_s19 + $0x90] sm:$0xff] }
  0x4e   : > { %6658 = vmatprep.mubr.msk.f32.mxu0 %vm692_vm2, %v7650_v52  ;;  %v7658_v55 = vsel %vm665_vm1, %v675_v48, %v676_v49  ;;  %v638_v56 = vsel %vm602_vm11, %v584_v30, %v620_v50  ;;  %v639_v57 = vsel %vm603_vm12, %v585_v34, %v621_v51  ;;  %v623_v58 = vmul.f32 0.2, %v587_v43  ;;  %v593_v24 = vld [vmem:[%s7608_s19 + $0x88] sm:$0x1]  ;;  %v6041_v26 = vld [vmem:[%s8721_s1 + $0xc] sm:$0xf] }
  0x4f   : > { %6659 = vmatmul.mubr.msk.f32.gmra.mrb[2].mxu0 %vm692_vm2, %v7658_v55  ;;  %v678_v60 = vrot.slane %v638_v56, 1  ;;  %v679_v61 = vrot.slane %v639_v57, 1  ;;  %v640_v62 = vsel %vm604_vm13, %v586_v42, %v622_v53  ;;  %vm606_vm15 = vcmp.ge.f32.partialorder %v588_v47, 0.0  ;;  %v6015_v32 = vld [vmem:[%s7608_s19 + $0xa0] sm:$0xff]  ;;  %v6017_v33 = vld [vmem:[%s7608_s19 + $0xb0] sm:$0xff]  ;;  %s573_s21 = scalar_select %p572_p10, %s7421_s24, 1 }
  0x50   : > { %v641_v0 = vsel %vm605_vm14, %v587_v43, %v623_v58  ;;  %v681_v1 = vrot.slane %v640_v62, 1  ;;  %vm607_vm3 = vcmp.ge.f32.partialorder %v589_v54, 0.0  ;;  %v624_v2 = vmul.f32 0.2, %v588_v47  ;;  %v6019_v38 = vld [vmem:[%s7608_s19 + $0xc0] sm:$0xff]  ;;  %s6364_s26 = sshll.u32 (%p7436_p5), %s7421_s24, 6 }
  0x51   : > { %v680_v3 = vsel %vm665_vm1, %v678_v60, %v679_v61  ;;  %v682_v4 = vrot.slane %v641_v0, 1  ;;  %v625_v5 = vmul.f32 0.2, %v589_v54  ;;  %vm608_vm4 = vcmp.ge.f32.partialorder %v590_v59, 0.0  ;;  %v6014_v40 = vld [vmem:[%s7608_s19 + $0x98] sm:$0x1]  ;;  %s8647_s7 = scalar_lea.vmem (%p7436_p5), %s8725_s5, %s6364_s26 }
  0x52   : > { %6661 = vmatprep.mubr.msk.f32.mxu0 %vm692_vm2, %v680_v3  ;;  %v642_v6 = vsel %vm606_vm15, %v588_v47, %v624_v2  ;;  %vm609_vm5 = vcmp.ge.f32.partialorder %v591_v63, 0.0  ;;  %v626_v7 = vmul.f32 0.2, %v590_v59  ;;  %v627_v8 = vmul.f32 0.2, %v591_v63  ;;  %v6025_v47 = vld [vmem:[%s7608_s19 + $0xf0] sm:$0xff] }
  0x53   : > { %v683_v9 = vsel %vm665_vm1, %v681_v1, %v682_v4  ;;  %v643_v10 = vsel %vm607_vm3, %v589_v54, %v625_v5  ;;  %v684_v11 = vrot.slane %v642_v6, 1  ;;  %v628_v22 = vmul.f32 0.2, %v592_v21  ;;  %v7746_v46 = vld [vmem:[%s8721_s1 + $0x24] sm:$0xf] }
  0x54   : > { %6662 = vmatmul.mubr.msk.f32.gmra.mrb[4].mxu0 %vm692_vm2, %v683_v9  ;;  %v685_v12 = vrot.slane %v643_v10, 1  ;;  %v644_v13 = vsel %vm608_vm4, %v590_v59, %v626_v7  ;;  %v645_v14 = vsel %vm609_vm5, %v591_v63, %v627_v8  ;;  %vm610_vm6 = vcmp.ge.f32.partialorder %v592_v21, 0.0  ;;  %v6016_v49 = vld [vmem:[%s7608_s19 + $0xa8] sm:$0x1]  ;;  %v6018_v50 = vld [vmem:[%s7608_s19 + $0xb8] sm:$0x1] }
  0x55   : > { %v687_v15 = vrot.slane %v644_v13, 1  ;;  %v688_v16 = vrot.slane %v645_v14, 1  ;;  %v646_v23 = vsel %vm610_vm6, %v592_v21, %v628_v22  ;;  %vm611_vm7 = vcmp.ge.f32.partialorder %v593_v24, 0.0  ;;  %v6020_v59 = vld [vmem:[%s7608_s19 + $0xc8] sm:$0x1] }
  0x56   : > { %v686_v17 = vsel %vm665_vm1, %v684_v11, %v685_v12  ;;  %v1064_v29 = vrot.slane %v646_v23, 1  ;;  %v1224_v31 = vmul.f32 0.2, %v6013_v28  ;;  %vm1206_vm8 = vcmp.ge.f32.partialorder %v6013_v28, 0.0  ;;  %v6022_v60 = vld [vmem:[%s7608_s19 + $0xd8] sm:$0x1] }
  0x57   : > { %6664 = vmatprep.mubr.msk.f32.mxu0 %vm692_vm2, %v686_v17  ;;  %v689_v19 = vsel %vm665_vm1, %v687_v15, %v688_v16  ;;  %vm1208_vm9 = vcmp.ge.f32.partialorder %v6015_v32, 0.0  ;;  %v1228_v37 = vmul.f32 0.2, %v6017_v33  ;;  %vm1210_vm10 = vcmp.ge.f32.partialorder %v6017_v33, 0.0  ;;  %v6026_v7 = vld [vmem:[%s7608_s19 + $0xf8] sm:$0x1] }
  0x58   : > { %6665 = vmatmul.mubr.msk.f32.gmra.mrb[6].mxu0 %vm692_vm2, %v689_v19  ;;  %v1230_v42 = vmul.f32 0.2, %v6019_v38  ;;  %vm1212_vm11 = vcmp.ge.f32.partialorder %v6019_v38, 0.0  ;;  %v1225_v48 = vmul.f32 0.2, %v6014_v40  ;;  %vm1207_vm13 = vcmp.ge.f32.partialorder %v6014_v40, 0.0 }
  0x59   : > { %6669 = vmatprep.mubr.msk.f32.mxu0 %vm692_vm2, %v7615_v18  ;;  %v6031_v18 = vld [vmem:[%s8721_s1 + $0x4] sm:$0xf]  ;;  %v7740_v43 = vsel %vm1210_vm10, %v6017_v33, %v1228_v37  ;;  %v1236_v54 = vmul.f32 0.2, %v6025_v47  ;;  %vm1218_vm15 = vcmp.ge.f32.partialorder %v6025_v47, 0.0  ;;  %vm1209_vm3 = vcmp.ge.f32.partialorder %v6016_v49, 0.0 }
  0x5a   : > { %v7756_v51 = vsel %vm1212_vm11, %v6019_v38, %v1230_v42  ;;  %v1243_v57 = vsel %vm1207_vm13, %v6014_v40, %v1225_v48  ;;  %v1229_v58 = vmul.f32 0.2, %v6018_v50  ;;  %vm1211_vm4 = vcmp.ge.f32.partialorder %v6018_v50, 0.0  ;;  %v6089_v42 = vld [vmem:[%s8721_s1 + $0x10] sm:$0xf] }
  0x5b   : > { %v7772_v0 = vsel %vm1218_vm15, %v6025_v47, %v1236_v54  ;;  %v1411_v1 = vrot.slane %v1243_v57, 1  ;;  %vm1213_vm6 = vcmp.ge.f32.partialorder %v6020_v59, 0.0  ;;  %v1233_v5 = vmul.f32 0.2, %v6022_v60  ;;  %v6099_v47 = vld [vmem:[%s8721_s1 + $0x18] sm:$0xf] }
  0x5c   : > { %6670 = vmatmul.mubr.msk.f32.vlgmr.msra.gmra.mrb[0].mxu0 %vm692_vm2, %v7620_v25  ;;  %v1247_v4 = vsel %vm1211_vm4, %v6018_v50, %v1229_v58  ;;  %v6075_v54 = vld [vmem:[%s7608_s19 + $0x140] sm:$0xff] }
  0x5d   : > { %6682 = vmatpush3.msk.msra.mxu0 %vm709_vm0, %v7630_v35  ;;  %6672 = vmatprep.mubr.msk.f32.mxu0 %vm692_vm2, %v7633_v36  ;;  %v1226_v35 = vmul.f32 0.2, %v6015_v32  ;;  %v1854_v58 = vmul.f32 0.2, %v6075_v54  ;;  %vm1836_vm15 = vcmp.ge.f32.partialorder %v6075_v54, 0.0 }
  0x5e   : > { %6695 = vmatprep.subr.msk.mxu0 %vm709_vm0, %v6003_v20 }
  0x5f   : > { %v7738_v41 = vsel %vm1208_vm9, %v6015_v32, %v1226_v35  ;;  %vm1219_vm9 = vcmp.ge.f32.partialorder %v6026_v7, 0.0  ;;  %v1428_v32 = vrot.slane %v7772_v0, 1 }
  0x60   : > { %6673 = vmatmul.mubr.msk.f32.gmra.mrb[2].mxu0 %vm692_vm2, %v7644_v45  ;;  %v1413_v8 = vrot.slane %v7738_v41, 1 }
  0x61   : > { %6675 = vmatprep.mubr.msk.f32.mxu0 %vm692_vm2, %v638_v56 }
  0x64   : > { %6676 = vmatmul.mubr.msk.f32.gmra.mrb[4].mxu0 %vm692_vm2, %v640_v62 }
  0x65   : > { %6678 = vmatprep.mubr.msk.f32.mxu0 %vm692_vm2, %v642_v6 }
  0x68   : > { %6679 = vmatmul.mubr.msk.f32.gmra.mrb[6].mxu0 %vm692_vm2, %v644_v13 }
  0x69   : > { %6683 = vmatprep.mubr.msk.f32.mxu0 %vm692_vm2, %v7620_v25  ;;  %v629_v25 = vmul.f32 0.2, %v593_v24 }
  0x6b   : > { %v647_v27 = vsel %vm611_vm7, %v593_v24, %v629_v25  ;;  %vm1215_vm7 = vcmp.ge.f32.partialorder %v6022_v60, 0.0 }
  0x6c   : > { %6684 = vmatmul.mubr.msk.f32.vlgmr.msra.gmra.mrb[0].mxu0 %vm692_vm2, %v7633_v36  ;;  %v1065_v30 = vrot.slane %v647_v27, 1  ;;  %v7730_v36 = vsel %vm1206_vm8, %v6013_v28, %v1224_v31  ;;  %v1251_v16 = vsel %vm1215_vm7, %v6022_v60, %v1233_v5  ;;  %v6061_v28 = vld [vmem:[%s8721_s1 + $0x2c] sm:$0xf]  ;;  %v6079_v60 = vld [vmem:[%s7608_s19 + $0x160] sm:$0xff] }
  0x6d   : > { %6696 = vmatpush3.msk.msra.mxu0 %vm709_vm0, %v6003_v20  ;;  %6686 = vmatprep.mubr.msk.f32.mxu0 %vm692_vm2, %v7644_v45  ;;  %v6023_v45 = vld [vmem:[%s7608_s19 + $0xe0] sm:$0xff]  ;;  %v1410_v61 = vrot.slane %v7730_v36, 1  ;;  %v1419_v20 = vrot.slane %v7756_v51, 1  ;;  %v1423_v24 = vrot.slane %v1251_v16, 1  ;;  %vm1840_vm4 = vcmp.ge.f32.partialorder %v6079_v60, 0.0 }
  0x6e   : > { %6709 = vmatprep.subr.msk.mxu0 %vm709_vm0, %v6031_v18  ;;  %v1066_v34 = vsel %vm665_vm1, %v1064_v29, %v1065_v30  ;;  %vm1216_vm14 = vcmp.ge.f32.partialorder %v6023_v45, 0.0  ;;  %v6078_v16 = vld [vmem:[%s7608_s19 + $0x158] sm:$0x1] }
  0x6f   : > { %v1412_v12 = vsel %vm665_vm1, %v1410_v61, %v1411_v1  ;;  %v6072_v61 = vld [vmem:[%s7608_s19 + $0x128] sm:$0x1]  ;;  %v1858_v1 = vmul.f32 0.2, %v6079_v60 }
  0x70   : > { %6687 = vmatmul.mubr.msk.f32.gmra.mrb[2].mxu0 %vm692_vm2, %v638_v56  ;;  %v1227_v56 = vmul.f32 0.2, %v6016_v49  ;;  %v1851_v5 = vmul.f32 0.2, %v6072_v61 }
  0x71   : > { %6689 = vmatprep.mubr.msk.f32.mxu0 %vm692_vm2, %v640_v62 }
  0x72   : > { %v1245_v2 = vsel %vm1209_vm3, %v6016_v49, %v1227_v56  ;;  %v6071_v49 = vld [vmem:[%s7608_s19 + $0x120] sm:$0xff] }
  0x73   : > { %v1414_v11 = vrot.slane %v1245_v2, 1  ;;  %vm1832_vm13 = vcmp.ge.f32.partialorder %v6071_v49, 0.0  ;;  %v6081_v2 = vld [vmem:[%s7608_s19 + $0x170] sm:$0xff] }
  0x74   : > { %6690 = vmatmul.mubr.msk.f32.gmra.mrb[4].mxu0 %vm692_vm2, %v642_v6  ;;  %v6024_v6 = vld [vmem:[%s7608_s19 + $0xe8] sm:$0x1] }
  0x75   : > { %6692 = vmatprep.mubr.msk.f32.mxu0 %vm692_vm2, %v644_v13  ;;  %v1417_v13 = vrot.slane %v1247_v4, 1  ;;  %v1235_v15 = vmul.f32 0.2, %v6024_v6  ;;  %vm1217_vm8 = vcmp.ge.f32.partialorder %v6024_v6, 0.0  ;;  %v1415_v21 = vsel %vm665_vm1, %v1413_v8, %v1414_v11  ;;  %v6083_v4 = vld [vmem:[%s7608_s19 + $0x180] sm:$0xff] }
  0x76   : > { %v1862_v11 = vmul.f32 0.2, %v6083_v4  ;;  %vm1844_vm7 = vcmp.ge.f32.partialorder %v6083_v4, 0.0 }
  0x77   : > { %v1253_v25 = vsel %vm1217_vm8, %v6024_v6, %v1235_v15  ;;  %v6074_v6 = vld [vmem:[%s7608_s19 + $0x138] sm:$0x1] }
  0x78   : > { %6693 = vmatmul.mubr.msk.f32.gmra.mrb[6].mxu0 %vm692_vm2, %v646_v23  ;;  %v1426_v31 = vrot.slane %v1253_v25, 1  ;;  %vm1835_vm8 = vcmp.ge.f32.partialorder %v6074_v6, 0.0 }
  0x79   : > { %6697 = vmatprep.mubr.msk.f32.mxu0 %vm692_vm2, %v7636_v39  ;;  %v6021_v39 = vld [vmem:[%s7608_s19 + $0xd0] sm:$0xff] }
  0x7a   : > { %v1232_v44 = vmul.f32 0.2, %v6021_v39  ;;  %vm1214_vm12 = vcmp.ge.f32.partialorder %v6021_v39, 0.0 }
  0x7c   : > { %6698 = vmatmul.mubr.msk.f32.vlgmr.msra.gmra.mrb[0].mxu0 %vm692_vm2, %v7650_v52  ;;  %v1234_v52 = vmul.f32 0.2, %v6023_v45  ;;  %v7758_v53 = vsel %vm1214_vm12, %v6021_v39, %v1232_v44  ;;  %v6029_v44 = vld [vmem:[%s7608_s19 + $0x110] sm:$0xff] }
  0x7d   : > { %6710 = vmatpush3.msk.msra.mxu0 %vm709_vm0, %v6031_v18  ;;  %6700 = vmatprep.mubr.msk.f32.mxu0 %vm692_vm2, %v7658_v55  ;;  %v6027_v55 = vld [vmem:[%s7608_s19 + $0x100] sm:$0xff]  ;;  %v1422_v18 = vrot.slane %v7758_v53, 1  ;;  %vm1222_vm11 = vcmp.ge.f32.partialorder %v6029_v44, 0.0 }
  0x7e   : > { %6723 = vmatprep.subr.msk.mxu0 %vm709_vm0, %v6041_v26  ;;  %v7770_v62 = vsel %vm1216_vm14, %v6023_v45, %v1234_v52  ;;  %vm1220_vm5 = vcmp.ge.f32.partialorder %v6027_v55, 0.0  ;;  %v1238_v63 = vmul.f32 0.2, %v6027_v55  ;;  %v6030_v45 = vld [vmem:[%s7608_s19 + $0x118] sm:$0x1] }
  0x7f   : > { %v1425_v29 = vrot.slane %v7770_v62, 1  ;;  %v1424_v33 = vsel %vm665_vm1, %v1422_v18, %v1423_v24  ;;  %vm1223_vm12 = vcmp.ge.f32.partialorder %v6030_v45, 0.0  ;;  %v1850_v52 = vmul.f32 0.2, %v6071_v49 }
  0x80   : > { %6701 = vmatmul.mubr.msk.f32.gmra.mrb[2].mxu0 %vm692_vm2, %v680_v3  ;;  %v1231_v3 = vmul.f32 0.2, %v6020_v59  ;;  %v1256_v10 = vsel %vm1220_vm5, %v6027_v55, %v1238_v63  ;;  %vm1833_vm5 = vcmp.ge.f32.partialorder %v6072_v61, 0.0  ;;  %v1857_v24 = vmul.f32 0.2, %v6078_v16 }
  0x81   : > { %6703 = vmatprep.mubr.msk.f32.mxu0 %vm692_vm2, %v683_v9  ;;  %v1416_v9 = vrot.slane %v7740_v43, 1  ;;  %v1427_v37 = vsel %vm665_vm1, %v1425_v29, %v1426_v31  ;;  %v7848_v57 = vsel %vm1832_vm13, %v6071_v49, %v1850_v52  ;;  %v6119_v49 = vld [vmem:[%s8721_s1 + $0x38] sm:$0xf] }
  0x82   : > { %v1249_v14 = vsel %vm1213_vm6, %v6020_v59, %v1231_v3  ;;  %v6077_v59 = vld [vmem:[%s7608_s19 + $0x150] sm:$0xff]  ;;  %vm1842_vm6 = vcmp.ge.f32.partialorder %v6081_v2, 0.0 }
  0x83   : > { %v1420_v22 = vrot.slane %v1249_v14, 1  ;;  %v1418_v23 = vsel %vm665_vm1, %v1416_v9, %v1417_v13  ;;  %v1856_v63 = vmul.f32 0.2, %v6077_v59  ;;  %vm1838_vm3 = vcmp.ge.f32.partialorder %v6077_v59, 0.0  ;;  %v7864_v3 = vld [vmem:[%s8721_s1 + $0x30] sm:$0xf] }
  0x84   : > { %6704 = vmatmul.mubr.msk.f32.gmra.mrb[4].mxu0 %vm692_vm2, %v686_v17  ;;  %v1237_v17 = vmul.f32 0.2, %v6026_v7  ;;  %v1860_v9 = vmul.f32 0.2, %v6081_v2  ;;  %v1853_v13 = vmul.f32 0.2, %v6074_v6  ;;  %v1869_v14 = vsel %vm1833_vm5, %v6072_v61, %v1851_v5 }
  0x85   : > { %6706 = vmatprep.mubr.msk.f32.mxu0 %vm692_vm2, %v689_v19  ;;  %v6028_v19 = vld [vmem:[%s7608_s19 + $0x108] sm:$0x1]  ;;  %v1421_v30 = vsel %vm665_vm1, %v1419_v20, %v1420_v22  ;;  %v7874_v8 = vsel %vm1838_vm3, %v6077_v59, %v1856_v63  ;;  %v2037_v22 = vrot.slane %v1869_v14, 1  ;;  %v6147_v63 = vld [vmem:[%s8721_s1 + $0x14] sm:$0xf] }
  0x86   : > { %v1255_v27 = vsel %vm1219_vm9, %v6026_v7, %v1237_v17  ;;  %vm1221_vm10 = vcmp.ge.f32.partialorder %v6028_v19, 0.0  ;;  %v6076_v7 = vld [vmem:[%s7608_s19 + $0x148] sm:$0x1]  ;;  %v7888_v20 = vsel %vm1842_vm6, %v6081_v2, %v1860_v9 }
  0x87   : > { %v1855_v15 = vmul.f32 0.2, %v6076_v7  ;;  %vm1837_vm9 = vcmp.ge.f32.partialorder %v6076_v7, 0.0  ;;  %v6080_v17 = vld [vmem:[%s7608_s19 + $0x168] sm:$0x1] }
  0x88   : > { %6707 = vmatmul.mubr.msk.f32.gmra.mrb[6].mxu0 %vm692_vm2, %v1066_v34  ;;  %v1429_v34 = vrot.slane %v1255_v27, 1  ;;  %v6082_v27 = vld [vmem:[%s7608_s19 + $0x178] sm:$0x1]  ;;  %v6088_v2 = vld [vmem:[%s7608_s19 + $0x1a8] sm:$0x1] }
  0x89   : > { %6711 = vmatprep.mubr.msk.f32.mxu0 %vm692_vm2, %v7730_v36  ;;  %v1431_v36 = vrot.slane %v1256_v10, 1  ;;  %v1873_v25 = vsel %vm1837_vm9, %v6076_v7, %v1855_v15  ;;  %vm1843_vm13 = vcmp.ge.f32.partialorder %v6082_v27, 0.0 }
  0x8a   : > { %v1430_v39 = vsel %vm665_vm1, %v1428_v32, %v1429_v34  ;;  %v2043_v34 = vrot.slane %v1873_v25, 1 }
  0x8c   : > { %6712 = vmatmul.mubr.msk.f32.vlgmr.msra.gmra.mrb[0].mxu0 %vm692_vm2, %v7738_v41 }
  0x8d   : > { %6724 = vmatpush3.msk.msra.mxu0 %vm709_vm0, %v6041_v26  ;;  %6714 = vmatprep.mubr.msk.f32.mxu0 %vm692_vm2, %v7740_v43  ;;  %v1239_v26 = vmul.f32 0.2, %v6028_v19 }
  0x8e   : > { %6737 = vmatprep.subr.msk.mxu0 %vm709_vm0, %v7746_v46 }
  0x8f   : > { %v1257_v35 = vsel %vm1221_vm10, %v6028_v19, %v1239_v26  ;;  %v2036_v19 = vrot.slane %v7848_v57, 1  ;;  %v1859_v26 = vmul.f32 0.2, %v6080_v17 }
  0x90   : > { %6715 = vmatmul.mubr.msk.f32.gmra.mrb[2].mxu0 %vm692_vm2, %v7756_v51  ;;  %v1432_v38 = vrot.slane %v1257_v35, 1 }
  0x91   : > { %6717 = vmatprep.mubr.msk.f32.mxu0 %vm692_vm2, %v7758_v53 }
  0x92   : > { %v1433_v40 = vsel %vm665_vm1, %v1431_v36, %v1432_v38  ;;  %v1861_v36 = vmul.f32 0.2, %v6082_v27 }
  0x94   : > { %6718 = vmatmul.mubr.msk.f32.gmra.mrb[4].mxu0 %vm692_vm2, %v7770_v62 }
  0x95   : > { %6720 = vmatprep.mubr.msk.f32.mxu0 %vm692_vm2, %v7772_v0 }
  0x98   : > { %6721 = vmatmul.mubr.msk.f32.gmra.mrb[6].mxu0 %vm692_vm2, %v1256_v10 }
  0x99   : > { %6725 = vmatprep.mubr.msk.f32.mxu0 %vm692_vm2, %v1412_v12  ;;  %v6085_v12 = vld [vmem:[%s7608_s19 + $0x190] sm:$0xff] }
  0x9a   : > { %vm1846_vm10 = vcmp.ge.f32.partialorder %v6085_v12, 0.0  ;;  %v1864_v18 = vmul.f32 0.2, %v6085_v12 }
  0x9c   : > { %6726 = vmatmul.mubr.msk.f32.vlgmr.msra.gmra.mrb[0].mxu0 %vm692_vm2, %v1415_v21  ;;  %v1882_v31 = vsel %vm1846_vm10, %v6085_v12, %v1864_v18 }
  0x9d   : > { %6738 = vmatpush3.msk.msra.mxu0 %vm709_vm0, %v7746_v46  ;;  %6728 = vmatprep.mubr.msk.f32.mxu0 %vm692_vm2, %v1418_v23  ;;  %v1241_v46 = vmul.f32 0.2, %v6030_v45 }
  0x9e   : > { %6751 = vmatprep.subr.msk.mxu0 %vm709_vm0, %v6061_v28 }
  0x9f   : > { %v1259_v48 = vsel %vm1223_vm12, %v6030_v45, %v1241_v46  ;;  %vm1841_vm12 = vcmp.ge.f32.partialorder %v6080_v17, 0.0  ;;  %v1879_v46 = vsel %vm1843_vm13, %v6082_v27, %v1861_v36  ;;  %v6132_v27 = vld [vmem:[%s7608_s19 + $0x1c8] sm:$0x1] }
  0xa0   : > { %6729 = vmatmul.mubr.msk.f32.gmra.mrb[2].mxu0 %vm692_vm2, %v1421_v30  ;;  %v2052_v52 = vrot.slane %v1879_v46, 1  ;;  %vm2461_vm13 = vcmp.ge.f32.partialorder %v6132_v27, 0.0 }
  0xa1   : > { %6731 = vmatprep.mubr.msk.f32.mxu0 %vm692_vm2, %v1424_v33 }
  0xa4   : > { %6732 = vmatmul.mubr.msk.f32.gmra.mrb[4].mxu0 %vm692_vm2, %v1427_v37 }
  0xa5   : > { %6734 = vmatprep.mubr.msk.f32.mxu0 %vm692_vm2, %v1430_v39 }
  0xa8   : > { %6735 = vmatmul.mubr.msk.f32.gmra.mrb[6].mxu0 %vm692_vm2, %v1433_v40 }
  0xa9   : > { %6739 = vmatprep.mubr.msk.f32.mxu0 %vm692_vm2, %v7738_v41  ;;  %v1240_v41 = vmul.f32 0.2, %v6029_v44 }
  0xac   : > { %6740 = vmatmul.mubr.msk.f32.vlgmr.msra.gmra.mrb[0].mxu0 %vm692_vm2, %v7740_v43  ;;  %v1258_v43 = vsel %vm1222_vm11, %v6029_v44, %v1240_v41  ;;  %vm1839_vm11 = vcmp.ge.f32.partialorder %v6078_v16, 0.0 }
  0xad   : > { %6752 = vmatpush3.msk.msra.mxu0 %vm709_vm0, %v6061_v28  ;;  %6742 = vmatprep.mubr.msk.f32.mxu0 %vm692_vm2, %v7756_v51  ;;  %v1690_v50 = vrot.slane %v1258_v43, 1  ;;  %v1691_v51 = vrot.slane %v1259_v48, 1  ;;  %v6084_v28 = vld [vmem:[%s7608_s19 + $0x188] sm:$0x1]  ;;  %v1875_v35 = vsel %vm1839_vm11, %v6078_v16, %v1857_v24  ;;  %v6135_v16 = vld [vmem:[%s7608_s19 + $0x1e0] sm:$0xff]  ;;  %v6141_v24 = vld [vmem:[%s7608_s19 + $0x210] sm:$0xff] }
  0xae   : > { %6765 = vmatprep.subr.msk.mxu0 %vm709_vm0, %v6089_v42  ;;  %v1863_v38 = vmul.f32 0.2, %v6084_v28  ;;  %v2046_v41 = vrot.slane %v1875_v35, 1  ;;  %v2482_v18 = vmul.f32 0.2, %v6135_v16 }
  0xaf   : > { %v1692_v55 = vsel %vm665_vm1, %v1690_v50, %v1691_v51  ;;  %v2051_v50 = vrot.slane %v7888_v20, 1 }
  0xb0   : > { %6743 = vmatmul.mubr.msk.f32.gmra.mrb[2].mxu0 %vm692_vm2, %v7758_v53  ;;  %v6073_v53 = vld [vmem:[%s7608_s19 + $0x130] sm:$0xff] }
  0xb1   : > { %6745 = vmatprep.mubr.msk.f32.mxu0 %vm692_vm2, %v7770_v62  ;;  %v1852_v56 = vmul.f32 0.2, %v6073_v53  ;;  %vm1834_vm14 = vcmp.ge.f32.partialorder %v6073_v53, 0.0 }
  0xb3   : > { %v7856_v62 = vsel %vm1834_vm14, %v6073_v53, %v1852_v56  ;;  %vm1845_vm14 = vcmp.ge.f32.partialorder %v6084_v28, 0.0 }
  0xb4   : > { %6746 = vmatmul.mubr.msk.f32.gmra.mrb[4].mxu0 %vm692_vm2, %v7772_v0  ;;  %v7858_v0 = vsel %vm1836_vm15, %v6075_v54, %v1854_v58  ;;  %v2039_v29 = vrot.slane %v7856_v62, 1  ;;  %v1881_v48 = vsel %vm1845_vm14, %v6084_v28, %v1863_v38  ;;  %v2053_v58 = vsel %vm665_vm1, %v2051_v50, %v2052_v52  ;;  %v6134_v28 = vld [vmem:[%s7608_s19 + $0x1d8] sm:$0x1] }
  0xb5   : > { %6748 = vmatprep.mubr.msk.f32.mxu0 %vm692_vm2, %v1256_v10  ;;  %v7876_v10 = vsel %vm1840_vm4, %v6079_v60, %v1858_v1  ;;  %v6087_v1 = vld [vmem:[%s7608_s19 + $0x1a0] sm:$0xff]  ;;  %vm1849_vm4 = vcmp.ge.f32.partialorder %v6088_v2, 0.0  ;;  %v2481_v36 = vmul.f32 0.2, %v6134_v28  ;;  %vm2463_vm14 = vcmp.ge.f32.partialorder %v6134_v28, 0.0 }
  0xb6   : > { %vm1848_vm3 = vcmp.ge.f32.partialorder %v6087_v1, 0.0  ;;  %v6138_v38 = vld [vmem:[%s7608_s19 + $0x1f8] sm:$0x1] }
  0xb7   : > { %v2499_v46 = vsel %vm2463_vm14, %v6134_v28, %v2481_v36  ;;  %v7369_v28 = vmov 0.0  }
  0xb8   : > { %6749 = vmatmul.mubr.msk.f32.gmra.mrb[6].mxu0 %vm692_vm2, %v1258_v43 }
  0xb9   : > { %6753 = vmatprep.mubr.msk.f32.mxu0 %vm692_vm2, %v1415_v21  ;;  %v7890_v21 = vsel %vm1844_vm7, %v6083_v4, %v1862_v11  ;;  %v6157_v4 = vld [vmem:[%s8721_s1 + $0x1c] sm:$0xf]  ;;  %v6133_v11 = vld [vmem:[%s7608_s19 + $0x1d0] sm:$0xff] }
  0xba   : > { %v2054_v53 = vrot.slane %v7890_v21, 1  ;;  %v2480_v15 = vmul.f32 0.2, %v6133_v11  ;;  %vm2462_vm7 = vcmp.ge.f32.partialorder %v6133_v11, 0.0 }
  0xbc   : > { %6754 = vmatmul.mubr.msk.f32.vlgmr.msra.gmra.mrb[0].mxu0 %vm692_vm2, %v1418_v23  ;;  %v1871_v23 = vsel %vm1835_vm8, %v6074_v6, %v1853_v13  ;;  %v6129_v6 = vld [vmem:[%s7608_s19 + $0x1b0] sm:$0xff]  ;;  %vm2464_vm8 = vcmp.ge.f32.partialorder %v6135_v16, 0.0 }
  0xbd   : > { %6766 = vmatpush3.msk.msra.mxu0 %vm709_vm0, %v6089_v42  ;;  %6756 = vmatprep.mubr.msk.f32.mxu0 %vm692_vm2, %v1421_v30  ;;  %v2042_v30 = vrot.slane %v7858_v0, 1  ;;  %v2040_v32 = vrot.slane %v1871_v23, 1  ;;  %v2048_v42 = vrot.slane %v7876_v10, 1  ;;  %v2476_v9 = vmul.f32 0.2, %v6129_v6  ;;  %v6139_v23 = vld [vmem:[%s7608_s19 + $0x200] sm:$0xff] }
  0xbe   : > { %6779 = vmatprep.subr.msk.mxu0 %vm709_vm0, %v6099_v47  ;;  %vm2458_vm5 = vcmp.ge.f32.partialorder %v6129_v6, 0.0  ;;  %vm2468_vm11 = vcmp.ge.f32.partialorder %v6139_v23, 0.0 }
  0xbf   : > { %v2041_v44 = vsel %vm665_vm1, %v2039_v29, %v2040_v32  ;;  %v2044_v43 = vsel %vm665_vm1, %v2042_v30, %v2043_v34  ;;  %v7966_v14 = vsel %vm2458_vm5, %v6129_v6, %v2476_v9  ;;  %v7992_v29 = vsel %vm2464_vm8, %v6135_v16, %v2482_v18  ;;  %v6177_v6 = vld [vmem:[%s8721_s1 + $0x3c] sm:$0xf]  ;;  %v6145_v18 = vld [vmem:[%s7608_s19 + $0x230] sm:$0xff] }
  0xc0   : > { %6757 = vmatmul.mubr.msk.f32.gmra.mrb[2].mxu0 %vm692_vm2, %v1424_v33  ;;  %v2038_v33 = vsel %vm665_vm1, %v2036_v19, %v2037_v22  ;;  %v6130_v19 = vld [vmem:[%s7608_s19 + $0x1b8] sm:$0x1]  ;;  %v2486_v30 = vmul.f32 0.2, %v6139_v23  ;;  %v2488_v32 = vmul.f32 0.2, %v6141_v24 }
  0xc1   : > { %6759 = vmatprep.mubr.msk.f32.mxu0 %vm692_vm2, %v1427_v37  ;;  %v1877_v37 = vsel %vm1841_vm12, %v6080_v17, %v1859_v26  ;;  %v6137_v17 = vld [vmem:[%s7608_s19 + $0x1f0] sm:$0xff]  ;;  %v2477_v25 = vmul.f32 0.2, %v6130_v19  ;;  %vm2459_vm10 = vcmp.ge.f32.partialorder %v6130_v19, 0.0  ;;  %v2479_v34 = vmul.f32 0.2, %v6132_v27 }
  0xc2   : > { %v2049_v45 = vrot.slane %v1877_v37, 1  ;;  %vm2466_vm9 = vcmp.ge.f32.partialorder %v6137_v17, 0.0  ;;  %v2484_v22 = vmul.f32 0.2, %v6137_v17  ;;  %v7983_v26 = vld [vmem:[%s8721_s1 + $0x34] sm:$0xf] }
  0xc3   : > { %vm2470_vm12 = vcmp.ge.f32.partialorder %v6141_v24, 0.0  ;;  %v2495_v35 = vsel %vm2459_vm10, %v6130_v19, %v2477_v25  ;;  %v6136_v37 = vld [vmem:[%s7608_s19 + $0x1e8] sm:$0x1]  ;;  %vm2474_vm8 = vcmp.ge.f32.partialorder %v6145_v18, 0.0  ;;  %vm3090_vm10 = vcmask 58368  }
  0xc4   : > { %6760 = vmatmul.mubr.msk.f32.gmra.mrb[4].mxu0 %vm692_vm2, %v1430_v39  ;;  %v6086_v39 = vld [vmem:[%s7608_s19 + $0x198] sm:$0x1]  ;;  %v2050_v54 = vsel %vm665_vm1, %v2048_v42, %v2049_v45  ;;  %v2483_v45 = vmul.f32 0.2, %v6136_v37  ;;  %3095 = vst.msk [vmem:[#allocation2 + $0x28] sm:$0x3] %vm3090_vm10, %v7369_v28 }
  0xc5   : > { %6762 = vmatprep.mubr.msk.f32.mxu0 %vm692_vm2, %v1433_v40  ;;  %v2045_v40 = vrot.slane %v7874_v8, 1  ;;  %vm1847_vm15 = vcmp.ge.f32.partialorder %v6086_v39, 0.0  ;;  %3091 = vst.msk [vmem:[#allocation2 + $0x8] sm:$0x3] %vm3090_vm10, %v7369_v28  ;;  %3093 = vst.msk [vmem:[#allocation2 + $0x18] sm:$0x3] %vm3090_vm10, %v7369_v28 }
  0xc6   : > { %3097 = vst.msk [vmem:[#allocation2 + $0x38] sm:$0x3] %vm3090_vm10, %v7369_v28  ;;  %3099 = vst.msk [vmem:[#allocation2 + $0x48] sm:$0x3] %vm3090_vm10, %v7369_v28 }
  0xc7   : > { %v2047_v51 = vsel %vm665_vm1, %v2045_v40, %v2046_v41  ;;  %v8006_v40 = vsel %vm2468_vm11, %v6139_v23, %v2486_v30  ;;  %v2663_v41 = vrot.slane %v2495_v35, 1  ;;  %3101 = vst.msk [vmem:[#allocation2 + $0x58] sm:$0x3] %vm3090_vm10, %v7369_v28  ;;  %3103 = vst.msk [vmem:[#allocation2 + $0x68] sm:$0x3] %vm3090_vm10, %v7369_v28 }
  0xc8   : > { %6763 = vmatmul.mubr.msk.f32.gmra.mrb[6].mxu0 %vm692_vm2, %v1692_v55  ;;  %v2055_v55 = vrot.slane %v1881_v48, 1  ;;  %v6140_v48 = vld [vmem:[%s7608_s19 + $0x208] sm:$0x1]  ;;  %3105 = vst.msk [vmem:[#allocation2 + $0x78] sm:$0x3] %vm3090_vm10, %v7369_v28 }
  0xc9   : > { %6767 = vmatprep.mubr.msk.f32.mxu0 %vm692_vm2, %v7848_v57  ;;  %v2057_v57 = vrot.slane %v1882_v31, 1  ;;  %vm2469_vm5 = vcmp.ge.f32.partialorder %v6140_v48, 0.0  ;;  %3107 = vst.msk [vmem:[#allocation2 + $0x88] sm:$0x3] %vm3090_vm10, %v7369_v28  ;;  %3109 = vst.msk [vmem:[#allocation2 + $0x98] sm:$0x3] %vm3090_vm10, %v7369_v28 }
  0xca   : > { %v2056_v60 = vsel %vm665_vm1, %v2054_v53, %v2055_v55  ;;  %v2669_v55 = vrot.slane %v2499_v46, 1 }
  0xcc   : > { %6768 = vmatmul.mubr.msk.f32.vlgmr.msra.gmra.mrb[0].mxu0 %vm692_vm2, %v7856_v62 }
  0xcd   : > { %6780 = vmatpush3.msk.msra.mxu0 %vm709_vm0, %v6099_v47  ;;  %6770 = vmatprep.mubr.msk.f32.mxu0 %vm692_vm2, %v7858_v0  ;;  %v1865_v47 = vmul.f32 0.2, %v6086_v39 }
  0xce   : > { %6793 = vmatprep.subr.msk.mxu0 %vm709_vm0, %v7864_v3 }
  0xcf   : > { %v1883_v56 = vsel %vm1847_vm15, %v6086_v39, %v1865_v47  ;;  %v2662_v39 = vrot.slane %v7966_v14, 1  ;;  %v2485_v47 = vmul.f32 0.2, %v6138_v38 }
  0xd0   : > { %6771 = vmatmul.mubr.msk.f32.gmra.mrb[2].mxu0 %vm692_vm2, %v7874_v8  ;;  %v2058_v59 = vrot.slane %v1883_v56, 1 }
  0xd1   : > { %6773 = vmatprep.mubr.msk.f32.mxu0 %vm692_vm2, %v7876_v10 }
  0xd2   : > { %v2059_v61 = vsel %vm665_vm1, %v2057_v57, %v2058_v59  ;;  %v2487_v57 = vmul.f32 0.2, %v6140_v48 }
  0xd4   : > { %6774 = vmatmul.mubr.msk.f32.gmra.mrb[4].mxu0 %vm692_vm2, %v7888_v20 }
  0xd5   : > { %6776 = vmatprep.mubr.msk.f32.mxu0 %vm692_vm2, %v7890_v21 }
  0xd8   : > { %6777 = vmatmul.mubr.msk.f32.gmra.mrb[6].mxu0 %vm692_vm2, %v1882_v31 }
  0xd9   : > { %6781 = vmatprep.mubr.msk.f32.mxu0 %vm692_vm2, %v2038_v33  ;;  %v6143_v33 = vld [vmem:[%s7608_s19 + $0x220] sm:$0xff] }
  0xda   : > { %vm2472_vm15 = vcmp.ge.f32.partialorder %v6143_v33, 0.0  ;;  %v2490_v42 = vmul.f32 0.2, %v6143_v33 }
  0xdc   : > { %6782 = vmatmul.mubr.msk.f32.vlgmr.msra.gmra.mrb[0].mxu0 %vm692_vm2, %v2041_v44  ;;  %v2508_v52 = vsel %vm2472_vm15, %v6143_v33, %v2490_v42 }
  0xdd   : > { %6794 = vmatpush3.msk.msra.mxu0 %vm709_vm0, %v7864_v3  ;;  %6784 = vmatprep.mubr.msk.f32.mxu0 %vm692_vm2, %v2044_v43  ;;  %v1867_v3 = vmul.f32 0.2, %v6088_v2 }
  0xde   : > { %6807 = vmatprep.subr.msk.mxu0 %vm709_vm0, %v6119_v49 }
  0xdf   : > { %v1885_v5 = vsel %vm1849_vm4, %v6088_v2, %v1867_v3  ;;  %vm2467_vm4 = vcmp.ge.f32.partialorder %v6138_v38, 0.0  ;;  %v2505_v3 = vsel %vm2469_vm5, %v6140_v48, %v2487_v57 }
  0xe0   : > { %6785 = vmatmul.mubr.msk.f32.gmra.mrb[2].mxu0 %vm692_vm2, %v2047_v51  ;;  %v2678_v9 = vrot.slane %v2505_v3, 1  ;;  %v6214_v3 = vld [vmem:[%s8723_s3 + $0x18] sm:$0xff] }
  0xe1   : > { %6787 = vmatprep.mubr.msk.f32.mxu0 %vm692_vm2, %v2050_v54 }
  0xe4   : > { %6788 = vmatmul.mubr.msk.f32.gmra.mrb[4].mxu0 %vm692_vm2, %v2053_v58 }
  0xe5   : > { %6790 = vmatprep.mubr.msk.f32.mxu0 %vm692_vm2, %v2056_v60 }
  0xe8   : > { %6791 = vmatmul.mubr.msk.f32.gmra.mrb[6].mxu0 %vm692_vm2, %v2059_v61 }
  0xe9   : > { %6795 = vmatprep.mubr.msk.f32.mxu0 %vm692_vm2, %v7856_v62  ;;  %v1866_v62 = vmul.f32 0.2, %v6087_v1 }
  0xec   : > { %6796 = vmatmul.mubr.msk.f32.vlgmr.msra.gmra.mrb[0].mxu0 %vm692_vm2, %v7858_v0  ;;  %v1884_v0 = vsel %vm1848_vm3, %v6087_v1, %v1866_v62  ;;  %vm2465_vm3 = vcmp.ge.f32.partialorder %v6136_v37, 0.0 }
  0xed   : > { %6808 = vmatpush3.msk.msra.mxu0 %vm709_vm0, %v6119_v49  ;;  %6798 = vmatprep.mubr.msk.f32.mxu0 %vm692_vm2, %v7874_v8  ;;  %v2316_v7 = vrot.slane %v1884_v0, 1  ;;  %v2317_v8 = vrot.slane %v1885_v5, 1  ;;  %v6142_v49 = vld [vmem:[%s7608_s19 + $0x218] sm:$0x1]  ;;  %v2501_v56 = vsel %vm2465_vm3, %v6136_v37, %v2483_v45 }
  0xee   : > { %6821 = vmatprep.subr.msk.mxu0 %vm709_vm0, %v6147_v63  ;;  %v2489_v59 = vmul.f32 0.2, %v6142_v49  ;;  %v2672_v62 = vrot.slane %v2501_v56, 1 }
  0xef   : > { %v2318_v12 = vsel %vm665_vm1, %v2316_v7, %v2317_v8  ;;  %v2677_v7 = vrot.slane %v8006_v40, 1 }
  0xf0   : > { %6799 = vmatmul.mubr.msk.f32.gmra.mrb[2].mxu0 %vm692_vm2, %v7876_v10  ;;  %v6131_v10 = vld [vmem:[%s7608_s19 + $0x1c0] sm:$0xff] }
  0xf1   : > { %6801 = vmatprep.mubr.msk.f32.mxu0 %vm692_vm2, %v7888_v20  ;;  %v2478_v13 = vmul.f32 0.2, %v6131_v10  ;;  %vm2460_vm6 = vcmp.ge.f32.partialorder %v6131_v10, 0.0 }
  0xf3   : > { %v7974_v20 = vsel %vm2460_vm6, %v6131_v10, %v2478_v13  ;;  %vm2471_vm6 = vcmp.ge.f32.partialorder %v6142_v49, 0.0 }
  0xf4   : > { %6802 = vmatmul.mubr.msk.f32.gmra.mrb[4].mxu0 %vm692_vm2, %v7890_v21  ;;  %v7976_v21 = vsel %vm2462_vm7, %v6133_v11, %v2480_v15  ;;  %v2665_v50 = vrot.slane %v7974_v20, 1  ;;  %v2507_v5 = vsel %vm2471_vm6, %v6142_v49, %v2489_v59  ;;  %v2679_v15 = vsel %vm665_vm1, %v2677_v7, %v2678_v9 }
  0xf5   : > { %6804 = vmatprep.mubr.msk.f32.mxu0 %vm692_vm2, %v1882_v31  ;;  %v7994_v31 = vsel %vm2466_vm9, %v6137_v17, %v2484_v22  ;;  %v2492_v22 = vmul.f32 0.2, %v6145_v18  ;;  %vm3088_vm9 = vcmask 64512  }
  0xf6   : > { %3094 = vst.msk [vmem:[#allocation2 + $0x20] sm:$0xff] %vm3088_vm9, %v7369_v28  ;;  %3089 = vst.msk [vmem:[#allocation2] sm:$0xff] %vm3088_vm9, %v7369_v28 }
  0xf7   : > { %3092 = vst.msk [vmem:[#allocation2 + $0x10] sm:$0xff] %vm3088_vm9, %v7369_v28  ;;  %3096 = vst.msk [vmem:[#allocation2 + $0x30] sm:$0xff] %vm3088_vm9, %v7369_v28 }
  0xf8   : > { %6805 = vmatmul.mubr.msk.f32.gmra.mrb[6].mxu0 %vm692_vm2, %v1884_v0  ;;  %3098 = vst.msk [vmem:[#allocation2 + $0x40] sm:$0xff] %vm3088_vm9, %v7369_v28  ;;  %3100 = vst.msk [vmem:[#allocation2 + $0x50] sm:$0xff] %vm3088_vm9, %v7369_v28 }
  0xf9   : > { %6809 = vmatprep.mubr.msk.f32.mxu0 %vm692_vm2, %v2041_v44  ;;  %v8008_v44 = vsel %vm2470_vm12, %v6141_v24, %v2488_v32  ;;  %3102 = vst.msk [vmem:[#allocation2 + $0x60] sm:$0xff] %vm3088_vm9, %v7369_v28  ;;  %3104 = vst.msk [vmem:[#allocation2 + $0x70] sm:$0xff] %vm3088_vm9, %v7369_v28  ;;  %v6187_v32 = vld [vmem:[%s8722_s2] ss:$0 sm:$0xff] }
  0xfa   : > { %v2680_v10 = vrot.slane %v8008_v44, 1  ;;  %3106 = vst.msk [vmem:[#allocation2 + $0x80] sm:$0xff] %vm3088_vm9, %v7369_v28  ;;  %3108 = vst.msk [vmem:[#allocation2 + $0x90] sm:$0xff] %vm3088_vm9, %v7369_v28  ;;  %v6296_v28 = vld [vmem:[%s8723_s3 + $0x58] sm:$0xff] }
  0xfc   : > { %6810 = vmatmul.mubr.msk.f32.vlgmr.msra.gmra.mrb[0].mxu0 %vm692_vm2, %v2044_v43  ;;  %v2497_v43 = vsel %vm2461_vm13, %v6132_v27, %v2479_v34 }
  0xfd   : > { %6822 = vmatpush3.msk.msra.mxu0 %vm709_vm0, %v6147_v63  ;;  %6812 = vmatprep.mubr.msk.f32.mxu0 %vm692_vm2, %v2047_v51  ;;  %v2668_v51 = vrot.slane %v7976_v21, 1  ;;  %v2666_v53 = vrot.slane %v2497_v43, 1  ;;  %v2674_v63 = vrot.slane %v7994_v31, 1  ;;  %v8096_v30 = vld [vmem:[#allocation2 + $0x1] sm:$0xff] }
  0xfe   : > { %6835 = vmatprep.subr.msk.mxu0 %vm709_vm0, %v6157_v4  ;;  %6879 = vmatprep.mubr.msk.f32.mxu1 %vm3088_vm9, %v8096_v30 }
  0xff   : > { %v2667_v1 = vsel %vm665_vm1, %v2665_v50, %v2666_v53  ;;  %v2670_v0 = vsel %vm665_vm1, %v2668_v51, %v2669_v55  ;;  %v6205_v55 = vld [vmem:[%s8723_s3 + $0x10] sm:$0xff] }
 0x100   : > { %6813 = vmatmul.mubr.msk.f32.gmra.mrb[2].mxu0 %vm692_vm2, %v2050_v54  ;;  %v2664_v54 = vsel %vm665_vm1, %v2662_v39, %v2663_v41 }
 0x101   : > { %6815 = vmatprep.mubr.msk.f32.mxu0 %vm692_vm2, %v2053_v58  ;;  %v2503_v58 = vsel %vm2467_vm4, %v6138_v38, %v2485_v47 }
 0x102   : > { %v2675_v2 = vrot.slane %v2503_v58, 1 }
 0x104   : > { %6816 = vmatmul.mubr.msk.f32.gmra.mrb[4].mxu0 %vm692_vm2, %v2056_v60  ;;  %v6144_v60 = vld [vmem:[%s7608_s19 + $0x228] sm:$0x1]  ;;  %v2676_v11 = vsel %vm665_vm1, %v2674_v63, %v2675_v2 }
 0x105   : > { %6818 = vmatprep.mubr.msk.f32.mxu0 %vm692_vm2, %v2059_v61  ;;  %v2671_v61 = vrot.slane %v7992_v29, 1  ;;  %vm2473_vm7 = vcmp.ge.f32.partialorder %v6144_v60, 0.0 }
 0x107   : > { %v2673_v8 = vsel %vm665_vm1, %v2671_v61, %v2672_v62  ;;  %v3119_v62 = vld [vmem:[#allocation2] sm:$0xff] }
 0x108   : > { %6819 = vmatmul.mubr.msk.f32.gmra.mrb[6].mxu0 %vm692_vm2, %v2318_v12  ;;  %v2681_v12 = vrot.slane %v2507_v5, 1 }
 0x109   : > { %6823 = vmatprep.mubr.msk.f32.mxu0 %vm692_vm2, %v7966_v14  ;;  %v2683_v14 = vrot.slane %v2508_v52, 1 }
 0x10a   : > { %v2682_v17 = vsel %vm665_vm1, %v2680_v10, %v2681_v12  ;;  %v6225_v10 = vld [vmem:[%s8723_s3 + $0x28] sm:$0xff]  ;;  %v6224_v12 = vld [vmem:[%s8723_s3 + $0x20] sm:$0xff] }
 0x10c   : > { %6824 = vmatmul.mubr.msk.f32.vlgmr.msra.gmra.mrb[0].mxu0 %vm692_vm2, %v7974_v20 }
 0x10d   : > { %6836 = vmatpush3.msk.msra.mxu0 %vm709_vm0, %v6157_v4  ;;  %6826 = vmatprep.mubr.msk.f32.mxu0 %vm692_vm2, %v7976_v21  ;;  %v2491_v4 = vmul.f32 0.2, %v6144_v60 }
 0x10e   : > { %6849 = vmatprep.subr.msk.mxu0 %vm709_vm0, %v7983_v26 }
 0x10f   : > { %v2509_v13 = vsel %vm2473_vm7, %v6144_v60, %v2491_v4 }
 0x110   : > { %6827 = vmatmul.mubr.msk.f32.gmra.mrb[2].mxu0 %vm692_vm2, %v7992_v29  ;;  %v2684_v16 = vrot.slane %v2509_v13, 1  ;;  %v3775_v13 = vld [vmem:[#allocation2 + $0x2] sm:$0xff] }
 0x111   : > { %6829 = vmatprep.mubr.msk.f32.mxu0 %vm692_vm2, %v7994_v31 }
 0x112   : > { %v2685_v19 = vsel %vm665_vm1, %v2683_v14, %v2684_v16  ;;  %v6242_v16 = vld [vmem:[%s8723_s3 + $0x30] sm:$0xff] }
 0x114   : > { %6830 = vmatmul.mubr.msk.f32.gmra.mrb[4].mxu0 %vm692_vm2, %v8006_v40 }
 0x115   : > { %6832 = vmatprep.mubr.msk.f32.mxu0 %vm692_vm2, %v8008_v44 }
 0x118   : > { %6833 = vmatmul.mubr.msk.f32.gmra.mrb[6].mxu0 %vm692_vm2, %v2508_v52 }
 0x119   : > { %6837 = vmatprep.mubr.msk.f32.mxu0 %vm692_vm2, %v2664_v54 }
 0x11c   : > { %6838 = vmatmul.mubr.msk.f32.vlgmr.msra.gmra.mrb[0].mxu0 %vm692_vm2, %v2667_v1 }
 0x11d   : > { %6850 = vmatpush3.msk.msra.mxu0 %vm709_vm0, %v7983_v26  ;;  %6840 = vmatprep.mubr.msk.f32.mxu0 %vm692_vm2, %v2670_v0 }
 0x11e   : > { %6863 = vmatprep.subr.msk.mxu0 %vm709_vm0, %v6177_v6 }
 0x120   : > { %6841 = vmatmul.mubr.msk.f32.gmra.mrb[2].mxu0 %vm692_vm2, %v2673_v8 }
 0x121   : > { %6843 = vmatprep.mubr.msk.f32.mxu0 %vm692_vm2, %v2676_v11 }
 0x124   : > { %6844 = vmatmul.mubr.msk.f32.gmra.mrb[4].mxu0 %vm692_vm2, %v2679_v15 }
 0x125   : > { %6846 = vmatprep.mubr.msk.f32.mxu0 %vm692_vm2, %v2682_v17 }
 0x128   : > { %6847 = vmatmul.mubr.msk.f32.gmra.mrb[6].mxu0 %vm692_vm2, %v2685_v19 }
 0x129   : > { %6851 = vmatprep.mubr.msk.f32.mxu0 %vm692_vm2, %v7974_v20  ;;  %v2510_v20 = vsel %vm2474_vm8, %v6145_v18, %v2492_v22 }
 0x12a   : > { %v2942_v25 = vrot.slane %v2510_v20, 1 }
 0x12c   : > { %6852 = vmatmul.mubr.msk.f32.vlgmr.msra.gmra.mrb[0].mxu0 %vm692_vm2, %v7976_v21  ;;  %v6146_v21 = vld [vmem:[%s7608_s19 + $0x238] sm:$0x1]  ;;  %s5972_s19 = sshll.u32 %s540_s15, 8  ;;  %s5973_s15 = sshll.u32 %s573_s21, 1 }
 0x12d   : > { %6864 = vmatpush3.msk.msra.mxu0 %vm709_vm0, %v6177_v6  ;;  %6854 = vmatprep.mubr.msk.f32.mxu0 %vm692_vm2, %v7992_v29  ;;  %v2493_v23 = vmul.f32 0.2, %v6146_v21  ;;  %vm2475_vm0 = vcmp.ge.f32.partialorder %v6146_v21, 0.0  ;;  %v6188_v29 = vld [vmem:[%s8723_s3 + $0x8] sm:$0xff]  ;;  %s8462_s17 = scalar_lea.vmem [#allocation4], %s5972_s19  ;;  %s575_s23 = scalar_lea.vmem %s8726_s6, %s5973_s15 }
 0x12e   : > { %6877 = vmatprep.subr.mxu1 %v6188_v29 }
 0x12f   : > { %v2511_v24 = vsel %vm2475_vm0, %v6146_v21, %v2493_v23  ;;  %6878 = vmatpush3.msra.mxu1 %v6188_v29  ;;  %v6251_v23 = vld [vmem:[%s8723_s3 + $0x38] sm:$0xff]  ;;  %v6315_v29 = vld [vmem:[%s8723_s3 + $0x68] sm:$0xff] }
 0x130   : > { %6855 = vmatmul.mubr.msk.f32.gmra.mrb[2].mxu0 %vm692_vm2, %v7994_v31  ;;  %v2943_v26 = vrot.slane %v2511_v24, 1  ;;  %v3127_v31 = vld [vmem:[%s8723_s3] sm:$0xff]  ;;  %v6270_v24 = vld [vmem:[%s8723_s3 + $0x48] sm:$0xff] }
 0x131   : > { %6857 = vmatprep.mubr.msk.f32.mxu0 %vm692_vm2, %v8006_v40  ;;  %6891 = vmatprep.subr.mxu1 %v3127_v31 }
 0x132   : > { %v2944_v27 = vsel %vm665_vm1, %v2942_v25, %v2943_v26  ;;  %v6269_v25 = vld [vmem:[%s8723_s3 + $0x40] sm:$0xff]  ;;  %vm5710_vm1 = vcmask 24576  }
 0x134   : > { %6858 = vmatmul.mubr.msk.f32.gmra.mrb[4].mxu0 %vm692_vm2, %v8008_v44 }
 0x135   : > { %6860 = vmatprep.mubr.msk.f32.mxu0 %vm692_vm2, %v2508_v52 }
 0x138   : > { %6861 = vmatmul.mubr.msk.f32.gmra.mrb[6].mxu0 %vm692_vm2, %v2510_v20 }
 0x139   : > { %6865 = vmatprep.mubr.msk.f32.mxu0 %vm692_vm2, %v2667_v1 }
 0x13c   : > { %6866 = vmatmul.mubr.msk.f32.vlgmr.msra.gmra.mrb[0].mxu0 %vm692_vm2, %v2670_v0 }
 0x13d   : > { %6868 = vmatprep.mubr.msk.f32.mxu0 %vm692_vm2, %v2673_v8 }
 0x140   : > { %6869 = vmatmul.mubr.msk.f32.gmra.mrb[2].mxu0 %vm692_vm2, %v2676_v11 }
 0x141   : > { %6871 = vmatprep.mubr.msk.f32.mxu0 %vm692_vm2, %v2679_v15 }
 0x144   : > { %6872 = vmatmul.mubr.msk.f32.gmra.mrb[4].mxu0 %vm692_vm2, %v2682_v17 }
 0x145   : > { %6874 = vmatprep.mubr.msk.f32.mxu0 %vm692_vm2, %v2685_v19 }
 0x148   : > { %6875 = vmatmul.mubr.msk.f32.gmra.mrb[6].mxu0 %vm692_vm2, %v2944_v27  ;;  %v6287_v27 = vld [vmem:[%s8723_s3 + $0x50] sm:$0xff] }
 0x20f   : > { %v6867_v33 = vpop.f32.mrb[0].mxu0 }
 0x210   : > { %v3073_v34 = vadd.f32 %v6867_v33, %v6187_v32  ;;  %v3018_v35 = vpop.f32.mrb[1].mxu0  ;;  %v6332_v33 = vld [vmem:[%s8723_s3 + $0x70] sm:$0xff] }
 0x211   : > { %v3072_v36 = vadd.f32 %v6187_v32, %v3018_v35  ;;  %v5494_v35 = vld [vmem:[#allocation2 + $0x92] sm:$0xff] }
 0x212   : > { %v3081_v37 = vmax.f32 %v3073_v34, 0.0  ;;  %v6341_v34 = vld [vmem:[%s8723_s3 + $0x78] sm:$0xff] }
 0x213   : > { %v3080_v38 = vmax.f32 %v3072_v36, 0.0  ;;  %v6870_v39 = vpop.f32.mrb[2].mxu0  ;;  %v8457_v36 = vld [vmem:[%s8724_s4] ss:$0 sm:$0xff] }
 0x214   : > { %3112 = vst.msk [vmem:[#allocation2 + $0x21] sm:$0xff] %vm3088_vm9, %v3081_v37  ;;  %v3075_v40 = vadd.f32 %v6870_v39, %v6187_v32  ;;  %v3028_v42 = vpop.f32.mrb[3].mxu0 }
 0x215   : > { %3111 = vst.msk [vmem:[#allocation2 + $0x11] sm:$0xff] %vm3088_vm9, %v3080_v38  ;;  %v3074_v44 = vadd.f32 %v6187_v32, %v3028_v42 }
 0x216   : > { %v3083_v41 = vmax.f32 %v3075_v40, 0.0 }
 0x217   : > { %v3082_v43 = vmax.f32 %v3074_v44, 0.0  ;;  %v6873_v45 = vpop.f32.mrb[4].mxu0 }
 0x218   : > { %3114 = vst.msk [vmem:[#allocation2 + $0x41] sm:$0xff] %vm3088_vm9, %v3083_v41  ;;  %v3077_v46 = vadd.f32 %v6873_v45, %v6187_v32  ;;  %v3038_v47 = vpop.f32.mrb[5].mxu0 }
 0x219   : > { %3113 = vst.msk [vmem:[#allocation2 + $0x31] sm:$0xff] %vm3088_vm9, %v3082_v43  ;;  %v3076_v48 = vadd.f32 %v6187_v32, %v3038_v47 }
 0x21a   : > { %v3085_v49 = vmax.f32 %v3077_v46, 0.0 }
 0x21b   : > { %v3084_v50 = vmax.f32 %v3076_v48, 0.0  ;;  %v6876_v51 = vpop.f32.mrb[6].mxu0  ;;  %v8119_v57 = vld [vmem:[#allocation2 + $0x21] sm:$0xff] }
 0x21c   : > { %3116 = vst.msk [vmem:[#allocation2 + $0x61] sm:$0xff] %vm3088_vm9, %v3085_v49  ;;  %v3079_v52 = vadd.f32 %v6876_v51, %v6187_v32  ;;  %v3048_v53 = vpop.f32.mrb[7].mxu0  ;;  %v8111_v54 = vld [vmem:[#allocation2 + $0x11] sm:$0xff]  ;;  %v8153_v4 = vld [vmem:[#allocation2 + $0x20] sm:$0xff] }
 0x21d   : > { %3115 = vst.msk [vmem:[#allocation2 + $0x51] sm:$0xff] %vm3088_vm9, %v3084_v50  ;;  %v3078_v56 = vadd.f32 %v6187_v32, %v3048_v53  ;;  %6880 = vmatmul.mubr.msk.f32.vlgmr.msra.gmra.mrb[0].mxu1 %vm3088_vm9, %v8111_v54  ;;  %v8146_v2 = vld [vmem:[#allocation2 + $0x10] sm:$0xff]  ;;  %v8227_v17 = vld [vmem:[#allocation2 + $0x22] sm:$0xff] }
 0x21e   : > { %v3087_v58 = vmax.f32 %v3079_v52, 0.0  ;;  %6892 = vmatpush3.msra.mxu1 %v3127_v31  ;;  %6882 = vmatprep.mubr.msk.f32.mxu1 %vm3088_vm9, %v8119_v57  ;;  %v8220_v15 = vld [vmem:[#allocation2 + $0x12] sm:$0xff]  ;;  %v6314_v31 = vld [vmem:[%s8723_s3 + $0x60] sm:$0xff] }
 0x21f   : > { %v3086_v59 = vmax.f32 %v3078_v56, 0.0  ;;  %6905 = vmatprep.subr.mxu1 %v6205_v55  ;;  %v8129_v61 = vld [vmem:[#allocation2 + $0x41] sm:$0xff]  ;;  %v4846_v32 = vld [vmem:[#allocation2 + $0x91] sm:$0xff] }
 0x220   : > { %3118 = vst.msk [vmem:[#allocation2 + $0x81] sm:$0xff] %vm3088_vm9, %v3087_v58  ;;  %v8124_v60 = vld [vmem:[#allocation2 + $0x31] sm:$0xff]  ;;  %v8161_v6 = vld [vmem:[#allocation2 + $0x40] sm:$0xff] }
 0x221   : > { %3117 = vst.msk [vmem:[#allocation2 + $0x71] sm:$0xff] %vm3088_vm9, %v3086_v59  ;;  %6883 = vmatmul.mubr.msk.f32.gmra.mrb[2].mxu1 %vm3088_vm9, %v8124_v60  ;;  %v8157_v5 = vld [vmem:[#allocation2 + $0x30] sm:$0xff]  ;;  %v8235_v18 = vld [vmem:[#allocation2 + $0x42] sm:$0xff] }
 0x222   : > { %6885 = vmatprep.mubr.msk.f32.mxu1 %vm3088_vm9, %v8129_v61  ;;  %v8231_v19 = vld [vmem:[#allocation2 + $0x32] sm:$0xff] }
 0x223   : > { %v8137_v1 = vld [vmem:[#allocation2 + $0x61] sm:$0xff] }
 0x224   : > { %v8133_v63 = vld [vmem:[#allocation2 + $0x51] sm:$0xff]  ;;  %v8169_v8 = vld [vmem:[#allocation2 + $0x60] sm:$0xff] }
 0x225   : > { %6886 = vmatmul.mubr.msk.f32.gmra.mrb[4].mxu1 %vm3088_vm9, %v8133_v63  ;;  %v8165_v7 = vld [vmem:[#allocation2 + $0x50] sm:$0xff]  ;;  %v8243_v20 = vld [vmem:[#allocation2 + $0x62] sm:$0xff] }
 0x226   : > { %6888 = vmatprep.mubr.msk.f32.mxu1 %vm3088_vm9, %v8137_v1  ;;  %v8239_v22 = vld [vmem:[#allocation2 + $0x52] sm:$0xff] }
 0x227   : > { %v8194_v11 = vld [vmem:[#allocation2 + $0x80] sm:$0xff] }
 0x228   : > { %v8141_v0 = vld [vmem:[#allocation2 + $0x71] sm:$0xff]  ;;  %v8215_v14 = vld [vmem:[#allocation2 + $0x81] sm:$0xff] }
 0x229   : > { %6889 = vmatmul.mubr.msk.f32.gmra.mrb[6].mxu1 %vm3088_vm9, %v8141_v0  ;;  %v8173_v9 = vld [vmem:[#allocation2 + $0x70] sm:$0xff]  ;;  %v8306_v26 = vld [vmem:[#allocation2 + $0x82] sm:$0xff] }
 0x22a   : > { %6893 = vmatprep.mubr.msk.f32.mxu1 %vm3088_vm9, %v3119_v62  ;;  %v8247_v21 = vld [vmem:[#allocation2 + $0x72] sm:$0xff] }
 0x22d   : > { %6894 = vmatmul.mubr.msk.f32.vlgmr.msra.gmra.mrb[0].mxu1 %vm3088_vm9, %v8146_v2 }
 0x22e   : > { %6906 = vmatpush3.msra.mxu1 %v6205_v55  ;;  %6896 = vmatprep.mubr.msk.f32.mxu1 %vm3088_vm9, %v8153_v4 }
 0x22f   : > { %6919 = vmatprep.subr.mxu1 %v6214_v3 }
 0x231   : > { %6897 = vmatmul.mubr.msk.f32.gmra.mrb[2].mxu1 %vm3088_vm9, %v8157_v5 }
 0x232   : > { %6899 = vmatprep.mubr.msk.f32.mxu1 %vm3088_vm9, %v8161_v6 }
 0x235   : > { %6900 = vmatmul.mubr.msk.f32.gmra.mrb[4].mxu1 %vm3088_vm9, %v8165_v7 }
 0x236   : > { %6902 = vmatprep.mubr.msk.f32.mxu1 %vm3088_vm9, %v8169_v8 }
 0x239   : > { %6903 = vmatmul.mubr.msk.f32.gmra.mrb[6].mxu1 %vm3088_vm9, %v8173_v9 }
 0x23a   : > { %6907 = vmatprep.mubr.msk.f32.mxu1 %vm3088_vm9, %v8146_v2 }
 0x23d   : > { %6908 = vmatmul.mubr.msk.f32.vlgmr.msra.gmra.mrb[0].mxu1 %vm3088_vm9, %v8153_v4 }
 0x23e   : > { %6920 = vmatpush3.msra.mxu1 %v6214_v3  ;;  %6910 = vmatprep.mubr.msk.f32.mxu1 %vm3088_vm9, %v8157_v5 }
 0x23f   : > { %6933 = vmatprep.subr.mxu1 %v6225_v10 }
 0x241   : > { %6911 = vmatmul.mubr.msk.f32.gmra.mrb[2].mxu1 %vm3088_vm9, %v8161_v6 }
 0x242   : > { %6913 = vmatprep.mubr.msk.f32.mxu1 %vm3088_vm9, %v8165_v7 }
 0x245   : > { %6914 = vmatmul.mubr.msk.f32.gmra.mrb[4].mxu1 %vm3088_vm9, %v8169_v8 }
 0x246   : > { %6916 = vmatprep.mubr.msk.f32.mxu1 %vm3088_vm9, %v8173_v9 }
 0x249   : > { %6917 = vmatmul.mubr.msk.f32.gmra.mrb[6].mxu1 %vm3088_vm9, %v8194_v11 }
 0x24a   : > { %6921 = vmatprep.mubr.msk.f32.mxu1 %vm3088_vm9, %v8111_v54 }
 0x24d   : > { %6922 = vmatmul.mubr.msk.f32.vlgmr.msra.gmra.mrb[0].mxu1 %vm3088_vm9, %v8119_v57 }
 0x24e   : > { %6934 = vmatpush3.msra.mxu1 %v6225_v10  ;;  %6924 = vmatprep.mubr.msk.f32.mxu1 %vm3088_vm9, %v8124_v60 }
 0x24f   : > { %6947 = vmatprep.subr.mxu1 %v6224_v12 }
 0x251   : > { %6925 = vmatmul.mubr.msk.f32.gmra.mrb[2].mxu1 %vm3088_vm9, %v8129_v61 }
 0x252   : > { %6927 = vmatprep.mubr.msk.f32.mxu1 %vm3088_vm9, %v8133_v63 }
 0x255   : > { %6928 = vmatmul.mubr.msk.f32.gmra.mrb[4].mxu1 %vm3088_vm9, %v8137_v1 }
 0x256   : > { %6930 = vmatprep.mubr.msk.f32.mxu1 %vm3088_vm9, %v8141_v0 }
 0x259   : > { %6931 = vmatmul.mubr.msk.f32.gmra.mrb[6].mxu1 %vm3088_vm9, %v8215_v14 }
 0x25a   : > { %6935 = vmatprep.mubr.msk.f32.mxu1 %vm3088_vm9, %v3775_v13 }
 0x25d   : > { %6936 = vmatmul.mubr.msk.f32.vlgmr.msra.gmra.mrb[8].mxu1 %vm3088_vm9, %v8220_v15 }
 0x25e   : > { %6948 = vmatpush3.msra.mxu1 %v6224_v12  ;;  %6938 = vmatprep.mubr.msk.f32.mxu1 %vm3088_vm9, %v8227_v17 }
 0x25f   : > { %6961 = vmatprep.subr.mxu1 %v6242_v16 }
 0x261   : > { %6939 = vmatmul.mubr.msk.f32.gmra.mrb[10].mxu1 %vm3088_vm9, %v8231_v19 }
 0x262   : > { %6941 = vmatprep.mubr.msk.f32.mxu1 %vm3088_vm9, %v8235_v18 }
 0x265   : > { %6942 = vmatmul.mubr.msk.f32.gmra.mrb[12].mxu1 %vm3088_vm9, %v8239_v22 }
 0x266   : > { %6944 = vmatprep.mubr.msk.f32.mxu1 %vm3088_vm9, %v8243_v20 }
 0x269   : > { %6945 = vmatmul.mubr.msk.f32.gmra.mrb[14].mxu1 %vm3088_vm9, %v8247_v21 }
 0x26a   : > { %6949 = vmatprep.mubr.msk.f32.mxu1 %vm3088_vm9, %v8096_v30  ;;  %v4699_v30 = vld [vmem:[#allocation2 + $0x90] sm:$0xff] }
 0x26d   : > { %6950 = vmatmul.mubr.msk.f32.vlgmr.msra.gmra.mrb[8].mxu1 %vm3088_vm9, %v8111_v54 }
 0x26e   : > { %6962 = vmatpush3.msra.mxu1 %v6242_v16  ;;  %6952 = vmatprep.mubr.msk.f32.mxu1 %vm3088_vm9, %v8119_v57 }
 0x26f   : > { %6975 = vmatprep.subr.mxu1 %v6251_v23 }
 0x271   : > { %6953 = vmatmul.mubr.msk.f32.gmra.mrb[10].mxu1 %vm3088_vm9, %v8124_v60 }
 0x272   : > { %6955 = vmatprep.mubr.msk.f32.mxu1 %vm3088_vm9, %v8129_v61 }
 0x275   : > { %6956 = vmatmul.mubr.msk.f32.gmra.mrb[12].mxu1 %vm3088_vm9, %v8133_v63 }
 0x276   : > { %6958 = vmatprep.mubr.msk.f32.mxu1 %vm3088_vm9, %v8137_v1 }
 0x279   : > { %6959 = vmatmul.mubr.msk.f32.gmra.mrb[14].mxu1 %vm3088_vm9, %v8141_v0 }
 0x27a   : > { %6963 = vmatprep.mubr.msk.f32.mxu1 %vm3088_vm9, %v8111_v54 }
 0x27d   : > { %6964 = vmatmul.mubr.msk.f32.vlgmr.msra.gmra.mrb[8].mxu1 %vm3088_vm9, %v8119_v57 }
 0x27e   : > { %6976 = vmatpush3.msra.mxu1 %v6251_v23  ;;  %6966 = vmatprep.mubr.msk.f32.mxu1 %vm3088_vm9, %v8124_v60 }
 0x27f   : > { %6989 = vmatprep.subr.mxu1 %v6270_v24 }
 0x281   : > { %6967 = vmatmul.mubr.msk.f32.gmra.mrb[10].mxu1 %vm3088_vm9, %v8129_v61 }
 0x282   : > { %6969 = vmatprep.mubr.msk.f32.mxu1 %vm3088_vm9, %v8133_v63 }
 0x285   : > { %6970 = vmatmul.mubr.msk.f32.gmra.mrb[12].mxu1 %vm3088_vm9, %v8137_v1 }
 0x286   : > { %6972 = vmatprep.mubr.msk.f32.mxu1 %vm3088_vm9, %v8141_v0 }
 0x289   : > { %6973 = vmatmul.mubr.msk.f32.gmra.mrb[14].mxu1 %vm3088_vm9, %v8215_v14 }
 0x28a   : > { %6977 = vmatprep.mubr.msk.f32.mxu1 %vm3088_vm9, %v8220_v15 }
 0x28d   : > { %6978 = vmatmul.mubr.msk.f32.vlgmr.msra.gmra.mrb[8].mxu1 %vm3088_vm9, %v8227_v17 }
 0x28e   : > { %6990 = vmatpush3.msra.mxu1 %v6270_v24  ;;  %6980 = vmatprep.mubr.msk.f32.mxu1 %vm3088_vm9, %v8231_v19 }
 0x28f   : > { %7003 = vmatprep.subr.mxu1 %v6269_v25 }
 0x291   : > { %6981 = vmatmul.mubr.msk.f32.gmra.mrb[10].mxu1 %vm3088_vm9, %v8235_v18 }
 0x292   : > { %6983 = vmatprep.mubr.msk.f32.mxu1 %vm3088_vm9, %v8239_v22 }
 0x295   : > { %6984 = vmatmul.mubr.msk.f32.gmra.mrb[12].mxu1 %vm3088_vm9, %v8243_v20 }
 0x296   : > { %6986 = vmatprep.mubr.msk.f32.mxu1 %vm3088_vm9, %v8247_v21 }
 0x299   : > { %6987 = vmatmul.mubr.msk.f32.gmra.mrb[14].mxu1 %vm3088_vm9, %v8306_v26 }
 0x29a   : > { %6991 = vmatprep.mubr.msk.f32.mxu1 %vm3088_vm9, %v8111_v54 }
 0x29d   : > { %6992 = vmatmul.mubr.msk.f32.vlgmr.msra.gmra.mrb[16].mxu1 %vm3088_vm9, %v8119_v57 }
 0x29e   : > { %7004 = vmatpush3.msra.mxu1 %v6269_v25  ;;  %6994 = vmatprep.mubr.msk.f32.mxu1 %vm3088_vm9, %v8124_v60 }
 0x29f   : > { %7017 = vmatprep.subr.mxu1 %v6287_v27 }
 0x2a1   : > { %6995 = vmatmul.mubr.msk.f32.gmra.mrb[18].mxu1 %vm3088_vm9, %v8129_v61 }
 0x2a2   : > { %6997 = vmatprep.mubr.msk.f32.mxu1 %vm3088_vm9, %v8133_v63 }
 0x2a5   : > { %6998 = vmatmul.mubr.msk.f32.gmra.mrb[20].mxu1 %vm3088_vm9, %v8137_v1 }
 0x2a6   : > { %7000 = vmatprep.mubr.msk.f32.mxu1 %vm3088_vm9, %v8141_v0 }
 0x2a9   : > { %7001 = vmatmul.mubr.msk.f32.gmra.mrb[22].mxu1 %vm3088_vm9, %v8215_v14 }
 0x2aa   : > { %7005 = vmatprep.mubr.msk.f32.mxu1 %vm3088_vm9, %v8146_v2 }
 0x2ad   : > { %7006 = vmatmul.mubr.msk.f32.vlgmr.msra.gmra.mrb[16].mxu1 %vm3088_vm9, %v8153_v4 }
 0x2ae   : > { %7018 = vmatpush3.msra.mxu1 %v6287_v27  ;;  %7008 = vmatprep.mubr.msk.f32.mxu1 %vm3088_vm9, %v8157_v5 }
 0x2af   : > { %7031 = vmatprep.subr.mxu1 %v6296_v28 }
 0x2b1   : > { %7009 = vmatmul.mubr.msk.f32.gmra.mrb[18].mxu1 %vm3088_vm9, %v8161_v6 }
 0x2b2   : > { %7011 = vmatprep.mubr.msk.f32.mxu1 %vm3088_vm9, %v8165_v7 }
 0x2b5   : > { %7012 = vmatmul.mubr.msk.f32.gmra.mrb[20].mxu1 %vm3088_vm9, %v8169_v8 }
 0x2b6   : > { %7014 = vmatprep.mubr.msk.f32.mxu1 %vm3088_vm9, %v8173_v9 }
 0x2b9   : > { %7015 = vmatmul.mubr.msk.f32.gmra.mrb[22].mxu1 %vm3088_vm9, %v8194_v11 }
 0x2ba   : > { %7019 = vmatprep.mubr.msk.f32.mxu1 %vm3088_vm9, %v8153_v4 }
 0x2bd   : > { %7020 = vmatmul.mubr.msk.f32.vlgmr.msra.gmra.mrb[16].mxu1 %vm3088_vm9, %v8157_v5 }
 0x2be   : > { %7032 = vmatpush3.msra.mxu1 %v6296_v28  ;;  %7022 = vmatprep.mubr.msk.f32.mxu1 %vm3088_vm9, %v8161_v6 }
 0x2bf   : > { %7045 = vmatprep.subr.mxu1 %v6315_v29 }
 0x2c1   : > { %7023 = vmatmul.mubr.msk.f32.gmra.mrb[18].mxu1 %vm3088_vm9, %v8165_v7 }
 0x2c2   : > { %7025 = vmatprep.mubr.msk.f32.mxu1 %vm3088_vm9, %v8169_v8 }
 0x2c5   : > { %7026 = vmatmul.mubr.msk.f32.gmra.mrb[20].mxu1 %vm3088_vm9, %v8173_v9 }
 0x2c6   : > { %7028 = vmatprep.mubr.msk.f32.mxu1 %vm3088_vm9, %v8194_v11 }
 0x2c9   : > { %7029 = vmatmul.mubr.msk.f32.gmra.mrb[22].mxu1 %vm3088_vm9, %v4699_v30 }
 0x2ca   : > { %7033 = vmatprep.mubr.msk.f32.mxu1 %vm3088_vm9, %v8119_v57 }
 0x2cd   : > { %7034 = vmatmul.mubr.msk.f32.vlgmr.msra.gmra.mrb[16].mxu1 %vm3088_vm9, %v8124_v60 }
 0x2ce   : > { %7046 = vmatpush3.msra.mxu1 %v6315_v29  ;;  %7036 = vmatprep.mubr.msk.f32.mxu1 %vm3088_vm9, %v8129_v61 }
 0x2cf   : > { %7059 = vmatprep.subr.mxu1 %v6314_v31 }
 0x2d1   : > { %7037 = vmatmul.mubr.msk.f32.gmra.mrb[18].mxu1 %vm3088_vm9, %v8133_v63 }
 0x2d2   : > { %7039 = vmatprep.mubr.msk.f32.mxu1 %vm3088_vm9, %v8137_v1 }
 0x2d5   : > { %7040 = vmatmul.mubr.msk.f32.gmra.mrb[20].mxu1 %vm3088_vm9, %v8141_v0 }
 0x2d6   : > { %7042 = vmatprep.mubr.msk.f32.mxu1 %vm3088_vm9, %v8215_v14 }
 0x2d9   : > { %7043 = vmatmul.mubr.msk.f32.gmra.mrb[22].mxu1 %vm3088_vm9, %v4846_v32 }
 0x2da   : > { %7047 = vmatprep.mubr.msk.f32.mxu1 %vm3088_vm9, %v8220_v15 }
 0x2dd   : > { %7048 = vmatmul.mubr.msk.f32.vlgmr.msra.gmra.mrb[24].mxu1 %vm3088_vm9, %v8227_v17 }
 0x2de   : > { %7060 = vmatpush3.msra.mxu1 %v6314_v31  ;;  %7050 = vmatprep.mubr.msk.f32.mxu1 %vm3088_vm9, %v8231_v19 }
 0x2df   : > { %7073 = vmatprep.subr.mxu1 %v6332_v33 }
 0x2e1   : > { %7051 = vmatmul.mubr.msk.f32.gmra.mrb[26].mxu1 %vm3088_vm9, %v8235_v18 }
 0x2e2   : > { %7053 = vmatprep.mubr.msk.f32.mxu1 %vm3088_vm9, %v8239_v22 }
 0x2e5   : > { %7054 = vmatmul.mubr.msk.f32.gmra.mrb[28].mxu1 %vm3088_vm9, %v8243_v20 }
 0x2e6   : > { %7056 = vmatprep.mubr.msk.f32.mxu1 %vm3088_vm9, %v8247_v21 }
 0x2e9   : > { %7057 = vmatmul.mubr.msk.f32.gmra.mrb[30].mxu1 %vm3088_vm9, %v8306_v26 }
 0x2ea   : > { %7061 = vmatprep.mubr.msk.f32.mxu1 %vm3088_vm9, %v8111_v54 }
 0x2ed   : > { %7062 = vmatmul.mubr.msk.f32.vlgmr.msra.gmra.mrb[24].mxu1 %vm3088_vm9, %v8119_v57 }
 0x2ee   : > { %7074 = vmatpush3.msra.mxu1 %v6332_v33  ;;  %7064 = vmatprep.mubr.msk.f32.mxu1 %vm3088_vm9, %v8124_v60 }
 0x2ef   : > { %7087 = vmatprep.subr.mxu1 %v6341_v34 }
 0x2f1   : > { %7065 = vmatmul.mubr.msk.f32.gmra.mrb[26].mxu1 %vm3088_vm9, %v8129_v61 }
 0x2f2   : > { %7067 = vmatprep.mubr.msk.f32.mxu1 %vm3088_vm9, %v8133_v63 }
 0x2f5   : > { %7068 = vmatmul.mubr.msk.f32.gmra.mrb[28].mxu1 %vm3088_vm9, %v8137_v1 }
 0x2f6   : > { %7070 = vmatprep.mubr.msk.f32.mxu1 %vm3088_vm9, %v8141_v0 }
 0x2f9   : > { %7071 = vmatmul.mubr.msk.f32.gmra.mrb[30].mxu1 %vm3088_vm9, %v8215_v14 }
 0x2fa   : > { %7075 = vmatprep.mubr.msk.f32.mxu1 %vm3088_vm9, %v8119_v57 }
 0x2fd   : > { %7076 = vmatmul.mubr.msk.f32.vlgmr.msra.gmra.mrb[24].mxu1 %vm3088_vm9, %v8124_v60 }
 0x2fe   : > { %7088 = vmatpush3.msra.mxu1 %v6341_v34  ;;  %7078 = vmatprep.mubr.msk.f32.mxu1 %vm3088_vm9, %v8129_v61 }
 0x301   : > { %7079 = vmatmul.mubr.msk.f32.gmra.mrb[26].mxu1 %vm3088_vm9, %v8133_v63 }
 0x302   : > { %7081 = vmatprep.mubr.msk.f32.mxu1 %vm3088_vm9, %v8137_v1 }
 0x305   : > { %7082 = vmatmul.mubr.msk.f32.gmra.mrb[28].mxu1 %vm3088_vm9, %v8141_v0 }
 0x306   : > { %7084 = vmatprep.mubr.msk.f32.mxu1 %vm3088_vm9, %v8215_v14 }
 0x309   : > { %7085 = vmatmul.mubr.msk.f32.gmra.mrb[30].mxu1 %vm3088_vm9, %v4846_v32 }
 0x30a   : > { %7089 = vmatprep.mubr.msk.f32.mxu1 %vm3088_vm9, %v8227_v17 }
 0x30d   : > { %7090 = vmatmul.mubr.msk.f32.vlgmr.msra.gmra.mrb[24].mxu1 %vm3088_vm9, %v8231_v19 }
 0x30e   : > { %7092 = vmatprep.mubr.msk.f32.mxu1 %vm3088_vm9, %v8235_v18 }
 0x311   : > { %7093 = vmatmul.mubr.msk.f32.gmra.mrb[26].mxu1 %vm3088_vm9, %v8239_v22 }
 0x312   : > { %7095 = vmatprep.mubr.msk.f32.mxu1 %vm3088_vm9, %v8243_v20 }
 0x315   : > { %7096 = vmatmul.mubr.msk.f32.gmra.mrb[28].mxu1 %vm3088_vm9, %v8247_v21 }
 0x316   : > { %7098 = vmatprep.mubr.msk.f32.mxu1 %vm3088_vm9, %v8306_v26 }
 0x319   : > { %7099 = vmatmul.mubr.msk.f32.gmra.mrb[30].mxu1 %vm3088_vm9, %v5494_v35 }
 0x320   : > { %v6923_v37 = vpop.f32.mrb[0].mxu1 }
 0x321   : > { %v3698_v38 = vadd.f32 %v6923_v37, %v8457_v36  ;;  %v3643_v39 = vpop.f32.mrb[1].mxu1 }
 0x322   : > { %v3697_v40 = vadd.f32 %v8457_v36, %v3643_v39 }
 0x323   : > { %v3706_v42 = vsel %vm692_vm2, %v3698_v38, 0.0  ;;  %v3728_v44 = vmul.f32 %v3698_v38, %v3698_v38  ;;  %3758 = vst.msk [vmem:[%s8462_s17 + $0x8] sm:$0xff] %vm692_vm2, %v3698_v38 }
 0x324   : > { %v3705_v41 = vsel %vm692_vm2, %v3697_v40, 0.0  ;;  %v3727_v43 = vmul.f32 %v3697_v40, %v3697_v40  ;;  %3757 = vst.msk [vmem:[%s8462_s17] sm:$0xff] %vm692_vm2, %v3697_v40  ;;  %v6926_v45 = vpop.f32.mrb[2].mxu1 }
 0x325   : > { %v3736_v46 = vsel %vm692_vm2, %v3728_v44, 0.0  ;;  %v3707_v47 = vadd.f32 %v3706_v42, %v3705_v41  ;;  %v3700_v48 = vadd.f32 %v6926_v45, %v8457_v36  ;;  %v3653_v49 = vpop.f32.mrb[3].mxu1 }
 0x326   : > { %v3735_v50 = vsel %vm692_vm2, %v3727_v43, 0.0  ;;  %v3699_v51 = vadd.f32 %v8457_v36, %v3653_v49 }
 0x327   : > { %v3737_v52 = vadd.f32 %v3736_v46, %v3735_v50  ;;  %3760 = vst.msk [vmem:[%s8462_s17 + $0x18] sm:$0xff] %vm692_vm2, %v3700_v48  ;;  %v3730_v53 = vmul.f32 %v3700_v48, %v3700_v48  ;;  %v3710_v60 = vsel %vm692_vm2, %v3700_v48, 0.0 }
 0x328   : > { %v3708_v54 = vsel %vm692_vm2, %v3699_v51, 0.0  ;;  %v3729_v55 = vmul.f32 %v3699_v51, %v3699_v51  ;;  %3759 = vst.msk [vmem:[%s8462_s17 + $0x10] sm:$0xff] %vm692_vm2, %v3699_v51  ;;  %v6929_v56 = vpop.f32.mrb[4].mxu1 }
 0x329   : > { %v3709_v57 = vadd.f32 %v3708_v54, %v3707_v47  ;;  %v3702_v58 = vadd.f32 %v6929_v56, %v8457_v36  ;;  %v3663_v59 = vpop.f32.mrb[5].mxu1  ;;  %v3740_v0 = vsel %vm692_vm2, %v3730_v53, 0.0 }
 0x32a   : > { %v3738_v61 = vsel %vm692_vm2, %v3729_v55, 0.0  ;;  %v3701_v63 = vadd.f32 %v8457_v36, %v3663_v59 }
 0x32b   : > { %v3739_v1 = vadd.f32 %v3738_v61, %v3737_v52  ;;  %3762 = vst.msk [vmem:[%s8462_s17 + $0x28] sm:$0xff] %vm692_vm2, %v3702_v58  ;;  %v3711_v62 = vadd.f32 %v3710_v60, %v3709_v57  ;;  %v3732_v2 = vmul.f32 %v3702_v58, %v3702_v58  ;;  %v3714_v10 = vsel %vm692_vm2, %v3702_v58, 0.0 }
 0x32c   : > { %v3712_v3 = vsel %vm692_vm2, %v3701_v63, 0.0  ;;  %v3731_v4 = vmul.f32 %v3701_v63, %v3701_v63  ;;  %3761 = vst.msk [vmem:[%s8462_s17 + $0x20] sm:$0xff] %vm692_vm2, %v3701_v63  ;;  %v6932_v5 = vpop.f32.mrb[6].mxu1 }
 0x32d   : > { %v3713_v6 = vadd.f32 %v3712_v3, %v3711_v62  ;;  %v3741_v7 = vadd.f32 %v3740_v0, %v3739_v1  ;;  %v3704_v8 = vadd.f32 %v6932_v5, %v8457_v36  ;;  %v3673_v9 = vpop.f32.mrb[7].mxu1  ;;  %v3744_v15 = vsel %vm692_vm2, %v3732_v2, 0.0 }
 0x32e   : > { %v3742_v11 = vsel %vm692_vm2, %v3731_v4, 0.0  ;;  %v3703_v12 = vadd.f32 %v8457_v36, %v3673_v9 }
 0x32f   : > { %v3743_v13 = vadd.f32 %v3742_v11, %v3741_v7  ;;  %3764 = vst.msk [vmem:[%s8462_s17 + $0x38] sm:$0xff] %vm692_vm2, %v3704_v8  ;;  %v3715_v14 = vadd.f32 %v3714_v10, %v3713_v6  ;;  %v3734_v16 = vmul.f32 %v3704_v8, %v3704_v8  ;;  %v3718_v20 = vsel %vm692_vm2, %v3704_v8, 0.0 }
 0x330   : > { %v3716_v17 = vsel %vm692_vm2, %v3703_v12, 0.0  ;;  %v3733_v19 = vmul.f32 %v3703_v12, %v3703_v12  ;;  %3763 = vst.msk [vmem:[%s8462_s17 + $0x30] sm:$0xff] %vm692_vm2, %v3703_v12 }
 0x331   : > { %v3717_v18 = vadd.f32 %v3716_v17, %v3715_v14  ;;  %v3745_v22 = vadd.f32 %v3744_v15, %v3743_v13  ;;  %v3748_v25 = vsel %vm692_vm2, %v3734_v16, 0.0 }
 0x332   : > { %v3746_v21 = vsel %vm692_vm2, %v3733_v19, 0.0 }
 0x333   : > { %v3719_v23 = vadd.f32 %v3718_v20, %v3717_v18  ;;  %v3747_v24 = vadd.f32 %v3746_v21, %v3745_v22 }
 0x335   : > { %v3749_v26 = vadd.f32 %v3748_v25, %v3747_v24  ;;  %v3720_v54 = vrot.slane %v3719_v23, 4 }
 0x337   : > { %v3750_v63 = vrot.slane %v3749_v26, 4  ;;  %v3721_v6 = vadd.f32 %v3720_v54, %v3719_v23 }
 0x339   : > { %v3751_v13 = vadd.f32 %v3750_v63, %v3749_v26  ;;  %v3722_v19 = vrot.slane %v3721_v6, 2 }
 0x33b   : > { %v3752_v21 = vrot.slane %v3751_v13, 2  ;;  %v3723_v25 = vadd.f32 %v3722_v19, %v3721_v6 }
 0x360   : > { %v6979_v27 = vpop.f32.mrb[8].mxu1 }
 0x361   : > { %v4345_v28 = vadd.f32 %v6979_v27, %v8457_v36  ;;  %v4290_v29 = vpop.f32.mrb[9].mxu1 }
 0x362   : > { %v4344_v30 = vadd.f32 %v8457_v36, %v4290_v29  ;;  %v3753_v29 = vadd.f32 %v3752_v21, %v3751_v13 }
 0x363   : > { %v4353_v31 = vsel %vm692_vm2, %v4345_v28, 0.0  ;;  %v4375_v32 = vmul.f32 %v4345_v28, %v4345_v28  ;;  %6262 = vst.msk [vmem:[%s8462_s17 + $0x48] sm:$0xff] %vm692_vm2, %v4345_v28 }
 0x364   : > { %v4352_v33 = vsel %vm692_vm2, %v4344_v30, 0.0  ;;  %v4374_v34 = vmul.f32 %v4344_v30, %v4344_v30  ;;  %6261 = vst.msk [vmem:[%s8462_s17 + $0x40] sm:$0xff] %vm692_vm2, %v4344_v30  ;;  %v6982_v35 = vpop.f32.mrb[10].mxu1 }
 0x365   : > { %v4383_v37 = vsel %vm692_vm2, %v4375_v32, 0.0  ;;  %v4354_v38 = vadd.f32 %v4353_v31, %v4352_v33  ;;  %v4347_v39 = vadd.f32 %v6982_v35, %v8457_v36  ;;  %v4300_v40 = vpop.f32.mrb[11].mxu1  ;;  %v3724_v31 = vrot.slane %v3723_v25, 1 }
 0x366   : > { %v4382_v42 = vsel %vm692_vm2, %v4374_v34, 0.0  ;;  %v4346_v44 = vadd.f32 %v8457_v36, %v4300_v40  ;;  %v3754_v34 = vrot.slane %v3753_v29, 1 }
 0x367   : > { %v4384_v41 = vadd.f32 %v4383_v37, %v4382_v42  ;;  %6264 = vst.msk [vmem:[%s8462_s17 + $0x58] sm:$0xff] %vm692_vm2, %v4347_v39  ;;  %v4377_v43 = vmul.f32 %v4347_v39, %v4347_v39  ;;  %v4357_v51 = vsel %vm692_vm2, %v4347_v39, 0.0 }
 0x368   : > { %v4355_v45 = vsel %vm692_vm2, %v4346_v44, 0.0  ;;  %v4376_v46 = vmul.f32 %v4346_v44, %v4346_v44  ;;  %6263 = vst.msk [vmem:[%s8462_s17 + $0x50] sm:$0xff] %vm692_vm2, %v4346_v44  ;;  %v6985_v47 = vpop.f32.mrb[12].mxu1  ;;  %v3755_v42 = vadd.f32 %v3754_v34, %v3753_v29 }
 0x369   : > { %v4356_v48 = vadd.f32 %v4355_v45, %v4354_v38  ;;  %v4349_v49 = vadd.f32 %v6985_v47, %v8457_v36  ;;  %v4310_v50 = vpop.f32.mrb[13].mxu1  ;;  %v4387_v57 = vsel %vm692_vm2, %v4377_v43, 0.0  ;;  %v3725_v38 = vadd.f32 %v3724_v31, %v3723_v25 }
 0x36a   : > { %v4385_v52 = vsel %vm692_vm2, %v4376_v46, 0.0  ;;  %v4348_v53 = vadd.f32 %v8457_v36, %v4310_v50 }
 0x36b   : > { %v4386_v55 = vadd.f32 %v4385_v52, %v4384_v41  ;;  %6266 = vst.msk [vmem:[%s8462_s17 + $0x68] sm:$0xff] %vm692_vm2, %v4349_v49  ;;  %v4358_v56 = vadd.f32 %v4357_v51, %v4356_v48  ;;  %v4379_v58 = vmul.f32 %v4349_v49, %v4349_v49  ;;  %v4361_v3 = vsel %vm692_vm2, %v4349_v49, 0.0 }
 0x36c   : > { %v4359_v59 = vsel %vm692_vm2, %v4348_v53, 0.0  ;;  %v4378_v60 = vmul.f32 %v4348_v53, %v4348_v53  ;;  %6265 = vst.msk [vmem:[%s8462_s17 + $0x60] sm:$0xff] %vm692_vm2, %v4348_v53  ;;  %v6988_v61 = vpop.f32.mrb[14].mxu1 }
 0x36d   : > { %v4360_v1 = vadd.f32 %v4359_v59, %v4358_v56  ;;  %v4388_v62 = vadd.f32 %v4387_v57, %v4386_v55  ;;  %v4351_v0 = vadd.f32 %v6988_v61, %v8457_v36  ;;  %v4320_v2 = vpop.f32.mrb[15].mxu1  ;;  %v4391_v9 = vsel %vm692_vm2, %v4379_v58, 0.0 }
 0x36e   : > { %v4389_v4 = vsel %vm692_vm2, %v4378_v60, 0.0  ;;  %v4350_v5 = vadd.f32 %v8457_v36, %v4320_v2 }
 0x36f   : > { %v4390_v7 = vadd.f32 %v4389_v4, %v4388_v62  ;;  %6268 = vst.msk [vmem:[%s8462_s17 + $0x78] sm:$0xff] %vm692_vm2, %v4351_v0  ;;  %v4362_v8 = vadd.f32 %v4361_v3, %v4360_v1  ;;  %v4381_v10 = vmul.f32 %v4351_v0, %v4351_v0  ;;  %v4365_v16 = vsel %vm692_vm2, %v4351_v0, 0.0 }
 0x370   : > { %v4363_v11 = vsel %vm692_vm2, %v4350_v5, 0.0  ;;  %v4380_v12 = vmul.f32 %v4350_v5, %v4350_v5  ;;  %6267 = vst.msk [vmem:[%s8462_s17 + $0x70] sm:$0xff] %vm692_vm2, %v4350_v5 }
 0x371   : > { %v4364_v14 = vadd.f32 %v4363_v11, %v4362_v8  ;;  %v4392_v15 = vadd.f32 %v4391_v9, %v4390_v7  ;;  %v4395_v20 = vsel %vm692_vm2, %v4381_v10, 0.0 }
 0x372   : > { %v4393_v17 = vsel %vm692_vm2, %v4380_v12, 0.0 }
 0x373   : > { %v4366_v18 = vadd.f32 %v4365_v16, %v4364_v14  ;;  %v4394_v22 = vadd.f32 %v4393_v17, %v4392_v15 }
 0x375   : > { %v4367_v23 = vrot.slane %v4366_v18, 4  ;;  %v4396_v24 = vadd.f32 %v4395_v20, %v4394_v22 }
 0x377   : > { %v4368_v27 = vadd.f32 %v4367_v23, %v4366_v18  ;;  %v4397_v28 = vrot.slane %v4396_v24, 4 }
 0x379   : > { %v4369_v30 = vrot.slane %v4368_v27, 2  ;;  %v4398_v26 = vadd.f32 %v4397_v28, %v4396_v24 }
 0x37b   : > { %v4370_v32 = vadd.f32 %v4369_v30, %v4368_v27  ;;  %v4399_v33 = vrot.slane %v4398_v26, 2 }
 0x37d   : > { %v4371_v35 = vrot.slane %v4370_v32, 1  ;;  %v4400_v37 = vadd.f32 %v4399_v33, %v4398_v26 }
 0x37f   : > { %v4372_v39 = vadd.f32 %v4371_v35, %v4370_v32  ;;  %v4401_v40 = vrot.slane %v4400_v37, 1 }
 0x381   : > { %v8541_v44 = vadd.f32 %v4372_v39, %v3725_v38  ;;  %v4402_v41 = vadd.f32 %v4401_v40, %v4400_v37 }
 0x383   : > { %v8543_v43 = vadd.f32 %v4402_v41, %v3755_v42 }
 0x3a0   : > { %v7035_v45 = vpop.f32.mrb[16].mxu1 }
 0x3a1   : > { %v4994_v46 = vadd.f32 %v7035_v45, %v8457_v36  ;;  %v4939_v47 = vpop.f32.mrb[17].mxu1 }
 0x3a2   : > { %v4993_v48 = vadd.f32 %v8457_v36, %v4939_v47 }
 0x3a3   : > { %v5002_v49 = vsel %vm692_vm2, %v4994_v46, 0.0  ;;  %v5024_v50 = vmul.f32 %v4994_v46, %v4994_v46  ;;  %6307 = vst.msk [vmem:[%s8462_s17 + $0x88] sm:$0xff] %vm692_vm2, %v4994_v46 }
 0x3a4   : > { %v5001_v51 = vsel %vm692_vm2, %v4993_v48, 0.0  ;;  %v5023_v52 = vmul.f32 %v4993_v48, %v4993_v48  ;;  %6306 = vst.msk [vmem:[%s8462_s17 + $0x80] sm:$0xff] %vm692_vm2, %v4993_v48  ;;  %v7038_v53 = vpop.f32.mrb[18].mxu1 }
 0x3a5   : > { %v5032_v54 = vsel %vm692_vm2, %v5024_v50, 0.0  ;;  %v5003_v55 = vadd.f32 %v5002_v49, %v5001_v51  ;;  %v4996_v56 = vadd.f32 %v7038_v53, %v8457_v36  ;;  %v4949_v57 = vpop.f32.mrb[19].mxu1 }
 0x3a6   : > { %v5031_v58 = vsel %vm692_vm2, %v5023_v52, 0.0  ;;  %v4995_v59 = vadd.f32 %v8457_v36, %v4949_v57 }
 0x3a7   : > { %v5033_v60 = vadd.f32 %v5032_v54, %v5031_v58  ;;  %6309 = vst.msk [vmem:[%s8462_s17 + $0x98] sm:$0xff] %vm692_vm2, %v4996_v56  ;;  %v5026_v61 = vmul.f32 %v4996_v56, %v4996_v56  ;;  %v5006_v4 = vsel %vm692_vm2, %v4996_v56, 0.0 }
 0x3a8   : > { %v5004_v63 = vsel %vm692_vm2, %v4995_v59, 0.0  ;;  %v5025_v1 = vmul.f32 %v4995_v59, %v4995_v59  ;;  %6308 = vst.msk [vmem:[%s8462_s17 + $0x90] sm:$0xff] %vm692_vm2, %v4995_v59  ;;  %v7041_v62 = vpop.f32.mrb[20].mxu1 }
 0x3a9   : > { %v5005_v0 = vadd.f32 %v5004_v63, %v5003_v55  ;;  %v4998_v2 = vadd.f32 %v7041_v62, %v8457_v36  ;;  %v4959_v3 = vpop.f32.mrb[21].mxu1  ;;  %v5036_v9 = vsel %vm692_vm2, %v5026_v61, 0.0 }
 0x3aa   : > { %v5034_v5 = vsel %vm692_vm2, %v5025_v1, 0.0  ;;  %v4997_v6 = vadd.f32 %v8457_v36, %v4959_v3 }
 0x3ab   : > { %v5035_v7 = vadd.f32 %v5034_v5, %v5033_v60  ;;  %6311 = vst.msk [vmem:[%s8462_s17 + $0xa8] sm:$0xff] %vm692_vm2, %v4998_v2  ;;  %v5007_v8 = vadd.f32 %v5006_v4, %v5005_v0  ;;  %v5028_v10 = vmul.f32 %v4998_v2, %v4998_v2  ;;  %v5010_v19 = vsel %vm692_vm2, %v4998_v2, 0.0 }
 0x3ac   : > { %v5008_v11 = vsel %vm692_vm2, %v4997_v6, 0.0  ;;  %v5027_v12 = vmul.f32 %v4997_v6, %v4997_v6  ;;  %6310 = vst.msk [vmem:[%s8462_s17 + $0xa0] sm:$0xff] %vm692_vm2, %v4997_v6  ;;  %v7044_v13 = vpop.f32.mrb[22].mxu1 }
 0x3ad   : > { %v5009_v14 = vadd.f32 %v5008_v11, %v5007_v8  ;;  %v5037_v15 = vadd.f32 %v5036_v9, %v5035_v7  ;;  %v5000_v16 = vadd.f32 %v7044_v13, %v8457_v36  ;;  %v4969_v17 = vpop.f32.mrb[23].mxu1  ;;  %v5040_v23 = vsel %vm692_vm2, %v5028_v10, 0.0 }
 0x3ae   : > { %v5038_v18 = vsel %vm692_vm2, %v5027_v12, 0.0  ;;  %v4999_v22 = vadd.f32 %v8457_v36, %v4969_v17 }
 0x3af   : > { %v5039_v20 = vadd.f32 %v5038_v18, %v5037_v15  ;;  %6313 = vst.msk [vmem:[%s8462_s17 + $0xb8] sm:$0xff] %vm692_vm2, %v5000_v16  ;;  %v5011_v21 = vadd.f32 %v5010_v19, %v5009_v14  ;;  %v5030_v24 = vmul.f32 %v5000_v16, %v5000_v16  ;;  %v5014_v30 = vsel %vm692_vm2, %v5000_v16, 0.0 }
 0x3b0   : > { %v5012_v25 = vsel %vm692_vm2, %v4999_v22, 0.0  ;;  %v5029_v27 = vmul.f32 %v4999_v22, %v4999_v22  ;;  %6312 = vst.msk [vmem:[%s8462_s17 + $0xb0] sm:$0xff] %vm692_vm2, %v4999_v22 }
 0x3b1   : > { %v5013_v28 = vadd.f32 %v5012_v25, %v5011_v21  ;;  %v5041_v29 = vadd.f32 %v5040_v23, %v5039_v20  ;;  %v5044_v33 = vsel %vm692_vm2, %v5030_v24, 0.0 }
 0x3b2   : > { %v5042_v26 = vsel %vm692_vm2, %v5029_v27, 0.0 }
 0x3b3   : > { %v5015_v31 = vadd.f32 %v5014_v30, %v5013_v28  ;;  %v5043_v32 = vadd.f32 %v5042_v26, %v5041_v29 }
 0x3b5   : > { %v5016_v34 = vrot.slane %v5015_v31, 4  ;;  %v5045_v35 = vadd.f32 %v5044_v33, %v5043_v32 }
 0x3b7   : > { %v5017_v37 = vadd.f32 %v5016_v34, %v5015_v31  ;;  %v5046_v38 = vrot.slane %v5045_v35, 4 }
 0x3b9   : > { %v5018_v39 = vrot.slane %v5017_v37, 2  ;;  %v5047_v40 = vadd.f32 %v5046_v38, %v5045_v35 }
 0x3bb   : > { %v5019_v42 = vadd.f32 %v5018_v39, %v5017_v37  ;;  %v5048_v41 = vrot.slane %v5047_v40, 2 }
 0x3bd   : > { %v5020_v45 = vrot.slane %v5019_v42, 1  ;;  %v5049_v46 = vadd.f32 %v5048_v41, %v5047_v40 }
 0x3bf   : > { %v5021_v47 = vadd.f32 %v5020_v45, %v5019_v42  ;;  %v5050_v48 = vrot.slane %v5049_v46, 1 }
 0x3c1   : > { %v8586_v49 = vadd.f32 %v5021_v47, %v8541_v44  ;;  %v5051_v50 = vadd.f32 %v5050_v48, %v5049_v46 }
 0x3c3   : > { %v8589_v51 = vadd.f32 %v5051_v50, %v8543_v43 }
 0x3e0   : > { %v7091_v52 = vpop.f32.mrb[24].mxu1 }
 0x3e1   : > { %v5642_v53 = vadd.f32 %v7091_v52, %v8457_v36  ;;  %v5587_v54 = vpop.f32.mrb[25].mxu1 }
 0x3e2   : > { %v5641_v55 = vadd.f32 %v8457_v36, %v5587_v54 }
 0x3e3   : > { %v5650_v56 = vsel %vm692_vm2, %v5642_v53, 0.0  ;;  %v5672_v57 = vmul.f32 %v5642_v53, %v5642_v53  ;;  %6352 = vst.msk [vmem:[%s8462_s17 + $0xc8] sm:$0xff] %vm692_vm2, %v5642_v53 }
 0x3e4   : > { %v5649_v44 = vsel %vm692_vm2, %v5641_v55, 0.0  ;;  %v5671_v58 = vmul.f32 %v5641_v55, %v5641_v55  ;;  %6351 = vst.msk [vmem:[%s8462_s17 + $0xc0] sm:$0xff] %vm692_vm2, %v5641_v55  ;;  %v7094_v43 = vpop.f32.mrb[26].mxu1 }
 0x3e5   : > { %v5680_v59 = vsel %vm692_vm2, %v5672_v57, 0.0  ;;  %v5651_v60 = vadd.f32 %v5650_v56, %v5649_v44  ;;  %v5644_v61 = vadd.f32 %v7094_v43, %v8457_v36  ;;  %v5597_v63 = vpop.f32.mrb[27].mxu1  ;;  %v5818_v44 = vld [vmem:[%s8462_s17 + $0x8] sm:$0xff] (%p7436_p5)  ;;  %v5824_v43 = vld [vmem:[%s8462_s17 + $0x20] sm:$0xff] (%p7436_p5) }
 0x3e6   : > { %v5679_v1 = vsel %vm692_vm2, %v5671_v58, 0.0  ;;  %v5643_v62 = vadd.f32 %v8457_v36, %v5597_v63  ;;  %v5820_v58 = vld [vmem:[%s8462_s17 + $0x10] sm:$0xff] (%p7436_p5)  ;;  %5819 = vst [vmem:[%s8647_s7 + $0x8] sm:$0xff] (%p7436_p5), %v5818_v44  ;;  %5825 = vst [vmem:[%s8647_s7 + $0x20] sm:$0xff] (%p7436_p5), %v5824_v43  ;;  %v5832_v63 = vld [vmem:[%s8462_s17 + $0x40] sm:$0xff] (%p7436_p5) }
 0x3e7   : > { %v5681_v0 = vadd.f32 %v5680_v59, %v5679_v1  ;;  %6354 = vst.msk [vmem:[%s8462_s17 + $0xd8] sm:$0xff] %vm692_vm2, %v5644_v61  ;;  %v5674_v2 = vmul.f32 %v5644_v61, %v5644_v61  ;;  %v5654_v9 = vsel %vm692_vm2, %v5644_v61, 0.0  ;;  %v5826_v59 = vld [vmem:[%s8462_s17 + $0x28] sm:$0xff] (%p7436_p5)  ;;  %5821 = vst [vmem:[%s8647_s7 + $0x10] sm:$0xff] (%p7436_p5), %v5820_v58  ;;  %v5830_v61 = vld [vmem:[%s8462_s17 + $0x38] sm:$0xff] (%p7436_p5) }
 0x3e8   : > { %v5652_v3 = vsel %vm692_vm2, %v5643_v62, 0.0  ;;  %v5673_v4 = vmul.f32 %v5643_v62, %v5643_v62  ;;  %6353 = vst.msk [vmem:[%s8462_s17 + $0xd0] sm:$0xff] %vm692_vm2, %v5643_v62  ;;  %v7097_v5 = vpop.f32.mrb[28].mxu1  ;;  %5827 = vst [vmem:[%s8647_s7 + $0x28] sm:$0xff] (%p7436_p5), %v5826_v59  ;;  %v5834_v1 = vld [vmem:[%s8462_s17 + $0x48] sm:$0xff] (%p7436_p5)  ;;  %v5836_v62 = vld [vmem:[%s8462_s17 + $0x50] sm:$0xff] (%p7436_p5) }
 0x3e9   : > { %v5653_v6 = vadd.f32 %v5652_v3, %v5651_v60  ;;  %v5646_v7 = vadd.f32 %v7097_v5, %v8457_v36  ;;  %v5607_v8 = vpop.f32.mrb[29].mxu1  ;;  %v5684_v14 = vsel %vm692_vm2, %v5674_v2, 0.0  ;;  %v5828_v60 = vld [vmem:[%s8462_s17 + $0x30] sm:$0xff] (%p7436_p5)  ;;  %5831 = vst [vmem:[%s8647_s7 + $0x38] sm:$0xff] (%p7436_p5), %v5830_v61  ;;  %5833 = vst [vmem:[%s8647_s7 + $0x80] sm:$0xff] (%p7436_p5), %v5832_v63  ;;  %v5840_v2 = vld [vmem:[%s8462_s17 + $0x60] sm:$0xff] (%p7436_p5) }
 0x3ea   : > { %v5682_v10 = vsel %vm692_vm2, %v5673_v4, 0.0  ;;  %v5645_v11 = vadd.f32 %v8457_v36, %v5607_v8  ;;  %5829 = vst [vmem:[%s8647_s7 + $0x30] sm:$0xff] (%p7436_p5), %v5828_v60  ;;  %5835 = vst [vmem:[%s8647_s7 + $0x88] sm:$0xff] (%p7436_p5), %v5834_v1  ;;  %v5842_v3 = vld [vmem:[%s8462_s17 + $0x68] sm:$0xff] (%p7436_p5)  ;;  %v5844_v4 = vld [vmem:[%s8462_s17 + $0x70] sm:$0xff] (%p7436_p5) }
 0x3eb   : > { %v5683_v12 = vadd.f32 %v5682_v10, %v5681_v0  ;;  %6356 = vst.msk [vmem:[%s8462_s17 + $0xe8] sm:$0xff] %vm692_vm2, %v5646_v7  ;;  %v5655_v13 = vadd.f32 %v5654_v9, %v5653_v6  ;;  %v5676_v15 = vmul.f32 %v5646_v7, %v5646_v7  ;;  %v5658_v23 = vsel %vm692_vm2, %v5646_v7, 0.0  ;;  %v5838_v0 = vld [vmem:[%s8462_s17 + $0x58] sm:$0xff] (%p7436_p5)  ;;  %5837 = vst [vmem:[%s8647_s7 + $0x90] sm:$0xff] (%p7436_p5), %v5836_v62  ;;  %v5848_v6 = vld [vmem:[%s8462_s17 + $0x80] sm:$0xff] (%p7436_p5) }
 0x3ec   : > { %v5656_v16 = vsel %vm692_vm2, %v5645_v11, 0.0  ;;  %v5675_v17 = vmul.f32 %v5645_v11, %v5645_v11  ;;  %6355 = vst.msk [vmem:[%s8462_s17 + $0xe0] sm:$0xff] %vm692_vm2, %v5645_v11  ;;  %v7100_v19 = vpop.f32.mrb[30].mxu1  ;;  %5839 = vst [vmem:[%s8647_s7 + $0x98] sm:$0xff] (%p7436_p5), %v5838_v0  ;;  %v5846_v5 = vld [vmem:[%s8462_s17 + $0x78] sm:$0xff] (%p7436_p5)  ;;  %v5850_v7 = vld [vmem:[%s8462_s17 + $0x88] sm:$0xff] (%p7436_p5) }
 0x3ed   : > { %v5657_v18 = vadd.f32 %v5656_v16, %v5655_v13  ;;  %v5685_v22 = vadd.f32 %v5684_v14, %v5683_v12  ;;  %v5648_v20 = vadd.f32 %v7100_v19, %v8457_v36  ;;  %v5617_v21 = vpop.f32.mrb[31].mxu1  ;;  %v5688_v29 = vsel %vm692_vm2, %v5676_v15, 0.0  ;;  %5841 = vst [vmem:[%s8647_s7 + $0xa0] sm:$0xff] (%p7436_p5), %v5840_v2  ;;  %5843 = vst [vmem:[%s8647_s7 + $0xa8] sm:$0xff] (%p7436_p5), %v5842_v3  ;;  %v5852_v8 = vld [vmem:[%s8462_s17 + $0x90] sm:$0xff] (%p7436_p5)  ;;  %v5854_v9 = vld [vmem:[%s8462_s17 + $0x98] sm:$0xff] (%p7436_p5) }
 0x3ee   : > { %v5686_v24 = vsel %vm692_vm2, %v5675_v17, 0.0  ;;  %v5647_v25 = vadd.f32 %v8457_v36, %v5617_v21  ;;  %5845 = vst [vmem:[%s8647_s7 + $0xb0] sm:$0xff] (%p7436_p5), %v5844_v4  ;;  %5847 = vst [vmem:[%s8647_s7 + $0xb8] sm:$0xff] (%p7436_p5), %v5846_v5  ;;  %v5856_v10 = vld [vmem:[%s8462_s17 + $0xa0] sm:$0xff] (%p7436_p5)  ;;  %v5858_v11 = vld [vmem:[%s8462_s17 + $0xa8] sm:$0xff] (%p7436_p5) }
 0x3ef   : > { %v5687_v27 = vadd.f32 %v5686_v24, %v5685_v22  ;;  %6358 = vst.msk [vmem:[%s8462_s17 + $0xf8] sm:$0xff] %vm692_vm2, %v5648_v20  ;;  %v5659_v28 = vadd.f32 %v5658_v23, %v5657_v18  ;;  %v5678_v30 = vmul.f32 %v5648_v20, %v5648_v20  ;;  %v5662_v34 = vsel %vm692_vm2, %v5648_v20, 0.0  ;;  %5849 = vst [vmem:[%s8647_s7 + $0x100] sm:$0xff] (%p7436_p5), %v5848_v6  ;;  %v5860_v12 = vld [vmem:[%s8462_s17 + $0xb0] sm:$0xff] (%p7436_p5)  ;;  %v5862_v13 = vld [vmem:[%s8462_s17 + $0xb8] sm:$0xff] (%p7436_p5) }
 0x3f0   : > { %v5660_v26 = vsel %vm692_vm2, %v5647_v25, 0.0  ;;  %v5677_v31 = vmul.f32 %v5647_v25, %v5647_v25  ;;  %6357 = vst.msk [vmem:[%s8462_s17 + $0xf0] sm:$0xff] %vm692_vm2, %v5647_v25  ;;  %5851 = vst [vmem:[%s8647_s7 + $0x108] sm:$0xff] (%p7436_p5), %v5850_v7  ;;  %v5864_v14 = vld [vmem:[%s8462_s17 + $0xc0] sm:$0xff] (%p7436_p5)  ;;  %v5866_v15 = vld [vmem:[%s8462_s17 + $0xc8] sm:$0xff] (%p7436_p5) }
 0x3f1   : > { %v5661_v32 = vadd.f32 %v5660_v26, %v5659_v28  ;;  %v5689_v33 = vadd.f32 %v5688_v29, %v5687_v27  ;;  %v5692_v38 = vsel %vm692_vm2, %v5678_v30, 0.0  ;;  %5853 = vst [vmem:[%s8647_s7 + $0x110] sm:$0xff] (%p7436_p5), %v5852_v8  ;;  %5855 = vst [vmem:[%s8647_s7 + $0x118] sm:$0xff] (%p7436_p5), %v5854_v9  ;;  %v5868_v16 = vld [vmem:[%s8462_s17 + $0xd0] sm:$0xff] (%p7436_p5)  ;;  %v5870_v17 = vld [vmem:[%s8462_s17 + $0xd8] sm:$0xff] (%p7436_p5) }
 0x3f2   : > { %v5690_v36 = vsel %vm692_vm2, %v5677_v31, 0.0  ;;  %5857 = vst [vmem:[%s8647_s7 + $0x120] sm:$0xff] (%p7436_p5), %v5856_v10  ;;  %5859 = vst [vmem:[%s8647_s7 + $0x128] sm:$0xff] (%p7436_p5), %v5858_v11  ;;  %v5874_v18 = vld [vmem:[%s8462_s17 + $0xe8] sm:$0xff] (%p7436_p5) }
 0x3f3   : > { %v5663_v35 = vadd.f32 %v5662_v34, %v5661_v32  ;;  %v5691_v37 = vadd.f32 %v5690_v36, %v5689_v33  ;;  %5861 = vst [vmem:[%s8647_s7 + $0x130] sm:$0xff] (%p7436_p5), %v5860_v12  ;;  %5863 = vst [vmem:[%s8647_s7 + $0x138] sm:$0xff] (%p7436_p5), %v5862_v13  ;;  %v5872_v19 = vld [vmem:[%s8462_s17 + $0xe0] sm:$0xff] (%p7436_p5) }
 0x3f4   : > { %5865 = vst [vmem:[%s8647_s7 + $0x180] sm:$0xff] (%p7436_p5), %v5864_v14  ;;  %5867 = vst [vmem:[%s8647_s7 + $0x188] sm:$0xff] (%p7436_p5), %v5866_v15 }
 0x3f5   : > { %v5664_v39 = vrot.slane %v5663_v35, 4  ;;  %v5693_v40 = vadd.f32 %v5692_v38, %v5691_v37  ;;  %5869 = vst [vmem:[%s8647_s7 + $0x190] sm:$0xff] (%p7436_p5), %v5868_v16  ;;  %5871 = vst [vmem:[%s8647_s7 + $0x198] sm:$0xff] (%p7436_p5), %v5870_v17 }
 0x3f6   : > { %5873 = vst [vmem:[%s8647_s7 + $0x1a0] sm:$0xff] (%p7436_p5), %v5872_v19  ;;  %5875 = vst [vmem:[%s8647_s7 + $0x1a8] sm:$0xff] (%p7436_p5), %v5874_v18  ;;  %v5878_v20 = vld [vmem:[%s8462_s17 + $0xf8] sm:$0xff] (%p7436_p5) }
 0x3f7   : > { %v5665_v42 = vadd.f32 %v5664_v39, %v5663_v35  ;;  %v5694_v41 = vrot.slane %v5693_v40, 4  ;;  %v5876_v22 = vld [vmem:[%s8462_s17 + $0xf0] sm:$0xff] (%p7436_p5)  ;;  %5879 = vst [vmem:[%s8647_s7 + $0x1b8] sm:$0xff] (%p7436_p5), %v5878_v20 }
 0x3f8   : > { %5877 = vst [vmem:[%s8647_s7 + $0x1b0] sm:$0xff] (%p7436_p5), %v5876_v22 }
 0x3f9   : > { %v5666_v45 = vrot.slane %v5665_v42, 2  ;;  %v5695_v46 = vadd.f32 %v5694_v41, %v5693_v40 }
 0x3fb   : > { %v5667_v47 = vadd.f32 %v5666_v45, %v5665_v42  ;;  %v5696_v48 = vrot.slane %v5695_v46, 2 }
 0x3fd   : > { %v5668_v50 = vrot.slane %v5667_v47, 1  ;;  %v5697_v52 = vadd.f32 %v5696_v48, %v5695_v46 }
 0x3ff   : > { %v5669_v53 = vadd.f32 %v5668_v50, %v5667_v47  ;;  %v5698_v54 = vrot.slane %v5697_v52, 1  ;;  %5723 = sbr.rel (!%p7436_p5) target bundleno = 1030 (0x406), region = 82 }
 0x401   : > { %v5670_v55 = vadd.f32 %v5669_v53, %v8586_v49  ;;  %v5699_v56 = vadd.f32 %v5698_v54, %v5697_v52  ;;  %v5816_v49 = vld [vmem:[%s8462_s17] sm:$0xff] (%p7436_p5) }
 0x402   : > { %5817 = vst [vmem:[%s8647_s7] sm:$0xff] (%p7436_p5), %v5816_v49 }
 0x403   : > { %v5700_v57 = vadd.f32 %v5699_v56, %v8589_v51  ;;  %5711 = vst.msk [vmem:[%s575_s23] sm:$0x1] %vm5710_vm1, %v5670_v55  ;;  %v5822_v51 = vld [vmem:[%s8462_s17 + $0x18] sm:$0xff] (%p7436_p5) }
 0x404   : > { %5823 = vst [vmem:[%s8647_s7 + $0x18] sm:$0xff] (%p7436_p5), %v5822_v51 }
 0x405   : > { %5712 = vst.msk [vmem:[%s575_s23 + $0x1] sm:$0x1] %vm5710_vm1, %v5700_v57 }
 0x406 PF: > { %p14_p11 = scmp.ge.s32.totalorder %s7424_s25, 4   ;;  %s8728_s21 = smov %s7363_s22 }
 0x407   : > { %s8729_s22 = smov %s7434_s28  ;;  %s8730_s23 = smov %s7424_s25 }
 0x408   :  { %16 = sbr.rel (!%p14_p11) target bundleno = 2 (0x2), region = 201 }

// kernel: innermost_block_forward.1
= control target key start
LH: loop header
LB: loop body
LE: loop exit
PB: predicated region body
PF: predicated region fallthrough
CT: control target
= control target key end

     0   :  { %s7405_s21 = smov 0   ;;  %s7407_s22 = smov 0   ;;  %s8720_s0 = inlined_call_operand.vmem [shape: f32[4,2,9,9,4], index: 0, kind: input, shape index: {}]   ;;  %s8721_s1 = inlined_call_operand.vmem [shape: f32[4,4,4,8], index: 1, kind: input, shape index: {}]   ;;  %s8722_s2 = inlined_call_operand.vmem [shape: f32[1,8], index: 2, kind: input, shape index: {}]   ;;  %s8723_s3 = inlined_call_operand.vmem [shape: f32[4,4,8,4], index: 3, kind: input, shape index: {}]   ;;  %s8724_s4 = inlined_call_operand.vmem [shape: f32[1,4], index: 4, kind: input, shape index: {}]   ;;  %s8725_s5 = inlined_call_operand.vmem [shape: f32[4,2,8,8,4], index: 5, kind: output, shape index: {0}]   ;;  %s8726_s6 = inlined_call_operand.vmem [shape: f32[2,2,4], index: 6, kind: output, shape index: {1}]  }
   0x1   :  { %s7409_s23 = smov 0  }
   0x2 LB: > { %s7421_s24 = sadd.s32 4294967295, %s7367_s23   ;;  %s7424_s25 = sadd.s32 1, %s7367_s23   ;;  %s7367_s23 = sphi %s7409_s23, %s8730_s23   ;;  %s7363_s22 = sphi %s7407_s22, %s8729_s22   ;;  %s7359_s21 = sphi %s7405_s21, %s8728_s21  }
   0x3   : > { %s21_s26 = ssub.s32 %s7367_s23, %s7424_s25  ;;  %s24_s27 = sadd.s32 1, %s7363_s22 }
   0x4   : > { %p22_p0 = scmp.eq.s32.totalorder %s21_s26, 0  ;;  %p31_p1 = scmp.ne.s32.totalorder %s7363_s22, %s7359_s21 }
   0x5   : > { %p32_p2 = scmp.eq.s32.totalorder %s7367_s23, 0  ;;  %p145_p3 = scmp.eq.s32.totalorder %s7421_s24, 1 }
   0x6   : > { %s7434_s28 = scalar_select %p22_p0, %s7363_s22, %s24_s27  }
   0x7   : > { %p33_p4 = por %p32_p2, %p31_p1  ;;  %p7436_p5 = por %p145_p3, %p31_p1 }
   0x8   : > { %p5969_p6 = scmp.ge.s32.totalorder %s7367_s23, 2 }
   0xa   : > { %205 = sbr.rel (%p5969_p6) target bundleno = 58 (0x3a), region = 32 }
  0x11   : > { %208 = sbr.rel (!%p33_p4) target bundleno = 58 (0x3a), region = 36  ;;  %s210_s30 = sand.u32 (%p33_p4), 1, %s7363_s22  }
  0x12   : > { %s7318_s7 = smul.u32 (%p33_p4), 144, %s7367_s23 }
  0x13   : > { %s7317_s8 = smul.u32 (%p33_p4), 576, %s210_s30 }
  0x14   : > { %s7446_s11 = scalar_lea.vmem (%p33_p4), %s8720_s0, %s7318_s7 }
  0x15   : > { %v385_v0 = vld [vmem:[%s7446_s11] sm:$0xff] (%p33_p4)  ;;  %v387_v1 = vld [vmem:[%s7446_s11 + $0x8] sm:$0xff] (%p33_p4)  ;;  %v389_v2 = vld [vmem:[%s7446_s11 + $0x10] sm:$0xff] (%p33_p4)  ;;  %s7451_s12 = scalar_lea.vmem (%p33_p4), [#allocation3], %s7317_s8 }
  0x16   : > { %386 = vst [vmem:[%s7451_s12] sm:$0xff] (%p33_p4), %v385_v0  ;;  %388 = vst [vmem:[%s7451_s12 + $0x8] sm:$0xff] (%p33_p4), %v387_v1  ;;  %v391_v3 = vld [vmem:[%s7446_s11 + $0x18] sm:$0xff] (%p33_p4)  ;;  %v393_v4 = vld [vmem:[%s7446_s11 + $0x20] sm:$0xff] (%p33_p4) }
  0x17   : > { %390 = vst [vmem:[%s7451_s12 + $0x10] sm:$0xff] (%p33_p4), %v389_v2  ;;  %v395_v5 = vld [vmem:[%s7446_s11 + $0x28] sm:$0xff] (%p33_p4)  ;;  %392 = vst [vmem:[%s7451_s12 + $0x18] sm:$0xff] (%p33_p4), %v391_v3  ;;  %v397_v6 = vld [vmem:[%s7446_s11 + $0x30] sm:$0xff] (%p33_p4) }
  0x18   : > { %394 = vst [vmem:[%s7451_s12 + $0x20] sm:$0xff] %v393_v4  ;;  %396 = vst [vmem:[%s7451_s12 + $0x28] sm:$0xff] %v395_v5  ;;  %v399_v7 = vld [vmem:[%s7446_s11 + $0x38] sm:$0xff]  ;;  %v401_v8 = vld [vmem:[%s7446_s11 + $0x40] sm:$0xff] }
  0x19   : > { %398 = vst [vmem:[%s7451_s12 + $0x30] sm:$0xff] %v397_v6  ;;  %400 = vst [vmem:[%s7451_s12 + $0x38] sm:$0xff] %v399_v7  ;;  %v403_v9 = vld [vmem:[%s7446_s11 + $0x48] sm:$0xff]  ;;  %v405_v10 = vld [vmem:[%s7446_s11 + $0x50] sm:$0xff] }
  0x1a   : > { %402 = vst [vmem:[%s7451_s12 + $0x40] sm:$0xff] %v401_v8  ;;  %v407_v11 = vld [vmem:[%s7446_s11 + $0x58] sm:$0xff]  ;;  %404 = vst [vmem:[%s7451_s12 + $0x48] sm:$0xff] %v403_v9  ;;  %v409_v12 = vld [vmem:[%s7446_s11 + $0x60] sm:$0xff] }
  0x1b   : > { %406 = vst [vmem:[%s7451_s12 + $0x50] sm:$0xff] %v405_v10  ;;  %408 = vst [vmem:[%s7451_s12 + $0x58] sm:$0xff] %v407_v11  ;;  %v411_v13 = vld [vmem:[%s7446_s11 + $0x68] sm:$0xff]  ;;  %v413_v14 = vld [vmem:[%s7446_s11 + $0x70] sm:$0xff] }
  0x1c   : > { %410 = vst [vmem:[%s7451_s12 + $0x60] sm:$0xff] %v409_v12  ;;  %412 = vst [vmem:[%s7451_s12 + $0x68] sm:$0xff] %v411_v13  ;;  %v415_v15 = vld [vmem:[%s7446_s11 + $0x78] sm:$0xff]  ;;  %v417_v16 = vld [vmem:[%s7446_s11 + $0x80] sm:$0xff] }
  0x1d   : > { %414 = vst [vmem:[%s7451_s12 + $0x70] sm:$0xff] %v413_v14  ;;  %v419_v17 = vld [vmem:[%s7446_s11 + $0x88] sm:$0xff]  ;;  %416 = vst [vmem:[%s7451_s12 + $0x78] sm:$0xff] %v415_v15  ;;  %v421_v18 = vld [vmem:[%s7446_s11 + $0x120] sm:$0xff] }
  0x1e   : > { %418 = vst [vmem:[%s7451_s12 + $0x80] sm:$0xff] %v417_v16  ;;  %420 = vst [vmem:[%s7451_s12 + $0x88] sm:$0xff] %v419_v17  ;;  %v423_v19 = vld [vmem:[%s7446_s11 + $0x128] sm:$0xff]  ;;  %v425_v20 = vld [vmem:[%s7446_s11 + $0x130] sm:$0xff] }
  0x1f   : > { %422 = vst [vmem:[%s7451_s12 + $0x90] sm:$0xff] %v421_v18  ;;  %424 = vst [vmem:[%s7451_s12 + $0x98] sm:$0xff] %v423_v19  ;;  %v427_v21 = vld [vmem:[%s7446_s11 + $0x138] sm:$0xff]  ;;  %v429_v22 = vld [vmem:[%s7446_s11 + $0x140] sm:$0xff] }
  0x20   : > { %426 = vst [vmem:[%s7451_s12 + $0xa0] sm:$0xff] %v425_v20  ;;  %v431_v23 = vld [vmem:[%s7446_s11 + $0x148] sm:$0xff]  ;;  %428 = vst [vmem:[%s7451_s12 + $0xa8] sm:$0xff] %v427_v21  ;;  %v433_v24 = vld [vmem:[%s7446_s11 + $0x150] sm:$0xff] }
  0x21   : > { %430 = vst [vmem:[%s7451_s12 + $0xb0] sm:$0xff] %v429_v22  ;;  %432 = vst [vmem:[%s7451_s12 + $0xb8] sm:$0xff] %v431_v23  ;;  %v435_v25 = vld [vmem:[%s7446_s11 + $0x158] sm:$0xff]  ;;  %v437_v26 = vld [vmem:[%s7446_s11 + $0x160] sm:$0xff] }
  0x22   : > { %434 = vst [vmem:[%s7451_s12 + $0xc0] sm:$0xff] %v433_v24  ;;  %436 = vst [vmem:[%s7451_s12 + $0xc8] sm:$0xff] %v435_v25  ;;  %v439_v27 = vld [vmem:[%s7446_s11 + $0x168] sm:$0xff]  ;;  %v441_v28 = vld [vmem:[%s7446_s11 + $0x170] sm:$0xff] }
  0x23   : > { %438 = vst [vmem:[%s7451_s12 + $0xd0] sm:$0xff] %v437_v26  ;;  %v443_v29 = vld [vmem:[%s7446_s11 + $0x178] sm:$0xff]  ;;  %440 = vst [vmem:[%s7451_s12 + $0xd8] sm:$0xff] %v439_v27  ;;  %v445_v30 = vld [vmem:[%s7446_s11 + $0x180] sm:$0xff] }
  0x24   : > { %442 = vst [vmem:[%s7451_s12 + $0xe0] sm:$0xff] %v441_v28  ;;  %444 = vst [vmem:[%s7451_s12 + $0xe8] sm:$0xff] %v443_v29  ;;  %v447_v31 = vld [vmem:[%s7446_s11 + $0x188] sm:$0xff]  ;;  %v449_v32 = vld [vmem:[%s7446_s11 + $0x190] sm:$0xff] }
  0x25   : > { %446 = vst [vmem:[%s7451_s12 + $0xf0] sm:$0xff] %v445_v30  ;;  %448 = vst [vmem:[%s7451_s12 + $0xf8] sm:$0xff] %v447_v31  ;;  %v451_v33 = vld [vmem:[%s7446_s11 + $0x198] sm:$0xff]  ;;  %v453_v34 = vld [vmem:[%s7446_s11 + $0x1a0] sm:$0xff] }
  0x26   : > { %450 = vst [vmem:[%s7451_s12 + $0x100] sm:$0xff] %v449_v32  ;;  %v455_v35 = vld [vmem:[%s7446_s11 + $0x1a8] sm:$0xff]  ;;  %452 = vst [vmem:[%s7451_s12 + $0x108] sm:$0xff] %v451_v33  ;;  %v457_v36 = vld [vmem:[%s7446_s11 + $0x240] sm:$0xff] }
  0x27   : > { %454 = vst [vmem:[%s7451_s12 + $0x110] sm:$0xff] %v453_v34  ;;  %456 = vst [vmem:[%s7451_s12 + $0x118] sm:$0xff] %v455_v35  ;;  %v459_v37 = vld [vmem:[%s7446_s11 + $0x248] sm:$0xff]  ;;  %v461_v38 = vld [vmem:[%s7446_s11 + $0x250] sm:$0xff] }
  0x28   : > { %458 = vst [vmem:[%s7451_s12 + $0x120] sm:$0xff] %v457_v36  ;;  %460 = vst [vmem:[%s7451_s12 + $0x128] sm:$0xff] %v459_v37  ;;  %v463_v39 = vld [vmem:[%s7446_s11 + $0x258] sm:$0xff]  ;;  %v465_v40 = vld [vmem:[%s7446_s11 + $0x260] sm:$0xff] }
  0x29   : > { %462 = vst [vmem:[%s7451_s12 + $0x130] sm:$0xff] %v461_v38  ;;  %v467_v41 = vld [vmem:[%s7446_s11 + $0x268] sm:$0xff]  ;;  %464 = vst [vmem:[%s7451_s12 + $0x138] sm:$0xff] %v463_v39  ;;  %v469_v42 = vld [vmem:[%s7446_s11 + $0x270] sm:$0xff] }
  0x2a   : > { %466 = vst [vmem:[%s7451_s12 + $0x140] sm:$0xff] %v465_v40  ;;  %468 = vst [vmem:[%s7451_s12 + $0x148] sm:$0xff] %v467_v41  ;;  %v471_v43 = vld [vmem:[%s7446_s11 + $0x278] sm:$0xff]  ;;  %v473_v44 = vld [vmem:[%s7446_s11 + $0x280] sm:$0xff] }
  0x2b   : > { %470 = vst [vmem:[%s7451_s12 + $0x150] sm:$0xff] %v469_v42  ;;  %472 = vst [vmem:[%s7451_s12 + $0x158] sm:$0xff] %v471_v43  ;;  %v475_v45 = vld [vmem:[%s7446_s11 + $0x288] sm:$0xff]  ;;  %v477_v46 = vld [vmem:[%s7446_s11 + $0x290] sm:$0xff] }
  0x2c   : > { %474 = vst [vmem:[%s7451_s12 + $0x160] sm:$0xff] %v473_v44  ;;  %v479_v47 = vld [vmem:[%s7446_s11 + $0x298] sm:$0xff]  ;;  %476 = vst [vmem:[%s7451_s12 + $0x168] sm:$0xff] %v475_v45  ;;  %v481_v48 = vld [vmem:[%s7446_s11 + $0x2a0] sm:$0xff] }
  0x2d   : > { %478 = vst [vmem:[%s7451_s12 + $0x170] sm:$0xff] %v477_v46  ;;  %480 = vst [vmem:[%s7451_s12 + $0x178] sm:$0xff] %v479_v47  ;;  %v483_v49 = vld [vmem:[%s7446_s11 + $0x2a8] sm:$0xff]  ;;  %v485_v50 = vld [vmem:[%s7446_s11 + $0x2b0] sm:$0xff] }
  0x2e   : > { %482 = vst [vmem:[%s7451_s12 + $0x180] sm:$0xff] %v481_v48  ;;  %484 = vst [vmem:[%s7451_s12 + $0x188] sm:$0xff] %v483_v49  ;;  %v487_v51 = vld [vmem:[%s7446_s11 + $0x2b8] sm:$0xff]  ;;  %v489_v52 = vld [vmem:[%s7446_s11 + $0x2c0] sm:$0xff] }
  0x2f   : > { %486 = vst [vmem:[%s7451_s12 + $0x190] sm:$0xff] %v485_v50  ;;  %v491_v53 = vld [vmem:[%s7446_s11 + $0x2c8] sm:$0xff]  ;;  %488 = vst [vmem:[%s7451_s12 + $0x198] sm:$0xff] %v487_v51  ;;  %v493_v54 = vld [vmem:[%s7446_s11 + $0x360] sm:$0xff] }
  0x30   : > { %490 = vst [vmem:[%s7451_s12 + $0x1a0] sm:$0xff] %v489_v52  ;;  %492 = vst [vmem:[%s7451_s12 + $0x1a8] sm:$0xff] %v491_v53  ;;  %v495_v55 = vld [vmem:[%s7446_s11 + $0x368] sm:$0xff]  ;;  %v497_v56 = vld [vmem:[%s7446_s11 + $0x370] sm:$0xff] }
  0x31   : > { %494 = vst [vmem:[%s7451_s12 + $0x1b0] sm:$0xff] %v493_v54  ;;  %496 = vst [vmem:[%s7451_s12 + $0x1b8] sm:$0xff] %v495_v55  ;;  %v499_v57 = vld [vmem:[%s7446_s11 + $0x378] sm:$0xff]  ;;  %v501_v58 = vld [vmem:[%s7446_s11 + $0x380] sm:$0xff] }
  0x32   : > { %498 = vst [vmem:[%s7451_s12 + $0x1c0] sm:$0xff] %v497_v56  ;;  %v503_v59 = vld [vmem:[%s7446_s11 + $0x388] sm:$0xff]  ;;  %500 = vst [vmem:[%s7451_s12 + $0x1c8] sm:$0xff] %v499_v57  ;;  %v505_v60 = vld [vmem:[%s7446_s11 + $0x390] sm:$0xff] }
  0x33   : > { %502 = vst [vmem:[%s7451_s12 + $0x1d0] sm:$0xff] %v501_v58  ;;  %504 = vst [vmem:[%s7451_s12 + $0x1d8] sm:$0xff] %v503_v59  ;;  %v507_v61 = vld [vmem:[%s7446_s11 + $0x398] sm:$0xff]  ;;  %v509_v62 = vld [vmem:[%s7446_s11 + $0x3a0] sm:$0xff] }
  0x34   : > { %506 = vst [vmem:[%s7451_s12 + $0x1e0] sm:$0xff] %v505_v60  ;;  %508 = vst [vmem:[%s7451_s12 + $0x1e8] sm:$0xff] %v507_v61  ;;  %v511_v63 = vld [vmem:[%s7446_s11 + $0x3a8] sm:$0xff]  ;;  %v513_v0 = vld [vmem:[%s7446_s11 + $0x3b0] sm:$0xff] }
  0x35   : > { %510 = vst [vmem:[%s7451_s12 + $0x1f0] sm:$0xff] %v509_v62  ;;  %v515_v1 = vld [vmem:[%s7446_s11 + $0x3b8] sm:$0xff]  ;;  %512 = vst [vmem:[%s7451_s12 + $0x1f8] sm:$0xff] %v511_v63  ;;  %v517_v2 = vld [vmem:[%s7446_s11 + $0x3c0] sm:$0xff] }
  0x36   : > { %514 = vst [vmem:[%s7451_s12 + $0x200] sm:$0xff] %v513_v0  ;;  %516 = vst [vmem:[%s7451_s12 + $0x208] sm:$0xff] %v515_v1  ;;  %v519_v3 = vld [vmem:[%s7446_s11 + $0x3c8] sm:$0xff]  ;;  %v521_v4 = vld [vmem:[%s7446_s11 + $0x3d0] sm:$0xff] }
  0x37   : > { %518 = vst [vmem:[%s7451_s12 + $0x210] sm:$0xff] %v517_v2  ;;  %520 = vst [vmem:[%s7451_s12 + $0x218] sm:$0xff] %v519_v3  ;;  %v523_v5 = vld [vmem:[%s7446_s11 + $0x3d8] sm:$0xff]  ;;  %v525_v6 = vld [vmem:[%s7446_s11 + $0x3e0] sm:$0xff] }
  0x38   : > { %522 = vst [vmem:[%s7451_s12 + $0x220] sm:$0xff] %v521_v4  ;;  %v527_v7 = vld [vmem:[%s7446_s11 + $0x3e8] sm:$0xff]  ;;  %524 = vst [vmem:[%s7451_s12 + $0x228] sm:$0xff] %v523_v5 }
  0x39   : > { %526 = vst [vmem:[%s7451_s12 + $0x230] sm:$0xff] %v525_v6  ;;  %528 = vst [vmem:[%s7451_s12 + $0x238] sm:$0xff] %v527_v7 }
  0x3a PF: > { %p5971_p7 = scmp.ge.s32.totalorder %s7367_s23, 1  ;;  %p533_p8 = scmp.lt.s32.totalorder %s7367_s23, 3 }
  0x3c   : > { %p534_p9 = pnand %p5971_p7, %p533_p8 }
  0x3d   : > { %v5974_v8 = vld [vmem:[%s8721_s1 + $0x8] sm:$0xf] (!%p534_p9)  ;;  %vm709_vm0 = vcmask (!%p534_p9), 1043456   ;;  %s540_s15 = sand.u32 (!%p534_p9), 1, %s7359_s21   ;;  %v648_v9 = vld [vmem:[%s8721_s1] sm:$0xf] (!%p534_p9) }
  0x3e   : > { %537 = sbr.rel (%p534_p9) target bundleno = 1030 (0x406), region = 74  ;;  %6653 = vmatprep.subr.msk.mxu0 (!%p534_p9), %vm709_vm0, %v5974_v8  ;;  %vm665_vm1 = vcmask (!%p534_p9), 1046528   ;;  %vm692_vm2 = vcmask (!%p534_p9), 31744   ;;  %v7630_v35 = vld [vmem:[%s8721_s1 + $0x20] sm:$0xf] (!%p534_p9)  ;;  %p572_p10 = scmp.lt.s32.totalorder (!%p534_p9), %s7421_s24, 1 }
  0x3f   : > { %s7319_s16 = smul.u32 (!%p534_p9), 576, %s540_s15  ;;  %6654 = vmatpush3.msk.msra.mxu0 (!%p534_p9), %vm709_vm0, %v5974_v8 }
  0x40   : > { %6667 = vmatprep.subr.msk.mxu0 (!%p534_p9), %vm709_vm0, %v648_v9 }
  0x41   : > { %s7608_s19 = scalar_lea.vmem (!%p534_p9), [#allocation3], %s7319_s16 }
  0x42   : > { %v576_v10 = vld [vmem:[%s7608_s19] sm:$0xff] (!%p534_p9)  ;;  %v577_v11 = vld [vmem:[%s7608_s19 + $0x8] sm:$0x1] (!%p534_p9)  ;;  %v578_v12 = vld [vmem:[%s7608_s19 + $0x10] sm:$0xff] (!%p534_p9) }
  0x43   : > { %vm594_vm3 = vcmp.ge.f32.partialorder (!%p534_p9), %v576_v10, 0.0  ;;  %vm595_vm4 = vcmp.ge.f32.partialorder (!%p534_p9), %v577_v11, 0.0  ;;  %v612_v13 = vmul.f32 (!%p534_p9), 0.2, %v576_v10  ;;  %v613_v14 = vmul.f32 (!%p534_p9), 0.2, %v577_v11 }
  0x44   : > { %v579_v15 = vld [vmem:[%s7608_s19 + $0x18] sm:$0x1] (!%p534_p9)  ;;  %vm596_vm5 = vcmp.ge.f32.partialorder (!%p534_p9), %v578_v12, 0.0  ;;  %v614_v16 = vmul.f32 (!%p534_p9), 0.2, %v578_v12  ;;  %v580_v17 = vld [vmem:[%s7608_s19 + $0x20] sm:$0xff] (!%p534_p9) }
  0x45   : > { %v7615_v18 = vsel %vm594_vm3, %v576_v10, %v612_v13  ;;  %v631_v19 = vsel %vm595_vm4, %v577_v11, %v613_v14  ;;  %vm597_vm6 = vcmp.ge.f32.partialorder %v579_v15, 0.0  ;;  %v615_v20 = vmul.f32 0.2, %v579_v15  ;;  %v581_v21 = vld [vmem:[%s7608_s19 + $0x28] sm:$0x1]  ;;  %v582_v22 = vld [vmem:[%s7608_s19 + $0x30] sm:$0xff] }
  0x46   : > { %v666_v23 = vrot.slane %v7615_v18, 1  ;;  %v667_v24 = vrot.slane %v631_v19, 1  ;;  %v7620_v25 = vsel %vm596_vm5, %v578_v12, %v614_v16  ;;  %vm598_vm7 = vcmp.ge.f32.partialorder %v580_v17, 0.0  ;;  %v583_v26 = vld [vmem:[%s7608_s19 + $0x38] sm:$0x1]  ;;  %v584_v30 = vld [vmem:[%s7608_s19 + $0x40] sm:$0xff] }
  0x47   : > { %v633_v27 = vsel %vm597_vm6, %v579_v15, %v615_v20  ;;  %v669_v28 = vrot.slane %v7620_v25, 1  ;;  %vm599_vm8 = vcmp.ge.f32.partialorder %v581_v21, 0.0  ;;  %v616_v29 = vmul.f32 0.2, %v580_v17  ;;  %v585_v34 = vld [vmem:[%s7608_s19 + $0x48] sm:$0x1] }
  0x48   : > { %v668_v31 = vsel %vm665_vm1, %v666_v23, %v667_v24  ;;  %v670_v32 = vrot.slane %v633_v27, 1  ;;  %v617_v33 = vmul.f32 0.2, %v581_v21  ;;  %vm600_vm9 = vcmp.ge.f32.partialorder %v582_v22, 0.0  ;;  %v586_v42 = vld [vmem:[%s7608_s19 + $0x50] sm:$0xff]  ;;  %v588_v47 = vld [vmem:[%s7608_s19 + $0x60] sm:$0xff] }
  0x49   : > { %6655 = vmatprep.mubr.msk.f32.mxu0 %vm692_vm2, %v668_v31  ;;  %v7633_v36 = vsel %vm598_vm7, %v580_v17, %v616_v29  ;;  %vm601_vm10 = vcmp.ge.f32.partialorder %v583_v26, 0.0  ;;  %v618_v37 = vmul.f32 0.2, %v582_v22  ;;  %v619_v38 = vmul.f32 0.2, %v583_v26  ;;  %v590_v59 = vld [vmem:[%s7608_s19 + $0x70] sm:$0xff] }
  0x4a   : > { %v7636_v39 = vsel %vm665_vm1, %v669_v28, %v670_v32  ;;  %v635_v40 = vsel %vm599_vm8, %v581_v21, %v617_v33  ;;  %v672_v41 = vrot.slane %v7633_v36, 1  ;;  %vm602_vm11 = vcmp.ge.f32.partialorder %v584_v30, 0.0  ;;  %v587_v43 = vld [vmem:[%s7608_s19 + $0x58] sm:$0x1]  ;;  %v589_v54 = vld [vmem:[%s7608_s19 + $0x68] sm:$0x1] }
  0x4b   : > { %6656 = vmatmul.mubr.msk.f32.vlgmr.msra.gmra.mrb[0].mxu0 %vm692_vm2, %v7636_v39  ;;  %v673_v44 = vrot.slane %v635_v40, 1  ;;  %v7644_v45 = vsel %vm600_vm9, %v582_v22, %v618_v37  ;;  %v637_v46 = vsel %vm601_vm10, %v583_v26, %v619_v38  ;;  %vm603_vm12 = vcmp.ge.f32.partialorder %v585_v34, 0.0  ;;  %v591_v63 = vld [vmem:[%s7608_s19 + $0x78] sm:$0x1]  ;;  %v6003_v20 = vld [vmem:[%s8721_s1 + $0x28] sm:$0xf] }
  0x4c   : > { %6668 = vmatpush3.msk.msra.mxu0 %vm709_vm0, %v648_v9  ;;  %v675_v48 = vrot.slane %v7644_v45, 1  ;;  %v676_v49 = vrot.slane %v637_v46, 1  ;;  %v620_v50 = vmul.f32 0.2, %v584_v30  ;;  %v621_v51 = vmul.f32 0.2, %v585_v34 }
  0x4d   : > { %v7650_v52 = vsel %vm665_vm1, %v672_v41, %v673_v44  ;;  %vm604_vm13 = vcmp.ge.f32.partialorder %v586_v42, 0.0  ;;  %vm605_vm14 = vcmp.ge.f32.partialorder %v587_v43, 0.0  ;;  %v622_v53 = vmul.f32 0.2, %v586_v42  ;;  %6681 = vmatprep.subr.msk.mxu0 %vm709_vm0, %v7630_v35  ;;  %v592_v21 = vld [vmem:[%s7608_s19 + $0x80] sm:$0xff]  ;;  %v6013_v28 = vld [vmem:[%s7608_s19 + $0x90] sm:$0xff] }
  0x4e   : > { %6658 = vmatprep.mubr.msk.f32.mxu0 %vm692_vm2, %v7650_v52  ;;  %v7658_v55 = vsel %vm665_vm1, %v675_v48, %v676_v49  ;;  %v638_v56 = vsel %vm602_vm11, %v584_v30, %v620_v50  ;;  %v639_v57 = vsel %vm603_vm12, %v585_v34, %v621_v51  ;;  %v623_v58 = vmul.f32 0.2, %v587_v43  ;;  %v593_v24 = vld [vmem:[%s7608_s19 + $0x88] sm:$0x1]  ;;  %v6041_v26 = vld [vmem:[%s8721_s1 + $0xc] sm:$0xf] }
  0x4f   : > { %6659 = vmatmul.mubr.msk.f32.gmra.mrb[2].mxu0 %vm692_vm2, %v7658_v55  ;;  %v678_v60 = vrot.slane %v638_v56, 1  ;;  %v679_v61 = vrot.slane %v639_v57, 1  ;;  %v640_v62 = vsel %vm604_vm13, %v586_v42, %v622_v53  ;;  %vm606_vm15 = vcmp.ge.f32.partialorder %v588_v47, 0.0  ;;  %v6015_v32 = vld [vmem:[%s7608_s19 + $0xa0] sm:$0xff]  ;;  %v6017_v33 = vld [vmem:[%s7608_s19 + $0xb0] sm:$0xff]  ;;  %s573_s21 = scalar_select %p572_p10, %s7421_s24, 1 }
  0x50   : > { %v641_v0 = vsel %vm605_vm14, %v587_v43, %v623_v58  ;;  %v681_v1 = vrot.slane %v640_v62, 1  ;;  %vm607_vm3 = vcmp.ge.f32.partialorder %v589_v54, 0.0  ;;  %v624_v2 = vmul.f32 0.2, %v588_v47  ;;  %v6019_v38 = vld [vmem:[%s7608_s19 + $0xc0] sm:$0xff]  ;;  %s6364_s26 = sshll.u32 (%p7436_p5), %s7421_s24, 6 }
  0x51   : > { %v680_v3 = vsel %vm665_vm1, %v678_v60, %v679_v61  ;;  %v682_v4 = vrot.slane %v641_v0, 1  ;;  %v625_v5 = vmul.f32 0.2, %v589_v54  ;;  %vm608_vm4 = vcmp.ge.f32.partialorder %v590_v59, 0.0  ;;  %v6014_v40 = vld [vmem:[%s7608_s19 + $0x98] sm:$0x1]  ;;  %s8647_s7 = scalar_lea.vmem (%p7436_p5), %s8725_s5, %s6364_s26 }
  0x52   : > { %6661 = vmatprep.mubr.msk.f32.mxu0 %vm692_vm2, %v680_v3  ;;  %v642_v6 = vsel %vm606_vm15, %v588_v47, %v624_v2  ;;  %vm609_vm5 = vcmp.ge.f32.partialorder %v591_v63, 0.0  ;;  %v626_v7 = vmul.f32 0.2, %v590_v59  ;;  %v627_v8 = vmul.f32 0.2, %v591_v63  ;;  %v6025_v47 = vld [vmem:[%s7608_s19 + $0xf0] sm:$0xff] }
  0x53   : > { %v683_v9 = vsel %vm665_vm1, %v681_v1, %v682_v4  ;;  %v643_v10 = vsel %vm607_vm3, %v589_v54, %v625_v5  ;;  %v684_v11 = vrot.slane %v642_v6, 1  ;;  %v628_v22 = vmul.f32 0.2, %v592_v21  ;;  %v7746_v46 = vld [vmem:[%s8721_s1 + $0x24] sm:$0xf] }
  0x54   : > { %6662 = vmatmul.mubr.msk.f32.gmra.mrb[4].mxu0 %vm692_vm2, %v683_v9  ;;  %v685_v12 = vrot.slane %v643_v10, 1  ;;  %v644_v13 = vsel %vm608_vm4, %v590_v59, %v626_v7  ;;  %v645_v14 = vsel %vm609_vm5, %v591_v63, %v627_v8  ;;  %vm610_vm6 = vcmp.ge.f32.partialorder %v592_v21, 0.0  ;;  %v6016_v49 = vld [vmem:[%s7608_s19 + $0xa8] sm:$0x1]  ;;  %v6018_v50 = vld [vmem:[%s7608_s19 + $0xb8] sm:$0x1] }
  0x55   : > { %v687_v15 = vrot.slane %v644_v13, 1  ;;  %v688_v16 = vrot.slane %v645_v14, 1  ;;  %v646_v23 = vsel %vm610_vm6, %v592_v21, %v628_v22  ;;  %vm611_vm7 = vcmp.ge.f32.partialorder %v593_v24, 0.0  ;;  %v6020_v59 = vld [vmem:[%s7608_s19 + $0xc8] sm:$0x1] }
  0x56   : > { %v686_v17 = vsel %vm665_vm1, %v684_v11, %v685_v12  ;;  %v1064_v29 = vrot.slane %v646_v23, 1  ;;  %v1224_v31 = vmul.f32 0.2, %v6013_v28  ;;  %vm1206_vm8 = vcmp.ge.f32.partialorder %v6013_v28, 0.0  ;;  %v6022_v60 = vld [vmem:[%s7608_s19 + $0xd8] sm:$0x1] }
  0x57   : > { %6664 = vmatprep.mubr.msk.f32.mxu0 %vm692_vm2, %v686_v17  ;;  %v689_v19 = vsel %vm665_vm1, %v687_v15, %v688_v16  ;;  %vm1208_vm9 = vcmp.ge.f32.partialorder %v6015_v32, 0.0  ;;  %v1228_v37 = vmul.f32 0.2, %v6017_v33  ;;  %vm1210_vm10 = vcmp.ge.f32.partialorder %v6017_v33, 0.0  ;;  %v6026_v7 = vld [vmem:[%s7608_s19 + $0xf8] sm:$0x1] }
  0x58   : > { %6665 = vmatmul.mubr.msk.f32.gmra.mrb[6].mxu0 %vm692_vm2, %v689_v19  ;;  %v1230_v42 = vmul.f32 0.2, %v6019_v38  ;;  %vm1212_vm11 = vcmp.ge.f32.partialorder %v6019_v38, 0.0  ;;  %v1225_v48 = vmul.f32 0.2, %v6014_v40  ;;  %vm1207_vm13 = vcmp.ge.f32.partialorder %v6014_v40, 0.0 }
  0x59   : > { %6669 = vmatprep.mubr.msk.f32.mxu0 %vm692_vm2, %v7615_v18  ;;  %v6031_v18 = vld [vmem:[%s8721_s1 + $0x4] sm:$0xf]  ;;  %v7740_v43 = vsel %vm1210_vm10, %v6017_v33, %v1228_v37  ;;  %v1236_v54 = vmul.f32 0.2, %v6025_v47  ;;  %vm1218_vm15 = vcmp.ge.f32.partialorder %v6025_v47, 0.0  ;;  %vm1209_vm3 = vcmp.ge.f32.partialorder %v6016_v49, 0.0 }
  0x5a   : > { %v7756_v51 = vsel %vm1212_vm11, %v6019_v38, %v1230_v42  ;;  %v1243_v57 = vsel %vm1207_vm13, %v6014_v40, %v1225_v48  ;;  %v1229_v58 = vmul.f32 0.2, %v6018_v50  ;;  %vm1211_vm4 = vcmp.ge.f32.partialorder %v6018_v50, 0.0  ;;  %v6089_v42 = vld [vmem:[%s8721_s1 + $0x10] sm:$0xf] }
  0x5b   : > { %v7772_v0 = vsel %vm1218_vm15, %v6025_v47, %v1236_v54  ;;  %v1411_v1 = vrot.slane %v1243_v57, 1  ;;  %vm1213_vm6 = vcmp.ge.f32.partialorder %v6020_v59, 0.0  ;;  %v1233_v5 = vmul.f32 0.2, %v6022_v60  ;;  %v6099_v47 = vld [vmem:[%s8721_s1 + $0x18] sm:$0xf] }
  0x5c   : > { %6670 = vmatmul.mubr.msk.f32.vlgmr.msra.gmra.mrb[0].mxu0 %vm692_vm2, %v7620_v25  ;;  %v1247_v4 = vsel %vm1211_vm4, %v6018_v50, %v1229_v58  ;;  %v6075_v54 = vld [vmem:[%s7608_s19 + $0x140] sm:$0xff] }
  0x5d   : > { %6682 = vmatpush3.msk.msra.mxu0 %vm709_vm0, %v7630_v35  ;;  %6672 = vmatprep.mubr.msk.f32.mxu0 %vm692_vm2, %v7633_v36  ;;  %v1226_v35 = vmul.f32 0.2, %v6015_v32  ;;  %v1854_v58 = vmul.f32 0.2, %v6075_v54  ;;  %vm1836_vm15 = vcmp.ge.f32.partialorder %v6075_v54, 0.0 }
  0x5e   : > { %6695 = vmatprep.subr.msk.mxu0 %vm709_vm0, %v6003_v20 }
  0x5f   : > { %v7738_v41 = vsel %vm1208_vm9, %v6015_v32, %v1226_v35  ;;  %vm1219_vm9 = vcmp.ge.f32.partialorder %v6026_v7, 0.0  ;;  %v1428_v32 = vrot.slane %v7772_v0, 1 }
  0x60   : > { %6673 = vmatmul.mubr.msk.f32.gmra.mrb[2].mxu0 %vm692_vm2, %v7644_v45  ;;  %v1413_v8 = vrot.slane %v7738_v41, 1 }
  0x61   : > { %6675 = vmatprep.mubr.msk.f32.mxu0 %vm692_vm2, %v638_v56 }
  0x64   : > { %6676 = vmatmul.mubr.msk.f32.gmra.mrb[4].mxu0 %vm692_vm2, %v640_v62 }
  0x65   : > { %6678 = vmatprep.mubr.msk.f32.mxu0 %vm692_vm2, %v642_v6 }
  0x68   : > { %6679 = vmatmul.mubr.msk.f32.gmra.mrb[6].mxu0 %vm692_vm2, %v644_v13 }
  0x69   : > { %6683 = vmatprep.mubr.msk.f32.mxu0 %vm692_vm2, %v7620_v25  ;;  %v629_v25 = vmul.f32 0.2, %v593_v24 }
  0x6b   : > { %v647_v27 = vsel %vm611_vm7, %v593_v24, %v629_v25  ;;  %vm1215_vm7 = vcmp.ge.f32.partialorder %v6022_v60, 0.0 }
  0x6c   : > { %6684 = vmatmul.mubr.msk.f32.vlgmr.msra.gmra.mrb[0].mxu0 %vm692_vm2, %v7633_v36  ;;  %v1065_v30 = vrot.slane %v647_v27, 1  ;;  %v7730_v36 = vsel %vm1206_vm8, %v6013_v28, %v1224_v31  ;;  %v1251_v16 = vsel %vm1215_vm7, %v6022_v60, %v1233_v5  ;;  %v6061_v28 = vld [vmem:[%s8721_s1 + $0x2c] sm:$0xf]  ;;  %v6079_v60 = vld [vmem:[%s7608_s19 + $0x160] sm:$0xff] }
  0x6d   : > { %6696 = vmatpush3.msk.msra.mxu0 %vm709_vm0, %v6003_v20  ;;  %6686 = vmatprep.mubr.msk.f32.mxu0 %vm692_vm2, %v7644_v45  ;;  %v6023_v45 = vld [vmem:[%s7608_s19 + $0xe0] sm:$0xff]  ;;  %v1410_v61 = vrot.slane %v7730_v36, 1  ;;  %v1419_v20 = vrot.slane %v7756_v51, 1  ;;  %v1423_v24 = vrot.slane %v1251_v16, 1  ;;  %vm1840_vm4 = vcmp.ge.f32.partialorder %v6079_v60, 0.0 }
  0x6e   : > { %6709 = vmatprep.subr.msk.mxu0 %vm709_vm0, %v6031_v18  ;;  %v1066_v34 = vsel %vm665_vm1, %v1064_v29, %v1065_v30  ;;  %vm1216_vm14 = vcmp.ge.f32.partialorder %v6023_v45, 0.0  ;;  %v6078_v16 = vld [vmem:[%s7608_s19 + $0x158] sm:$0x1] }
  0x6f   : > { %v1412_v12 = vsel %vm665_vm1, %v1410_v61, %v1411_v1  ;;  %v6072_v61 = vld [vmem:[%s7608_s19 + $0x128] sm:$0x1]  ;;  %v1858_v1 = vmul.f32 0.2, %v6079_v60 }
  0x70   : > { %6687 = vmatmul.mubr.msk.f32.gmra.mrb[2].mxu0 %vm692_vm2, %v638_v56  ;;  %v1227_v56 = vmul.f32 0.2, %v6016_v49  ;;  %v1851_v5 = vmul.f32 0.2, %v6072_v61 }
  0x71   : > { %6689 = vmatprep.mubr.msk.f32.mxu0 %vm692_vm2, %v640_v62 }
  0x72   : > { %v1245_v2 = vsel %vm1209_vm3, %v6016_v49, %v1227_v56  ;;  %v6071_v49 = vld [vmem:[%s7608_s19 + $0x120] sm:$0xff] }
  0x73   : > { %v1414_v11 = vrot.slane %v1245_v2, 1  ;;  %vm1832_vm13 = vcmp.ge.f32.partialorder %v6071_v49, 0.0  ;;  %v6081_v2 = vld [vmem:[%s7608_s19 + $0x170] sm:$0xff] }
  0x74   : > { %6690 = vmatmul.mubr.msk.f32.gmra.mrb[4].mxu0 %vm692_vm2, %v642_v6  ;;  %v6024_v6 = vld [vmem:[%s7608_s19 + $0xe8] sm:$0x1] }
  0x75   : > { %6692 = vmatprep.mubr.msk.f32.mxu0 %vm692_vm2, %v644_v13  ;;  %v1417_v13 = vrot.slane %v1247_v4, 1  ;;  %v1235_v15 = vmul.f32 0.2, %v6024_v6  ;;  %vm1217_vm8 = vcmp.ge.f32.partialorder %v6024_v6, 0.0  ;;  %v1415_v21 = vsel %vm665_vm1, %v1413_v8, %v1414_v11  ;;  %v6083_v4 = vld [vmem:[%s7608_s19 + $0x180] sm:$0xff] }
  0x76   : > { %v1862_v11 = vmul.f32 0.2, %v6083_v4  ;;  %vm1844_vm7 = vcmp.ge.f32.partialorder %v6083_v4, 0.0 }
  0x77   : > { %v1253_v25 = vsel %vm1217_vm8, %v6024_v6, %v1235_v15  ;;  %v6074_v6 = vld [vmem:[%s7608_s19 + $0x138] sm:$0x1] }
  0x78   : > { %6693 = vmatmul.mubr.msk.f32.gmra.mrb[6].mxu0 %vm692_vm2, %v646_v23  ;;  %v1426_v31 = vrot.slane %v1253_v25, 1  ;;  %vm1835_vm8 = vcmp.ge.f32.partialorder %v6074_v6, 0.0 }
  0x79   : > { %6697 = vmatprep.mubr.msk.f32.mxu0 %vm692_vm2, %v7636_v39  ;;  %v6021_v39 = vld [vmem:[%s7608_s19 + $0xd0] sm:$0xff] }
  0x7a   : > { %v1232_v44 = vmul.f32 0.2, %v6021_v39  ;;  %vm1214_vm12 = vcmp.ge.f32.partialorder %v6021_v39, 0.0 }
  0x7c   : > { %6698 = vmatmul.mubr.msk.f32.vlgmr.msra.gmra.mrb[0].mxu0 %vm692_vm2, %v7650_v52  ;;  %v1234_v52 = vmul.f32 0.2, %v6023_v45  ;;  %v7758_v53 = vsel %vm1214_vm12, %v6021_v39, %v1232_v44  ;;  %v6029_v44 = vld [vmem:[%s7608_s19 + $0x110] sm:$0xff] }
  0x7d   : > { %6710 = vmatpush3.msk.msra.mxu0 %vm709_vm0, %v6031_v18  ;;  %6700 = vmatprep.mubr.msk.f32.mxu0 %vm692_vm2, %v7658_v55  ;;  %v6027_v55 = vld [vmem:[%s7608_s19 + $0x100] sm:$0xff]  ;;  %v1422_v18 = vrot.slane %v7758_v53, 1  ;;  %vm1222_vm11 = vcmp.ge.f32.partialorder %v6029_v44, 0.0 }
  0x7e   : > { %6723 = vmatprep.subr.msk.mxu0 %vm709_vm0, %v6041_v26  ;;  %v7770_v62 = vsel %vm1216_vm14, %v6023_v45, %v1234_v52  ;;  %vm1220_vm5 = vcmp.ge.f32.partialorder %v6027_v55, 0.0  ;;  %v1238_v63 = vmul.f32 0.2, %v6027_v55  ;;  %v6030_v45 = vld [vmem:[%s7608_s19 + $0x118] sm:$0x1] }
  0x7f   : > { %v1425_v29 = vrot.slane %v7770_v62, 1  ;;  %v1424_v33 = vsel %vm665_vm1, %v1422_v18, %v1423_v24  ;;  %vm1223_vm12 = vcmp.ge.f32.partialorder %v6030_v45, 0.0  ;;  %v1850_v52 = vmul.f32 0.2, %v6071_v49 }
  0x80   : > { %6701 = vmatmul.mubr.msk.f32.gmra.mrb[2].mxu0 %vm692_vm2, %v680_v3  ;;  %v1231_v3 = vmul.f32 0.2, %v6020_v59  ;;  %v1256_v10 = vsel %vm1220_vm5, %v6027_v55, %v1238_v63  ;;  %vm1833_vm5 = vcmp.ge.f32.partialorder %v6072_v61, 0.0  ;;  %v1857_v24 = vmul.f32 0.2, %v6078_v16 }
  0x81   : > { %6703 = vmatprep.mubr.msk.f32.mxu0 %vm692_vm2, %v683_v9  ;;  %v1416_v9 = vrot.slane %v7740_v43, 1  ;;  %v1427_v37 = vsel %vm665_vm1, %v1425_v29, %v1426_v31  ;;  %v7848_v57 = vsel %vm1832_vm13, %v6071_v49, %v1850_v52  ;;  %v6119_v49 = vld [vmem:[%s8721_s1 + $0x38] sm:$0xf] }
  0x82   : > { %v1249_v14 = vsel %vm1213_vm6, %v6020_v59, %v1231_v3  ;;  %v6077_v59 = vld [vmem:[%s7608_s19 + $0x150] sm:$0xff]  ;;  %vm1842_vm6 = vcmp.ge.f32.partialorder %v6081_v2, 0.0 }
  0x83   : > { %v1420_v22 = vrot.slane %v1249_v14, 1  ;;  %v1418_v23 = vsel %vm665_vm1, %v1416_v9, %v1417_v13  ;;  %v1856_v63 = vmul.f32 0.2, %v6077_v59  ;;  %vm1838_vm3 = vcmp.ge.f32.partialorder %v6077_v59, 0.0  ;;  %v7864_v3 = vld [vmem:[%s8721_s1 + $0x30] sm:$0xf] }
  0x84   : > { %6704 = vmatmul.mubr.msk.f32.gmra.mrb[4].mxu0 %vm692_vm2, %v686_v17  ;;  %v1237_v17 = vmul.f32 0.2, %v6026_v7  ;;  %v1860_v9 = vmul.f32 0.2, %v6081_v2  ;;  %v1853_v13 = vmul.f32 0.2, %v6074_v6  ;;  %v1869_v14 = vsel %vm1833_vm5, %v6072_v61, %v1851_v5 }
  0x85   : > { %6706 = vmatprep.mubr.msk.f32.mxu0 %vm692_vm2, %v689_v19  ;;  %v6028_v19 = vld [vmem:[%s7608_s19 + $0x108] sm:$0x1]  ;;  %v1421_v30 = vsel %vm665_vm1, %v1419_v20, %v1420_v22  ;;  %v7874_v8 = vsel %vm1838_vm3, %v6077_v59, %v1856_v63  ;;  %v2037_v22 = vrot.slane %v1869_v14, 1  ;;  %v6147_v63 = vld [vmem:[%s8721_s1 + $0x14] sm:$0xf] }
  0x86   : > { %v1255_v27 = vsel %vm1219_vm9, %v6026_v7, %v1237_v17  ;;  %vm1221_vm10 = vcmp.ge.f32.partialorder %v6028_v19, 0.0  ;;  %v6076_v7 = vld [vmem:[%s7608_s19 + $0x148] sm:$0x1]  ;;  %v7888_v20 = vsel %vm1842_vm6, %v6081_v2, %v1860_v9 }
  0x87   : > { %v1855_v15 = vmul.f32 0.2, %v6076_v7  ;;  %vm1837_vm9 = vcmp.ge.f32.partialorder %v6076_v7, 0.0  ;;  %v6080_v17 = vld [vmem:[%s7608_s19 + $0x168] sm:$0x1] }
  0x88   : > { %6707 = vmatmul.mubr.msk.f32.gmra.mrb[6].mxu0 %vm692_vm2, %v1066_v34  ;;  %v1429_v34 = vrot.slane %v1255_v27, 1  ;;  %v6082_v27 = vld [vmem:[%s7608_s19 + $0x178] sm:$0x1]  ;;  %v6088_v2 = vld [vmem:[%s7608_s19 + $0x1a8] sm:$0x1] }
  0x89   : > { %6711 = vmatprep.mubr.msk.f32.mxu0 %vm692_vm2, %v7730_v36  ;;  %v1431_v36 = vrot.slane %v1256_v10, 1  ;;  %v1873_v25 = vsel %vm1837_vm9, %v6076_v7, %v1855_v15  ;;  %vm1843_vm13 = vcmp.ge.f32.partialorder %v6082_v27, 0.0 }
  0x8a   : > { %v1430_v39 = vsel %vm665_vm1, %v1428_v32, %v1429_v34  ;;  %v2043_v34 = vrot.slane %v1873_v25, 1 }
  0x8c   : > { %6712 = vmatmul.mubr.msk.f32.vlgmr.msra.gmra.mrb[0].mxu0 %vm692_vm2, %v7738_v41 }
  0x8d   : > { %6724 = vmatpush3.msk.msra.mxu0 %vm709_vm0, %v6041_v26  ;;  %6714 = vmatprep.mubr.msk.f32.mxu0 %vm692_vm2, %v7740_v43  ;;  %v1239_v26 = vmul.f32 0.2, %v6028_v19 }
  0x8e   : > { %6737 = vmatprep.subr.msk.mxu0 %vm709_vm0, %v7746_v46 }
  0x8f   : > { %v1257_v35 = vsel %vm1221_vm10, %v6028_v19, %v1239_v26  ;;  %v2036_v19 = vrot.slane %v7848_v57, 1  ;;  %v1859_v26 = vmul.f32 0.2, %v6080_v17 }
  0x90   : > { %6715 = vmatmul.mubr.msk.f32.gmra.mrb[2].mxu0 %vm692_vm2, %v7756_v51  ;;  %v1432_v38 = vrot.slane %v1257_v35, 1 }
  0x91   : > { %6717 = vmatprep.mubr.msk.f32.mxu0 %vm692_vm2, %v7758_v53 }
  0x92   : > { %v1433_v40 = vsel %vm665_vm1, %v1431_v36, %v1432_v38  ;;  %v1861_v36 = vmul.f32 0.2, %v6082_v27 }
  0x94   : > { %6718 = vmatmul.mubr.msk.f32.gmra.mrb[4].mxu0 %vm692_vm2, %v7770_v62 }
  0x95   : > { %6720 = vmatprep.mubr.msk.f32.mxu0 %vm692_vm2, %v7772_v0 }
  0x98   : > { %6721 = vmatmul.mubr.msk.f32.gmra.mrb[6].mxu0 %vm692_vm2, %v1256_v10 }
  0x99   : > { %6725 = vmatprep.mubr.msk.f32.mxu0 %vm692_vm2, %v1412_v12  ;;  %v6085_v12 = vld [vmem:[%s7608_s19 + $0x190] sm:$0xff] }
  0x9a   : > { %vm1846_vm10 = vcmp.ge.f32.partialorder %v6085_v12, 0.0  ;;  %v1864_v18 = vmul.f32 0.2, %v6085_v12 }
  0x9c   : > { %6726 = vmatmul.mubr.msk.f32.vlgmr.msra.gmra.mrb[0].mxu0 %vm692_vm2, %v1415_v21  ;;  %v1882_v31 = vsel %vm1846_vm10, %v6085_v12, %v1864_v18 }
  0x9d   : > { %6738 = vmatpush3.msk.msra.mxu0 %vm709_vm0, %v7746_v46  ;;  %6728 = vmatprep.mubr.msk.f32.mxu0 %vm692_vm2, %v1418_v23  ;;  %v1241_v46 = vmul.f32 0.2, %v6030_v45 }
  0x9e   : > { %6751 = vmatprep.subr.msk.mxu0 %vm709_vm0, %v6061_v28 }
  0x9f   : > { %v1259_v48 = vsel %vm1223_vm12, %v6030_v45, %v1241_v46  ;;  %vm1841_vm12 = vcmp.ge.f32.partialorder %v6080_v17, 0.0  ;;  %v1879_v46 = vsel %vm1843_vm13, %v6082_v27, %v1861_v36  ;;  %v6132_v27 = vld [vmem:[%s7608_s19 + $0x1c8] sm:$0x1] }
  0xa0   : > { %6729 = vmatmul.mubr.msk.f32.gmra.mrb[2].mxu0 %vm692_vm2, %v1421_v30  ;;  %v2052_v52 = vrot.slane %v1879_v46, 1  ;;  %vm2461_vm13 = vcmp.ge.f32.partialorder %v6132_v27, 0.0 }
  0xa1   : > { %6731 = vmatprep.mubr.msk.f32.mxu0 %vm692_vm2, %v1424_v33 }
  0xa4   : > { %6732 = vmatmul.mubr.msk.f32.gmra.mrb[4].mxu0 %vm692_vm2, %v1427_v37 }
  0xa5   : > { %6734 = vmatprep.mubr.msk.f32.mxu0 %vm692_vm2, %v1430_v39 }
  0xa8   : > { %6735 = vmatmul.mubr.msk.f32.gmra.mrb[6].mxu0 %vm692_vm2, %v1433_v40 }
  0xa9   : > { %6739 = vmatprep.mubr.msk.f32.mxu0 %vm692_vm2, %v7738_v41  ;;  %v1240_v41 = vmul.f32 0.2, %v6029_v44 }
  0xac   : > { %6740 = vmatmul.mubr.msk.f32.vlgmr.msra.gmra.mrb[0].mxu0 %vm692_vm2, %v7740_v43  ;;  %v1258_v43 = vsel %vm1222_vm11, %v6029_v44, %v1240_v41  ;;  %vm1839_vm11 = vcmp.ge.f32.partialorder %v6078_v16, 0.0 }
  0xad   : > { %6752 = vmatpush3.msk.msra.mxu0 %vm709_vm0, %v6061_v28  ;;  %6742 = vmatprep.mubr.msk.f32.mxu0 %vm692_vm2, %v7756_v51  ;;  %v1690_v50 = vrot.slane %v1258_v43, 1  ;;  %v1691_v51 = vrot.slane %v1259_v48, 1  ;;  %v6084_v28 = vld [vmem:[%s7608_s19 + $0x188] sm:$0x1]  ;;  %v1875_v35 = vsel %vm1839_vm11, %v6078_v16, %v1857_v24  ;;  %v6135_v16 = vld [vmem:[%s7608_s19 + $0x1e0] sm:$0xff]  ;;  %v6141_v24 = vld [vmem:[%s7608_s19 + $0x210] sm:$0xff] }
  0xae   : > { %6765 = vmatprep.subr.msk.mxu0 %vm709_vm0, %v6089_v42  ;;  %v1863_v38 = vmul.f32 0.2, %v6084_v28  ;;  %v2046_v41 = vrot.slane %v1875_v35, 1  ;;  %v2482_v18 = vmul.f32 0.2, %v6135_v16 }
  0xaf   : > { %v1692_v55 = vsel %vm665_vm1, %v1690_v50, %v1691_v51  ;;  %v2051_v50 = vrot.slane %v7888_v20, 1 }
  0xb0   : > { %6743 = vmatmul.mubr.msk.f32.gmra.mrb[2].mxu0 %vm692_vm2, %v7758_v53  ;;  %v6073_v53 = vld [vmem:[%s7608_s19 + $0x130] sm:$0xff] }
  0xb1   : > { %6745 = vmatprep.mubr.msk.f32.mxu0 %vm692_vm2, %v7770_v62  ;;  %v1852_v56 = vmul.f32 0.2, %v6073_v53  ;;  %vm1834_vm14 = vcmp.ge.f32.partialorder %v6073_v53, 0.0 }
  0xb3   : > { %v7856_v62 = vsel %vm1834_vm14, %v6073_v53, %v1852_v56  ;;  %vm1845_vm14 = vcmp.ge.f32.partialorder %v6084_v28, 0.0 }
  0xb4   : > { %6746 = vmatmul.mubr.msk.f32.gmra.mrb[4].mxu0 %vm692_vm2, %v7772_v0  ;;  %v7858_v0 = vsel %vm1836_vm15, %v6075_v54, %v1854_v58  ;;  %v2039_v29 = vrot.slane %v7856_v62, 1  ;;  %v1881_v48 = vsel %vm1845_vm14, %v6084_v28, %v1863_v38  ;;  %v2053_v58 = vsel %vm665_vm1, %v2051_v50, %v2052_v52  ;;  %v6134_v28 = vld [vmem:[%s7608_s19 + $0x1d8] sm:$0x1] }
  0xb5   : > { %6748 = vmatprep.mubr.msk.f32.mxu0 %vm692_vm2, %v1256_v10  ;;  %v7876_v10 = vsel %vm1840_vm4, %v6079_v60, %v1858_v1  ;;  %v6087_v1 = vld [vmem:[%s7608_s19 + $0x1a0] sm:$0xff]  ;;  %vm1849_vm4 = vcmp.ge.f32.partialorder %v6088_v2, 0.0  ;;  %v2481_v36 = vmul.f32 0.2, %v6134_v28  ;;  %vm2463_vm14 = vcmp.ge.f32.partialorder %v6134_v28, 0.0 }
  0xb6   : > { %vm1848_vm3 = vcmp.ge.f32.partialorder %v6087_v1, 0.0  ;;  %v6138_v38 = vld [vmem:[%s7608_s19 + $0x1f8] sm:$0x1] }
  0xb7   : > { %v2499_v46 = vsel %vm2463_vm14, %v6134_v28, %v2481_v36  ;;  %v7369_v28 = vmov 0.0  }
  0xb8   : > { %6749 = vmatmul.mubr.msk.f32.gmra.mrb[6].mxu0 %vm692_vm2, %v1258_v43 }
  0xb9   : > { %6753 = vmatprep.mubr.msk.f32.mxu0 %vm692_vm2, %v1415_v21  ;;  %v7890_v21 = vsel %vm1844_vm7, %v6083_v4, %v1862_v11  ;;  %v6157_v4 = vld [vmem:[%s8721_s1 + $0x1c] sm:$0xf]  ;;  %v6133_v11 = vld [vmem:[%s7608_s19 + $0x1d0] sm:$0xff] }
  0xba   : > { %v2054_v53 = vrot.slane %v7890_v21, 1  ;;  %v2480_v15 = vmul.f32 0.2, %v6133_v11  ;;  %vm2462_vm7 = vcmp.ge.f32.partialorder %v6133_v11, 0.0 }
  0xbc   : > { %6754 = vmatmul.mubr.msk.f32.vlgmr.msra.gmra.mrb[0].mxu0 %vm692_vm2, %v1418_v23  ;;  %v1871_v23 = vsel %vm1835_vm8, %v6074_v6, %v1853_v13  ;;  %v6129_v6 = vld [vmem:[%s7608_s19 + $0x1b0] sm:$0xff]  ;;  %vm2464_vm8 = vcmp.ge.f32.partialorder %v6135_v16, 0.0 }
  0xbd   : > { %6766 = vmatpush3.msk.msra.mxu0 %vm709_vm0, %v6089_v42  ;;  %6756 = vmatprep.mubr.msk.f32.mxu0 %vm692_vm2, %v1421_v30  ;;  %v2042_v30 = vrot.slane %v7858_v0, 1  ;;  %v2040_v32 = vrot.slane %v1871_v23, 1  ;;  %v2048_v42 = vrot.slane %v7876_v10, 1  ;;  %v2476_v9 = vmul.f32 0.2, %v6129_v6  ;;  %v6139_v23 = vld [vmem:[%s7608_s19 + $0x200] sm:$0xff] }
  0xbe   : > { %6779 = vmatprep.subr.msk.mxu0 %vm709_vm0, %v6099_v47  ;;  %vm2458_vm5 = vcmp.ge.f32.partialorder %v6129_v6, 0.0  ;;  %vm2468_vm11 = vcmp.ge.f32.partialorder %v6139_v23, 0.0 }
  0xbf   : > { %v2041_v44 = vsel %vm665_vm1, %v2039_v29, %v2040_v32  ;;  %v2044_v43 = vsel %vm665_vm1, %v2042_v30, %v2043_v34  ;;  %v7966_v14 = vsel %vm2458_vm5, %v6129_v6, %v2476_v9  ;;  %v7992_v29 = vsel %vm2464_vm8, %v6135_v16, %v2482_v18  ;;  %v6177_v6 = vld [vmem:[%s8721_s1 + $0x3c] sm:$0xf]  ;;  %v6145_v18 = vld [vmem:[%s7608_s19 + $0x230] sm:$0xff] }
  0xc0   : > { %6757 = vmatmul.mubr.msk.f32.gmra.mrb[2].mxu0 %vm692_vm2, %v1424_v33  ;;  %v2038_v33 = vsel %vm665_vm1, %v2036_v19, %v2037_v22  ;;  %v6130_v19 = vld [vmem:[%s7608_s19 + $0x1b8] sm:$0x1]  ;;  %v2486_v30 = vmul.f32 0.2, %v6139_v23  ;;  %v2488_v32 = vmul.f32 0.2, %v6141_v24 }
  0xc1   : > { %6759 = vmatprep.mubr.msk.f32.mxu0 %vm692_vm2, %v1427_v37  ;;  %v1877_v37 = vsel %vm1841_vm12, %v6080_v17, %v1859_v26  ;;  %v6137_v17 = vld [vmem:[%s7608_s19 + $0x1f0] sm:$0xff]  ;;  %v2477_v25 = vmul.f32 0.2, %v6130_v19  ;;  %vm2459_vm10 = vcmp.ge.f32.partialorder %v6130_v19, 0.0  ;;  %v2479_v34 = vmul.f32 0.2, %v6132_v27 }
  0xc2   : > { %v2049_v45 = vrot.slane %v1877_v37, 1  ;;  %vm2466_vm9 = vcmp.ge.f32.partialorder %v6137_v17, 0.0  ;;  %v2484_v22 = vmul.f32 0.2, %v6137_v17  ;;  %v7983_v26 = vld [vmem:[%s8721_s1 + $0x34] sm:$0xf] }
  0xc3   : > { %vm2470_vm12 = vcmp.ge.f32.partialorder %v6141_v24, 0.0  ;;  %v2495_v35 = vsel %vm2459_vm10, %v6130_v19, %v2477_v25  ;;  %v6136_v37 = vld [vmem:[%s7608_s19 + $0x1e8] sm:$0x1]  ;;  %vm2474_vm8 = vcmp.ge.f32.partialorder %v6145_v18, 0.0  ;;  %vm3090_vm10 = vcmask 58368  }
  0xc4   : > { %6760 = vmatmul.mubr.msk.f32.gmra.mrb[4].mxu0 %vm692_vm2, %v1430_v39  ;;  %v6086_v39 = vld [vmem:[%s7608_s19 + $0x198] sm:$0x1]  ;;  %v2050_v54 = vsel %vm665_vm1, %v2048_v42, %v2049_v45  ;;  %v2483_v45 = vmul.f32 0.2, %v6136_v37  ;;  %3095 = vst.msk [vmem:[#allocation2 + $0x28] sm:$0x3] %vm3090_vm10, %v7369_v28 }
  0xc5   : > { %6762 = vmatprep.mubr.msk.f32.mxu0 %vm692_vm2, %v1433_v40  ;;  %v2045_v40 = vrot.slane %v7874_v8, 1  ;;  %vm1847_vm15 = vcmp.ge.f32.partialorder %v6086_v39, 0.0  ;;  %3091 = vst.msk [vmem:[#allocation2 + $0x8] sm:$0x3] %vm3090_vm10, %v7369_v28  ;;  %3093 = vst.msk [vmem:[#allocation2 + $0x18] sm:$0x3] %vm3090_vm10, %v7369_v28 }
  0xc6   : > { %3097 = vst.msk [vmem:[#allocation2 + $0x38] sm:$0x3] %vm3090_vm10, %v7369_v28  ;;  %3099 = vst.msk [vmem:[#allocation2 + $0x48] sm:$0x3] %vm3090_vm10, %v7369_v28 }
  0xc7   : > { %v2047_v51 = vsel %vm665_vm1, %v2045_v40, %v2046_v41  ;;  %v8006_v40 = vsel %vm2468_vm11, %v6139_v23, %v2486_v30  ;;  %v2663_v41 = vrot.slane %v2495_v35, 1  ;;  %3101 = vst.msk [vmem:[#allocation2 + $0x58] sm:$0x3] %vm3090_vm10, %v7369_v28  ;;  %3103 = vst.msk [vmem:[#allocation2 + $0x68] sm:$0x3] %vm3090_vm10, %v7369_v28 }
  0xc8   : > { %6763 = vmatmul.mubr.msk.f32.gmra.mrb[6].mxu0 %vm692_vm2, %v1692_v55  ;;  %v2055_v55 = vrot.slane %v1881_v48, 1  ;;  %v6140_v48 = vld [vmem:[%s7608_s19 + $0x208] sm:$0x1]  ;;  %3105 = vst.msk [vmem:[#allocation2 + $0x78] sm:$0x3] %vm3090_vm10, %v7369_v28 }
  0xc9   : > { %6767 = vmatprep.mubr.msk.f32.mxu0 %vm692_vm2, %v7848_v57  ;;  %v2057_v57 = vrot.slane %v1882_v31, 1  ;;  %vm2469_vm5 = vcmp.ge.f32.partialorder %v6140_v48, 0.0  ;;  %3107 = vst.msk [vmem:[#allocation2 + $0x88] sm:$0x3] %vm3090_vm10, %v7369_v28  ;;  %3109 = vst.msk [vmem:[#allocation2 + $0x98] sm:$0x3] %vm3090_vm10, %v7369_v28 }
  0xca   : > { %v2056_v60 = vsel %vm665_vm1, %v2054_v53, %v2055_v55  ;;  %v2669_v55 = vrot.slane %v2499_v46, 1 }
  0xcc   : > { %6768 = vmatmul.mubr.msk.f32.vlgmr.msra.gmra.mrb[0].mxu0 %vm692_vm2, %v7856_v62 }
  0xcd   : > { %6780 = vmatpush3.msk.msra.mxu0 %vm709_vm0, %v6099_v47  ;;  %6770 = vmatprep.mubr.msk.f32.mxu0 %vm692_vm2, %v7858_v0  ;;  %v1865_v47 = vmul.f32 0.2, %v6086_v39 }
  0xce   : > { %6793 = vmatprep.subr.msk.mxu0 %vm709_vm0, %v7864_v3 }
  0xcf   : > { %v1883_v56 = vsel %vm1847_vm15, %v6086_v39, %v1865_v47  ;;  %v2662_v39 = vrot.slane %v7966_v14, 1  ;;  %v2485_v47 = vmul.f32 0.2, %v6138_v38 }
  0xd0   : > { %6771 = vmatmul.mubr.msk.f32.gmra.mrb[2].mxu0 %vm692_vm2, %v7874_v8  ;;  %v2058_v59 = vrot.slane %v1883_v56, 1 }
  0xd1   : > { %6773 = vmatprep.mubr.msk.f32.mxu0 %vm692_vm2, %v7876_v10 }
  0xd2   : > { %v2059_v61 = vsel %vm665_vm1, %v2057_v57, %v2058_v59  ;;  %v2487_v57 = vmul.f32 0.2, %v6140_v48 }
  0xd4   : > { %6774 = vmatmul.mubr.msk.f32.gmra.mrb[4].mxu0 %vm692_vm2, %v7888_v20 }
  0xd5   : > { %6776 = vmatprep.mubr.msk.f32.mxu0 %vm692_vm2, %v7890_v21 }
  0xd8   : > { %6777 = vmatmul.mubr.msk.f32.gmra.mrb[6].mxu0 %vm692_vm2, %v1882_v31 }
  0xd9   : > { %6781 = vmatprep.mubr.msk.f32.mxu0 %vm692_vm2, %v2038_v33  ;;  %v6143_v33 = vld [vmem:[%s7608_s19 + $0x220] sm:$0xff] }
  0xda   : > { %vm2472_vm15 = vcmp.ge.f32.partialorder %v6143_v33, 0.0  ;;  %v2490_v42 = vmul.f32 0.2, %v6143_v33 }
  0xdc   : > { %6782 = vmatmul.mubr.msk.f32.vlgmr.msra.gmra.mrb[0].mxu0 %vm692_vm2, %v2041_v44  ;;  %v2508_v52 = vsel %vm2472_vm15, %v6143_v33, %v2490_v42 }
  0xdd   : > { %6794 = vmatpush3.msk.msra.mxu0 %vm709_vm0, %v7864_v3  ;;  %6784 = vmatprep.mubr.msk.f32.mxu0 %vm692_vm2, %v2044_v43  ;;  %v1867_v3 = vmul.f32 0.2, %v6088_v2 }
  0xde   : > { %6807 = vmatprep.subr.msk.mxu0 %vm709_vm0, %v6119_v49 }
  0xdf   : > { %v1885_v5 = vsel %vm1849_vm4, %v6088_v2, %v1867_v3  ;;  %vm2467_vm4 = vcmp.ge.f32.partialorder %v6138_v38, 0.0  ;;  %v2505_v3 = vsel %vm2469_vm5, %v6140_v48, %v2487_v57 }
  0xe0   : > { %6785 = vmatmul.mubr.msk.f32.gmra.mrb[2].mxu0 %vm692_vm2, %v2047_v51  ;;  %v2678_v9 = vrot.slane %v2505_v3, 1  ;;  %v6214_v3 = vld [vmem:[%s8723_s3 + $0x18] sm:$0xff] }
  0xe1   : > { %6787 = vmatprep.mubr.msk.f32.mxu0 %vm692_vm2, %v2050_v54 }
  0xe4   : > { %6788 = vmatmul.mubr.msk.f32.gmra.mrb[4].mxu0 %vm692_vm2, %v2053_v58 }
  0xe5   : > { %6790 = vmatprep.mubr.msk.f32.mxu0 %vm692_vm2, %v2056_v60 }
  0xe8   : > { %6791 = vmatmul.mubr.msk.f32.gmra.mrb[6].mxu0 %vm692_vm2, %v2059_v61 }
  0xe9   : > { %6795 = vmatprep.mubr.msk.f32.mxu0 %vm692_vm2, %v7856_v62  ;;  %v1866_v62 = vmul.f32 0.2, %v6087_v1 }
  0xec   : > { %6796 = vmatmul.mubr.msk.f32.vlgmr.msra.gmra.mrb[0].mxu0 %vm692_vm2, %v7858_v0  ;;  %v1884_v0 = vsel %vm1848_vm3, %v6087_v1, %v1866_v62  ;;  %vm2465_vm3 = vcmp.ge.f32.partialorder %v6136_v37, 0.0 }
  0xed   : > { %6808 = vmatpush3.msk.msra.mxu0 %vm709_vm0, %v6119_v49  ;;  %6798 = vmatprep.mubr.msk.f32.mxu0 %vm692_vm2, %v7874_v8  ;;  %v2316_v7 = vrot.slane %v1884_v0, 1  ;;  %v2317_v8 = vrot.slane %v1885_v5, 1  ;;  %v6142_v49 = vld [vmem:[%s7608_s19 + $0x218] sm:$0x1]  ;;  %v2501_v56 = vsel %vm2465_vm3, %v6136_v37, %v2483_v45 }
  0xee   : > { %6821 = vmatprep.subr.msk.mxu0 %vm709_vm0, %v6147_v63  ;;  %v2489_v59 = vmul.f32 0.2, %v6142_v49  ;;  %v2672_v62 = vrot.slane %v2501_v56, 1 }
  0xef   : > { %v2318_v12 = vsel %vm665_vm1, %v2316_v7, %v2317_v8  ;;  %v2677_v7 = vrot.slane %v8006_v40, 1 }
  0xf0   : > { %6799 = vmatmul.mubr.msk.f32.gmra.mrb[2].mxu0 %vm692_vm2, %v7876_v10  ;;  %v6131_v10 = vld [vmem:[%s7608_s19 + $0x1c0] sm:$0xff] }
  0xf1   : > { %6801 = vmatprep.mubr.msk.f32.mxu0 %vm692_vm2, %v7888_v20  ;;  %v2478_v13 = vmul.f32 0.2, %v6131_v10  ;;  %vm2460_vm6 = vcmp.ge.f32.partialorder %v6131_v10, 0.0 }
  0xf3   : > { %v7974_v20 = vsel %vm2460_vm6, %v6131_v10, %v2478_v13  ;;  %vm2471_vm6 = vcmp.ge.f32.partialorder %v6142_v49, 0.0 }
  0xf4   : > { %6802 = vmatmul.mubr.msk.f32.gmra.mrb[4].mxu0 %vm692_vm2, %v7890_v21  ;;  %v7976_v21 = vsel %vm2462_vm7, %v6133_v11, %v2480_v15  ;;  %v2665_v50 = vrot.slane %v7974_v20, 1  ;;  %v2507_v5 = vsel %vm2471_vm6, %v6142_v49, %v2489_v59  ;;  %v2679_v15 = vsel %vm665_vm1, %v2677_v7, %v2678_v9 }
  0xf5   : > { %6804 = vmatprep.mubr.msk.f32.mxu0 %vm692_vm2, %v1882_v31  ;;  %v7994_v31 = vsel %vm2466_vm9, %v6137_v17, %v2484_v22  ;;  %v2492_v22 = vmul.f32 0.2, %v6145_v18  ;;  %vm3088_vm9 = vcmask 64512  }
  0xf6   : > { %3094 = vst.msk [vmem:[#allocation2 + $0x20] sm:$0xff] %vm3088_vm9, %v7369_v28  ;;  %3089 = vst.msk [vmem:[#allocation2] sm:$0xff] %vm3088_vm9, %v7369_v28 }
  0xf7   : > { %3092 = vst.msk [vmem:[#allocation2 + $0x10] sm:$0xff] %vm3088_vm9, %v7369_v28  ;;  %3096 = vst.msk [vmem:[#allocation2 + $0x30] sm:$0xff] %vm3088_vm9, %v7369_v28 }
  0xf8   : > { %6805 = vmatmul.mubr.msk.f32.gmra.mrb[6].mxu0 %vm692_vm2, %v1884_v0  ;;  %3098 = vst.msk [vmem:[#allocation2 + $0x40] sm:$0xff] %vm3088_vm9, %v7369_v28  ;;  %3100 = vst.msk [vmem:[#allocation2 + $0x50] sm:$0xff] %vm3088_vm9, %v7369_v28 }
  0xf9   : > { %6809 = vmatprep.mubr.msk.f32.mxu0 %vm692_vm2, %v2041_v44  ;;  %v8008_v44 = vsel %vm2470_vm12, %v6141_v24, %v2488_v32  ;;  %3102 = vst.msk [vmem:[#allocation2 + $0x60] sm:$0xff] %vm3088_vm9, %v7369_v28  ;;  %3104 = vst.msk [vmem:[#allocation2 + $0x70] sm:$0xff] %vm3088_vm9, %v7369_v28  ;;  %v6187_v32 = vld [vmem:[%s8722_s2] ss:$0 sm:$0xff] }
  0xfa   : > { %v2680_v10 = vrot.slane %v8008_v44, 1  ;;  %3106 = vst.msk [vmem:[#allocation2 + $0x80] sm:$0xff] %vm3088_vm9, %v7369_v28  ;;  %3108 = vst.msk [vmem:[#allocation2 + $0x90] sm:$0xff] %vm3088_vm9, %v7369_v28  ;;  %v6296_v28 = vld [vmem:[%s8723_s3 + $0x58] sm:$0xff] }
  0xfc   : > { %6810 = vmatmul.mubr.msk.f32.vlgmr.msra.gmra.mrb[0].mxu0 %vm692_vm2, %v2044_v43  ;;  %v2497_v43 = vsel %vm2461_vm13, %v6132_v27, %v2479_v34 }
  0xfd   : > { %6822 = vmatpush3.msk.msra.mxu0 %vm709_vm0, %v6147_v63  ;;  %6812 = vmatprep.mubr.msk.f32.mxu0 %vm692_vm2, %v2047_v51  ;;  %v2668_v51 = vrot.slane %v7976_v21, 1  ;;  %v2666_v53 = vrot.slane %v2497_v43, 1  ;;  %v2674_v63 = vrot.slane %v7994_v31, 1  ;;  %v8096_v30 = vld [vmem:[#allocation2 + $0x1] sm:$0xff] }
  0xfe   : > { %6835 = vmatprep.subr.msk.mxu0 %vm709_vm0, %v6157_v4  ;;  %6879 = vmatprep.mubr.msk.f32.mxu1 %vm3088_vm9, %v8096_v30 }
  0xff   : > { %v2667_v1 = vsel %vm665_vm1, %v2665_v50, %v2666_v53  ;;  %v2670_v0 = vsel %vm665_vm1, %v2668_v51, %v2669_v55  ;;  %v6205_v55 = vld [vmem:[%s8723_s3 + $0x10] sm:$0xff] }
 0x100   : > { %6813 = vmatmul.mubr.msk.f32.gmra.mrb[2].mxu0 %vm692_vm2, %v2050_v54  ;;  %v2664_v54 = vsel %vm665_vm1, %v2662_v39, %v2663_v41 }
 0x101   : > { %6815 = vmatprep.mubr.msk.f32.mxu0 %vm692_vm2, %v2053_v58  ;;  %v2503_v58 = vsel %vm2467_vm4, %v6138_v38, %v2485_v47 }
 0x102   : > { %v2675_v2 = vrot.slane %v2503_v58, 1 }
 0x104   : > { %6816 = vmatmul.mubr.msk.f32.gmra.mrb[4].mxu0 %vm692_vm2, %v2056_v60  ;;  %v6144_v60 = vld [vmem:[%s7608_s19 + $0x228] sm:$0x1]  ;;  %v2676_v11 = vsel %vm665_vm1, %v2674_v63, %v2675_v2 }
 0x105   : > { %6818 = vmatprep.mubr.msk.f32.mxu0 %vm692_vm2, %v2059_v61  ;;  %v2671_v61 = vrot.slane %v7992_v29, 1  ;;  %vm2473_vm7 = vcmp.ge.f32.partialorder %v6144_v60, 0.0 }
 0x107   : > { %v2673_v8 = vsel %vm665_vm1, %v2671_v61, %v2672_v62  ;;  %v3119_v62 = vld [vmem:[#allocation2] sm:$0xff] }
 0x108   : > { %6819 = vmatmul.mubr.msk.f32.gmra.mrb[6].mxu0 %vm692_vm2, %v2318_v12  ;;  %v2681_v12 = vrot.slane %v2507_v5, 1 }
 0x109   : > { %6823 = vmatprep.mubr.msk.f32.mxu0 %vm692_vm2, %v7966_v14  ;;  %v2683_v14 = vrot.slane %v2508_v52, 1 }
 0x10a   : > { %v2682_v17 = vsel %vm665_vm1, %v2680_v10, %v2681_v12  ;;  %v6225_v10 = vld [vmem:[%s8723_s3 + $0x28] sm:$0xff]  ;;  %v6224_v12 = vld [vmem:[%s8723_s3 + $0x20] sm:$0xff] }
 0x10c   : > { %6824 = vmatmul.mubr.msk.f32.vlgmr.msra.gmra.mrb[0].mxu0 %vm692_vm2, %v7974_v20 }
 0x10d   : > { %6836 = vmatpush3.msk.msra.mxu0 %vm709_vm0, %v6157_v4  ;;  %6826 = vmatprep.mubr.msk.f32.mxu0 %vm692_vm2, %v7976_v21  ;;  %v2491_v4 = vmul.f32 0.2, %v6144_v60 }
 0x10e   : > { %6849 = vmatprep.subr.msk.mxu0 %vm709_vm0, %v7983_v26 }
 0x10f   : > { %v2509_v13 = vsel %vm2473_vm7, %v6144_v60, %v2491_v4 }
 0x110   : > { %6827 = vmatmul.mubr.msk.f32.gmra.mrb[2].mxu0 %vm692_vm2, %v7992_v29  ;;  %v2684_v16 = vrot.slane %v2509_v13, 1  ;;  %v3775_v13 = vld [vmem:[#allocation2 + $0x2] sm:$0xff] }
 0x111   : > { %6829 = vmatprep.mubr.msk.f32.mxu0 %vm692_vm2, %v7994_v31 }
 0x112   : > { %v2685_v19 = vsel %vm665_vm1, %v2683_v14, %v2684_v16  ;;  %v6242_v16 = vld [vmem:[%s8723_s3 + $0x30] sm:$0xff] }
 0x114   : > { %6830 = vmatmul.mubr.msk.f32.gmra.mrb[4].mxu0 %vm692_vm2, %v8006_v40 }
 0x115   : > { %6832 = vmatprep.mubr.msk.f32.mxu0 %vm692_vm2, %v8008_v44 }
 0x118   : > { %6833 = vmatmul.mubr.msk.f32.gmra.mrb[6].mxu0 %vm692_vm2, %v2508_v52 }
 0x119   : > { %6837 = vmatprep.mubr.msk.f32.mxu0 %vm692_vm2, %v2664_v54 }
 0x11c   : > { %6838 = vmatmul.mubr.msk.f32.vlgmr.msra.gmra.mrb[0].mxu0 %vm692_vm2, %v2667_v1 }
 0x11d   : > { %6850 = vmatpush3.msk.msra.mxu0 %vm709_vm0, %v7983_v26  ;;  %6840 = vmatprep.mubr.msk.f32.mxu0 %vm692_vm2, %v2670_v0 }
 0x11e   : > { %6863 = vmatprep.subr.msk.mxu0 %vm709_vm0, %v6177_v6 }
 0x120   : > { %6841 = vmatmul.mubr.msk.f32.gmra.mrb[2].mxu0 %vm692_vm2, %v2673_v8 }
 0x121   : > { %6843 = vmatprep.mubr.msk.f32.mxu0 %vm692_vm2, %v2676_v11 }
 0x124   : > { %6844 = vmatmul.mubr.msk.f32.gmra.mrb[4].mxu0 %vm692_vm2, %v2679_v15 }
 0x125   : > { %6846 = vmatprep.mubr.msk.f32.mxu0 %vm692_vm2, %v2682_v17 }
 0x128   : > { %6847 = vmatmul.mubr.msk.f32.gmra.mrb[6].mxu0 %vm692_vm2, %v2685_v19 }
 0x129   : > { %6851 = vmatprep.mubr.msk.f32.mxu0 %vm692_vm2, %v7974_v20  ;;  %v2510_v20 = vsel %vm2474_vm8, %v6145_v18, %v2492_v22 }
 0x12a   : > { %v2942_v25 = vrot.slane %v2510_v20, 1 }
 0x12c   : > { %6852 = vmatmul.mubr.msk.f32.vlgmr.msra.gmra.mrb[0].mxu0 %vm692_vm2, %v7976_v21  ;;  %v6146_v21 = vld [vmem:[%s7608_s19 + $0x238] sm:$0x1]  ;;  %s5972_s19 = sshll.u32 %s540_s15, 8  ;;  %s5973_s15 = sshll.u32 %s573_s21, 1 }
 0x12d   : > { %6864 = vmatpush3.msk.msra.mxu0 %vm709_vm0, %v6177_v6  ;;  %6854 = vmatprep.mubr.msk.f32.mxu0 %vm692_vm2, %v7992_v29  ;;  %v2493_v23 = vmul.f32 0.2, %v6146_v21  ;;  %vm2475_vm0 = vcmp.ge.f32.partialorder %v6146_v21, 0.0  ;;  %v6188_v29 = vld [vmem:[%s8723_s3 + $0x8] sm:$0xff]  ;;  %s8462_s17 = scalar_lea.vmem [#allocation4], %s5972_s19  ;;  %s575_s23 = scalar_lea.vmem %s8726_s6, %s5973_s15 }
 0x12e   : > { %6877 = vmatprep.subr.mxu1 %v6188_v29 }
 0x12f   : > { %v2511_v24 = vsel %vm2475_vm0, %v6146_v21, %v2493_v23  ;;  %6878 = vmatpush3.msra.mxu1 %v6188_v29  ;;  %v6251_v23 = vld [vmem:[%s8723_s3 + $0x38] sm:$0xff]  ;;  %v6315_v29 = vld [vmem:[%s8723_s3 + $0x68] sm:$0xff] }
 0x130   : > { %6855 = vmatmul.mubr.msk.f32.gmra.mrb[2].mxu0 %vm692_vm2, %v7994_v31  ;;  %v2943_v26 = vrot.slane %v2511_v24, 1  ;;  %v3127_v31 = vld [vmem:[%s8723_s3] sm:$0xff]  ;;  %v6270_v24 = vld [vmem:[%s8723_s3 + $0x48] sm:$0xff] }
 0x131   : > { %6857 = vmatprep.mubr.msk.f32.mxu0 %vm692_vm2, %v8006_v40  ;;  %6891 = vmatprep.subr.mxu1 %v3127_v31 }
 0x132   : > { %v2944_v27 = vsel %vm665_vm1, %v2942_v25, %v2943_v26  ;;  %v6269_v25 = vld [vmem:[%s8723_s3 + $0x40] sm:$0xff]  ;;  %vm5710_vm1 = vcmask 24576  }
 0x134   : > { %6858 = vmatmul.mubr.msk.f32.gmra.mrb[4].mxu0 %vm692_vm2, %v8008_v44 }
 0x135   : > { %6860 = vmatprep.mubr.msk.f32.mxu0 %vm692_vm2, %v2508_v52 }
 0x138   : > { %6861 = vmatmul.mubr.msk.f32.gmra.mrb[6].mxu0 %vm692_vm2, %v2510_v20 }
 0x139   : > { %6865 = vmatprep.mubr.msk.f32.mxu0 %vm692_vm2, %v2667_v1 }
 0x13c   : > { %6866 = vmatmul.mubr.msk.f32.vlgmr.msra.gmra.mrb[0].mxu0 %vm692_vm2, %v2670_v0 }
 0x13d   : > { %6868 = vmatprep.mubr.msk.f32.mxu0 %vm692_vm2, %v2673_v8 }
 0x140   : > { %6869 = vmatmul.mubr.msk.f32.gmra.mrb[2].mxu0 %vm692_vm2, %v2676_v11 }
 0x141   : > { %6871 = vmatprep.mubr.msk.f32.mxu0 %vm692_vm2, %v2679_v15 }
 0x144   : > { %6872 = vmatmul.mubr.msk.f32.gmra.mrb[4].mxu0 %vm692_vm2, %v2682_v17 }
 0x145   : > { %6874 = vmatprep.mubr.msk.f32.mxu0 %vm692_vm2, %v2685_v19 }
 0x148   : > { %6875 = vmatmul.mubr.msk.f32.gmra.mrb[6].mxu0 %vm692_vm2, %v2944_v27  ;;  %v6287_v27 = vld [vmem:[%s8723_s3 + $0x50] sm:$0xff] }
 0x20f   : > { %v6867_v33 = vpop.f32.mrb[0].mxu0 }
 0x210   : > { %v3073_v34 = vadd.f32 %v6867_v33, %v6187_v32  ;;  %v3018_v35 = vpop.f32.mrb[1].mxu0  ;;  %v6332_v33 = vld [vmem:[%s8723_s3 + $0x70] sm:$0xff] }
 0x211   : > { %v3072_v36 = vadd.f32 %v6187_v32, %v3018_v35  ;;  %v5494_v35 = vld [vmem:[#allocation2 + $0x92] sm:$0xff] }
 0x212   : > { %v3081_v37 = vmax.f32 %v3073_v34, 0.0  ;;  %v6341_v34 = vld [vmem:[%s8723_s3 + $0x78] sm:$0xff] }
 0x213   : > { %v3080_v38 = vmax.f32 %v3072_v36, 0.0  ;;  %v6870_v39 = vpop.f32.mrb[2].mxu0  ;;  %v8457_v36 = vld [vmem:[%s8724_s4] ss:$0 sm:$0xff] }
 0x214   : > { %3112 = vst.msk [vmem:[#allocation2 + $0x21] sm:$0xff] %vm3088_vm9, %v3081_v37  ;;  %v3075_v40 = vadd.f32 %v6870_v39, %v6187_v32  ;;  %v3028_v42 = vpop.f32.mrb[3].mxu0 }
 0x215   : > { %3111 = vst.msk [vmem:[#allocation2 + $0x11] sm:$0xff] %vm3088_vm9, %v3080_v38  ;;  %v3074_v44 = vadd.f32 %v6187_v32, %v3028_v42 }
 0x216   : > { %v3083_v41 = vmax.f32 %v3075_v40, 0.0 }
 0x217   : > { %v3082_v43 = vmax.f32 %v3074_v44, 0.0  ;;  %v6873_v45 = vpop.f32.mrb[4].mxu0 }
 0x218   : > { %3114 = vst.msk [vmem:[#allocation2 + $0x41] sm:$0xff] %vm3088_vm9, %v3083_v41  ;;  %v3077_v46 = vadd.f32 %v6873_v45, %v6187_v32  ;;  %v3038_v47 = vpop.f32.mrb[5].mxu0 }
 0x219   : > { %3113 = vst.msk [vmem:[#allocation2 + $0x31] sm:$0xff] %vm3088_vm9, %v3082_v43  ;;  %v3076_v48 = vadd.f32 %v6187_v32, %v3038_v47 }
 0x21a   : > { %v3085_v49 = vmax.f32 %v3077_v46, 0.0 }
 0x21b   : > { %v3084_v50 = vmax.f32 %v3076_v48, 0.0  ;;  %v6876_v51 = vpop.f32.mrb[6].mxu0  ;;  %v8119_v57 = vld [vmem:[#allocation2 + $0x21] sm:$0xff] }
 0x21c   : > { %3116 = vst.msk [vmem:[#allocation2 + $0x61] sm:$0xff] %vm3088_vm9, %v3085_v49  ;;  %v3079_v52 = vadd.f32 %v6876_v51, %v6187_v32  ;;  %v3048_v53 = vpop.f32.mrb[7].mxu0  ;;  %v8111_v54 = vld [vmem:[#allocation2 + $0x11] sm:$0xff]  ;;  %v8153_v4 = vld [vmem:[#allocation2 + $0x20] sm:$0xff] }
 0x21d   : > { %3115 = vst.msk [vmem:[#allocation2 + $0x51] sm:$0xff] %vm3088_vm9, %v3084_v50  ;;  %v3078_v56 = vadd.f32 %v6187_v32, %v3048_v53  ;;  %6880 = vmatmul.mubr.msk.f32.vlgmr.msra.gmra.mrb[0].mxu1 %vm3088_vm9, %v8111_v54  ;;  %v8146_v2 = vld [vmem:[#allocation2 + $0x10] sm:$0xff]  ;;  %v8227_v17 = vld [vmem:[#allocation2 + $0x22] sm:$0xff] }
 0x21e   : > { %v3087_v58 = vmax.f32 %v3079_v52, 0.0  ;;  %6892 = vmatpush3.msra.mxu1 %v3127_v31  ;;  %6882 = vmatprep.mubr.msk.f32.mxu1 %vm3088_vm9, %v8119_v57  ;;  %v8220_v15 = vld [vmem:[#allocation2 + $0x12] sm:$0xff]  ;;  %v6314_v31 = vld [vmem:[%s8723_s3 + $0x60] sm:$0xff] }
 0x21f   : > { %v3086_v59 = vmax.f32 %v3078_v56, 0.0  ;;  %6905 = vmatprep.subr.mxu1 %v6205_v55  ;;  %v8129_v61 = vld [vmem:[#allocation2 + $0x41] sm:$0xff]  ;;  %v4846_v32 = vld [vmem:[#allocation2 + $0x91] sm:$0xff] }
 0x220   : > { %3118 = vst.msk [vmem:[#allocation2 + $0x81] sm:$0xff] %vm3088_vm9, %v3087_v58  ;;  %v8124_v60 = vld [vmem:[#allocation2 + $0x31] sm:$0xff]  ;;  %v8161_v6 = vld [vmem:[#allocation2 + $0x40] sm:$0xff] }
 0x221   : > { %3117 = vst.msk [vmem:[#allocation2 + $0x71] sm:$0xff] %vm3088_vm9, %v3086_v59  ;;  %6883 = vmatmul.mubr.msk.f32.gmra.mrb[2].mxu1 %vm3088_vm9, %v8124_v60  ;;  %v8157_v5 = vld [vmem:[#allocation2 + $0x30] sm:$0xff]  ;;  %v8235_v18 = vld [vmem:[#allocation2 + $0x42] sm:$0xff] }
 0x222   : > { %6885 = vmatprep.mubr.msk.f32.mxu1 %vm3088_vm9, %v8129_v61  ;;  %v8231_v19 = vld [vmem:[#allocation2 + $0x32] sm:$0xff] }
 0x223   : > { %v8137_v1 = vld [vmem:[#allocation2 + $0x61] sm:$0xff] }
 0x224   : > { %v8133_v63 = vld [vmem:[#allocation2 + $0x51] sm:$0xff]  ;;  %v8169_v8 = vld [vmem:[#allocation2 + $0x60] sm:$0xff] }
 0x225   : > { %6886 = vmatmul.mubr.msk.f32.gmra.mrb[4].mxu1 %vm3088_vm9, %v8133_v63  ;;  %v8165_v7 = vld [vmem:[#allocation2 + $0x50] sm:$0xff]  ;;  %v8243_v20 = vld [vmem:[#allocation2 + $0x62] sm:$0xff] }
 0x226   : > { %6888 = vmatprep.mubr.msk.f32.mxu1 %vm3088_vm9, %v8137_v1  ;;  %v8239_v22 = vld [vmem:[#allocation2 + $0x52] sm:$0xff] }
 0x227   : > { %v8194_v11 = vld [vmem:[#allocation2 + $0x80] sm:$0xff] }
 0x228   : > { %v8141_v0 = vld [vmem:[#allocation2 + $0x71] sm:$0xff]  ;;  %v8215_v14 = vld [vmem:[#allocation2 + $0x81] sm:$0xff] }
 0x229   : > { %6889 = vmatmul.mubr.msk.f32.gmra.mrb[6].mxu1 %vm3088_vm9, %v8141_v0  ;;  %v8173_v9 = vld [vmem:[#allocation2 + $0x70] sm:$0xff]  ;;  %v8306_v26 = vld [vmem:[#allocation2 + $0x82] sm:$0xff] }
 0x22a   : > { %6893 = vmatprep.mubr.msk.f32.mxu1 %vm3088_vm9, %v3119_v62  ;;  %v8247_v21 = vld [vmem:[#allocation2 + $0x72] sm:$0xff] }
 0x22d   : > { %6894 = vmatmul.mubr.msk.f32.vlgmr.msra.gmra.mrb[0].mxu1 %vm3088_vm9, %v8146_v2 }
 0x22e   : > { %6906 = vmatpush3.msra.mxu1 %v6205_v55  ;;  %6896 = vmatprep.mubr.msk.f32.mxu1 %vm3088_vm9, %v8153_v4 }
 0x22f   : > { %6919 = vmatprep.subr.mxu1 %v6214_v3 }
 0x231   : > { %6897 = vmatmul.mubr.msk.f32.gmra.mrb[2].mxu1 %vm3088_vm9, %v8157_v5 }
 0x232   : > { %6899 = vmatprep.mubr.msk.f32.mxu1 %vm3088_vm9, %v8161_v6 }
 0x235   : > { %6900 = vmatmul.mubr.msk.f32.gmra.mrb[4].mxu1 %vm3088_vm9, %v8165_v7 }
 0x236   : > { %6902 = vmatprep.mubr.msk.f32.mxu1 %vm3088_vm9, %v8169_v8 }
 0x239   : > { %6903 = vmatmul.mubr.msk.f32.gmra.mrb[6].mxu1 %vm3088_vm9, %v8173_v9 }
 0x23a   : > { %6907 = vmatprep.mubr.msk.f32.mxu1 %vm3088_vm9, %v8146_v2 }
 0x23d   : > { %6908 = vmatmul.mubr.msk.f32.vlgmr.msra.gmra.mrb[0].mxu1 %vm3088_vm9, %v8153_v4 }
 0x23e   : > { %6920 = vmatpush3.msra.mxu1 %v6214_v3  ;;  %6910 = vmatprep.mubr.msk.f32.mxu1 %vm3088_vm9, %v8157_v5 }
 0x23f   : > { %6933 = vmatprep.subr.mxu1 %v6225_v10 }
 0x241   : > { %6911 = vmatmul.mubr.msk.f32.gmra.mrb[2].mxu1 %vm3088_vm9, %v8161_v6 }
 0x242   : > { %6913 = vmatprep.mubr.msk.f32.mxu1 %vm3088_vm9, %v8165_v7 }
 0x245   : > { %6914 = vmatmul.mubr.msk.f32.gmra.mrb[4].mxu1 %vm3088_vm9, %v8169_v8 }
 0x246   : > { %6916 = vmatprep.mubr.msk.f32.mxu1 %vm3088_vm9, %v8173_v9 }
 0x249   : > { %6917 = vmatmul.mubr.msk.f32.gmra.mrb[6].mxu1 %vm3088_vm9, %v8194_v11 }
 0x24a   : > { %6921 = vmatprep.mubr.msk.f32.mxu1 %vm3088_vm9, %v8111_v54 }
 0x24d   : > { %6922 = vmatmul.mubr.msk.f32.vlgmr.msra.gmra.mrb[0].mxu1 %vm3088_vm9, %v8119_v57 }
 0x24e   : > { %6934 = vmatpush3.msra.mxu1 %v6225_v10  ;;  %6924 = vmatprep.mubr.msk.f32.mxu1 %vm3088_vm9, %v8124_v60 }
 0x24f   : > { %6947 = vmatprep.subr.mxu1 %v6224_v12 }
 0x251   : > { %6925 = vmatmul.mubr.msk.f32.gmra.mrb[2].mxu1 %vm3088_vm9, %v8129_v61 }
 0x252   : > { %6927 = vmatprep.mubr.msk.f32.mxu1 %vm3088_vm9, %v8133_v63 }
 0x255   : > { %6928 = vmatmul.mubr.msk.f32.gmra.mrb[4].mxu1 %vm3088_vm9, %v8137_v1 }
 0x256   : > { %6930 = vmatprep.mubr.msk.f32.mxu1 %vm3088_vm9, %v8141_v0 }
 0x259   : > { %6931 = vmatmul.mubr.msk.f32.gmra.mrb[6].mxu1 %vm3088_vm9, %v8215_v14 }
 0x25a   : > { %6935 = vmatprep.mubr.msk.f32.mxu1 %vm3088_vm9, %v3775_v13 }
 0x25d   : > { %6936 = vmatmul.mubr.msk.f32.vlgmr.msra.gmra.mrb[8].mxu1 %vm3088_vm9, %v8220_v15 }
 0x25e   : > { %6948 = vmatpush3.msra.mxu1 %v6224_v12  ;;  %6938 = vmatprep.mubr.msk.f32.mxu1 %vm3088_vm9, %v8227_v17 }
 0x25f   : > { %6961 = vmatprep.subr.mxu1 %v6242_v16 }
 0x261   : > { %6939 = vmatmul.mubr.msk.f32.gmra.mrb[10].mxu1 %vm3088_vm9, %v8231_v19 }
 0x262   : > { %6941 = vmatprep.mubr.msk.f32.mxu1 %vm3088_vm9, %v8235_v18 }
 0x265   : > { %6942 = vmatmul.mubr.msk.f32.gmra.mrb[12].mxu1 %vm3088_vm9, %v8239_v22 }
 0x266   : > { %6944 = vmatprep.mubr.msk.f32.mxu1 %vm3088_vm9, %v8243_v20 }
 0x269   : > { %6945 = vmatmul.mubr.msk.f32.gmra.mrb[14].mxu1 %vm3088_vm9, %v8247_v21 }
 0x26a   : > { %6949 = vmatprep.mubr.msk.f32.mxu1 %vm3088_vm9, %v8096_v30  ;;  %v4699_v30 = vld [vmem:[#allocation2 + $0x90] sm:$0xff] }
 0x26d   : > { %6950 = vmatmul.mubr.msk.f32.vlgmr.msra.gmra.mrb[8].mxu1 %vm3088_vm9, %v8111_v54 }
 0x26e   : > { %6962 = vmatpush3.msra.mxu1 %v6242_v16  ;;  %6952 = vmatprep.mubr.msk.f32.mxu1 %vm3088_vm9, %v8119_v57 }
 0x26f   : > { %6975 = vmatprep.subr.mxu1 %v6251_v23 }
 0x271   : > { %6953 = vmatmul.mubr.msk.f32.gmra.mrb[10].mxu1 %vm3088_vm9, %v8124_v60 }
 0x272   : > { %6955 = vmatprep.mubr.msk.f32.mxu1 %vm3088_vm9, %v8129_v61 }
 0x275   : > { %6956 = vmatmul.mubr.msk.f32.gmra.mrb[12].mxu1 %vm3088_vm9, %v8133_v63 }
 0x276   : > { %6958 = vmatprep.mubr.msk.f32.mxu1 %vm3088_vm9, %v8137_v1 }
 0x279   : > { %6959 = vmatmul.mubr.msk.f32.gmra.mrb[14].mxu1 %vm3088_vm9, %v8141_v0 }
 0x27a   : > { %6963 = vmatprep.mubr.msk.f32.mxu1 %vm3088_vm9, %v8111_v54 }
 0x27d   : > { %6964 = vmatmul.mubr.msk.f32.vlgmr.msra.gmra.mrb[8].mxu1 %vm3088_vm9, %v8119_v57 }
 0x27e   : > { %6976 = vmatpush3.msra.mxu1 %v6251_v23  ;;  %6966 = vmatprep.mubr.msk.f32.mxu1 %vm3088_vm9, %v8124_v60 }
 0x27f   : > { %6989 = vmatprep.subr.mxu1 %v6270_v24 }
 0x281   : > { %6967 = vmatmul.mubr.msk.f32.gmra.mrb[10].mxu1 %vm3088_vm9, %v8129_v61 }
 0x282   : > { %6969 = vmatprep.mubr.msk.f32.mxu1 %vm3088_vm9, %v8133_v63 }
 0x285   : > { %6970 = vmatmul.mubr.msk.f32.gmra.mrb[12].mxu1 %vm3088_vm9, %v8137_v1 }
 0x286   : > { %6972 = vmatprep.mubr.msk.f32.mxu1 %vm3088_vm9, %v8141_v0 }
 0x289   : > { %6973 = vmatmul.mubr.msk.f32.gmra.mrb[14].mxu1 %vm3088_vm9, %v8215_v14 }
 0x28a   : > { %6977 = vmatprep.mubr.msk.f32.mxu1 %vm3088_vm9, %v8220_v15 }
 0x28d   : > { %6978 = vmatmul.mubr.msk.f32.vlgmr.msra.gmra.mrb[8].mxu1 %vm3088_vm9, %v8227_v17 }
 0x28e   : > { %6990 = vmatpush3.msra.mxu1 %v6270_v24  ;;  %6980 = vmatprep.mubr.msk.f32.mxu1 %vm3088_vm9, %v8231_v19 }
 0x28f   : > { %7003 = vmatprep.subr.mxu1 %v6269_v25 }
 0x291   : > { %6981 = vmatmul.mubr.msk.f32.gmra.mrb[10].mxu1 %vm3088_vm9, %v8235_v18 }
 0x292   : > { %6983 = vmatprep.mubr.msk.f32.mxu1 %vm3088_vm9, %v8239_v22 }
 0x295   : > { %6984 = vmatmul.mubr.msk.f32.gmra.mrb[12].mxu1 %vm3088_vm9, %v8243_v20 }
 0x296   : > { %6986 = vmatprep.mubr.msk.f32.mxu1 %vm3088_vm9, %v8247_v21 }
 0x299   : > { %6987 = vmatmul.mubr.msk.f32.gmra.mrb[14].mxu1 %vm3088_vm9, %v8306_v26 }
 0x29a   : > { %6991 = vmatprep.mubr.msk.f32.mxu1 %vm3088_vm9, %v8111_v54 }
 0x29d   : > { %6992 = vmatmul.mubr.msk.f32.vlgmr.msra.gmra.mrb[16].mxu1 %vm3088_vm9, %v8119_v57 }
 0x29e   : > { %7004 = vmatpush3.msra.mxu1 %v6269_v25  ;;  %6994 = vmatprep.mubr.msk.f32.mxu1 %vm3088_vm9, %v8124_v60 }
 0x29f   : > { %7017 = vmatprep.subr.mxu1 %v6287_v27 }
 0x2a1   : > { %6995 = vmatmul.mubr.msk.f32.gmra.mrb[18].mxu1 %vm3088_vm9, %v8129_v61 }
 0x2a2   : > { %6997 = vmatprep.mubr.msk.f32.mxu1 %vm3088_vm9, %v8133_v63 }
 0x2a5   : > { %6998 = vmatmul.mubr.msk.f32.gmra.mrb[20].mxu1 %vm3088_vm9, %v8137_v1 }
 0x2a6   : > { %7000 = vmatprep.mubr.msk.f32.mxu1 %vm3088_vm9, %v8141_v0 }
 0x2a9   : > { %7001 = vmatmul.mubr.msk.f32.gmra.mrb[22].mxu1 %vm3088_vm9, %v8215_v14 }
 0x2aa   : > { %7005 = vmatprep.mubr.msk.f32.mxu1 %vm3088_vm9, %v8146_v2 }
 0x2ad   : > { %7006 = vmatmul.mubr.msk.f32.vlgmr.msra.gmra.mrb[16].mxu1 %vm3088_vm9, %v8153_v4 }
 0x2ae   : > { %7018 = vmatpush3.msra.mxu1 %v6287_v27  ;;  %7008 = vmatprep.mubr.msk.f32.mxu1 %vm3088_vm9, %v8157_v5 }
 0x2af   : > { %7031 = vmatprep.subr.mxu1 %v6296_v28 }
 0x2b1   : > { %7009 = vmatmul.mubr.msk.f32.gmra.mrb[18].mxu1 %vm3088_vm9, %v8161_v6 }
 0x2b2   : > { %7011 = vmatprep.mubr.msk.f32.mxu1 %vm3088_vm9, %v8165_v7 }
 0x2b5   : > { %7012 = vmatmul.mubr.msk.f32.gmra.mrb[20].mxu1 %vm3088_vm9, %v8169_v8 }
 0x2b6   : > { %7014 = vmatprep.mubr.msk.f32.mxu1 %vm3088_vm9, %v8173_v9 }
 0x2b9   : > { %7015 = vmatmul.mubr.msk.f32.gmra.mrb[22].mxu1 %vm3088_vm9, %v8194_v11 }
 0x2ba   : > { %7019 = vmatprep.mubr.msk.f32.mxu1 %vm3088_vm9, %v8153_v4 }
 0x2bd   : > { %7020 = vmatmul.mubr.msk.f32.vlgmr.msra.gmra.mrb[16].mxu1 %vm3088_vm9, %v8157_v5 }
 0x2be   : > { %7032 = vmatpush3.msra.mxu1 %v6296_v28  ;;  %7022 = vmatprep.mubr.msk.f32.mxu1 %vm3088_vm9, %v8161_v6 }
 0x2bf   : > { %7045 = vmatprep.subr.mxu1 %v6315_v29 }
 0x2c1   : > { %7023 = vmatmul.mubr.msk.f32.gmra.mrb[18].mxu1 %vm3088_vm9, %v8165_v7 }
 0x2c2   : > { %7025 = vmatprep.mubr.msk.f32.mxu1 %vm3088_vm9, %v8169_v8 }
 0x2c5   : > { %7026 = vmatmul.mubr.msk.f32.gmra.mrb[20].mxu1 %vm3088_vm9, %v8173_v9 }
 0x2c6   : > { %7028 = vmatprep.mubr.msk.f32.mxu1 %vm3088_vm9, %v8194_v11 }
 0x2c9   : > { %7029 = vmatmul.mubr.msk.f32.gmra.mrb[22].mxu1 %vm3088_vm9, %v4699_v30 }
 0x2ca   : > { %7033 = vmatprep.mubr.msk.f32.mxu1 %vm3088_vm9, %v8119_v57 }
 0x2cd   : > { %7034 = vmatmul.mubr.msk.f32.vlgmr.msra.gmra.mrb[16].mxu1 %vm3088_vm9, %v8124_v60 }
 0x2ce   : > { %7046 = vmatpush3.msra.mxu1 %v6315_v29  ;;  %7036 = vmatprep.mubr.msk.f32.mxu1 %vm3088_vm9, %v8129_v61 }
 0x2cf   : > { %7059 = vmatprep.subr.mxu1 %v6314_v31 }
 0x2d1   : > { %7037 = vmatmul.mubr.msk.f32.gmra.mrb[18].mxu1 %vm3088_vm9, %v8133_v63 }
 0x2d2   : > { %7039 = vmatprep.mubr.msk.f32.mxu1 %vm3088_vm9, %v8137_v1 }
 0x2d5   : > { %7040 = vmatmul.mubr.msk.f32.gmra.mrb[20].mxu1 %vm3088_vm9, %v8141_v0 }
 0x2d6   : > { %7042 = vmatprep.mubr.msk.f32.mxu1 %vm3088_vm9, %v8215_v14 }
 0x2d9   : > { %7043 = vmatmul.mubr.msk.f32.gmra.mrb[22].mxu1 %vm3088_vm9, %v4846_v32 }
 0x2da   : > { %7047 = vmatprep.mubr.msk.f32.mxu1 %vm3088_vm9, %v8220_v15 }
 0x2dd   : > { %7048 = vmatmul.mubr.msk.f32.vlgmr.msra.gmra.mrb[24].mxu1 %vm3088_vm9, %v8227_v17 }
 0x2de   : > { %7060 = vmatpush3.msra.mxu1 %v6314_v31  ;;  %7050 = vmatprep.mubr.msk.f32.mxu1 %vm3088_vm9, %v8231_v19 }
 0x2df   : > { %7073 = vmatprep.subr.mxu1 %v6332_v33 }
 0x2e1   : > { %7051 = vmatmul.mubr.msk.f32.gmra.mrb[26].mxu1 %vm3088_vm9, %v8235_v18 }
 0x2e2   : > { %7053 = vmatprep.mubr.msk.f32.mxu1 %vm3088_vm9, %v8239_v22 }
 0x2e5   : > { %7054 = vmatmul.mubr.msk.f32.gmra.mrb[28].mxu1 %vm3088_vm9, %v8243_v20 }
 0x2e6   : > { %7056 = vmatprep.mubr.msk.f32.mxu1 %vm3088_vm9, %v8247_v21 }
 0x2e9   : > { %7057 = vmatmul.mubr.msk.f32.gmra.mrb[30].mxu1 %vm3088_vm9, %v8306_v26 }
 0x2ea   : > { %7061 = vmatprep.mubr.msk.f32.mxu1 %vm3088_vm9, %v8111_v54 }
 0x2ed   : > { %7062 = vmatmul.mubr.msk.f32.vlgmr.msra.gmra.mrb[24].mxu1 %vm3088_vm9, %v8119_v57 }
 0x2ee   : > { %7074 = vmatpush3.msra.mxu1 %v6332_v33  ;;  %7064 = vmatprep.mubr.msk.f32.mxu1 %vm3088_vm9, %v8124_v60 }
 0x2ef   : > { %7087 = vmatprep.subr.mxu1 %v6341_v34 }
 0x2f1   : > { %7065 = vmatmul.mubr.msk.f32.gmra.mrb[26].mxu1 %vm3088_vm9, %v8129_v61 }
 0x2f2   : > { %7067 = vmatprep.mubr.msk.f32.mxu1 %vm3088_vm9, %v8133_v63 }
 0x2f5   : > { %7068 = vmatmul.mubr.msk.f32.gmra.mrb[28].mxu1 %vm3088_vm9, %v8137_v1 }
 0x2f6   : > { %7070 = vmatprep.mubr.msk.f32.mxu1 %vm3088_vm9, %v8141_v0 }
 0x2f9   : > { %7071 = vmatmul.mubr.msk.f32.gmra.mrb[30].mxu1 %vm3088_vm9, %v8215_v14 }
 0x2fa   : > { %7075 = vmatprep.mubr.msk.f32.mxu1 %vm3088_vm9, %v8119_v57 }
 0x2fd   : > { %7076 = vmatmul.mubr.msk.f32.vlgmr.msra.gmra.mrb[24].mxu1 %vm3088_vm9, %v8124_v60 }
 0x2fe   : > { %7088 = vmatpush3.msra.mxu1 %v6341_v34  ;;  %7078 = vmatprep.mubr.msk.f32.mxu1 %vm3088_vm9, %v8129_v61 }
 0x301   : > { %7079 = vmatmul.mubr.msk.f32.gmra.mrb[26].mxu1 %vm3088_vm9, %v8133_v63 }
 0x302   : > { %7081 = vmatprep.mubr.msk.f32.mxu1 %vm3088_vm9, %v8137_v1 }
 0x305   : > { %7082 = vmatmul.mubr.msk.f32.gmra.mrb[28].mxu1 %vm3088_vm9, %v8141_v0 }
 0x306   : > { %7084 = vmatprep.mubr.msk.f32.mxu1 %vm3088_vm9, %v8215_v14 }
 0x309   : > { %7085 = vmatmul.mubr.msk.f32.gmra.mrb[30].mxu1 %vm3088_vm9, %v4846_v32 }
 0x30a   : > { %7089 = vmatprep.mubr.msk.f32.mxu1 %vm3088_vm9, %v8227_v17 }
 0x30d   : > { %7090 = vmatmul.mubr.msk.f32.vlgmr.msra.gmra.mrb[24].mxu1 %vm3088_vm9, %v8231_v19 }
 0x30e   : > { %7092 = vmatprep.mubr.msk.f32.mxu1 %vm3088_vm9, %v8235_v18 }
 0x311   : > { %7093 = vmatmul.mubr.msk.f32.gmra.mrb[26].mxu1 %vm3088_vm9, %v8239_v22 }
 0x312   : > { %7095 = vmatprep.mubr.msk.f32.mxu1 %vm3088_vm9, %v8243_v20 }
 0x315   : > { %7096 = vmatmul.mubr.msk.f32.gmra.mrb[28].mxu1 %vm3088_vm9, %v8247_v21 }
 0x316   : > { %7098 = vmatprep.mubr.msk.f32.mxu1 %vm3088_vm9, %v8306_v26 }
 0x319   : > { %7099 = vmatmul.mubr.msk.f32.gmra.mrb[30].mxu1 %vm3088_vm9, %v5494_v35 }
 0x320   : > { %v6923_v37 = vpop.f32.mrb[0].mxu1 }
 0x321   : > { %v3698_v38 = vadd.f32 %v6923_v37, %v8457_v36  ;;  %v3643_v39 = vpop.f32.mrb[1].mxu1 }
 0x322   : > { %v3697_v40 = vadd.f32 %v8457_v36, %v3643_v39 }
 0x323   : > { %v3706_v42 = vsel %vm692_vm2, %v3698_v38, 0.0  ;;  %v3728_v44 = vmul.f32 %v3698_v38, %v3698_v38  ;;  %3758 = vst.msk [vmem:[%s8462_s17 + $0x8] sm:$0xff] %vm692_vm2, %v3698_v38 }
 0x324   : > { %v3705_v41 = vsel %vm692_vm2, %v3697_v40, 0.0  ;;  %v3727_v43 = vmul.f32 %v3697_v40, %v3697_v40  ;;  %3757 = vst.msk [vmem:[%s8462_s17] sm:$0xff] %vm692_vm2, %v3697_v40  ;;  %v6926_v45 = vpop.f32.mrb[2].mxu1 }
 0x325   : > { %v3736_v46 = vsel %vm692_vm2, %v3728_v44, 0.0  ;;  %v3707_v47 = vadd.f32 %v3706_v42, %v3705_v41  ;;  %v3700_v48 = vadd.f32 %v6926_v45, %v8457_v36  ;;  %v3653_v49 = vpop.f32.mrb[3].mxu1 }
 0x326   : > { %v3735_v50 = vsel %vm692_vm2, %v3727_v43, 0.0  ;;  %v3699_v51 = vadd.f32 %v8457_v36, %v3653_v49 }
 0x327   : > { %v3737_v52 = vadd.f32 %v3736_v46, %v3735_v50  ;;  %3760 = vst.msk [vmem:[%s8462_s17 + $0x18] sm:$0xff] %vm692_vm2, %v3700_v48  ;;  %v3730_v53 = vmul.f32 %v3700_v48, %v3700_v48  ;;  %v3710_v60 = vsel %vm692_vm2, %v3700_v48, 0.0 }
 0x328   : > { %v3708_v54 = vsel %vm692_vm2, %v3699_v51, 0.0  ;;  %v3729_v55 = vmul.f32 %v3699_v51, %v3699_v51  ;;  %3759 = vst.msk [vmem:[%s8462_s17 + $0x10] sm:$0xff] %vm692_vm2, %v3699_v51  ;;  %v6929_v56 = vpop.f32.mrb[4].mxu1 }
 0x329   : > { %v3709_v57 = vadd.f32 %v3708_v54, %v3707_v47  ;;  %v3702_v58 = vadd.f32 %v6929_v56, %v8457_v36  ;;  %v3663_v59 = vpop.f32.mrb[5].mxu1  ;;  %v3740_v0 = vsel %vm692_vm2, %v3730_v53, 0.0 }
 0x32a   : > { %v3738_v61 = vsel %vm692_vm2, %v3729_v55, 0.0  ;;  %v3701_v63 = vadd.f32 %v8457_v36, %v3663_v59 }
 0x32b   : > { %v3739_v1 = vadd.f32 %v3738_v61, %v3737_v52  ;;  %3762 = vst.msk [vmem:[%s8462_s17 + $0x28] sm:$0xff] %vm692_vm2, %v3702_v58  ;;  %v3711_v62 = vadd.f32 %v3710_v60, %v3709_v57  ;;  %v3732_v2 = vmul.f32 %v3702_v58, %v3702_v58  ;;  %v3714_v10 = vsel %vm692_vm2, %v3702_v58, 0.0 }
 0x32c   : > { %v3712_v3 = vsel %vm692_vm2, %v3701_v63, 0.0  ;;  %v3731_v4 = vmul.f32 %v3701_v63, %v3701_v63  ;;  %3761 = vst.msk [vmem:[%s8462_s17 + $0x20] sm:$0xff] %vm692_vm2, %v3701_v63  ;;  %v6932_v5 = vpop.f32.mrb[6].mxu1 }
 0x32d   : > { %v3713_v6 = vadd.f32 %v3712_v3, %v3711_v62  ;;  %v3741_v7 = vadd.f32 %v3740_v0, %v3739_v1  ;;  %v3704_v8 = vadd.f32 %v6932_v5, %v8457_v36  ;;  %v3673_v9 = vpop.f32.mrb[7].mxu1  ;;  %v3744_v15 = vsel %vm692_vm2, %v3732_v2, 0.0 }
 0x32e   : > { %v3742_v11 = vsel %vm692_vm2, %v3731_v4, 0.0  ;;  %v3703_v12 = vadd.f32 %v8457_v36, %v3673_v9 }
 0x32f   : > { %v3743_v13 = vadd.f32 %v3742_v11, %v3741_v7  ;;  %3764 = vst.msk [vmem:[%s8462_s17 + $0x38] sm:$0xff] %vm692_vm2, %v3704_v8  ;;  %v3715_v14 = vadd.f32 %v3714_v10, %v3713_v6  ;;  %v3734_v16 = vmul.f32 %v3704_v8, %v3704_v8  ;;  %v3718_v20 = vsel %vm692_vm2, %v3704_v8, 0.0 }
 0x330   : > { %v3716_v17 = vsel %vm692_vm2, %v3703_v12, 0.0  ;;  %v3733_v19 = vmul.f32 %v3703_v12, %v3703_v12  ;;  %3763 = vst.msk [vmem:[%s8462_s17 + $0x30] sm:$0xff] %vm692_vm2, %v3703_v12 }
 0x331   : > { %v3717_v18 = vadd.f32 %v3716_v17, %v3715_v14  ;;  %v3745_v22 = vadd.f32 %v3744_v15, %v3743_v13  ;;  %v3748_v25 = vsel %vm692_vm2, %v3734_v16, 0.0 }
 0x332   : > { %v3746_v21 = vsel %vm692_vm2, %v3733_v19, 0.0 }
 0x333   : > { %v3719_v23 = vadd.f32 %v3718_v20, %v3717_v18  ;;  %v3747_v24 = vadd.f32 %v3746_v21, %v3745_v22 }
 0x335   : > { %v3749_v26 = vadd.f32 %v3748_v25, %v3747_v24  ;;  %v3720_v54 = vrot.slane %v3719_v23, 4 }
 0x337   : > { %v3750_v63 = vrot.slane %v3749_v26, 4  ;;  %v3721_v6 = vadd.f32 %v3720_v54, %v3719_v23 }
 0x339   : > { %v3751_v13 = vadd.f32 %v3750_v63, %v3749_v26  ;;  %v3722_v19 = vrot.slane %v3721_v6, 2 }
 0x33b   : > { %v3752_v21 = vrot.slane %v3751_v13, 2  ;;  %v3723_v25 = vadd.f32 %v3722_v19, %v3721_v6 }
 0x360   : > { %v6979_v27 = vpop.f32.mrb[8].mxu1 }
 0x361   : > { %v4345_v28 = vadd.f32 %v6979_v27, %v8457_v36  ;;  %v4290_v29 = vpop.f32.mrb[9].mxu1 }
 0x362   : > { %v4344_v30 = vadd.f32 %v8457_v36, %v4290_v29  ;;  %v3753_v29 = vadd.f32 %v3752_v21, %v3751_v13 }
 0x363   : > { %v4353_v31 = vsel %vm692_vm2, %v4345_v28, 0.0  ;;  %v4375_v32 = vmul.f32 %v4345_v28, %v4345_v28  ;;  %6262 = vst.msk [vmem:[%s8462_s17 + $0x48] sm:$0xff] %vm692_vm2, %v4345_v28 }
 0x364   : > { %v4352_v33 = vsel %vm692_vm2, %v4344_v30, 0.0  ;;  %v4374_v34 = vmul.f32 %v4344_v30, %v4344_v30  ;;  %6261 = vst.msk [vmem:[%s8462_s17 + $0x40] sm:$0xff] %vm692_vm2, %v4344_v30  ;;  %v6982_v35 = vpop.f32.mrb[10].mxu1 }
 0x365   : > { %v4383_v37 = vsel %vm692_vm2, %v4375_v32, 0.0  ;;  %v4354_v38 = vadd.f32 %v4353_v31, %v4352_v33  ;;  %v4347_v39 = vadd.f32 %v6982_v35, %v8457_v36  ;;  %v4300_v40 = vpop.f32.mrb[11].mxu1  ;;  %v3724_v31 = vrot.slane %v3723_v25, 1 }
 0x366   : > { %v4382_v42 = vsel %vm692_vm2, %v4374_v34, 0.0  ;;  %v4346_v44 = vadd.f32 %v8457_v36, %v4300_v40  ;;  %v3754_v34 = vrot.slane %v3753_v29, 1 }
 0x367   : > { %v4384_v41 = vadd.f32 %v4383_v37, %v4382_v42  ;;  %6264 = vst.msk [vmem:[%s8462_s17 + $0x58] sm:$0xff] %vm692_vm2, %v4347_v39  ;;  %v4377_v43 = vmul.f32 %v4347_v39, %v4347_v39  ;;  %v4357_v51 = vsel %vm692_vm2, %v4347_v39, 0.0 }
 0x368   : > { %v4355_v45 = vsel %vm692_vm2, %v4346_v44, 0.0  ;;  %v4376_v46 = vmul.f32 %v4346_v44, %v4346_v44  ;;  %6263 = vst.msk [vmem:[%s8462_s17 + $0x50] sm:$0xff] %vm692_vm2, %v4346_v44  ;;  %v6985_v47 = vpop.f32.mrb[12].mxu1  ;;  %v3755_v42 = vadd.f32 %v3754_v34, %v3753_v29 }
 0x369   : > { %v4356_v48 = vadd.f32 %v4355_v45, %v4354_v38  ;;  %v4349_v49 = vadd.f32 %v6985_v47, %v8457_v36  ;;  %v4310_v50 = vpop.f32.mrb[13].mxu1  ;;  %v4387_v57 = vsel %vm692_vm2, %v4377_v43, 0.0  ;;  %v3725_v38 = vadd.f32 %v3724_v31, %v3723_v25 }
 0x36a   : > { %v4385_v52 = vsel %vm692_vm2, %v4376_v46, 0.0  ;;  %v4348_v53 = vadd.f32 %v8457_v36, %v4310_v50 }
 0x36b   : > { %v4386_v55 = vadd.f32 %v4385_v52, %v4384_v41  ;;  %6266 = vst.msk [vmem:[%s8462_s17 + $0x68] sm:$0xff] %vm692_vm2, %v4349_v49  ;;  %v4358_v56 = vadd.f32 %v4357_v51, %v4356_v48  ;;  %v4379_v58 = vmul.f32 %v4349_v49, %v4349_v49  ;;  %v4361_v3 = vsel %vm692_vm2, %v4349_v49, 0.0 }
 0x36c   : > { %v4359_v59 = vsel %vm692_vm2, %v4348_v53, 0.0  ;;  %v4378_v60 = vmul.f32 %v4348_v53, %v4348_v53  ;;  %6265 = vst.msk [vmem:[%s8462_s17 + $0x60] sm:$0xff] %vm692_vm2, %v4348_v53  ;;  %v6988_v61 = vpop.f32.mrb[14].mxu1 }
 0x36d   : > { %v4360_v1 = vadd.f32 %v4359_v59, %v4358_v56  ;;  %v4388_v62 = vadd.f32 %v4387_v57, %v4386_v55  ;;  %v4351_v0 = vadd.f32 %v6988_v61, %v8457_v36  ;;  %v4320_v2 = vpop.f32.mrb[15].mxu1  ;;  %v4391_v9 = vsel %vm692_vm2, %v4379_v58, 0.0 }
 0x36e   : > { %v4389_v4 = vsel %vm692_vm2, %v4378_v60, 0.0  ;;  %v4350_v5 = vadd.f32 %v8457_v36, %v4320_v2 }
 0x36f   : > { %v4390_v7 = vadd.f32 %v4389_v4, %v4388_v62  ;;  %6268 = vst.msk [vmem:[%s8462_s17 + $0x78] sm:$0xff] %vm692_vm2, %v4351_v0  ;;  %v4362_v8 = vadd.f32 %v4361_v3, %v4360_v1  ;;  %v4381_v10 = vmul.f32 %v4351_v0, %v4351_v0  ;;  %v4365_v16 = vsel %vm692_vm2, %v4351_v0, 0.0 }
 0x370   : > { %v4363_v11 = vsel %vm692_vm2, %v4350_v5, 0.0  ;;  %v4380_v12 = vmul.f32 %v4350_v5, %v4350_v5  ;;  %6267 = vst.msk [vmem:[%s8462_s17 + $0x70] sm:$0xff] %vm692_vm2, %v4350_v5 }
 0x371   : > { %v4364_v14 = vadd.f32 %v4363_v11, %v4362_v8  ;;  %v4392_v15 = vadd.f32 %v4391_v9, %v4390_v7  ;;  %v4395_v20 = vsel %vm692_vm2, %v4381_v10, 0.0 }
 0x372   : > { %v4393_v17 = vsel %vm692_vm2, %v4380_v12, 0.0 }
 0x373   : > { %v4366_v18 = vadd.f32 %v4365_v16, %v4364_v14  ;;  %v4394_v22 = vadd.f32 %v4393_v17, %v4392_v15 }
 0x375   : > { %v4367_v23 = vrot.slane %v4366_v18, 4  ;;  %v4396_v24 = vadd.f32 %v4395_v20, %v4394_v22 }
 0x377   : > { %v4368_v27 = vadd.f32 %v4367_v23, %v4366_v18  ;;  %v4397_v28 = vrot.slane %v4396_v24, 4 }
 0x379   : > { %v4369_v30 = vrot.slane %v4368_v27, 2  ;;  %v4398_v26 = vadd.f32 %v4397_v28, %v4396_v24 }
 0x37b   : > { %v4370_v32 = vadd.f32 %v4369_v30, %v4368_v27  ;;  %v4399_v33 = vrot.slane %v4398_v26, 2 }
 0x37d   : > { %v4371_v35 = vrot.slane %v4370_v32, 1  ;;  %v4400_v37 = vadd.f32 %v4399_v33, %v4398_v26 }
 0x37f   : > { %v4372_v39 = vadd.f32 %v4371_v35, %v4370_v32  ;;  %v4401_v40 = vrot.slane %v4400_v37, 1 }
 0x381   : > { %v8541_v44 = vadd.f32 %v4372_v39, %v3725_v38  ;;  %v4402_v41 = vadd.f32 %v4401_v40, %v4400_v37 }
 0x383   : > { %v8543_v43 = vadd.f32 %v4402_v41, %v3755_v42 }
 0x3a0   : > { %v7035_v45 = vpop.f32.mrb[16].mxu1 }
 0x3a1   : > { %v4994_v46 = vadd.f32 %v7035_v45, %v8457_v36  ;;  %v4939_v47 = vpop.f32.mrb[17].mxu1 }
 0x3a2   : > { %v4993_v48 = vadd.f32 %v8457_v36, %v4939_v47 }
 0x3a3   : > { %v5002_v49 = vsel %vm692_vm2, %v4994_v46, 0.0  ;;  %v5024_v50 = vmul.f32 %v4994_v46, %v4994_v46  ;;  %6307 = vst.msk [vmem:[%s8462_s17 + $0x88] sm:$0xff] %vm692_vm2, %v4994_v46 }
 0x3a4   : > { %v5001_v51 = vsel %vm692_vm2, %v4993_v48, 0.0  ;;  %v5023_v52 = vmul.f32 %v4993_v48, %v4993_v48  ;;  %6306 = vst.msk [vmem:[%s8462_s17 + $0x80] sm:$0xff] %vm692_vm2, %v4993_v48  ;;  %v7038_v53 = vpop.f32.mrb[18].mxu1 }
 0x3a5   : > { %v5032_v54 = vsel %vm692_vm2, %v5024_v50, 0.0  ;;  %v5003_v55 = vadd.f32 %v5002_v49, %v5001_v51  ;;  %v4996_v56 = vadd.f32 %v7038_v53, %v8457_v36  ;;  %v4949_v57 = vpop.f32.mrb[19].mxu1 }
 0x3a6   : > { %v5031_v58 = vsel %vm692_vm2, %v5023_v52, 0.0  ;;  %v4995_v59 = vadd.f32 %v8457_v36, %v4949_v57 }
 0x3a7   : > { %v5033_v60 = vadd.f32 %v5032_v54, %v5031_v58  ;;  %6309 = vst.msk [vmem:[%s8462_s17 + $0x98] sm:$0xff] %vm692_vm2, %v4996_v56  ;;  %v5026_v61 = vmul.f32 %v4996_v56, %v4996_v56  ;;  %v5006_v4 = vsel %vm692_vm2, %v4996_v56, 0.0 }
 0x3a8   : > { %v5004_v63 = vsel %vm692_vm2, %v4995_v59, 0.0  ;;  %v5025_v1 = vmul.f32 %v4995_v59, %v4995_v59  ;;  %6308 = vst.msk [vmem:[%s8462_s17 + $0x90] sm:$0xff] %vm692_vm2, %v4995_v59  ;;  %v7041_v62 = vpop.f32.mrb[20].mxu1 }
 0x3a9   : > { %v5005_v0 = vadd.f32 %v5004_v63, %v5003_v55  ;;  %v4998_v2 = vadd.f32 %v7041_v62, %v8457_v36  ;;  %v4959_v3 = vpop.f32.mrb[21].mxu1  ;;  %v5036_v9 = vsel %vm692_vm2, %v5026_v61, 0.0 }
 0x3aa   : > { %v5034_v5 = vsel %vm692_vm2, %v5025_v1, 0.0  ;;  %v4997_v6 = vadd.f32 %v8457_v36, %v4959_v3 }
 0x3ab   : > { %v5035_v7 = vadd.f32 %v5034_v5, %v5033_v60  ;;  %6311 = vst.msk [vmem:[%s8462_s17 + $0xa8] sm:$0xff] %vm692_vm2, %v4998_v2  ;;  %v5007_v8 = vadd.f32 %v5006_v4, %v5005_v0  ;;  %v5028_v10 = vmul.f32 %v4998_v2, %v4998_v2  ;;  %v5010_v19 = vsel %vm692_vm2, %v4998_v2, 0.0 }
 0x3ac   : > { %v5008_v11 = vsel %vm692_vm2, %v4997_v6, 0.0  ;;  %v5027_v12 = vmul.f32 %v4997_v6, %v4997_v6  ;;  %6310 = vst.msk [vmem:[%s8462_s17 + $0xa0] sm:$0xff] %vm692_vm2, %v4997_v6  ;;  %v7044_v13 = vpop.f32.mrb[22].mxu1 }
 0x3ad   : > { %v5009_v14 = vadd.f32 %v5008_v11, %v5007_v8  ;;  %v5037_v15 = vadd.f32 %v5036_v9, %v5035_v7  ;;  %v5000_v16 = vadd.f32 %v7044_v13, %v8457_v36  ;;  %v4969_v17 = vpop.f32.mrb[23].mxu1  ;;  %v5040_v23 = vsel %vm692_vm2, %v5028_v10, 0.0 }
 0x3ae   : > { %v5038_v18 = vsel %vm692_vm2, %v5027_v12, 0.0  ;;  %v4999_v22 = vadd.f32 %v8457_v36, %v4969_v17 }
 0x3af   : > { %v5039_v20 = vadd.f32 %v5038_v18, %v5037_v15  ;;  %6313 = vst.msk [vmem:[%s8462_s17 + $0xb8] sm:$0xff] %vm692_vm2, %v5000_v16  ;;  %v5011_v21 = vadd.f32 %v5010_v19, %v5009_v14  ;;  %v5030_v24 = vmul.f32 %v5000_v16, %v5000_v16  ;;  %v5014_v30 = vsel %vm692_vm2, %v5000_v16, 0.0 }
 0x3b0   : > { %v5012_v25 = vsel %vm692_vm2, %v4999_v22, 0.0  ;;  %v5029_v27 = vmul.f32 %v4999_v22, %v4999_v22  ;;  %6312 = vst.msk [vmem:[%s8462_s17 + $0xb0] sm:$0xff] %vm692_vm2, %v4999_v22 }
 0x3b1   : > { %v5013_v28 = vadd.f32 %v5012_v25, %v5011_v21  ;;  %v5041_v29 = vadd.f32 %v5040_v23, %v5039_v20  ;;  %v5044_v33 = vsel %vm692_vm2, %v5030_v24, 0.0 }
 0x3b2   : > { %v5042_v26 = vsel %vm692_vm2, %v5029_v27, 0.0 }
 0x3b3   : > { %v5015_v31 = vadd.f32 %v5014_v30, %v5013_v28  ;;  %v5043_v32 = vadd.f32 %v5042_v26, %v5041_v29 }
 0x3b5   : > { %v5016_v34 = vrot.slane %v5015_v31, 4  ;;  %v5045_v35 = vadd.f32 %v5044_v33, %v5043_v32 }
 0x3b7   : > { %v5017_v37 = vadd.f32 %v5016_v34, %v5015_v31  ;;  %v5046_v38 = vrot.slane %v5045_v35, 4 }
 0x3b9   : > { %v5018_v39 = vrot.slane %v5017_v37, 2  ;;  %v5047_v40 = vadd.f32 %v5046_v38, %v5045_v35 }
 0x3bb   : > { %v5019_v42 = vadd.f32 %v5018_v39, %v5017_v37  ;;  %v5048_v41 = vrot.slane %v5047_v40, 2 }
 0x3bd   : > { %v5020_v45 = vrot.slane %v5019_v42, 1  ;;  %v5049_v46 = vadd.f32 %v5048_v41, %v5047_v40 }
 0x3bf   : > { %v5021_v47 = vadd.f32 %v5020_v45, %v5019_v42  ;;  %v5050_v48 = vrot.slane %v5049_v46, 1 }
 0x3c1   : > { %v8586_v49 = vadd.f32 %v5021_v47, %v8541_v44  ;;  %v5051_v50 = vadd.f32 %v5050_v48, %v5049_v46 }
 0x3c3   : > { %v8589_v51 = vadd.f32 %v5051_v50, %v8543_v43 }
 0x3e0   : > { %v7091_v52 = vpop.f32.mrb[24].mxu1 }
 0x3e1   : > { %v5642_v53 = vadd.f32 %v7091_v52, %v8457_v36  ;;  %v5587_v54 = vpop.f32.mrb[25].mxu1 }
 0x3e2   : > { %v5641_v55 = vadd.f32 %v8457_v36, %v5587_v54 }
 0x3e3   : > { %v5650_v56 = vsel %vm692_vm2, %v5642_v53, 0.0  ;;  %v5672_v57 = vmul.f32 %v5642_v53, %v5642_v53  ;;  %6352 = vst.msk [vmem:[%s8462_s17 + $0xc8] sm:$0xff] %vm692_vm2, %v5642_v53 }
 0x3e4   : > { %v5649_v44 = vsel %vm692_vm2, %v5641_v55, 0.0  ;;  %v5671_v58 = vmul.f32 %v5641_v55, %v5641_v55  ;;  %6351 = vst.msk [vmem:[%s8462_s17 + $0xc0] sm:$0xff] %vm692_vm2, %v5641_v55  ;;  %v7094_v43 = vpop.f32.mrb[26].mxu1 }
 0x3e5   : > { %v5680_v59 = vsel %vm692_vm2, %v5672_v57, 0.0  ;;  %v5651_v60 = vadd.f32 %v5650_v56, %v5649_v44  ;;  %v5644_v61 = vadd.f32 %v7094_v43, %v8457_v36  ;;  %v5597_v63 = vpop.f32.mrb[27].mxu1  ;;  %v5818_v44 = vld [vmem:[%s8462_s17 + $0x8] sm:$0xff] (%p7436_p5)  ;;  %v5824_v43 = vld [vmem:[%s8462_s17 + $0x20] sm:$0xff] (%p7436_p5) }
 0x3e6   : > { %v5679_v1 = vsel %vm692_vm2, %v5671_v58, 0.0  ;;  %v5643_v62 = vadd.f32 %v8457_v36, %v5597_v63  ;;  %v5820_v58 = vld [vmem:[%s8462_s17 + $0x10] sm:$0xff] (%p7436_p5)  ;;  %5819 = vst [vmem:[%s8647_s7 + $0x8] sm:$0xff] (%p7436_p5), %v5818_v44  ;;  %5825 = vst [vmem:[%s8647_s7 + $0x20] sm:$0xff] (%p7436_p5), %v5824_v43  ;;  %v5832_v63 = vld [vmem:[%s8462_s17 + $0x40] sm:$0xff] (%p7436_p5) }
 0x3e7   : > { %v5681_v0 = vadd.f32 %v5680_v59, %v5679_v1  ;;  %6354 = vst.msk [vmem:[%s8462_s17 + $0xd8] sm:$0xff] %vm692_vm2, %v5644_v61  ;;  %v5674_v2 = vmul.f32 %v5644_v61, %v5644_v61  ;;  %v5654_v9 = vsel %vm692_vm2, %v5644_v61, 0.0  ;;  %v5826_v59 = vld [vmem:[%s8462_s17 + $0x28] sm:$0xff] (%p7436_p5)  ;;  %5821 = vst [vmem:[%s8647_s7 + $0x10] sm:$0xff] (%p7436_p5), %v5820_v58  ;;  %v5830_v61 = vld [vmem:[%s8462_s17 + $0x38] sm:$0xff] (%p7436_p5) }
 0x3e8   : > { %v5652_v3 = vsel %vm692_vm2, %v5643_v62, 0.0  ;;  %v5673_v4 = vmul.f32 %v5643_v62, %v5643_v62  ;;  %6353 = vst.msk [vmem:[%s8462_s17 + $0xd0] sm:$0xff] %vm692_vm2, %v5643_v62  ;;  %v7097_v5 = vpop.f32.mrb[28].mxu1  ;;  %5827 = vst [vmem:[%s8647_s7 + $0x28] sm:$0xff] (%p7436_p5), %v5826_v59  ;;  %v5834_v1 = vld [vmem:[%s8462_s17 + $0x48] sm:$0xff] (%p7436_p5)  ;;  %v5836_v62 = vld [vmem:[%s8462_s17 + $0x50] sm:$0xff] (%p7436_p5) }
 0x3e9   : > { %v5653_v6 = vadd.f32 %v5652_v3, %v5651_v60  ;;  %v5646_v7 = vadd.f32 %v7097_v5, %v8457_v36  ;;  %v5607_v8 = vpop.f32.mrb[29].mxu1  ;;  %v5684_v14 = vsel %vm692_vm2, %v5674_v2, 0.0  ;;  %v5828_v60 = vld [vmem:[%s8462_s17 + $0x30] sm:$0xff] (%p7436_p5)  ;;  %5831 = vst [vmem:[%s8647_s7 + $0x38] sm:$0xff] (%p7436_p5), %v5830_v61  ;;  %5833 = vst [vmem:[%s8647_s7 + $0x80] sm:$0xff] (%p7436_p5), %v5832_v63  ;;  %v5840_v2 = vld [vmem:[%s8462_s17 + $0x60] sm:$0xff] (%p7436_p5) }
 0x3ea   : > { %v5682_v10 = vsel %vm692_vm2, %v5673_v4, 0.0  ;;  %v5645_v11 = vadd.f32 %v8457_v36, %v5607_v8  ;;  %5829 = vst [vmem:[%s8647_s7 + $0x30] sm:$0xff] (%p7436_p5), %v5828_v60  ;;  %5835 = vst [vmem:[%s8647_s7 + $0x88] sm:$0xff] (%p7436_p5), %v5834_v1  ;;  %v5842_v3 = vld [vmem:[%s8462_s17 + $0x68] sm:$0xff] (%p7436_p5)  ;;  %v5844_v4 = vld [vmem:[%s8462_s17 + $0x70] sm:$0xff] (%p7436_p5) }
 0x3eb   : > { %v5683_v12 = vadd.f32 %v5682_v10, %v5681_v0  ;;  %6356 = vst.msk [vmem:[%s8462_s17 + $0xe8] sm:$0xff] %vm692_vm2, %v5646_v7  ;;  %v5655_v13 = vadd.f32 %v5654_v9, %v5653_v6  ;;  %v5676_v15 = vmul.f32 %v5646_v7, %v5646_v7  ;;  %v5658_v23 = vsel %vm692_vm2, %v5646_v7, 0.0  ;;  %v5838_v0 = vld [vmem:[%s8462_s17 + $0x58] sm:$0xff] (%p7436_p5)  ;;  %5837 = vst [vmem:[%s8647_s7 + $0x90] sm:$0xff] (%p7436_p5), %v5836_v62  ;;  %v5848_v6 = vld [vmem:[%s8462_s17 + $0x80] sm:$0xff] (%p7436_p5) }
 0x3ec   : > { %v5656_v16 = vsel %vm692_vm2, %v5645_v11, 0.0  ;;  %v5675_v17 = vmul.f32 %v5645_v11, %v5645_v11  ;;  %6355 = vst.msk [vmem:[%s8462_s17 + $0xe0] sm:$0xff] %vm692_vm2, %v5645_v11  ;;  %v7100_v19 = vpop.f32.mrb[30].mxu1  ;;  %5839 = vst [vmem:[%s8647_s7 + $0x98] sm:$0xff] (%p7436_p5), %v5838_v0  ;;  %v5846_v5 = vld [vmem:[%s8462_s17 + $0x78] sm:$0xff] (%p7436_p5)  ;;  %v5850_v7 = vld [vmem:[%s8462_s17 + $0x88] sm:$0xff] (%p7436_p5) }
 0x3ed   : > { %v5657_v18 = vadd.f32 %v5656_v16, %v5655_v13  ;;  %v5685_v22 = vadd.f32 %v5684_v14, %v5683_v12  ;;  %v5648_v20 = vadd.f32 %v7100_v19, %v8457_v36  ;;  %v5617_v21 = vpop.f32.mrb[31].mxu1  ;;  %v5688_v29 = vsel %vm692_vm2, %v5676_v15, 0.0  ;;  %5841 = vst [vmem:[%s8647_s7 + $0xa0] sm:$0xff] (%p7436_p5), %v5840_v2  ;;  %5843 = vst [vmem:[%s8647_s7 + $0xa8] sm:$0xff] (%p7436_p5), %v5842_v3  ;;  %v5852_v8 = vld [vmem:[%s8462_s17 + $0x90] sm:$0xff] (%p7436_p5)  ;;  %v5854_v9 = vld [vmem:[%s8462_s17 + $0x98] sm:$0xff] (%p7436_p5) }
 0x3ee   : > { %v5686_v24 = vsel %vm692_vm2, %v5675_v17, 0.0  ;;  %v5647_v25 = vadd.f32 %v8457_v36, %v5617_v21  ;;  %5845 = vst [vmem:[%s8647_s7 + $0xb0] sm:$0xff] (%p7436_p5), %v5844_v4  ;;  %5847 = vst [vmem:[%s8647_s7 + $0xb8] sm:$0xff] (%p7436_p5), %v5846_v5  ;;  %v5856_v10 = vld [vmem:[%s8462_s17 + $0xa0] sm:$0xff] (%p7436_p5)  ;;  %v5858_v11 = vld [vmem:[%s8462_s17 + $0xa8] sm:$0xff] (%p7436_p5) }
 0x3ef   : > { %v5687_v27 = vadd.f32 %v5686_v24, %v5685_v22  ;;  %6358 = vst.msk [vmem:[%s8462_s17 + $0xf8] sm:$0xff] %vm692_vm2, %v5648_v20  ;;  %v5659_v28 = vadd.f32 %v5658_v23, %v5657_v18  ;;  %v5678_v30 = vmul.f32 %v5648_v20, %v5648_v20  ;;  %v5662_v34 = vsel %vm692_vm2, %v5648_v20, 0.0  ;;  %5849 = vst [vmem:[%s8647_s7 + $0x100] sm:$0xff] (%p7436_p5), %v5848_v6  ;;  %v5860_v12 = vld [vmem:[%s8462_s17 + $0xb0] sm:$0xff] (%p7436_p5)  ;;  %v5862_v13 = vld [vmem:[%s8462_s17 + $0xb8] sm:$0xff] (%p7436_p5) }
 0x3f0   : > { %v5660_v26 = vsel %vm692_vm2, %v5647_v25, 0.0  ;;  %v5677_v31 = vmul.f32 %v5647_v25, %v5647_v25  ;;  %6357 = vst.msk [vmem:[%s8462_s17 + $0xf0] sm:$0xff] %vm692_vm2, %v5647_v25  ;;  %5851 = vst [vmem:[%s8647_s7 + $0x108] sm:$0xff] (%p7436_p5), %v5850_v7  ;;  %v5864_v14 = vld [vmem:[%s8462_s17 + $0xc0] sm:$0xff] (%p7436_p5)  ;;  %v5866_v15 = vld [vmem:[%s8462_s17 + $0xc8] sm:$0xff] (%p7436_p5) }
 0x3f1   : > { %v5661_v32 = vadd.f32 %v5660_v26, %v5659_v28  ;;  %v5689_v33 = vadd.f32 %v5688_v29, %v5687_v27  ;;  %v5692_v38 = vsel %vm692_vm2, %v5678_v30, 0.0  ;;  %5853 = vst [vmem:[%s8647_s7 + $0x110] sm:$0xff] (%p7436_p5), %v5852_v8  ;;  %5855 = vst [vmem:[%s8647_s7 + $0x118] sm:$0xff] (%p7436_p5), %v5854_v9  ;;  %v5868_v16 = vld [vmem:[%s8462_s17 + $0xd0] sm:$0xff] (%p7436_p5)  ;;  %v5870_v17 = vld [vmem:[%s8462_s17 + $0xd8] sm:$0xff] (%p7436_p5) }
 0x3f2   : > { %v5690_v36 = vsel %vm692_vm2, %v5677_v31, 0.0  ;;  %5857 = vst [vmem:[%s8647_s7 + $0x120] sm:$0xff] (%p7436_p5), %v5856_v10  ;;  %5859 = vst [vmem:[%s8647_s7 + $0x128] sm:$0xff] (%p7436_p5), %v5858_v11  ;;  %v5874_v18 = vld [vmem:[%s8462_s17 + $0xe8] sm:$0xff] (%p7436_p5) }
 0x3f3   : > { %v5663_v35 = vadd.f32 %v5662_v34, %v5661_v32  ;;  %v5691_v37 = vadd.f32 %v5690_v36, %v5689_v33  ;;  %5861 = vst [vmem:[%s8647_s7 + $0x130] sm:$0xff] (%p7436_p5), %v5860_v12  ;;  %5863 = vst [vmem:[%s8647_s7 + $0x138] sm:$0xff] (%p7436_p5), %v5862_v13  ;;  %v5872_v19 = vld [vmem:[%s8462_s17 + $0xe0] sm:$0xff] (%p7436_p5) }
 0x3f4   : > { %5865 = vst [vmem:[%s8647_s7 + $0x180] sm:$0xff] (%p7436_p5), %v5864_v14  ;;  %5867 = vst [vmem:[%s8647_s7 + $0x188] sm:$0xff] (%p7436_p5), %v5866_v15 }
 0x3f5   : > { %v5664_v39 = vrot.slane %v5663_v35, 4  ;;  %v5693_v40 = vadd.f32 %v5692_v38, %v5691_v37  ;;  %5869 = vst [vmem:[%s8647_s7 + $0x190] sm:$0xff] (%p7436_p5), %v5868_v16  ;;  %5871 = vst [vmem:[%s8647_s7 + $0x198] sm:$0xff] (%p7436_p5), %v5870_v17 }
 0x3f6   : > { %5873 = vst [vmem:[%s8647_s7 + $0x1a0] sm:$0xff] (%p7436_p5), %v5872_v19  ;;  %5875 = vst [vmem:[%s8647_s7 + $0x1a8] sm:$0xff] (%p7436_p5), %v5874_v18  ;;  %v5878_v20 = vld [vmem:[%s8462_s17 + $0xf8] sm:$0xff] (%p7436_p5) }
 0x3f7   : > { %v5665_v42 = vadd.f32 %v5664_v39, %v5663_v35  ;;  %v5694_v41 = vrot.slane %v5693_v40, 4  ;;  %v5876_v22 = vld [vmem:[%s8462_s17 + $0xf0] sm:$0xff] (%p7436_p5)  ;;  %5879 = vst [vmem:[%s8647_s7 + $0x1b8] sm:$0xff] (%p7436_p5), %v5878_v20 }
 0x3f8   : > { %5877 = vst [vmem:[%s8647_s7 + $0x1b0] sm:$0xff] (%p7436_p5), %v5876_v22 }
 0x3f9   : > { %v5666_v45 = vrot.slane %v5665_v42, 2  ;;  %v5695_v46 = vadd.f32 %v5694_v41, %v5693_v40 }
 0x3fb   : > { %v5667_v47 = vadd.f32 %v5666_v45, %v5665_v42  ;;  %v5696_v48 = vrot.slane %v5695_v46, 2 }
 0x3fd   : > { %v5668_v50 = vrot.slane %v5667_v47, 1  ;;  %v5697_v52 = vadd.f32 %v5696_v48, %v5695_v46 }
 0x3ff   : > { %v5669_v53 = vadd.f32 %v5668_v50, %v5667_v47  ;;  %v5698_v54 = vrot.slane %v5697_v52, 1  ;;  %5723 = sbr.rel (!%p7436_p5) target bundleno = 1030 (0x406), region = 82 }
 0x401   : > { %v5670_v55 = vadd.f32 %v5669_v53, %v8586_v49  ;;  %v5699_v56 = vadd.f32 %v5698_v54, %v5697_v52  ;;  %v5816_v49 = vld [vmem:[%s8462_s17] sm:$0xff] (%p7436_p5) }
 0x402   : > { %5817 = vst [vmem:[%s8647_s7] sm:$0xff] (%p7436_p5), %v5816_v49 }
 0x403   : > { %v5700_v57 = vadd.f32 %v5699_v56, %v8589_v51  ;;  %5711 = vst.msk [vmem:[%s575_s23] sm:$0x1] %vm5710_vm1, %v5670_v55  ;;  %v5822_v51 = vld [vmem:[%s8462_s17 + $0x18] sm:$0xff] (%p7436_p5) }
 0x404   : > { %5823 = vst [vmem:[%s8647_s7 + $0x18] sm:$0xff] (%p7436_p5), %v5822_v51 }
 0x405   : > { %5712 = vst.msk [vmem:[%s575_s23 + $0x1] sm:$0x1] %vm5710_vm1, %v5700_v57 }
 0x406 PF: > { %p14_p11 = scmp.ge.s32.totalorder %s7424_s25, 4   ;;  %s8728_s21 = smov %s7363_s22 }
 0x407   : > { %s8729_s22 = smov %s7434_s28  ;;  %s8730_s23 = smov %s7424_s25 }
 0x408   :  { %16 = sbr.rel (!%p14_p11) target bundleno = 2 (0x2), region = 201 }

</bundles_post_ra>
